<compile_context>
chip_gen: v7x
topology: tpu7x:2x2x1
jax: 0.10.0
libtpu: 0.0.40
codegen_flags: <defaults>
</compile_context>

<pallas_src>
import math

import jax
import jax.numpy as jnp
from jax import lax
from jax.experimental import pallas as pl
from jax.experimental.pallas import tpu as pltpu


_VMEM_LIMIT = 32 * 1024 * 1024  # conservative: safe on v7x (64 MiB physical) and v5e/v6e.


# ----------------------------------------------------------------------------
# Pallas kernel: fused matmul + bias (+ optional ReLU).
#   bf16 operands, f32 accumulation, tiled/parallel M grid, lane-dense N.
# ----------------------------------------------------------------------------
def matmul_bias_act(a, b, bias, *, relu=False, out_dtype=jnp.float32, bm=256):
    M, K = a.shape
    K2, N = b.shape
    assert K == K2
    bm = min(bm, M)
    grid = (pl.cdiv(M, bm),)
    bias2 = bias.reshape(1, N).astype(jnp.float32)

    def kernel(a_ref, b_ref, bias_ref, o_ref):
        acc = jnp.dot(a_ref[...], b_ref[...], preferred_element_type=jnp.float32)
        acc = acc + bias_ref[...]
        if relu:
            acc = jnp.maximum(acc, 0.0)
        o_ref[...] = acc.astype(o_ref.dtype)

    return pl.pallas_call(
        kernel,
        out_shape=jax.ShapeDtypeStruct((M, N), out_dtype),
        grid=grid,
        in_specs=[
            pl.BlockSpec((bm, K), lambda i: (i, 0)),
            pl.BlockSpec((K, N), lambda i: (0, 0)),
            pl.BlockSpec((1, N), lambda i: (0, 0)),
        ],
        out_specs=pl.BlockSpec((bm, N), lambda i: (i, 0)),
        compiler_params=pltpu.CompilerParams(
            dimension_semantics=("parallel",),
            vmem_limit_bytes=_VMEM_LIMIT,
        ),
    )(a, b, bias2)


# ----------------------------------------------------------------------------
# Conv3d + bias + ReLU, channels-last.  Output channels padded to 128 multiple.
# ----------------------------------------------------------------------------
def conv3d_relu(x_cl, w, b, stride, padding, compute_dtype=jnp.bfloat16):
    """x_cl: (B, T, H, W, Cin) bf16;  w: (Cout, Cin, kT, kH, kW) (PyTorch layout).

    Returns (B, To, Ho, Wo, Np) with Np = 128*ceil(Cout/128); padded channels are 0.
    """
    Cout, Cin, kT, kH, kW = w.shape
    sT, sH, sW = stride
    pT, pH, pW = padding
    B, T, H, W, _ = x_cl.shape
    xp = jnp.pad(x_cl, ((0, 0), (pT, pT), (pH, pH), (pW, pW), (0, 0)))
    Tp, Hp, Wp = T + 2 * pT, H + 2 * pH, W + 2 * pW
    To = (Tp - kT) // sT + 1
    Ho = (Hp - kH) // sH + 1
    Wo = (Wp - kW) // sW + 1

    # im2col in bf16 (XLA glue feeding the Pallas matmul).
    # TODO(synk): fuse this patch extraction into the matmul kernel itself.
    cols = []
    for dt in range(kT):
        for dh in range(kH):
            for dw in range(kW):
                cols.append(
                    xp[:, dt:dt + (To - 1) * sT + 1:sT,
                          dh:dh + (Ho - 1) * sH + 1:sH,
                          dw:dw + (Wo - 1) * sW + 1:sW, :])
    K = kT * kH * kW * Cin
    patches = jnp.concatenate(cols, axis=-1).reshape(B * To * Ho * Wo, K)
    patches = patches.astype(compute_dtype)

    # (Cout, Cin, kT, kH, kW) -> (K, Cout), N padded to a lane-dense 128 multiple.
    Np = ((Cout + 127) // 128) * 128
    w_mat = jnp.transpose(w, (2, 3, 4, 1, 0)).reshape(K, Cout)
    w_mat = jnp.pad(w_mat, ((0, 0), (0, Np - Cout))).astype(compute_dtype)
    b_pad = jnp.pad(b, (0, Np - Cout)).astype(jnp.float32)

    out = matmul_bias_act(patches, w_mat, b_pad, relu=True, out_dtype=compute_dtype)
    return out.reshape(B, To, Ho, Wo, Np)


# ----------------------------------------------------------------------------
# Pallas kernel: MaxPool3d((1,2,2),(1,2,2)) on channels-last activations.
# The H-pair is exposed as a free leading-dim reshape and reduced in-kernel;
# the W parity split is two cheap XLA strided slices in the wrapper.
# ----------------------------------------------------------------------------
def maxpool_hw2(x_cl, bm=128):
    B, T, H, W, C = x_cl.shape
    Hh, Wh = H // 2, W // 2
    xe = x_cl[:, :, :Hh * 2, 0:Wh * 2:2, :].reshape(B * T * Hh, 2, Wh, C)
    xo = x_cl[:, :, :Hh * 2, 1:Wh * 2:2, :].reshape(B * T * Hh, 2, Wh, C)
    M = B * T * Hh
    bm = min(bm, M)

    def kernel(even_ref, odd_ref, out_ref):
        e = jnp.max(even_ref[...], axis=1)      # max over the H pair (W-even cols)
        o = jnp.max(odd_ref[...], axis=1)       # max over the H pair (W-odd cols)
        out_ref[...] = jnp.maximum(e, o)        # max over the W pair

    out = pl.pallas_call(
        kernel,
        out_shape=jax.ShapeDtypeStruct((M, Wh, C), x_cl.dtype),
        grid=(pl.cdiv(M, bm),),
        in_specs=[
            pl.BlockSpec((bm, 2, Wh, C), lambda i: (i, 0, 0, 0)),
            pl.BlockSpec((bm, 2, Wh, C), lambda i: (i, 0, 0, 0)),
        ],
        out_specs=pl.BlockSpec((bm, Wh, C), lambda i: (i, 0, 0)),
        compiler_params=pltpu.CompilerParams(
            dimension_semantics=("parallel",),
            vmem_limit_bytes=_VMEM_LIMIT,
        ),
    )(xe, xo)
    return out.reshape(B, T, Hh, Wh, C)


# ----------------------------------------------------------------------------
# Pallas kernel: both GRU directions of one layer in a single invocation.
# grid=(1,); lax.fori_loop over time inside the kernel; hidden state carried
# as the loop value; one batched dot per step covers both directions.
# ----------------------------------------------------------------------------
def gru_recurrence(gix, whh, bhn):
    """gix: (T, 2, B, 3H) f32 -- x @ W_ih^T + b_ih (+ b_hh for r,z), direction 1
    already time-reversed.  whh: (2, H, 3H) f32.  bhn: (2, 1, H) f32 (b_hn only).
    Returns (T, 2, B, H) f32 (direction 1 still in reversed time order)."""
    T, ndir, B, H3 = gix.shape
    Hd = whh.shape[1]

    def kernel(gix_ref, whh_ref, bhn_ref, o_ref):
        whh_v = whh_ref[...]
        bhn_v = jnp.broadcast_to(bhn_ref[...], (ndir, B, Hd))  # hoisted broadcast

        def step(t, h):
            gx = gix_ref[t]                                    # (2, B, 3H)
            # einsum('dbh,dhg->dbg'): one batched MXU matmul for both directions.
            gh = lax.dot_general(
                h, whh_v,
                dimension_numbers=(((2,), (1,)), ((0,), (0,))),
                preferred_element_type=jnp.float32)
            r = jax.nn.sigmoid(gx[..., :Hd] + gh[..., :Hd])
            z = jax.nn.sigmoid(gx[..., Hd:2 * Hd] + gh[..., Hd:2 * Hd])
            n = jnp.tanh(gx[..., 2 * Hd:] + r * (gh[..., 2 * Hd:] + bhn_v))
            h_new = (1.0 - z) * n + z * h
            o_ref[t] = h_new.astype(o_ref.dtype)
            return h_new

        lax.fori_loop(0, T, step, jnp.zeros((ndir, B, Hd), jnp.float32))

    return pl.pallas_call(
        kernel,
        out_shape=jax.ShapeDtypeStruct((T, ndir, B, Hd), jnp.float32),
        grid=(1,),
        in_specs=[
            pl.BlockSpec((T, ndir, B, H3), lambda i: (0, 0, 0, 0)),
            pl.BlockSpec((ndir, Hd, H3), lambda i: (0, 0, 0)),
            pl.BlockSpec((ndir, 1, Hd), lambda i: (0, 0, 0)),
        ],
        out_specs=pl.BlockSpec((T, ndir, B, Hd), lambda i: (0, 0, 0, 0)),
        compiler_params=pltpu.CompilerParams(
            dimension_semantics=("arbitrary",),
            vmem_limit_bytes=_VMEM_LIMIT,
        ),
    )(gix, whh, bhn)


def bidirectional_gru(x_tbd, p, compute_dtype=jnp.bfloat16):
    """x_tbd: (T, B, D) -> (T, B, 2*hidden).  Matches nn.GRU(bidirectional=True)."""
    T, B, D = x_tbd.shape
    Hd = p["whh_f"].shape[1]
    H3 = 3 * Hd

    def fold_bias(bih, bhh):
        # b_hh for the r,z gates folds into the precomputed input gates; the n-gate
        # b_hn must stay inside r * (W_hn h + b_hn).
        return (bih + jnp.concatenate([bhh[:2 * Hd], jnp.zeros((Hd,), bhh.dtype)])
                ).astype(jnp.float32)

    # One matmul feeds both directions: [W_ih_f^T | W_ih_b^T] -> (D, 6H).
    w_cat = jnp.concatenate([p["wih_f"].T, p["wih_b"].T], axis=1).astype(compute_dtype)
    b_cat = jnp.concatenate([fold_bias(p["bih_f"], p["bhh_f"]),
                             fold_bias(p["bih_b"], p["bhh_b"])])
    gix = matmul_bias_act(x_tbd.reshape(T * B, D).astype(compute_dtype),
                          w_cat, b_cat, relu=False, out_dtype=jnp.float32)
    gix = gix.reshape(T, B, 2 * H3)
    gix_f = gix[..., :H3]
    gix_b = gix[..., H3:][::-1]                      # backward direction on reversed time
    gix_stack = jnp.stack([gix_f, gix_b], axis=1)    # (T, 2, B, 3H)

    whh = jnp.stack([p["whh_f"].T, p["whh_b"].T], axis=0).astype(jnp.float32)
    bhn = jnp.stack([p["bhh_f"][2 * Hd:], p["bhh_b"][2 * Hd:]], axis=0)
    bhn = bhn.reshape(2, 1, Hd).astype(jnp.float32)

    h = gru_recurrence(gix_stack, whh, bhn)          # (T, 2, B, Hd)
    return jnp.concatenate([h[:, 0], h[:, 1][::-1]], axis=-1)


# ----------------------------------------------------------------------------
# Parameter initialization (deterministic, mirrors the module's shapes).
# ----------------------------------------------------------------------------
def _kaiming_normal(key, shape):
    fan_in = 1
    for d in shape[1:]:
        fan_in *= d
    std = math.sqrt(2.0 / fan_in)
    return std * jax.random.normal(key, shape, dtype=jnp.float32)


def init_gru_params(key, input_size, hidden):
    ks = jax.random.split(key, 6)
    stddev = math.sqrt(2.0 / (96 * 3 * 6 + 256))
    lim = math.sqrt(3.0) * stddev

    def u(k, shape, bound):
        return jax.random.uniform(k, shape, jnp.float32, -bound, bound)

    hb = 1.0 / math.sqrt(hidden)
    return {
        "wih_f": u(ks[0], (3 * hidden, input_size), lim),
        "whh_f": u(ks[1], (3 * hidden, hidden), hb),   # stand-in for orthogonal init
        "bih_f": jnp.zeros((3 * hidden,), jnp.float32),
        "bhh_f": u(ks[2], (3 * hidden,), hb),
        "wih_b": u(ks[3], (3 * hidden, input_size), lim),
        "whh_b": u(ks[4], (3 * hidden, hidden), hb),
        "bih_b": jnp.zeros((3 * hidden,), jnp.float32),
        "bhh_b": u(ks[5], (3 * hidden,), hb),
    }


def init_lipnet_params(key, gru1_input_size, hidden=256):
    ks = jax.random.split(key, 5)
    return {
        "conv1_w": _kaiming_normal(ks[0], (32, 3, 3, 5, 5)),
        "conv1_b": jnp.zeros((32,), jnp.float32),
        "conv2_w": _kaiming_normal(ks[1], (64, 32, 3, 5, 5)),
        "conv2_b": jnp.zeros((64,), jnp.float32),
        "conv3_w": _kaiming_normal(ks[2], (96, 64, 3, 3, 3)),
        "conv3_b": jnp.zeros((96,), jnp.float32),
        "gru1": init_gru_params(ks[3], gru1_input_size, hidden),
        "gru2": init_gru_params(ks[4], 2 * hidden, hidden),
    }


# ----------------------------------------------------------------------------
# LipNet forward (returns the pre-FC features, exactly as the PyTorch forward).
# ----------------------------------------------------------------------------
def lipnet_forward(x, params):
    """x: (B, C, T, H, W) float32 (PyTorch NCDHW).  Returns (T, B, 512) features."""
    # channels-last + bf16 for the whole conv stack
    x = jnp.transpose(x, (0, 2, 3, 4, 1)).astype(jnp.bfloat16)   # (B, T, H, W, C)

    x = conv3d_relu(x, params["conv1_w"], params["conv1_b"], (1, 2, 2), (1, 2, 2))
    x = maxpool_hw2(x)[..., :params["conv2_w"].shape[1]]          # drop channel padding

    x = conv3d_relu(x, params["conv2_w"], params["conv2_b"], (1, 1, 1), (1, 2, 2))
    x = maxpool_hw2(x)[..., :params["conv3_w"].shape[1]]

    x = conv3d_relu(x, params["conv3_w"], params["conv3_b"], (1, 1, 1), (1, 1, 1))
    x = maxpool_hw2(x)[..., :params["conv3_w"].shape[0]]

    # (B, T, Hf, Wf, C) -> (T, B, C*Hf*Wf), matching PyTorch's (C, H, W) flatten order.
    B, T, Hf, Wf, C = x.shape
    x = jnp.transpose(x, (1, 0, 4, 2, 3)).reshape(T, B, C * Hf * Wf)

    # Dropout / Dropout3d are inference identities; the final dropout's result is
    # discarded by the original forward.  fully_connected is never applied.
    x = bidirectional_gru(x, params["gru1"])
    x = bidirectional_gru(x, params["gru2"])
    return x  # (T, B, 512)


if __name__ == "__main__":
    key = jax.random.PRNGKey(0)
    kx, kp = jax.random.split(key)

    # Small shapes consistent with the module: NCDHW input (B=2, C=3, T=4, H=16, W=32).
    B, C, T, H, W = 2, 3, 4, 16, 32
    x = jax.random.normal(kx, (B, C, T, H, W), dtype=jnp.float32)

    # Spatial size after the three conv+pool stages (GRU1 input dim = 96*Hf*Wf).
    Hf = H // 2 // 2 // 2 // 2   # conv1 stride 2 + three pools
    Wf = W // 2 // 2 // 2 // 2
    params = init_lipnet_params(kp, gru1_input_size=96 * Hf * Wf, hidden=256)

    fwd = jax.jit(lipnet_forward)
    out = jax.block_until_ready(fwd(x, params))

    assert out.shape == (T, B, 512), out.shape
    assert bool(jnp.all(jnp.isfinite(out)))
    print("KERNEL_OK")
</pallas_src>

<mosaic_0001>
module attributes {stable_mosaic.version = 11 : i64} {
  func.func @kernel(%arg0: i32, %arg1: memref<32x2x8x128xbf16, #tpu.memory_space<vmem>>, %arg2: memref<32x2x8x128xbf16, #tpu.memory_space<vmem>>, %arg3: memref<32x8x128xbf16, #tpu.memory_space<vmem>>) attributes {dimension_semantics = [#tpu.dimension_semantics<parallel>], iteration_bounds = array<i64: 1>, scalar_prefetch = 0 : i64, scratch_operands = 0 : i64, tpu.core_type = #tpu.core_type<tc>, window_params = [{transform_indices = @transform_0, window_bounds = array<i64: 32, 2, 8, 128>}, {transform_indices = @transform_1, window_bounds = array<i64: 32, 2, 8, 128>}, {transform_indices = @transform_2, window_bounds = array<i64: 32, 8, 128>}]} {
    %c0 = arith.constant 0 : index
    %c0_0 = arith.constant 0 : index
    %c0_1 = arith.constant 0 : index
    %c0_2 = arith.constant 0 : index
    %0 = vector.load %arg1[%c0, %c0_0, %c0_1, %c0_2] : memref<32x2x8x128xbf16, #tpu.memory_space<vmem>>, vector<32x2x8x128xbf16>
    %cst = arith.constant dense<0xFF80> : vector<32x8x128xbf16>
    %1 = vector.multi_reduction <maximumf>, %0, %cst [1] : vector<32x2x8x128xbf16> to vector<32x8x128xbf16>
    %c0_3 = arith.constant 0 : index
    %c0_4 = arith.constant 0 : index
    %c0_5 = arith.constant 0 : index
    %c0_6 = arith.constant 0 : index
    %2 = vector.load %arg2[%c0_3, %c0_4, %c0_5, %c0_6] : memref<32x2x8x128xbf16, #tpu.memory_space<vmem>>, vector<32x2x8x128xbf16>
    %cst_7 = arith.constant dense<0xFF80> : vector<32x8x128xbf16>
    %3 = vector.multi_reduction <maximumf>, %2, %cst_7 [1] : vector<32x2x8x128xbf16> to vector<32x8x128xbf16>
    %4 = arith.maximumf %1, %3 : vector<32x8x128xbf16>
    %c0_8 = arith.constant 0 : index
    %c0_9 = arith.constant 0 : index
    %c0_10 = arith.constant 0 : index
    %5 = vector.load %arg3[%c0_8, %c0_9, %c0_10] : memref<32x8x128xbf16, #tpu.memory_space<vmem>>, vector<32x8x128xbf16>
    tpu.vector_store %arg3[%c0_8, %c0_9, %c0_10], %4 {strides = array<i32>} : memref<32x8x128xbf16, #tpu.memory_space<vmem>>, vector<32x8x128xbf16>,
    return
  }
  func.func @transform_0(%arg0: i32) -> (i32, i32, i32, i32) {
    %c0_i32 = arith.constant 0 : i32
    %c0_i32_0 = arith.constant 0 : i32
    %c0_i32_1 = arith.constant 0 : i32
    %c0_i32_2 = arith.constant 0 : i32
    return %arg0, %c0_i32, %c0_i32_0, %c0_i32_1 : i32, i32, i32, i32
  }
  func.func @transform_1(%arg0: i32) -> (i32, i32, i32, i32) {
    %c0_i32 = arith.constant 0 : i32
    %c0_i32_0 = arith.constant 0 : i32
    %c0_i32_1 = arith.constant 0 : i32
    %c0_i32_2 = arith.constant 0 : i32
    return %arg0, %c0_i32, %c0_i32_0, %c0_i32_1 : i32, i32, i32, i32
  }
  func.func @transform_2(%arg0: i32) -> (i32, i32, i32) {
    %c0_i32 = arith.constant 0 : i32
    %c0_i32_0 = arith.constant 0 : i32
    %c0_i32_1 = arith.constant 0 : i32
    return %arg0, %c0_i32, %c0_i32_0 : i32, i32, i32
  }
}

module attributes {stable_mosaic.version = 11 : i64} {
  func.func @kernel(%arg0: i32, %arg1: memref<256x225xbf16, #tpu.memory_space<vmem>>, %arg2: memref<225x128xbf16, #tpu.memory_space<vmem>>, %arg3: memref<1x128xf32, #tpu.memory_space<vmem>>, %arg4: memref<256x128xbf16, #tpu.memory_space<vmem>>) attributes {dimension_semantics = [#tpu.dimension_semantics<parallel>], iteration_bounds = array<i64: 4>, scalar_prefetch = 0 : i64, scratch_operands = 0 : i64, tpu.core_type = #tpu.core_type<tc>, window_params = [{transform_indices = @transform_0, window_bounds = array<i64: 256, 225>}, {pipeline_mode = #tpu.pipeline_mode<synchronous>, transform_indices = @transform_1, window_bounds = array<i64: 225, 128>}, {pipeline_mode = #tpu.pipeline_mode<synchronous>, transform_indices = @transform_2, window_bounds = array<i64: 1, 128>}, {transform_indices = @transform_3, window_bounds = array<i64: 256, 128>}]} {
    %c0 = arith.constant 0 : index
    %c0_0 = arith.constant 0 : index
    %0 = vector.load %arg1[%c0, %c0_0] : memref<256x225xbf16, #tpu.memory_space<vmem>>, vector<256x225xbf16>
    %c0_1 = arith.constant 0 : index
    %c0_2 = arith.constant 0 : index
    %1 = vector.load %arg2[%c0_1, %c0_2] : memref<225x128xbf16, #tpu.memory_space<vmem>>, vector<225x128xbf16>
    %cst = arith.constant dense<0.000000e+00> : vector<256x128xf32>
    %2 = tpu.matmul %0, %1, %cst {dimension_numbers = #tpu.dot_dimension_numbers<[1], [0], [0], [1], [0, 0, 1, 1], [], []>} : vector<256x225xbf16>, vector<225x128xbf16>, vector<256x128xf32> -> vector<256x128xf32>
    %c0_3 = arith.constant 0 : index
    %c0_4 = arith.constant 0 : index
    %3 = vector.load %arg3[%c0_3, %c0_4] : memref<1x128xf32, #tpu.memory_space<vmem>>, vector<1x128xf32>
    %4 = vector.broadcast %3 : vector<1x128xf32> to vector<256x128xf32>
    %5 = arith.addf %2, %4 : vector<256x128xf32>
    %cst_5 = arith.constant 0.000000e+00 : f32
    %6 = vector.broadcast %cst_5 : f32 to vector<256x128xf32>
    %7 = arith.maximumf %5, %6 : vector<256x128xf32>
    %8 = arith.truncf %7 : vector<256x128xf32> to vector<256x128xbf16>
    %c0_6 = arith.constant 0 : index
    %c0_7 = arith.constant 0 : index
    %9 = vector.load %arg4[%c0_6, %c0_7] : memref<256x128xbf16, #tpu.memory_space<vmem>>, vector<256x128xbf16>
    tpu.vector_store %arg4[%c0_6, %c0_7], %8 {strides = array<i32>} : memref<256x128xbf16, #tpu.memory_space<vmem>>, vector<256x128xbf16>,
    return
  }
  func.func @transform_0(%arg0: i32) -> (i32, i32) {
    %c0_i32 = arith.constant 0 : i32
    %c0_i32_0 = arith.constant 0 : i32
    return %arg0, %c0_i32 : i32, i32
  }
  func.func @transform_1(%arg0: i32) -> (i32, i32) {
    %c0_i32 = arith.constant 0 : i32
    %c0_i32_0 = arith.constant 0 : i32
    %c0_i32_1 = arith.constant 0 : i32
    return %c0_i32, %c0_i32_0 : i32, i32
  }
  func.func @transform_2(%arg0: i32) -> (i32, i32) {
    %c0_i32 = arith.constant 0 : i32
    %c0_i32_0 = arith.constant 0 : i32
    %c0_i32_1 = arith.constant 0 : i32
    return %c0_i32, %c0_i32_0 : i32, i32
  }
  func.func @transform_3(%arg0: i32) -> (i32, i32) {
    %c0_i32 = arith.constant 0 : i32
    %c0_i32_0 = arith.constant 0 : i32
    return %arg0, %c0_i32 : i32, i32
  }
}

module attributes {stable_mosaic.version = 11 : i64} {
  func.func @kernel(%arg0: i32, %arg1: memref<256x2400xbf16, #tpu.memory_space<vmem>>, %arg2: memref<2400x128xbf16, #tpu.memory_space<vmem>>, %arg3: memref<1x128xf32, #tpu.memory_space<vmem>>, %arg4: memref<256x128xbf16, #tpu.memory_space<vmem>>) attributes {dimension_semantics = [#tpu.dimension_semantics<parallel>], iteration_bounds = array<i64: 1>, scalar_prefetch = 0 : i64, scratch_operands = 0 : i64, tpu.core_type = #tpu.core_type<tc>, window_params = [{transform_indices = @transform_0, window_bounds = array<i64: 256, 2400>}, {pipeline_mode = #tpu.pipeline_mode<synchronous>, transform_indices = @transform_1, window_bounds = array<i64: 2400, 128>}, {pipeline_mode = #tpu.pipeline_mode<synchronous>, transform_indices = @transform_2, window_bounds = array<i64: 1, 128>}, {transform_indices = @transform_3, window_bounds = array<i64: 256, 128>}]} {
    %c0 = arith.constant 0 : index
    %c0_0 = arith.constant 0 : index
    %0 = vector.load %arg1[%c0, %c0_0] : memref<256x2400xbf16, #tpu.memory_space<vmem>>, vector<256x2400xbf16>
    %c0_1 = arith.constant 0 : index
    %c0_2 = arith.constant 0 : index
    %1 = vector.load %arg2[%c0_1, %c0_2] : memref<2400x128xbf16, #tpu.memory_space<vmem>>, vector<2400x128xbf16>
    %cst = arith.constant dense<0.000000e+00> : vector<256x128xf32>
    %2 = tpu.matmul %0, %1, %cst {dimension_numbers = #tpu.dot_dimension_numbers<[1], [0], [0], [1], [0, 0, 1, 1], [], []>} : vector<256x2400xbf16>, vector<2400x128xbf16>, vector<256x128xf32> -> vector<256x128xf32>
    %c0_3 = arith.constant 0 : index
    %c0_4 = arith.constant 0 : index
    %3 = vector.load %arg3[%c0_3, %c0_4] : memref<1x128xf32, #tpu.memory_space<vmem>>, vector<1x128xf32>
    %4 = vector.broadcast %3 : vector<1x128xf32> to vector<256x128xf32>
    %5 = arith.addf %2, %4 : vector<256x128xf32>
    %cst_5 = arith.constant 0.000000e+00 : f32
    %6 = vector.broadcast %cst_5 : f32 to vector<256x128xf32>
    %7 = arith.maximumf %5, %6 : vector<256x128xf32>
    %8 = arith.truncf %7 : vector<256x128xf32> to vector<256x128xbf16>
    %c0_6 = arith.constant 0 : index
    %c0_7 = arith.constant 0 : index
    %9 = vector.load %arg4[%c0_6, %c0_7] : memref<256x128xbf16, #tpu.memory_space<vmem>>, vector<256x128xbf16>
    tpu.vector_store %arg4[%c0_6, %c0_7], %8 {strides = array<i32>} : memref<256x128xbf16, #tpu.memory_space<vmem>>, vector<256x128xbf16>,
    return
  }
  func.func @transform_0(%arg0: i32) -> (i32, i32) {
    %c0_i32 = arith.constant 0 : i32
    %c0_i32_0 = arith.constant 0 : i32
    return %arg0, %c0_i32 : i32, i32
  }
  func.func @transform_1(%arg0: i32) -> (i32, i32) {
    %c0_i32 = arith.constant 0 : i32
    %c0_i32_0 = arith.constant 0 : i32
    %c0_i32_1 = arith.constant 0 : i32
    return %c0_i32, %c0_i32_0 : i32, i32
  }
  func.func @transform_2(%arg0: i32) -> (i32, i32) {
    %c0_i32 = arith.constant 0 : i32
    %c0_i32_0 = arith.constant 0 : i32
    %c0_i32_1 = arith.constant 0 : i32
    return %c0_i32, %c0_i32_0 : i32, i32
  }
  func.func @transform_3(%arg0: i32) -> (i32, i32) {
    %c0_i32 = arith.constant 0 : i32
    %c0_i32_0 = arith.constant 0 : i32
    return %arg0, %c0_i32 : i32, i32
  }
}

module attributes {stable_mosaic.version = 11 : i64} {
  func.func @kernel(%arg0: i32, %arg1: memref<16x2x4x128xbf16, #tpu.memory_space<vmem>>, %arg2: memref<16x2x4x128xbf16, #tpu.memory_space<vmem>>, %arg3: memref<16x4x128xbf16, #tpu.memory_space<vmem>>) attributes {dimension_semantics = [#tpu.dimension_semantics<parallel>], iteration_bounds = array<i64: 1>, scalar_prefetch = 0 : i64, scratch_operands = 0 : i64, tpu.core_type = #tpu.core_type<tc>, window_params = [{transform_indices = @transform_0, window_bounds = array<i64: 16, 2, 4, 128>}, {transform_indices = @transform_1, window_bounds = array<i64: 16, 2, 4, 128>}, {transform_indices = @transform_2, window_bounds = array<i64: 16, 4, 128>}]} {
    %c0 = arith.constant 0 : index
    %c0_0 = arith.constant 0 : index
    %c0_1 = arith.constant 0 : index
    %c0_2 = arith.constant 0 : index
    %0 = vector.load %arg1[%c0, %c0_0, %c0_1, %c0_2] : memref<16x2x4x128xbf16, #tpu.memory_space<vmem>>, vector<16x2x4x128xbf16>
    %cst = arith.constant dense<0xFF80> : vector<16x4x128xbf16>
    %1 = vector.multi_reduction <maximumf>, %0, %cst [1] : vector<16x2x4x128xbf16> to vector<16x4x128xbf16>
    %c0_3 = arith.constant 0 : index
    %c0_4 = arith.constant 0 : index
    %c0_5 = arith.constant 0 : index
    %c0_6 = arith.constant 0 : index
    %2 = vector.load %arg2[%c0_3, %c0_4, %c0_5, %c0_6] : memref<16x2x4x128xbf16, #tpu.memory_space<vmem>>, vector<16x2x4x128xbf16>
    %cst_7 = arith.constant dense<0xFF80> : vector<16x4x128xbf16>
    %3 = vector.multi_reduction <maximumf>, %2, %cst_7 [1] : vector<16x2x4x128xbf16> to vector<16x4x128xbf16>
    %4 = arith.maximumf %1, %3 : vector<16x4x128xbf16>
    %c0_8 = arith.constant 0 : index
    %c0_9 = arith.constant 0 : index
    %c0_10 = arith.constant 0 : index
    %5 = vector.load %arg3[%c0_8, %c0_9, %c0_10] : memref<16x4x128xbf16, #tpu.memory_space<vmem>>, vector<16x4x128xbf16>
    tpu.vector_store %arg3[%c0_8, %c0_9, %c0_10], %4 {strides = array<i32>} : memref<16x4x128xbf16, #tpu.memory_space<vmem>>, vector<16x4x128xbf16>,
    return
  }
  func.func @transform_0(%arg0: i32) -> (i32, i32, i32, i32) {
    %c0_i32 = arith.constant 0 : i32
    %c0_i32_0 = arith.constant 0 : i32
    %c0_i32_1 = arith.constant 0 : i32
    %c0_i32_2 = arith.constant 0 : i32
    return %arg0, %c0_i32, %c0_i32_0, %c0_i32_1 : i32, i32, i32, i32
  }
  func.func @transform_1(%arg0: i32) -> (i32, i32, i32, i32) {
    %c0_i32 = arith.constant 0 : i32
    %c0_i32_0 = arith.constant 0 : i32
    %c0_i32_1 = arith.constant 0 : i32
    %c0_i32_2 = arith.constant 0 : i32
    return %arg0, %c0_i32, %c0_i32_0, %c0_i32_1 : i32, i32, i32, i32
  }
  func.func @transform_2(%arg0: i32) -> (i32, i32, i32) {
    %c0_i32 = arith.constant 0 : i32
    %c0_i32_0 = arith.constant 0 : i32
    %c0_i32_1 = arith.constant 0 : i32
    return %arg0, %c0_i32, %c0_i32_0 : i32, i32, i32
  }
}

module attributes {stable_mosaic.version = 11 : i64} {
  func.func @kernel(%arg0: i32, %arg1: memref<64x1728xbf16, #tpu.memory_space<vmem>>, %arg2: memref<1728x128xbf16, #tpu.memory_space<vmem>>, %arg3: memref<1x128xf32, #tpu.memory_space<vmem>>, %arg4: memref<64x128xbf16, #tpu.memory_space<vmem>>) attributes {dimension_semantics = [#tpu.dimension_semantics<parallel>], iteration_bounds = array<i64: 1>, scalar_prefetch = 0 : i64, scratch_operands = 0 : i64, tpu.core_type = #tpu.core_type<tc>, window_params = [{transform_indices = @transform_0, window_bounds = array<i64: 64, 1728>}, {pipeline_mode = #tpu.pipeline_mode<synchronous>, transform_indices = @transform_1, window_bounds = array<i64: 1728, 128>}, {pipeline_mode = #tpu.pipeline_mode<synchronous>, transform_indices = @transform_2, window_bounds = array<i64: 1, 128>}, {transform_indices = @transform_3, window_bounds = array<i64: 64, 128>}]} {
    %c0 = arith.constant 0 : index
    %c0_0 = arith.constant 0 : index
    %0 = vector.load %arg1[%c0, %c0_0] : memref<64x1728xbf16, #tpu.memory_space<vmem>>, vector<64x1728xbf16>
    %c0_1 = arith.constant 0 : index
    %c0_2 = arith.constant 0 : index
    %1 = vector.load %arg2[%c0_1, %c0_2] : memref<1728x128xbf16, #tpu.memory_space<vmem>>, vector<1728x128xbf16>
    %cst = arith.constant dense<0.000000e+00> : vector<64x128xf32>
    %2 = tpu.matmul %0, %1, %cst {dimension_numbers = #tpu.dot_dimension_numbers<[1], [0], [0], [1], [0, 0, 1, 1], [], []>} : vector<64x1728xbf16>, vector<1728x128xbf16>, vector<64x128xf32> -> vector<64x128xf32>
    %c0_3 = arith.constant 0 : index
    %c0_4 = arith.constant 0 : index
    %3 = vector.load %arg3[%c0_3, %c0_4] : memref<1x128xf32, #tpu.memory_space<vmem>>, vector<1x128xf32>
    %4 = vector.broadcast %3 : vector<1x128xf32> to vector<64x128xf32>
    %5 = arith.addf %2, %4 : vector<64x128xf32>
    %cst_5 = arith.constant 0.000000e+00 : f32
    %6 = vector.broadcast %cst_5 : f32 to vector<64x128xf32>
    %7 = arith.maximumf %5, %6 : vector<64x128xf32>
    %8 = arith.truncf %7 : vector<64x128xf32> to vector<64x128xbf16>
    %c0_6 = arith.constant 0 : index
    %c0_7 = arith.constant 0 : index
    %9 = vector.load %arg4[%c0_6, %c0_7] : memref<64x128xbf16, #tpu.memory_space<vmem>>, vector<64x128xbf16>
    tpu.vector_store %arg4[%c0_6, %c0_7], %8 {strides = array<i32>} : memref<64x128xbf16, #tpu.memory_space<vmem>>, vector<64x128xbf16>,
    return
  }
  func.func @transform_0(%arg0: i32) -> (i32, i32) {
    %c0_i32 = arith.constant 0 : i32
    %c0_i32_0 = arith.constant 0 : i32
    return %arg0, %c0_i32 : i32, i32
  }
  func.func @transform_1(%arg0: i32) -> (i32, i32) {
    %c0_i32 = arith.constant 0 : i32
    %c0_i32_0 = arith.constant 0 : i32
    %c0_i32_1 = arith.constant 0 : i32
    return %c0_i32, %c0_i32_0 : i32, i32
  }
  func.func @transform_2(%arg0: i32) -> (i32, i32) {
    %c0_i32 = arith.constant 0 : i32
    %c0_i32_0 = arith.constant 0 : i32
    %c0_i32_1 = arith.constant 0 : i32
    return %c0_i32, %c0_i32_0 : i32, i32
  }
  func.func @transform_3(%arg0: i32) -> (i32, i32) {
    %c0_i32 = arith.constant 0 : i32
    %c0_i32_0 = arith.constant 0 : i32
    return %arg0, %c0_i32 : i32, i32
  }
}

module attributes {stable_mosaic.version = 11 : i64} {
  func.func @kernel(%arg0: i32, %arg1: memref<8x2x2x128xbf16, #tpu.memory_space<vmem>>, %arg2: memref<8x2x2x128xbf16, #tpu.memory_space<vmem>>, %arg3: memref<8x2x128xbf16, #tpu.memory_space<vmem>>) attributes {dimension_semantics = [#tpu.dimension_semantics<parallel>], iteration_bounds = array<i64: 1>, scalar_prefetch = 0 : i64, scratch_operands = 0 : i64, tpu.core_type = #tpu.core_type<tc>, window_params = [{transform_indices = @transform_0, window_bounds = array<i64: 8, 2, 2, 128>}, {transform_indices = @transform_1, window_bounds = array<i64: 8, 2, 2, 128>}, {transform_indices = @transform_2, window_bounds = array<i64: 8, 2, 128>}]} {
    %c0 = arith.constant 0 : index
    %c0_0 = arith.constant 0 : index
    %c0_1 = arith.constant 0 : index
    %c0_2 = arith.constant 0 : index
    %0 = vector.load %arg1[%c0, %c0_0, %c0_1, %c0_2] : memref<8x2x2x128xbf16, #tpu.memory_space<vmem>>, vector<8x2x2x128xbf16>
    %cst = arith.constant dense<0xFF80> : vector<8x2x128xbf16>
    %1 = vector.multi_reduction <maximumf>, %0, %cst [1] : vector<8x2x2x128xbf16> to vector<8x2x128xbf16>
    %c0_3 = arith.constant 0 : index
    %c0_4 = arith.constant 0 : index
    %c0_5 = arith.constant 0 : index
    %c0_6 = arith.constant 0 : index
    %2 = vector.load %arg2[%c0_3, %c0_4, %c0_5, %c0_6] : memref<8x2x2x128xbf16, #tpu.memory_space<vmem>>, vector<8x2x2x128xbf16>
    %cst_7 = arith.constant dense<0xFF80> : vector<8x2x128xbf16>
    %3 = vector.multi_reduction <maximumf>, %2, %cst_7 [1] : vector<8x2x2x128xbf16> to vector<8x2x128xbf16>
    %4 = arith.maximumf %1, %3 : vector<8x2x128xbf16>
    %c0_8 = arith.constant 0 : index
    %c0_9 = arith.constant 0 : index
    %c0_10 = arith.constant 0 : index
    %5 = vector.load %arg3[%c0_8, %c0_9, %c0_10] : memref<8x2x128xbf16, #tpu.memory_space<vmem>>, vector<8x2x128xbf16>
    tpu.vector_store %arg3[%c0_8, %c0_9, %c0_10], %4 {strides = array<i32>} : memref<8x2x128xbf16, #tpu.memory_space<vmem>>, vector<8x2x128xbf16>,
    return
  }
  func.func @transform_0(%arg0: i32) -> (i32, i32, i32, i32) {
    %c0_i32 = arith.constant 0 : i32
    %c0_i32_0 = arith.constant 0 : i32
    %c0_i32_1 = arith.constant 0 : i32
    %c0_i32_2 = arith.constant 0 : i32
    return %arg0, %c0_i32, %c0_i32_0, %c0_i32_1 : i32, i32, i32, i32
  }
  func.func @transform_1(%arg0: i32) -> (i32, i32, i32, i32) {
    %c0_i32 = arith.constant 0 : i32
    %c0_i32_0 = arith.constant 0 : i32
    %c0_i32_1 = arith.constant 0 : i32
    %c0_i32_2 = arith.constant 0 : i32
    return %arg0, %c0_i32, %c0_i32_0, %c0_i32_1 : i32, i32, i32, i32
  }
  func.func @transform_2(%arg0: i32) -> (i32, i32, i32) {
    %c0_i32 = arith.constant 0 : i32
    %c0_i32_0 = arith.constant 0 : i32
    %c0_i32_1 = arith.constant 0 : i32
    return %arg0, %c0_i32, %c0_i32_0 : i32, i32, i32
  }
}

module attributes {stable_mosaic.version = 11 : i64} {
  func.func @kernel(%arg0: i32, %arg1: memref<8x192xbf16, #tpu.memory_space<vmem>>, %arg2: memref<192x1536xbf16, #tpu.memory_space<vmem>>, %arg3: memref<1x1536xf32, #tpu.memory_space<vmem>>, %arg4: memref<8x1536xf32, #tpu.memory_space<vmem>>) attributes {dimension_semantics = [#tpu.dimension_semantics<parallel>], iteration_bounds = array<i64: 1>, scalar_prefetch = 0 : i64, scratch_operands = 0 : i64, tpu.core_type = #tpu.core_type<tc>, window_params = [{transform_indices = @transform_0, window_bounds = array<i64: 8, 192>}, {pipeline_mode = #tpu.pipeline_mode<synchronous>, transform_indices = @transform_1, window_bounds = array<i64: 192, 1536>}, {pipeline_mode = #tpu.pipeline_mode<synchronous>, transform_indices = @transform_2, window_bounds = array<i64: 1, 1536>}, {transform_indices = @transform_3, window_bounds = array<i64: 8, 1536>}]} {
    %c0 = arith.constant 0 : index
    %c0_0 = arith.constant 0 : index
    %0 = vector.load %arg1[%c0, %c0_0] : memref<8x192xbf16, #tpu.memory_space<vmem>>, vector<8x192xbf16>
    %c0_1 = arith.constant 0 : index
    %c0_2 = arith.constant 0 : index
    %1 = vector.load %arg2[%c0_1, %c0_2] : memref<192x1536xbf16, #tpu.memory_space<vmem>>, vector<192x1536xbf16>
    %cst = arith.constant dense<0.000000e+00> : vector<8x1536xf32>
    %2 = tpu.matmul %0, %1, %cst {dimension_numbers = #tpu.dot_dimension_numbers<[1], [0], [0], [1], [0, 0, 1, 1], [], []>} : vector<8x192xbf16>, vector<192x1536xbf16>, vector<8x1536xf32> -> vector<8x1536xf32>
    %c0_3 = arith.constant 0 : index
    %c0_4 = arith.constant 0 : index
    %3 = vector.load %arg3[%c0_3, %c0_4] : memref<1x1536xf32, #tpu.memory_space<vmem>>, vector<1x1536xf32>
    %4 = vector.broadcast %3 : vector<1x1536xf32> to vector<8x1536xf32>
    %5 = arith.addf %2, %4 : vector<8x1536xf32>
    %c0_5 = arith.constant 0 : index
    %c0_6 = arith.constant 0 : index
    %6 = vector.load %arg4[%c0_5, %c0_6] : memref<8x1536xf32, #tpu.memory_space<vmem>>, vector<8x1536xf32>
    tpu.vector_store %arg4[%c0_5, %c0_6], %5 {strides = array<i32>} : memref<8x1536xf32, #tpu.memory_space<vmem>>, vector<8x1536xf32>,
    return
  }
  func.func @transform_0(%arg0: i32) -> (i32, i32) {
    %c0_i32 = arith.constant 0 : i32
    %c0_i32_0 = arith.constant 0 : i32
    return %arg0, %c0_i32 : i32, i32
  }
  func.func @transform_1(%arg0: i32) -> (i32, i32) {
    %c0_i32 = arith.constant 0 : i32
    %c0_i32_0 = arith.constant 0 : i32
    %c0_i32_1 = arith.constant 0 : i32
    return %c0_i32, %c0_i32_0 : i32, i32
  }
  func.func @transform_2(%arg0: i32) -> (i32, i32) {
    %c0_i32 = arith.constant 0 : i32
    %c0_i32_0 = arith.constant 0 : i32
    %c0_i32_1 = arith.constant 0 : i32
    return %c0_i32, %c0_i32_0 : i32, i32
  }
  func.func @transform_3(%arg0: i32) -> (i32, i32) {
    %c0_i32 = arith.constant 0 : i32
    %c0_i32_0 = arith.constant 0 : i32
    return %arg0, %c0_i32 : i32, i32
  }
}

module attributes {stable_mosaic.version = 11 : i64} {
  func.func @kernel(%arg0: i32, %arg1: memref<4x2x2x768xf32, #tpu.memory_space<vmem>>, %arg2: memref<2x256x768xf32, #tpu.memory_space<vmem>>, %arg3: memref<2x1x256xf32, #tpu.memory_space<vmem>>, %arg4: memref<4x2x2x256xf32, #tpu.memory_space<vmem>>) attributes {dimension_semantics = [#tpu.dimension_semantics<arbitrary>], iteration_bounds = array<i64: 1>, scalar_prefetch = 0 : i64, scratch_operands = 0 : i64, tpu.core_type = #tpu.core_type<tc>, window_params = [{pipeline_mode = #tpu.pipeline_mode<synchronous>, transform_indices = @transform_0, window_bounds = array<i64: 4, 2, 2, 768>}, {pipeline_mode = #tpu.pipeline_mode<synchronous>, transform_indices = @transform_1, window_bounds = array<i64: 2, 256, 768>}, {pipeline_mode = #tpu.pipeline_mode<synchronous>, transform_indices = @transform_2, window_bounds = array<i64: 2, 1, 256>}, {pipeline_mode = #tpu.pipeline_mode<synchronous>, transform_indices = @transform_3, window_bounds = array<i64: 4, 2, 2, 256>}]} {
    %c0 = arith.constant 0 : index
    %c0_0 = arith.constant 0 : index
    %c0_1 = arith.constant 0 : index
    %0 = vector.load %arg2[%c0, %c0_0, %c0_1] : memref<2x256x768xf32, #tpu.memory_space<vmem>>, vector<2x256x768xf32>
    %c0_2 = arith.constant 0 : index
    %c0_3 = arith.constant 0 : index
    %c0_4 = arith.constant 0 : index
    %1 = vector.load %arg3[%c0_2, %c0_3, %c0_4] : memref<2x1x256xf32, #tpu.memory_space<vmem>>, vector<2x1x256xf32>
    %2 = vector.shape_cast %1 : vector<2x1x256xf32> to vector<2x1x256xf32>
    %3 = vector.broadcast %2 : vector<2x1x256xf32> to vector<2x2x256xf32>
    %cst = arith.constant 0.000000e+00 : f32
    %4 = vector.broadcast %cst : f32 to vector<2x2x256xf32>
    %c0_i32 = arith.constant 0 : i32
    %c4_i32 = arith.constant 4 : i32
    %5 = arith.addi %c0_i32, %c4_i32 : i32
    %c1_i32 = arith.constant 1 : i32
    %6 = scf.for %arg5 = %c0_i32 to %5 step %c1_i32 iter_args(%arg6 = %4) -> (vector<2x2x256xf32>)  : i32 {
      %7 = arith.index_cast %arg5 : i32 to index
      %c0_6 = arith.constant 0 : index
      %c0_7 = arith.constant 0 : index
      %c0_8 = arith.constant 0 : index
      %8 = vector.load %arg1[%7, %c0_6, %c0_7, %c0_8] : memref<4x2x2x768xf32, #tpu.memory_space<vmem>>, vector<1x2x2x768xf32>
      %9 = vector.shape_cast %8 : vector<1x2x2x768xf32> to vector<2x2x768xf32>
      %cst_9 = arith.constant dense<0.000000e+00> : vector<2x2x768xf32>
      %10 = tpu.matmul %arg6, %0, %cst_9 {dimension_numbers = #tpu.dot_dimension_numbers<[2], [1], [1], [2], [0, 0, 0, 1, 1, 2], [0], [0]>} : vector<2x2x256xf32>, vector<2x256x768xf32>, vector<2x2x768xf32> -> vector<2x2x768xf32>
      %11 = vector.extract_strided_slice %9 {offsets = [0, 0, 0], sizes = [2, 2, 256], strides = [1, 1, 1]} : vector<2x2x768xf32> to vector<2x2x256xf32>
      %12 = vector.extract_strided_slice %10 {offsets = [0, 0, 0], sizes = [2, 2, 256], strides = [1, 1, 1]} : vector<2x2x768xf32> to vector<2x2x256xf32>
      %13 = arith.addf %11, %12 : vector<2x2x256xf32>
      %14 = arith.negf %13 : vector<2x2x256xf32>
      %15 = math.exp %14 : vector<2x2x256xf32>
      %cst_10 = arith.constant 1.000000e+00 : f32
      %16 = vector.broadcast %cst_10 : f32 to vector<2x2x256xf32>
      %17 = arith.addf %16, %15 : vector<2x2x256xf32>
      %18 = arith.divf %16, %17 : vector<2x2x256xf32>
      %19 = vector.extract_strided_slice %9 {offsets = [0, 0, 256], sizes = [2, 2, 256], strides = [1, 1, 1]} : vector<2x2x768xf32> to vector<2x2x256xf32>
      %20 = vector.extract_strided_slice %10 {offsets = [0, 0, 256], sizes = [2, 2, 256], strides = [1, 1, 1]} : vector<2x2x768xf32> to vector<2x2x256xf32>
      %21 = arith.addf %19, %20 : vector<2x2x256xf32>
      %22 = arith.negf %21 : vector<2x2x256xf32>
      %23 = math.exp %22 : vector<2x2x256xf32>
      %cst_11 = arith.constant 1.000000e+00 : f32
      %24 = vector.broadcast %cst_11 : f32 to vector<2x2x256xf32>
      %25 = arith.addf %24, %23 : vector<2x2x256xf32>
      %26 = arith.divf %24, %25 : vector<2x2x256xf32>
      %27 = vector.extract_strided_slice %9 {offsets = [0, 0, 512], sizes = [2, 2, 256], strides = [1, 1, 1]} : vector<2x2x768xf32> to vector<2x2x256xf32>
      %28 = vector.extract_strided_slice %10 {offsets = [0, 0, 512], sizes = [2, 2, 256], strides = [1, 1, 1]} : vector<2x2x768xf32> to vector<2x2x256xf32>
      %29 = arith.addf %28, %3 : vector<2x2x256xf32>
      %30 = arith.mulf %18, %29 : vector<2x2x256xf32>
      %31 = arith.addf %27, %30 : vector<2x2x256xf32>
      %32 = math.tanh %31 : vector<2x2x256xf32>
      %cst_12 = arith.constant 1.000000e+00 : f32
      %33 = vector.broadcast %cst_12 : f32 to vector<2x2x256xf32>
      %34 = arith.subf %33, %26 : vector<2x2x256xf32>
      %35 = arith.mulf %34, %32 : vector<2x2x256xf32>
      %36 = arith.mulf %26, %arg6 : vector<2x2x256xf32>
      %37 = arith.addf %35, %36 : vector<2x2x256xf32>
      %38 = arith.index_cast %arg5 : i32 to index
      %c0_13 = arith.constant 0 : index
      %c0_14 = arith.constant 0 : index
      %c0_15 = arith.constant 0 : index
      %39 = vector.load %arg4[%38, %c0_13, %c0_14, %c0_15] : memref<4x2x2x256xf32, #tpu.memory_space<vmem>>, vector<1x2x2x256xf32>
      %40 = vector.shape_cast %39 : vector<1x2x2x256xf32> to vector<2x2x256xf32>
      %41 = vector.shape_cast %37 : vector<2x2x256xf32> to vector<1x2x2x256xf32>
      tpu.vector_store %arg4[%38, %c0_13, %c0_14, %c0_15], %41 {strides = array<i32>} : memref<4x2x2x256xf32, #tpu.memory_space<vmem>>, vector<1x2x2x256xf32>,
      scf.yield %37 : vector<2x2x256xf32>
    }
    %c4_i32_5 = arith.constant 4 : i32
    return
  }
  func.func @transform_0(%arg0: i32) -> (i32, i32, i32, i32) {
    %c0_i32 = arith.constant 0 : i32
    %c0_i32_0 = arith.constant 0 : i32
    %c0_i32_1 = arith.constant 0 : i32
    %c0_i32_2 = arith.constant 0 : i32
    %c0_i32_3 = arith.constant 0 : i32
    return %c0_i32, %c0_i32_0, %c0_i32_1, %c0_i32_2 : i32, i32, i32, i32
  }
  func.func @transform_1(%arg0: i32) -> (i32, i32, i32) {
    %c0_i32 = arith.constant 0 : i32
    %c0_i32_0 = arith.constant 0 : i32
    %c0_i32_1 = arith.constant 0 : i32
    %c0_i32_2 = arith.constant 0 : i32
    return %c0_i32, %c0_i32_0, %c0_i32_1 : i32, i32, i32
  }
  func.func @transform_2(%arg0: i32) -> (i32, i32, i32) {
    %c0_i32 = arith.constant 0 : i32
    %c0_i32_0 = arith.constant 0 : i32
    %c0_i32_1 = arith.constant 0 : i32
    %c0_i32_2 = arith.constant 0 : i32
    return %c0_i32, %c0_i32_0, %c0_i32_1 : i32, i32, i32
  }
  func.func @transform_3(%arg0: i32) -> (i32, i32, i32, i32) {
    %c0_i32 = arith.constant 0 : i32
    %c0_i32_0 = arith.constant 0 : i32
    %c0_i32_1 = arith.constant 0 : i32
    %c0_i32_2 = arith.constant 0 : i32
    %c0_i32_3 = arith.constant 0 : i32
    return %c0_i32, %c0_i32_0, %c0_i32_1, %c0_i32_2 : i32, i32, i32, i32
  }
}

module attributes {stable_mosaic.version = 11 : i64} {
  func.func @kernel(%arg0: i32, %arg1: memref<8x512xbf16, #tpu.memory_space<vmem>>, %arg2: memref<512x1536xbf16, #tpu.memory_space<vmem>>, %arg3: memref<1x1536xf32, #tpu.memory_space<vmem>>, %arg4: memref<8x1536xf32, #tpu.memory_space<vmem>>) attributes {dimension_semantics = [#tpu.dimension_semantics<parallel>], iteration_bounds = array<i64: 1>, scalar_prefetch = 0 : i64, scratch_operands = 0 : i64, tpu.core_type = #tpu.core_type<tc>, window_params = [{transform_indices = @transform_0, window_bounds = array<i64: 8, 512>}, {pipeline_mode = #tpu.pipeline_mode<synchronous>, transform_indices = @transform_1, window_bounds = array<i64: 512, 1536>}, {pipeline_mode = #tpu.pipeline_mode<synchronous>, transform_indices = @transform_2, window_bounds = array<i64: 1, 1536>}, {transform_indices = @transform_3, window_bounds = array<i64: 8, 1536>}]} {
    %c0 = arith.constant 0 : index
    %c0_0 = arith.constant 0 : index
    %0 = vector.load %arg1[%c0, %c0_0] : memref<8x512xbf16, #tpu.memory_space<vmem>>, vector<8x512xbf16>
    %c0_1 = arith.constant 0 : index
    %c0_2 = arith.constant 0 : index
    %1 = vector.load %arg2[%c0_1, %c0_2] : memref<512x1536xbf16, #tpu.memory_space<vmem>>, vector<512x1536xbf16>
    %cst = arith.constant dense<0.000000e+00> : vector<8x1536xf32>
    %2 = tpu.matmul %0, %1, %cst {dimension_numbers = #tpu.dot_dimension_numbers<[1], [0], [0], [1], [0, 0, 1, 1], [], []>} : vector<8x512xbf16>, vector<512x1536xbf16>, vector<8x1536xf32> -> vector<8x1536xf32>
    %c0_3 = arith.constant 0 : index
    %c0_4 = arith.constant 0 : index
    %3 = vector.load %arg3[%c0_3, %c0_4] : memref<1x1536xf32, #tpu.memory_space<vmem>>, vector<1x1536xf32>
    %4 = vector.broadcast %3 : vector<1x1536xf32> to vector<8x1536xf32>
    %5 = arith.addf %2, %4 : vector<8x1536xf32>
    %c0_5 = arith.constant 0 : index
    %c0_6 = arith.constant 0 : index
    %6 = vector.load %arg4[%c0_5, %c0_6] : memref<8x1536xf32, #tpu.memory_space<vmem>>, vector<8x1536xf32>
    tpu.vector_store %arg4[%c0_5, %c0_6], %5 {strides = array<i32>} : memref<8x1536xf32, #tpu.memory_space<vmem>>, vector<8x1536xf32>,
    return
  }
  func.func @transform_0(%arg0: i32) -> (i32, i32) {
    %c0_i32 = arith.constant 0 : i32
    %c0_i32_0 = arith.constant 0 : i32
    return %arg0, %c0_i32 : i32, i32
  }
  func.func @transform_1(%arg0: i32) -> (i32, i32) {
    %c0_i32 = arith.constant 0 : i32
    %c0_i32_0 = arith.constant 0 : i32
    %c0_i32_1 = arith.constant 0 : i32
    return %c0_i32, %c0_i32_0 : i32, i32
  }
  func.func @transform_2(%arg0: i32) -> (i32, i32) {
    %c0_i32 = arith.constant 0 : i32
    %c0_i32_0 = arith.constant 0 : i32
    %c0_i32_1 = arith.constant 0 : i32
    return %c0_i32, %c0_i32_0 : i32, i32
  }
  func.func @transform_3(%arg0: i32) -> (i32, i32) {
    %c0_i32 = arith.constant 0 : i32
    %c0_i32_0 = arith.constant 0 : i32
    return %arg0, %c0_i32 : i32, i32
  }
}

</mosaic_0001>

<bundles_post_ra>
// kernel: lipnet_forward.11
= control target key start
LH: loop header
LB: loop body
LE: loop exit
PB: predicated region body
PF: predicated region fallthrough
CT: control target
= control target key end

     0   :  { %vm76_vm0 = vcmask 1043456   ;;  %s1344_s0 = inlined_call_operand.vmem [shape: bf16[32,2,8,128], index: 0, kind: input, shape index: {}]   ;;  %s1345_s1 = inlined_call_operand.vmem [shape: bf16[32,2,8,128], index: 1, kind: input, shape index: {}]   ;;  %s1346_s2 = inlined_call_operand.vmem [shape: bf16[32,8,128], index: 2, kind: output, shape index: {}]  }
   0x1   :  { %v12_v0 = vld [vmem:[%s1344_s0] sm:$0xf]  ;;  %v13_v1 = vld [vmem:[%s1344_s0 + $0x4] sm:$0xf]  ;;  %v14_v2 = vld [vmem:[%s1344_s0 + $0x8] sm:$0xf] }
   0x2   :  { %v15_v3 = vld [vmem:[%s1344_s0 + $0xc] sm:$0xf]  ;;  %v79_v4 = vsel %vm76_vm0, %v12_v0, 4286644096  ;;  %v82_v5 = vsel %vm76_vm0, %v13_v1, 4286644096 }
   0x3   :  { %v86_v6 = vsel %vm76_vm0, %v14_v2, 4286644096  ;;  %v89_v7 = vsel %vm76_vm0, %v15_v3, 4286644096  ;;  %v302_v8 = vld [vmem:[%s1345_s1] sm:$0xf]  ;;  %v84_v9 = vmax.bf16 %v82_v5, %v79_v4 }
   0x4   :  { %v303_v10 = vld [vmem:[%s1345_s1 + $0x4] sm:$0xf]  ;;  %v304_v11 = vld [vmem:[%s1345_s1 + $0x8] sm:$0xf]  ;;  %v305_v12 = vld [vmem:[%s1345_s1 + $0xc] sm:$0xf]  ;;  %v91_v13 = vmax.bf16 %v89_v7, %v86_v6 }
   0x5   :  { %v367_v14 = vsel %vm76_vm0, %v302_v8, 4286644096  ;;  %v370_v15 = vsel %vm76_vm0, %v303_v10, 4286644096  ;;  %v374_v16 = vsel %vm76_vm0, %v304_v11, 4286644096 }
   0x6   :  { %v372_v17 = vmax.bf16 %v370_v15, %v367_v14  ;;  %v377_v18 = vsel %vm76_vm0, %v305_v12, 4286644096  ;;  %v16_v19 = vld [vmem:[%s1344_s0 + $0x10] sm:$0xf]  ;;  %v17_v20 = vld [vmem:[%s1344_s0 + $0x14] sm:$0xf] }
   0x7   :  { %v379_v21 = vmax.bf16 %v377_v18, %v374_v16  ;;  %v18_v22 = vld [vmem:[%s1344_s0 + $0x18] sm:$0xf]  ;;  %v19_v23 = vld [vmem:[%s1344_s0 + $0x1c] sm:$0xf]  ;;  %v93_v24 = vsel %vm76_vm0, %v16_v19, 4286644096 }
   0x8   :  { %v590_v25 = vmax.bf16 %v372_v17, %v84_v9  ;;  %v96_v26 = vsel %vm76_vm0, %v17_v20, 4286644096  ;;  %v100_v27 = vsel %vm76_vm0, %v18_v22, 4286644096  ;;  %v103_v28 = vsel %vm76_vm0, %v19_v23, 4286644096 }
   0x9   :  { %v591_v29 = vmax.bf16 %v379_v21, %v91_v13  ;;  %v98_v30 = vmax.bf16 %v96_v26, %v93_v24  ;;  %v306_v31 = vld [vmem:[%s1345_s1 + $0x10] sm:$0xf]  ;;  %v307_v32 = vld [vmem:[%s1345_s1 + $0x14] sm:$0xf]  ;;  %v308_v33 = vld [vmem:[%s1345_s1 + $0x18] sm:$0xf]  ;;  %v105_v34 = vmax.bf16 %v103_v28, %v100_v27 }
   0xa   :  { %v309_v35 = vld [vmem:[%s1345_s1 + $0x1c] sm:$0xf]  ;;  %v381_v36 = vsel %vm76_vm0, %v306_v31, 4286644096  ;;  %v384_v37 = vsel %vm76_vm0, %v307_v32, 4286644096 }
   0xb   :  { %v738_v38 = vcombine.low %v590_v25, %v591_v29  ;;  %v386_v39 = vmax.bf16 %v384_v37, %v381_v36  ;;  %v388_v40 = vsel %vm76_vm0, %v308_v33, 4286644096  ;;  %v391_v41 = vsel %vm76_vm0, %v309_v35, 4286644096  ;;  %v20_v42 = vld [vmem:[%s1344_s0 + $0x20] sm:$0xf] }
   0xc   :  { %v393_v43 = vmax.bf16 %v391_v41, %v388_v40  ;;  %v21_v44 = vld [vmem:[%s1344_s0 + $0x24] sm:$0xf]  ;;  %v22_v45 = vld [vmem:[%s1344_s0 + $0x28] sm:$0xf]  ;;  %v23_v46 = vld [vmem:[%s1344_s0 + $0x2c] sm:$0xf] }
   0xd   :  { %662 = vst [vmem:[%s1346_s2] sm:$0xff] %v738_v38   ;;  %v592_v47 = vmax.bf16 %v386_v39, %v98_v30  ;;  %v107_v48 = vsel %vm76_vm0, %v20_v42, 4286644096  ;;  %v110_v49 = vsel %vm76_vm0, %v21_v44, 4286644096  ;;  %v114_v50 = vsel %vm76_vm0, %v22_v45, 4286644096 }
   0xe   :  { %v593_v51 = vmax.bf16 %v393_v43, %v105_v34  ;;  %v117_v52 = vsel %vm76_vm0, %v23_v46, 4286644096  ;;  %v310_v53 = vld [vmem:[%s1345_s1 + $0x20] sm:$0xf]  ;;  %v311_v54 = vld [vmem:[%s1345_s1 + $0x24] sm:$0xf]  ;;  %v112_v55 = vmax.bf16 %v110_v49, %v107_v48 }
   0xf   :  { %v119_v56 = vmax.bf16 %v117_v52, %v114_v50  ;;  %v312_v57 = vld [vmem:[%s1345_s1 + $0x28] sm:$0xf]  ;;  %v313_v58 = vld [vmem:[%s1345_s1 + $0x2c] sm:$0xf]  ;;  %v395_v59 = vsel %vm76_vm0, %v310_v53, 4286644096 }
  0x10   :  { %v739_v60 = vcombine.low %v592_v47, %v593_v51  ;;  %v398_v61 = vsel %vm76_vm0, %v311_v54, 4286644096  ;;  %v402_v62 = vsel %vm76_vm0, %v312_v57, 4286644096  ;;  %v405_v63 = vsel %vm76_vm0, %v313_v58, 4286644096 }
  0x11   :  { %v400_v0 = vmax.bf16 %v398_v61, %v395_v59  ;;  %v407_v1 = vmax.bf16 %v405_v63, %v402_v62  ;;  %v24_v2 = vld [vmem:[%s1344_s0 + $0x30] sm:$0xf]  ;;  %v25_v3 = vld [vmem:[%s1344_s0 + $0x34] sm:$0xf]  ;;  %v26_v4 = vld [vmem:[%s1344_s0 + $0x38] sm:$0xf] }
  0x12   :  { %740 = vst [vmem:[%s1346_s2 + $0x8] sm:$0xff] %v739_v60   ;;  %v27_v5 = vld [vmem:[%s1344_s0 + $0x3c] sm:$0xf]  ;;  %v121_v6 = vsel %vm76_vm0, %v24_v2, 4286644096 }
  0x13   :  { %v124_v7 = vsel %vm76_vm0, %v25_v3, 4286644096  ;;  %v594_v8 = vmax.bf16 %v400_v0, %v112_v55  ;;  %v595_v9 = vmax.bf16 %v407_v1, %v119_v56  ;;  %v128_v10 = vsel %vm76_vm0, %v26_v4, 4286644096  ;;  %v314_v11 = vld [vmem:[%s1345_s1 + $0x30] sm:$0xf] }
  0x14   :  { %v315_v12 = vld [vmem:[%s1345_s1 + $0x34] sm:$0xf]  ;;  %v126_v13 = vmax.bf16 %v124_v7, %v121_v6  ;;  %v131_v14 = vsel %vm76_vm0, %v27_v5, 4286644096  ;;  %v316_v15 = vld [vmem:[%s1345_s1 + $0x38] sm:$0xf] }
  0x15   :  { %v317_v16 = vld [vmem:[%s1345_s1 + $0x3c] sm:$0xf]  ;;  %v741_v17 = vcombine.low %v594_v8, %v595_v9  ;;  %v133_v18 = vmax.bf16 %v131_v14, %v128_v10  ;;  %v409_v19 = vsel %vm76_vm0, %v314_v11, 4286644096  ;;  %v412_v20 = vsel %vm76_vm0, %v315_v12, 4286644096 }
  0x16   :  { %v28_v21 = vld [vmem:[%s1344_s0 + $0x40] sm:$0xf]  ;;  %v414_v22 = vmax.bf16 %v412_v20, %v409_v19  ;;  %v416_v23 = vsel %vm76_vm0, %v316_v15, 4286644096  ;;  %v419_v24 = vsel %vm76_vm0, %v317_v16, 4286644096 }
  0x17   :  { %v29_v25 = vld [vmem:[%s1344_s0 + $0x44] sm:$0xf]  ;;  %742 = vst [vmem:[%s1346_s2 + $0x10] sm:$0xff] %v741_v17   ;;  %v421_v26 = vmax.bf16 %v419_v24, %v416_v23  ;;  %v30_v27 = vld [vmem:[%s1344_s0 + $0x48] sm:$0xf] }
  0x18   :  { %v31_v28 = vld [vmem:[%s1344_s0 + $0x4c] sm:$0xf]  ;;  %v135_v29 = vsel %vm76_vm0, %v28_v21, 4286644096  ;;  %v596_v30 = vmax.bf16 %v414_v22, %v126_v13  ;;  %v138_v31 = vsel %vm76_vm0, %v29_v25, 4286644096 }
  0x19   :  { %v142_v32 = vsel %vm76_vm0, %v30_v27, 4286644096  ;;  %v145_v33 = vsel %vm76_vm0, %v31_v28, 4286644096  ;;  %v597_v34 = vmax.bf16 %v421_v26, %v133_v18  ;;  %v140_v35 = vmax.bf16 %v138_v31, %v135_v29  ;;  %v318_v36 = vld [vmem:[%s1345_s1 + $0x40] sm:$0xf] }
  0x1a   :  { %v319_v37 = vld [vmem:[%s1345_s1 + $0x44] sm:$0xf]  ;;  %v320_v38 = vld [vmem:[%s1345_s1 + $0x48] sm:$0xf]  ;;  %v147_v39 = vmax.bf16 %v145_v33, %v142_v32  ;;  %v321_v40 = vld [vmem:[%s1345_s1 + $0x4c] sm:$0xf] }
  0x1b   :  { %v423_v41 = vsel %vm76_vm0, %v318_v36, 4286644096  ;;  %v426_v42 = vsel %vm76_vm0, %v319_v37, 4286644096  ;;  %v743_v43 = vcombine.low %v596_v30, %v597_v34  ;;  %v430_v45 = vsel %vm76_vm0, %v320_v38, 4286644096 }
  0x1c   :  { %v428_v44 = vmax.bf16 %v426_v42, %v423_v41  ;;  %v433_v46 = vsel %vm76_vm0, %v321_v40, 4286644096  ;;  %v32_v47 = vld [vmem:[%s1344_s0 + $0x50] sm:$0xf]  ;;  %v33_v49 = vld [vmem:[%s1344_s0 + $0x54] sm:$0xf] }
  0x1d   :  { %v435_v48 = vmax.bf16 %v433_v46, %v430_v45  ;;  %v34_v50 = vld [vmem:[%s1344_s0 + $0x58] sm:$0xf]  ;;  %v35_v51 = vld [vmem:[%s1344_s0 + $0x5c] sm:$0xf]  ;;  %744 = vst [vmem:[%s1346_s2 + $0x18] sm:$0xff] %v743_v43  }
  0x1e   :  { %v598_v52 = vmax.bf16 %v428_v44, %v140_v35  ;;  %v149_v53 = vsel %vm76_vm0, %v32_v47, 4286644096  ;;  %v152_v54 = vsel %vm76_vm0, %v33_v49, 4286644096  ;;  %v156_v55 = vsel %vm76_vm0, %v34_v50, 4286644096 }
  0x1f   :  { %v599_v56 = vmax.bf16 %v435_v48, %v147_v39  ;;  %v159_v57 = vsel %vm76_vm0, %v35_v51, 4286644096  ;;  %v322_v58 = vld [vmem:[%s1345_s1 + $0x50] sm:$0xf]  ;;  %v323_v59 = vld [vmem:[%s1345_s1 + $0x54] sm:$0xf]  ;;  %v154_v60 = vmax.bf16 %v152_v54, %v149_v53 }
  0x20   :  { %v161_v61 = vmax.bf16 %v159_v57, %v156_v55  ;;  %v324_v62 = vld [vmem:[%s1345_s1 + $0x58] sm:$0xf]  ;;  %v325_v63 = vld [vmem:[%s1345_s1 + $0x5c] sm:$0xf]  ;;  %v437_v0 = vsel %vm76_vm0, %v322_v58, 4286644096 }
  0x21   :  { %v745_v1 = vcombine.low %v598_v52, %v599_v56  ;;  %v440_v2 = vsel %vm76_vm0, %v323_v59, 4286644096  ;;  %v444_v3 = vsel %vm76_vm0, %v324_v62, 4286644096  ;;  %v447_v4 = vsel %vm76_vm0, %v325_v63, 4286644096 }
  0x22   :  { %v442_v5 = vmax.bf16 %v440_v2, %v437_v0  ;;  %v449_v6 = vmax.bf16 %v447_v4, %v444_v3  ;;  %v36_v7 = vld [vmem:[%s1344_s0 + $0x60] sm:$0xf]  ;;  %v37_v8 = vld [vmem:[%s1344_s0 + $0x64] sm:$0xf]  ;;  %v38_v9 = vld [vmem:[%s1344_s0 + $0x68] sm:$0xf] }
  0x23   :  { %746 = vst [vmem:[%s1346_s2 + $0x20] sm:$0xff] %v745_v1   ;;  %v39_v10 = vld [vmem:[%s1344_s0 + $0x6c] sm:$0xf]  ;;  %v163_v11 = vsel %vm76_vm0, %v36_v7, 4286644096 }
  0x24   :  { %v166_v12 = vsel %vm76_vm0, %v37_v8, 4286644096  ;;  %v600_v13 = vmax.bf16 %v442_v5, %v154_v60  ;;  %v601_v14 = vmax.bf16 %v449_v6, %v161_v61  ;;  %v170_v15 = vsel %vm76_vm0, %v38_v9, 4286644096  ;;  %v326_v16 = vld [vmem:[%s1345_s1 + $0x60] sm:$0xf] }
  0x25   :  { %v327_v17 = vld [vmem:[%s1345_s1 + $0x64] sm:$0xf]  ;;  %v168_v18 = vmax.bf16 %v166_v12, %v163_v11  ;;  %v173_v19 = vsel %vm76_vm0, %v39_v10, 4286644096  ;;  %v328_v20 = vld [vmem:[%s1345_s1 + $0x68] sm:$0xf] }
  0x26   :  { %v329_v21 = vld [vmem:[%s1345_s1 + $0x6c] sm:$0xf]  ;;  %v747_v22 = vcombine.low %v600_v13, %v601_v14  ;;  %v175_v23 = vmax.bf16 %v173_v19, %v170_v15  ;;  %v451_v24 = vsel %vm76_vm0, %v326_v16, 4286644096  ;;  %v454_v25 = vsel %vm76_vm0, %v327_v17, 4286644096 }
  0x27   :  { %v40_v26 = vld [vmem:[%s1344_s0 + $0x70] sm:$0xf]  ;;  %v456_v27 = vmax.bf16 %v454_v25, %v451_v24  ;;  %v458_v28 = vsel %vm76_vm0, %v328_v20, 4286644096  ;;  %v461_v29 = vsel %vm76_vm0, %v329_v21, 4286644096 }
  0x28   :  { %v41_v30 = vld [vmem:[%s1344_s0 + $0x74] sm:$0xf]  ;;  %748 = vst [vmem:[%s1346_s2 + $0x28] sm:$0xff] %v747_v22   ;;  %v463_v31 = vmax.bf16 %v461_v29, %v458_v28  ;;  %v42_v32 = vld [vmem:[%s1344_s0 + $0x78] sm:$0xf] }
  0x29   :  { %v43_v33 = vld [vmem:[%s1344_s0 + $0x7c] sm:$0xf]  ;;  %v177_v34 = vsel %vm76_vm0, %v40_v26, 4286644096  ;;  %v602_v35 = vmax.bf16 %v456_v27, %v168_v18  ;;  %v180_v36 = vsel %vm76_vm0, %v41_v30, 4286644096 }
  0x2a   :  { %v184_v37 = vsel %vm76_vm0, %v42_v32, 4286644096  ;;  %v187_v38 = vsel %vm76_vm0, %v43_v33, 4286644096  ;;  %v603_v39 = vmax.bf16 %v463_v31, %v175_v23  ;;  %v182_v40 = vmax.bf16 %v180_v36, %v177_v34  ;;  %v330_v41 = vld [vmem:[%s1345_s1 + $0x70] sm:$0xf] }
  0x2b   :  { %v331_v42 = vld [vmem:[%s1345_s1 + $0x74] sm:$0xf]  ;;  %v332_v43 = vld [vmem:[%s1345_s1 + $0x78] sm:$0xf]  ;;  %v189_v44 = vmax.bf16 %v187_v38, %v184_v37  ;;  %v333_v45 = vld [vmem:[%s1345_s1 + $0x7c] sm:$0xf] }
  0x2c   :  { %v465_v46 = vsel %vm76_vm0, %v330_v41, 4286644096  ;;  %v468_v47 = vsel %vm76_vm0, %v331_v42, 4286644096  ;;  %v749_v48 = vcombine.low %v602_v35, %v603_v39  ;;  %v472_v50 = vsel %vm76_vm0, %v332_v43, 4286644096 }
  0x2d   :  { %v470_v49 = vmax.bf16 %v468_v47, %v465_v46  ;;  %v475_v51 = vsel %vm76_vm0, %v333_v45, 4286644096  ;;  %v44_v52 = vld [vmem:[%s1344_s0 + $0x80] sm:$0xf]  ;;  %v45_v54 = vld [vmem:[%s1344_s0 + $0x84] sm:$0xf] }
  0x2e   :  { %v477_v53 = vmax.bf16 %v475_v51, %v472_v50  ;;  %v46_v55 = vld [vmem:[%s1344_s0 + $0x88] sm:$0xf]  ;;  %v47_v56 = vld [vmem:[%s1344_s0 + $0x8c] sm:$0xf]  ;;  %750 = vst [vmem:[%s1346_s2 + $0x30] sm:$0xff] %v749_v48  }
  0x2f   :  { %v604_v57 = vmax.bf16 %v470_v49, %v182_v40  ;;  %v191_v58 = vsel %vm76_vm0, %v44_v52, 4286644096  ;;  %v194_v59 = vsel %vm76_vm0, %v45_v54, 4286644096  ;;  %v198_v60 = vsel %vm76_vm0, %v46_v55, 4286644096 }
  0x30   :  { %v605_v61 = vmax.bf16 %v477_v53, %v189_v44  ;;  %v201_v62 = vsel %vm76_vm0, %v47_v56, 4286644096  ;;  %v334_v63 = vld [vmem:[%s1345_s1 + $0x80] sm:$0xf]  ;;  %v335_v0 = vld [vmem:[%s1345_s1 + $0x84] sm:$0xf]  ;;  %v196_v1 = vmax.bf16 %v194_v59, %v191_v58 }
  0x31   :  { %v203_v2 = vmax.bf16 %v201_v62, %v198_v60  ;;  %v336_v3 = vld [vmem:[%s1345_s1 + $0x88] sm:$0xf]  ;;  %v337_v4 = vld [vmem:[%s1345_s1 + $0x8c] sm:$0xf]  ;;  %v479_v5 = vsel %vm76_vm0, %v334_v63, 4286644096 }
  0x32   :  { %v751_v6 = vcombine.low %v604_v57, %v605_v61  ;;  %v482_v7 = vsel %vm76_vm0, %v335_v0, 4286644096  ;;  %v486_v8 = vsel %vm76_vm0, %v336_v3, 4286644096  ;;  %v489_v9 = vsel %vm76_vm0, %v337_v4, 4286644096 }
  0x33   :  { %v484_v10 = vmax.bf16 %v482_v7, %v479_v5  ;;  %v491_v11 = vmax.bf16 %v489_v9, %v486_v8  ;;  %v48_v12 = vld [vmem:[%s1344_s0 + $0x90] sm:$0xf]  ;;  %v49_v13 = vld [vmem:[%s1344_s0 + $0x94] sm:$0xf]  ;;  %v50_v14 = vld [vmem:[%s1344_s0 + $0x98] sm:$0xf] }
  0x34   :  { %752 = vst [vmem:[%s1346_s2 + $0x38] sm:$0xff] %v751_v6   ;;  %v51_v15 = vld [vmem:[%s1344_s0 + $0x9c] sm:$0xf]  ;;  %v205_v16 = vsel %vm76_vm0, %v48_v12, 4286644096 }
  0x35   :  { %v208_v17 = vsel %vm76_vm0, %v49_v13, 4286644096  ;;  %v606_v18 = vmax.bf16 %v484_v10, %v196_v1  ;;  %v607_v19 = vmax.bf16 %v491_v11, %v203_v2  ;;  %v212_v20 = vsel %vm76_vm0, %v50_v14, 4286644096  ;;  %v338_v21 = vld [vmem:[%s1345_s1 + $0x90] sm:$0xf] }
  0x36   :  { %v339_v22 = vld [vmem:[%s1345_s1 + $0x94] sm:$0xf]  ;;  %v210_v23 = vmax.bf16 %v208_v17, %v205_v16  ;;  %v215_v24 = vsel %vm76_vm0, %v51_v15, 4286644096  ;;  %v340_v25 = vld [vmem:[%s1345_s1 + $0x98] sm:$0xf] }
  0x37   :  { %v341_v26 = vld [vmem:[%s1345_s1 + $0x9c] sm:$0xf]  ;;  %v753_v27 = vcombine.low %v606_v18, %v607_v19  ;;  %v217_v28 = vmax.bf16 %v215_v24, %v212_v20  ;;  %v493_v29 = vsel %vm76_vm0, %v338_v21, 4286644096  ;;  %v496_v30 = vsel %vm76_vm0, %v339_v22, 4286644096 }
  0x38   :  { %v52_v31 = vld [vmem:[%s1344_s0 + $0xa0] sm:$0xf]  ;;  %v498_v32 = vmax.bf16 %v496_v30, %v493_v29  ;;  %v500_v33 = vsel %vm76_vm0, %v340_v25, 4286644096  ;;  %v503_v34 = vsel %vm76_vm0, %v341_v26, 4286644096 }
  0x39   :  { %v53_v35 = vld [vmem:[%s1344_s0 + $0xa4] sm:$0xf]  ;;  %754 = vst [vmem:[%s1346_s2 + $0x40] sm:$0xff] %v753_v27   ;;  %v505_v36 = vmax.bf16 %v503_v34, %v500_v33  ;;  %v54_v37 = vld [vmem:[%s1344_s0 + $0xa8] sm:$0xf] }
  0x3a   :  { %v55_v38 = vld [vmem:[%s1344_s0 + $0xac] sm:$0xf]  ;;  %v219_v39 = vsel %vm76_vm0, %v52_v31, 4286644096  ;;  %v608_v40 = vmax.bf16 %v498_v32, %v210_v23  ;;  %v222_v41 = vsel %vm76_vm0, %v53_v35, 4286644096 }
  0x3b   :  { %v226_v42 = vsel %vm76_vm0, %v54_v37, 4286644096  ;;  %v229_v43 = vsel %vm76_vm0, %v55_v38, 4286644096  ;;  %v609_v44 = vmax.bf16 %v505_v36, %v217_v28  ;;  %v224_v45 = vmax.bf16 %v222_v41, %v219_v39  ;;  %v342_v46 = vld [vmem:[%s1345_s1 + $0xa0] sm:$0xf] }
  0x3c   :  { %v343_v47 = vld [vmem:[%s1345_s1 + $0xa4] sm:$0xf]  ;;  %v344_v48 = vld [vmem:[%s1345_s1 + $0xa8] sm:$0xf]  ;;  %v231_v49 = vmax.bf16 %v229_v43, %v226_v42  ;;  %v345_v50 = vld [vmem:[%s1345_s1 + $0xac] sm:$0xf] }
  0x3d   :  { %v507_v51 = vsel %vm76_vm0, %v342_v46, 4286644096  ;;  %v510_v52 = vsel %vm76_vm0, %v343_v47, 4286644096  ;;  %v755_v53 = vcombine.low %v608_v40, %v609_v44  ;;  %v514_v55 = vsel %vm76_vm0, %v344_v48, 4286644096 }
  0x3e   :  { %v512_v54 = vmax.bf16 %v510_v52, %v507_v51  ;;  %v517_v56 = vsel %vm76_vm0, %v345_v50, 4286644096  ;;  %v56_v57 = vld [vmem:[%s1344_s0 + $0xb0] sm:$0xf]  ;;  %v57_v59 = vld [vmem:[%s1344_s0 + $0xb4] sm:$0xf] }
  0x3f   :  { %v519_v58 = vmax.bf16 %v517_v56, %v514_v55  ;;  %v58_v60 = vld [vmem:[%s1344_s0 + $0xb8] sm:$0xf]  ;;  %v59_v61 = vld [vmem:[%s1344_s0 + $0xbc] sm:$0xf]  ;;  %756 = vst [vmem:[%s1346_s2 + $0x48] sm:$0xff] %v755_v53  }
  0x40   :  { %v610_v62 = vmax.bf16 %v512_v54, %v224_v45  ;;  %v233_v63 = vsel %vm76_vm0, %v56_v57, 4286644096  ;;  %v236_v0 = vsel %vm76_vm0, %v57_v59, 4286644096  ;;  %v240_v1 = vsel %vm76_vm0, %v58_v60, 4286644096 }
  0x41   :  { %v611_v2 = vmax.bf16 %v519_v58, %v231_v49  ;;  %v243_v3 = vsel %vm76_vm0, %v59_v61, 4286644096  ;;  %v346_v4 = vld [vmem:[%s1345_s1 + $0xb0] sm:$0xf]  ;;  %v347_v5 = vld [vmem:[%s1345_s1 + $0xb4] sm:$0xf]  ;;  %v238_v6 = vmax.bf16 %v236_v0, %v233_v63 }
  0x42   :  { %v245_v7 = vmax.bf16 %v243_v3, %v240_v1  ;;  %v348_v8 = vld [vmem:[%s1345_s1 + $0xb8] sm:$0xf]  ;;  %v349_v9 = vld [vmem:[%s1345_s1 + $0xbc] sm:$0xf]  ;;  %v521_v10 = vsel %vm76_vm0, %v346_v4, 4286644096 }
  0x43   :  { %v757_v11 = vcombine.low %v610_v62, %v611_v2  ;;  %v524_v12 = vsel %vm76_vm0, %v347_v5, 4286644096  ;;  %v528_v13 = vsel %vm76_vm0, %v348_v8, 4286644096  ;;  %v531_v14 = vsel %vm76_vm0, %v349_v9, 4286644096 }
  0x44   :  { %v526_v15 = vmax.bf16 %v524_v12, %v521_v10  ;;  %v533_v16 = vmax.bf16 %v531_v14, %v528_v13  ;;  %v60_v17 = vld [vmem:[%s1344_s0 + $0xc0] sm:$0xf]  ;;  %v61_v18 = vld [vmem:[%s1344_s0 + $0xc4] sm:$0xf]  ;;  %v62_v19 = vld [vmem:[%s1344_s0 + $0xc8] sm:$0xf] }
  0x45   :  { %758 = vst [vmem:[%s1346_s2 + $0x50] sm:$0xff] %v757_v11   ;;  %v63_v20 = vld [vmem:[%s1344_s0 + $0xcc] sm:$0xf]  ;;  %v247_v21 = vsel %vm76_vm0, %v60_v17, 4286644096 }
  0x46   :  { %v250_v22 = vsel %vm76_vm0, %v61_v18, 4286644096  ;;  %v612_v23 = vmax.bf16 %v526_v15, %v238_v6  ;;  %v613_v24 = vmax.bf16 %v533_v16, %v245_v7  ;;  %v254_v25 = vsel %vm76_vm0, %v62_v19, 4286644096  ;;  %v350_v26 = vld [vmem:[%s1345_s1 + $0xc0] sm:$0xf] }
  0x47   :  { %v351_v27 = vld [vmem:[%s1345_s1 + $0xc4] sm:$0xf]  ;;  %v252_v28 = vmax.bf16 %v250_v22, %v247_v21  ;;  %v257_v29 = vsel %vm76_vm0, %v63_v20, 4286644096  ;;  %v352_v30 = vld [vmem:[%s1345_s1 + $0xc8] sm:$0xf] }
  0x48   :  { %v353_v31 = vld [vmem:[%s1345_s1 + $0xcc] sm:$0xf]  ;;  %v759_v32 = vcombine.low %v612_v23, %v613_v24  ;;  %v259_v33 = vmax.bf16 %v257_v29, %v254_v25  ;;  %v535_v34 = vsel %vm76_vm0, %v350_v26, 4286644096  ;;  %v538_v35 = vsel %vm76_vm0, %v351_v27, 4286644096 }
  0x49   :  { %v64_v36 = vld [vmem:[%s1344_s0 + $0xd0] sm:$0xf]  ;;  %v540_v37 = vmax.bf16 %v538_v35, %v535_v34  ;;  %v542_v38 = vsel %vm76_vm0, %v352_v30, 4286644096  ;;  %v545_v39 = vsel %vm76_vm0, %v353_v31, 4286644096 }
  0x4a   :  { %v65_v40 = vld [vmem:[%s1344_s0 + $0xd4] sm:$0xf]  ;;  %760 = vst [vmem:[%s1346_s2 + $0x58] sm:$0xff] %v759_v32   ;;  %v547_v41 = vmax.bf16 %v545_v39, %v542_v38  ;;  %v66_v42 = vld [vmem:[%s1344_s0 + $0xd8] sm:$0xf] }
  0x4b   :  { %v67_v43 = vld [vmem:[%s1344_s0 + $0xdc] sm:$0xf]  ;;  %v261_v44 = vsel %vm76_vm0, %v64_v36, 4286644096  ;;  %v614_v45 = vmax.bf16 %v540_v37, %v252_v28  ;;  %v264_v46 = vsel %vm76_vm0, %v65_v40, 4286644096 }
  0x4c   :  { %v268_v47 = vsel %vm76_vm0, %v66_v42, 4286644096  ;;  %v271_v48 = vsel %vm76_vm0, %v67_v43, 4286644096  ;;  %v615_v49 = vmax.bf16 %v547_v41, %v259_v33  ;;  %v266_v50 = vmax.bf16 %v264_v46, %v261_v44  ;;  %v354_v51 = vld [vmem:[%s1345_s1 + $0xd0] sm:$0xf] }
  0x4d   :  { %v355_v52 = vld [vmem:[%s1345_s1 + $0xd4] sm:$0xf]  ;;  %v356_v53 = vld [vmem:[%s1345_s1 + $0xd8] sm:$0xf]  ;;  %v273_v54 = vmax.bf16 %v271_v48, %v268_v47  ;;  %v357_v55 = vld [vmem:[%s1345_s1 + $0xdc] sm:$0xf] }
  0x4e   :  { %v549_v56 = vsel %vm76_vm0, %v354_v51, 4286644096  ;;  %v552_v57 = vsel %vm76_vm0, %v355_v52, 4286644096  ;;  %v761_v58 = vcombine.low %v614_v45, %v615_v49  ;;  %v556_v60 = vsel %vm76_vm0, %v356_v53, 4286644096 }
  0x4f   :  { %v554_v59 = vmax.bf16 %v552_v57, %v549_v56  ;;  %v559_v61 = vsel %vm76_vm0, %v357_v55, 4286644096  ;;  %v68_v62 = vld [vmem:[%s1344_s0 + $0xe0] sm:$0xf]  ;;  %v69_v0 = vld [vmem:[%s1344_s0 + $0xe4] sm:$0xf] }
  0x50   :  { %v561_v63 = vmax.bf16 %v559_v61, %v556_v60  ;;  %v70_v1 = vld [vmem:[%s1344_s0 + $0xe8] sm:$0xf]  ;;  %v71_v2 = vld [vmem:[%s1344_s0 + $0xec] sm:$0xf]  ;;  %762 = vst [vmem:[%s1346_s2 + $0x60] sm:$0xff] %v761_v58  }
  0x51   :  { %v616_v3 = vmax.bf16 %v554_v59, %v266_v50  ;;  %v275_v4 = vsel %vm76_vm0, %v68_v62, 4286644096  ;;  %v278_v5 = vsel %vm76_vm0, %v69_v0, 4286644096  ;;  %v282_v6 = vsel %vm76_vm0, %v70_v1, 4286644096 }
  0x52   :  { %v617_v7 = vmax.bf16 %v561_v63, %v273_v54  ;;  %v285_v8 = vsel %vm76_vm0, %v71_v2, 4286644096  ;;  %v358_v9 = vld [vmem:[%s1345_s1 + $0xe0] sm:$0xf]  ;;  %v359_v10 = vld [vmem:[%s1345_s1 + $0xe4] sm:$0xf]  ;;  %v280_v11 = vmax.bf16 %v278_v5, %v275_v4 }
  0x53   :  { %v287_v12 = vmax.bf16 %v285_v8, %v282_v6  ;;  %v360_v13 = vld [vmem:[%s1345_s1 + $0xe8] sm:$0xf]  ;;  %v361_v14 = vld [vmem:[%s1345_s1 + $0xec] sm:$0xf]  ;;  %v563_v15 = vsel %vm76_vm0, %v358_v9, 4286644096 }
  0x54   :  { %v763_v16 = vcombine.low %v616_v3, %v617_v7  ;;  %v566_v17 = vsel %vm76_vm0, %v359_v10, 4286644096  ;;  %v570_v18 = vsel %vm76_vm0, %v360_v13, 4286644096  ;;  %v573_v19 = vsel %vm76_vm0, %v361_v14, 4286644096 }
  0x55   :  { %v568_v20 = vmax.bf16 %v566_v17, %v563_v15  ;;  %v575_v21 = vmax.bf16 %v573_v19, %v570_v18  ;;  %v72_v22 = vld [vmem:[%s1344_s0 + $0xf0] sm:$0xf]  ;;  %v73_v23 = vld [vmem:[%s1344_s0 + $0xf4] sm:$0xf]  ;;  %v74_v24 = vld [vmem:[%s1344_s0 + $0xf8] sm:$0xf] }
  0x56   :  { %764 = vst [vmem:[%s1346_s2 + $0x68] sm:$0xff] %v763_v16   ;;  %v75_v25 = vld [vmem:[%s1344_s0 + $0xfc] sm:$0xf]  ;;  %v289_v26 = vsel %vm76_vm0, %v72_v22, 4286644096 }
  0x57   :  { %v292_v27 = vsel %vm76_vm0, %v73_v23, 4286644096  ;;  %v618_v28 = vmax.bf16 %v568_v20, %v280_v11  ;;  %v619_v29 = vmax.bf16 %v575_v21, %v287_v12  ;;  %v296_v30 = vsel %vm76_vm0, %v74_v24, 4286644096  ;;  %v362_v31 = vld [vmem:[%s1345_s1 + $0xf0] sm:$0xf] }
  0x58   :  { %v363_v32 = vld [vmem:[%s1345_s1 + $0xf4] sm:$0xf]  ;;  %v294_v33 = vmax.bf16 %v292_v27, %v289_v26  ;;  %v299_v34 = vsel %vm76_vm0, %v75_v25, 4286644096  ;;  %v364_v35 = vld [vmem:[%s1345_s1 + $0xf8] sm:$0xf] }
  0x59   :  { %v365_v36 = vld [vmem:[%s1345_s1 + $0xfc] sm:$0xf]  ;;  %v765_v37 = vcombine.low %v618_v28, %v619_v29  ;;  %v301_v38 = vmax.bf16 %v299_v34, %v296_v30  ;;  %v577_v39 = vsel %vm76_vm0, %v362_v31, 4286644096  ;;  %v580_v40 = vsel %vm76_vm0, %v363_v32, 4286644096 }
  0x5a   :  { %v582_v41 = vmax.bf16 %v580_v40, %v577_v39  ;;  %v584_v42 = vsel %vm76_vm0, %v364_v35, 4286644096  ;;  %v587_v43 = vsel %vm76_vm0, %v365_v36, 4286644096 }
  0x5b   :  { %766 = vst [vmem:[%s1346_s2 + $0x70] sm:$0xff] %v765_v37   ;;  %v589_v44 = vmax.bf16 %v587_v43, %v584_v42 }
  0x5c   :  { %v620_v45 = vmax.bf16 %v582_v41, %v294_v33 }
  0x5d   :  { %v621_v46 = vmax.bf16 %v589_v44, %v301_v38 }
  0x5f   :  { %v767_v47 = vcombine.low %v620_v45, %v621_v46 }
  0x61   :  { %768 = vst [vmem:[%s1346_s2 + $0x78] sm:$0xff] %v767_v47  }

// kernel: lipnet_forward.10
= control target key start
LH: loop header
LB: loop body
LE: loop exit
PB: predicated region body
PF: predicated region fallthrough
CT: control target
= control target key end

     0   :  { %s1308_s12 = smov 0   ;;  %s1510_s0 = inlined_call_operand.vmem [shape: bf16[1024,225], index: 0, kind: input, shape index: {}]   ;;  %s1511_s1 = inlined_call_operand.vmem [shape: bf16[225,128], index: 1, kind: input, shape index: {}]   ;;  %s1512_s2 = inlined_call_operand.vmem [shape: f32[1,128], index: 2, kind: input, shape index: {}]   ;;  %s1513_s3 = inlined_call_operand.vmem [shape: bf16[1024,128], index: 3, kind: output, shape index: {}]  }
   0x1 LB: > { %s941_s13 = sadd.s32 4294967295, %s1285_s12   ;;  %p945_p0 = scmp.ge.s32.totalorder %s1285_s12, 1  ;;  %s1285_s12 = sphi %s1308_s12, %s13_s12  }
   0x2   : > { %p139_p1 = scmp.lt.s32.totalorder %s1285_s12, 5 }
   0x4   : > { %p140_p2 = pnand %p945_p0, %p139_p1 }
   0x5   : > { %v1216_v0 = vld [vmem:[%s1511_s1] sm:$0xff] (!%p140_p2)   ;;  %v1287_v1 = vmov (!%p140_p2), 0   ;;  %v1217_v2 = vld [vmem:[%s1511_s1 + $0x8] sm:$0xff] (!%p140_p2)   ;;  %s946_s18 = sshll.u32 (!%p140_p2), %s941_s13, 5  ;;  %v1218_v3 = vld [vmem:[%s1511_s1 + $0x10] sm:$0xff] (!%p140_p2)   ;;  %vm477_vm0 = vcmask (!%p140_p2), 793600  }
   0x6   : > { %143 = sbr.rel (%p140_p2) target bundleno = 343 (0x157), region = 32  ;;  %532 = vmatprep.subr.bf16.mxu0 (!%p140_p2), %v1287_v1  ;;  %1177 = vmatprep.subr.bf16.mxu1 (!%p140_p2), %v1287_v1  ;;  %p165_p3 = scmp.lt.s32.totalorder (!%p140_p2), %s946_s18, 127  ;;  %v1219_v4 = vld [vmem:[%s1511_s1 + $0x18] sm:$0xff] (!%p140_p2)   ;;  %v1220_v5 = vld [vmem:[%s1511_s1 + $0x20] sm:$0xff] (!%p140_p2)   ;;  %v1221_v8 = vld [vmem:[%s1511_s1 + $0x28] sm:$0xff] (!%p140_p2)   ;;  %vm526_vm1 = vcmask (!%p140_p2), 1040384  }
   0x7   : > { %533 = vmatpush1.bf16.msra.mxu0 (!%p140_p2), %v1216_v0  ;;  %1192 = vmatpush1.bf16.msra.mxu1 (!%p140_p2), %v1216_v0  ;;  %v1222_v9 = vld [vmem:[%s1511_s1 + $0x30] sm:$0xff] (!%p140_p2)   ;;  %v1223_v10 = vld [vmem:[%s1511_s1 + $0x38] sm:$0xff] (!%p140_p2)   ;;  %v1224_v11 = vld [vmem:[%s1511_s1 + $0x40] sm:$0xff] (!%p140_p2)   ;;  %v528_v18 = vsel (!%p140_p2), %vm526_vm1, 65535, %v1287_v1 }
   0x8   : > { %534 = vmatprep.subr.bf16.mxu0 (!%p140_p2), %v1287_v1  ;;  %1178 = vmatprep.subr.bf16.mxu1 (!%p140_p2), %v1287_v1  ;;  %v1225_v12 = vld [vmem:[%s1511_s1 + $0x48] sm:$0xff] (!%p140_p2)   ;;  %v1226_v13 = vld [vmem:[%s1511_s1 + $0x50] sm:$0xff] (!%p140_p2)   ;;  %v1227_v14 = vld [vmem:[%s1511_s1 + $0x58] sm:$0xff] (!%p140_p2)  }
   0x9   : > { %v1228_v15 = vld [vmem:[%s1511_s1 + $0x60] sm:$0xff] (!%p140_p2)   ;;  %v1229_v16 = vld [vmem:[%s1511_s1 + $0x68] sm:$0xff] (!%p140_p2)   ;;  %v1230_v17 = vld [vmem:[%s1511_s1 + $0x70] ss:$0 sps:$4 sm:$0x11] (!%p140_p2)  }
   0xa   : > { %v530_v19 = vand.u32 (!%p140_p2), %v1230_v17, %v528_v18  ;;  %v1451_v50 = vld [vmem:[%s1512_s2] ss:$0 sm:$0xff] (!%p140_p2) }
   0xb   : > { %535 = vmatpush1.bf16.msra.mxu0 (!%p140_p2), %v1217_v2  ;;  %1193 = vmatpush1.bf16.msra.mxu1 (!%p140_p2), %v1217_v2 }
   0xc   : > { %536 = vmatprep.subr.bf16.mxu0 (!%p140_p2), %v1287_v1  ;;  %1179 = vmatprep.subr.bf16.mxu1 (!%p140_p2), %v1287_v1 }
   0xd   : > { %s1515_s18 = smov (!%p165_p3, %s946_s18), 127 }
   0xe   : > { %s1049_s21 = sshll.u32 %s1515_s18, 3  ;;  %s950_s27 = sshll.u32 %s1515_s18, 2 }
   0xf   : > { %537 = vmatpush1.bf16.msra.mxu0 %v1218_v3  ;;  %1194 = vmatpush1.bf16.msra.mxu1 %v1218_v3  ;;  %s1342_s26 = scalar_lea.vmem %s1510_s0, %s1049_s21  ;;  %s1461_s29 = scalar_lea.vmem %s1513_s3, %s950_s27 }
  0x10   : > { %538 = vmatprep.subr.bf16.mxu0 %v1287_v1  ;;  %1180 = vmatprep.subr.bf16.mxu1 %v1287_v1  ;;  %v1233_v6 = vld [vmem:[%s1342_s26 + $0x4] ss:$8 sps:$4 sm:$0xff]   ;;  %v1231_v20 = vld [vmem:[%s1342_s26] ss:$8 sps:$4 sm:$0xff]   ;;  %v1237_v22 = vld [vmem:[%s1342_s26 + $0x14] ss:$8 sps:$4 sm:$0xff]  }
  0x11   : > { %999 = vmatprep.mubr.msk.bf16.mxu0 %vm477_vm0, %v1233_v6  ;;  %v1236_v7 = vld [vmem:[%s1342_s26 + $0x84] ss:$8 sps:$4 sm:$0xff]   ;;  %v1234_v21 = vld [vmem:[%s1342_s26 + $0x80] ss:$8 sps:$4 sm:$0xff]   ;;  %v1239_v23 = vld [vmem:[%s1342_s26 + $0x94] ss:$8 sps:$4 sm:$0xff]  }
  0x12   : > { %1007 = vmatprep.mubr.msk.bf16.mxu1 %vm477_vm0, %v1236_v7  ;;  %v1241_v24 = vld [vmem:[%s1342_s26 + $0x10] ss:$8 sps:$4 sm:$0xff]   ;;  %v1243_v26 = vld [vmem:[%s1342_s26 + $0x24] ss:$8 sps:$4 sm:$0xff]   ;;  %v1247_v28 = vld [vmem:[%s1342_s26 + $0x20] ss:$8 sps:$4 sm:$0xff]  }
  0x13   : > { %539 = vmatpush1.bf16.msra.mxu0 %v1219_v4  ;;  %1195 = vmatpush1.bf16.msra.mxu1 %v1219_v4  ;;  %v1242_v25 = vld [vmem:[%s1342_s26 + $0x90] ss:$8 sps:$4 sm:$0xff]   ;;  %v1245_v27 = vld [vmem:[%s1342_s26 + $0xa4] ss:$8 sps:$4 sm:$0xff]   ;;  %v1248_v29 = vld [vmem:[%s1342_s26 + $0xa0] ss:$8 sps:$4 sm:$0xff]  }
  0x14   : > { %540 = vmatprep.subr.bf16.mxu0 %v1287_v1  ;;  %1181 = vmatprep.subr.bf16.mxu1 %v1287_v1  ;;  %v1249_v30 = vld [vmem:[%s1342_s26 + $0x34] ss:$8 sps:$4 sm:$0xff]   ;;  %v1253_v32 = vld [vmem:[%s1342_s26 + $0x30] ss:$8 sps:$4 sm:$0xff]   ;;  %v1255_v34 = vld [vmem:[%s1342_s26 + $0x44] ss:$8 sps:$4 sm:$0xff]  }
  0x15   : > { %v1251_v31 = vld [vmem:[%s1342_s26 + $0xb4] ss:$8 sps:$4 sm:$0xff]   ;;  %v1254_v33 = vld [vmem:[%s1342_s26 + $0xb0] ss:$8 sps:$4 sm:$0xff]   ;;  %v1257_v35 = vld [vmem:[%s1342_s26 + $0xc4] ss:$8 sps:$4 sm:$0xff]  }
  0x16   : > { %v1259_v36 = vld [vmem:[%s1342_s26 + $0x40] ss:$8 sps:$4 sm:$0xff]   ;;  %v1261_v38 = vld [vmem:[%s1342_s26 + $0x54] ss:$8 sps:$4 sm:$0xff]   ;;  %v1265_v40 = vld [vmem:[%s1342_s26 + $0x50] ss:$8 sps:$4 sm:$0xff]  }
  0x17   : > { %541 = vmatpush1.bf16.msra.mxu0 %v1220_v5  ;;  %1196 = vmatpush1.bf16.msra.mxu1 %v1220_v5  ;;  %v1260_v37 = vld [vmem:[%s1342_s26 + $0xc0] ss:$8 sps:$4 sm:$0xff]   ;;  %v1263_v39 = vld [vmem:[%s1342_s26 + $0xd4] ss:$8 sps:$4 sm:$0xff]   ;;  %v1266_v41 = vld [vmem:[%s1342_s26 + $0xd0] ss:$8 sps:$4 sm:$0xff]  }
  0x18   : > { %542 = vmatprep.subr.bf16.mxu0 %v1287_v1  ;;  %1182 = vmatprep.subr.bf16.mxu1 %v1287_v1  ;;  %v1267_v42 = vld [vmem:[%s1342_s26 + $0x64] ss:$8 sps:$4 sm:$0xff]   ;;  %v1271_v44 = vld [vmem:[%s1342_s26 + $0x60] ss:$8 sps:$4 sm:$0xff]   ;;  %v1273_v46 = vld [vmem:[%s1342_s26 + $0x74] ss:$8 sps:$4 sm:$0xff]  }
  0x19   : > { %v1269_v43 = vld [vmem:[%s1342_s26 + $0xe4] ss:$8 sps:$4 sm:$0xff]   ;;  %v1272_v45 = vld [vmem:[%s1342_s26 + $0xe0] ss:$8 sps:$4 sm:$0xff]   ;;  %v1275_v47 = vld [vmem:[%s1342_s26 + $0xf4] ss:$8 sps:$4 sm:$0xff]  }
  0x1a   : > { %v1277_v48 = vld [vmem:[%s1342_s26 + $0x70] ss:$8 sps:$4 sm:$0xff]  }
  0x1b   : > { %543 = vmatpush1.bf16.msra.mxu0 %v1221_v8  ;;  %1197 = vmatpush1.bf16.msra.mxu1 %v1221_v8  ;;  %v1278_v49 = vld [vmem:[%s1342_s26 + $0xf0] ss:$8 sps:$4 sm:$0xff]  }
  0x1c   : > { %544 = vmatprep.subr.bf16.mxu0 %v1287_v1  ;;  %1183 = vmatprep.subr.bf16.mxu1 %v1287_v1 }
  0x1f   : > { %545 = vmatpush1.bf16.msra.mxu0 %v1222_v9  ;;  %1198 = vmatpush1.bf16.msra.mxu1 %v1222_v9 }
  0x20   : > { %546 = vmatprep.subr.bf16.mxu0 %v1287_v1  ;;  %1184 = vmatprep.subr.bf16.mxu1 %v1287_v1 }
  0x23   : > { %547 = vmatpush1.bf16.msra.mxu0 %v1223_v10  ;;  %1199 = vmatpush1.bf16.msra.mxu1 %v1223_v10 }
  0x24   : > { %548 = vmatprep.subr.bf16.mxu0 %v1287_v1  ;;  %1185 = vmatprep.subr.bf16.mxu1 %v1287_v1 }
  0x27   : > { %549 = vmatpush1.bf16.msra.mxu0 %v1224_v11  ;;  %1200 = vmatpush1.bf16.msra.mxu1 %v1224_v11 }
  0x28   : > { %550 = vmatprep.subr.bf16.mxu0 %v1287_v1  ;;  %1186 = vmatprep.subr.bf16.mxu1 %v1287_v1 }
  0x2b   : > { %551 = vmatpush1.bf16.msra.mxu0 %v1225_v12  ;;  %1201 = vmatpush1.bf16.msra.mxu1 %v1225_v12 }
  0x2c   : > { %552 = vmatprep.subr.bf16.mxu0 %v1287_v1  ;;  %1187 = vmatprep.subr.bf16.mxu1 %v1287_v1 }
  0x2f   : > { %553 = vmatpush1.bf16.msra.mxu0 %v1226_v13  ;;  %1202 = vmatpush1.bf16.msra.mxu1 %v1226_v13 }
  0x30   : > { %554 = vmatprep.subr.bf16.mxu0 %v1287_v1  ;;  %1188 = vmatprep.subr.bf16.mxu1 %v1287_v1 }
  0x33   : > { %555 = vmatpush1.bf16.msra.mxu0 %v1227_v14  ;;  %1203 = vmatpush1.bf16.msra.mxu1 %v1227_v14 }
  0x34   : > { %556 = vmatprep.subr.bf16.mxu0 %v1287_v1  ;;  %1189 = vmatprep.subr.bf16.mxu1 %v1287_v1 }
  0x37   : > { %557 = vmatpush1.bf16.msra.mxu0 %v1228_v15  ;;  %1204 = vmatpush1.bf16.msra.mxu1 %v1228_v15 }
  0x38   : > { %558 = vmatprep.subr.bf16.mxu0 %v1287_v1  ;;  %1190 = vmatprep.subr.bf16.mxu1 %v1287_v1 }
  0x3b   : > { %559 = vmatpush1.bf16.msra.mxu0 %v1229_v16  ;;  %1205 = vmatpush1.bf16.msra.mxu1 %v1229_v16 }
  0x3c   : > { %560 = vmatprep.subr.bf16.mxu0 %v1287_v1  ;;  %1191 = vmatprep.subr.bf16.mxu1 %v1287_v1 }
  0x3f   : > { %561 = vmatpush1.bf16.msra.mxu0 %v530_v19  ;;  %1206 = vmatpush1.bf16.msra.mxu1 %v530_v19 }
  0x42   : > { %565 = vmatmul.mubr.bf16.vlgmr.msra.gmra.mrb[0].mxu0 %v1231_v20  ;;  %629 = vmatmul.mubr.bf16.vlgmr.msra.gmra.mrb[0].mxu1 %v1234_v21 }
  0x43   : > { %1000 = vmatprep.mubr.msk.bf16.mxu0 %vm477_vm0, %v1237_v22  ;;  %1008 = vmatprep.mubr.msk.bf16.mxu1 %vm477_vm0, %v1239_v23 }
  0x4a   : > { %573 = vmatmul.mubr.bf16.gmra.mrb[4].mxu0 %v1241_v24  ;;  %637 = vmatmul.mubr.bf16.gmra.mrb[4].mxu1 %v1242_v25 }
  0x4b   : > { %1001 = vmatprep.mubr.msk.bf16.mxu0 %vm477_vm0, %v1243_v26  ;;  %1009 = vmatprep.mubr.msk.bf16.mxu1 %vm477_vm0, %v1245_v27 }
  0x52   : > { %581 = vmatmul.mubr.bf16.gmra.mrb[8].mxu0 %v1247_v28  ;;  %645 = vmatmul.mubr.bf16.gmra.mrb[8].mxu1 %v1248_v29 }
  0x53   : > { %1002 = vmatprep.mubr.msk.bf16.mxu0 %vm477_vm0, %v1249_v30  ;;  %1010 = vmatprep.mubr.msk.bf16.mxu1 %vm477_vm0, %v1251_v31 }
  0x5a   : > { %589 = vmatmul.mubr.bf16.gmra.mrb[12].mxu0 %v1253_v32  ;;  %653 = vmatmul.mubr.bf16.gmra.mrb[12].mxu1 %v1254_v33 }
  0x5b   : > { %1003 = vmatprep.mubr.msk.bf16.mxu0 %vm477_vm0, %v1255_v34  ;;  %1011 = vmatprep.mubr.msk.bf16.mxu1 %vm477_vm0, %v1257_v35 }
  0x62   : > { %597 = vmatmul.mubr.bf16.gmra.mrb[16].mxu0 %v1259_v36  ;;  %661 = vmatmul.mubr.bf16.gmra.mrb[16].mxu1 %v1260_v37 }
  0x63   : > { %1004 = vmatprep.mubr.msk.bf16.mxu0 %vm477_vm0, %v1261_v38  ;;  %1012 = vmatprep.mubr.msk.bf16.mxu1 %vm477_vm0, %v1263_v39 }
  0x6a   : > { %605 = vmatmul.mubr.bf16.gmra.mrb[20].mxu0 %v1265_v40  ;;  %669 = vmatmul.mubr.bf16.gmra.mrb[20].mxu1 %v1266_v41 }
  0x6b   : > { %1005 = vmatprep.mubr.msk.bf16.mxu0 %vm477_vm0, %v1267_v42  ;;  %1013 = vmatprep.mubr.msk.bf16.mxu1 %vm477_vm0, %v1269_v43 }
  0x72   : > { %613 = vmatmul.mubr.bf16.gmra.mrb[24].mxu0 %v1271_v44  ;;  %677 = vmatmul.mubr.bf16.gmra.mrb[24].mxu1 %v1272_v45 }
  0x73   : > { %1006 = vmatprep.mubr.msk.bf16.mxu0 %vm477_vm0, %v1273_v46  ;;  %1014 = vmatprep.mubr.msk.bf16.mxu1 %vm477_vm0, %v1275_v47 }
  0x7a   : > { %621 = vmatmul.mubr.bf16.gmra.mrb[28].mxu0 %v1277_v48  ;;  %685 = vmatmul.mubr.bf16.gmra.mrb[28].mxu1 %v1278_v49 }
 0x115   : > { %v566_v51 = vpop.f32.mrb[0].mxu0  ;;  %v630_v52 = vpop.f32.mrb[0].mxu1 }
 0x116   : > { %v567_v53 = vadd.f32 %v1451_v50, %v566_v51  ;;  %v631_v54 = vadd.f32 %v1451_v50, %v630_v52  ;;  %v568_v55 = vpop.f32.mrb[1].mxu0  ;;  %v632_v56 = vpop.f32.mrb[1].mxu1 }
 0x117   : > { %v569_v57 = vpop.f32.mrb[2].mxu0  ;;  %v633_v58 = vpop.f32.mrb[2].mxu1 }
 0x118   : > { %v570_v59 = vadd.f32 %v1451_v50, %v569_v57  ;;  %v634_v60 = vadd.f32 %v1451_v50, %v633_v58  ;;  %v571_v61 = vpop.f32.mrb[3].mxu0  ;;  %v635_v62 = vpop.f32.mrb[3].mxu1  ;;  %v693_v63 = vmax.f32 %v567_v53, 0.0  ;;  %v709_v0 = vmax.f32 %v631_v54, 0.0 }
 0x11a   : > { %v694_v1 = vmax.f32 %v570_v59, 0.0  ;;  %v710_v2 = vmax.f32 %v634_v60, 0.0 }
 0x11c   : > { %v1085_v3 = vpack.c.bf16 %v694_v1, %v693_v63  ;;  %v1125_v4 = vpack.c.bf16 %v710_v2, %v709_v0 }
 0x11d   : > { %v574_v5 = vpop.f32.mrb[4].mxu0  ;;  %v638_v6 = vpop.f32.mrb[4].mxu1 }
 0x11e   : > { %1086 = vst [vmem:[%s1461_s29] sm:$0xff] %v1085_v3   ;;  %1169 = vst [vmem:[%s1461_s29 + $0x40] sm:$0xff] %v1125_v4   ;;  %v575_v7 = vadd.f32 %v1451_v50, %v574_v5  ;;  %v639_v8 = vadd.f32 %v1451_v50, %v638_v6  ;;  %v576_v9 = vpop.f32.mrb[5].mxu0  ;;  %v640_v10 = vpop.f32.mrb[5].mxu1 }
 0x11f   : > { %v577_v11 = vpop.f32.mrb[6].mxu0  ;;  %v641_v12 = vpop.f32.mrb[6].mxu1 }
 0x120   : > { %v578_v13 = vadd.f32 %v1451_v50, %v577_v11  ;;  %v642_v14 = vadd.f32 %v1451_v50, %v641_v12  ;;  %v579_v15 = vpop.f32.mrb[7].mxu0  ;;  %v643_v16 = vpop.f32.mrb[7].mxu1  ;;  %v695_v17 = vmax.f32 %v575_v7, 0.0  ;;  %v711_v18 = vmax.f32 %v639_v8, 0.0 }
 0x122   : > { %v696_v19 = vmax.f32 %v578_v13, 0.0  ;;  %v712_v20 = vmax.f32 %v642_v14, 0.0 }
 0x124   : > { %v1090_v21 = vpack.c.bf16 %v696_v19, %v695_v17  ;;  %v1130_v22 = vpack.c.bf16 %v712_v20, %v711_v18 }
 0x125   : > { %v582_v23 = vpop.f32.mrb[8].mxu0  ;;  %v646_v24 = vpop.f32.mrb[8].mxu1 }
 0x126   : > { %1162 = vst [vmem:[%s1461_s29 + $0x8] sm:$0xff] %v1090_v21   ;;  %1170 = vst [vmem:[%s1461_s29 + $0x48] sm:$0xff] %v1130_v22   ;;  %v583_v25 = vadd.f32 %v1451_v50, %v582_v23  ;;  %v647_v26 = vadd.f32 %v1451_v50, %v646_v24  ;;  %v584_v27 = vpop.f32.mrb[9].mxu0  ;;  %v648_v28 = vpop.f32.mrb[9].mxu1 }
 0x127   : > { %v585_v29 = vpop.f32.mrb[10].mxu0  ;;  %v649_v30 = vpop.f32.mrb[10].mxu1 }
 0x128   : > { %v586_v31 = vadd.f32 %v1451_v50, %v585_v29  ;;  %v650_v32 = vadd.f32 %v1451_v50, %v649_v30  ;;  %v587_v33 = vpop.f32.mrb[11].mxu0  ;;  %v651_v34 = vpop.f32.mrb[11].mxu1  ;;  %v697_v35 = vmax.f32 %v583_v25, 0.0  ;;  %v713_v36 = vmax.f32 %v647_v26, 0.0 }
 0x12a   : > { %v698_v37 = vmax.f32 %v586_v31, 0.0  ;;  %v714_v38 = vmax.f32 %v650_v32, 0.0 }
 0x12c   : > { %v1095_v39 = vpack.c.bf16 %v698_v37, %v697_v35  ;;  %v1135_v40 = vpack.c.bf16 %v714_v38, %v713_v36 }
 0x12d   : > { %v590_v41 = vpop.f32.mrb[12].mxu0  ;;  %v654_v42 = vpop.f32.mrb[12].mxu1 }
 0x12e   : > { %1163 = vst [vmem:[%s1461_s29 + $0x10] sm:$0xff] %v1095_v39   ;;  %1171 = vst [vmem:[%s1461_s29 + $0x50] sm:$0xff] %v1135_v40   ;;  %v591_v43 = vadd.f32 %v1451_v50, %v590_v41  ;;  %v655_v44 = vadd.f32 %v1451_v50, %v654_v42  ;;  %v592_v45 = vpop.f32.mrb[13].mxu0  ;;  %v656_v46 = vpop.f32.mrb[13].mxu1 }
 0x12f   : > { %v593_v47 = vpop.f32.mrb[14].mxu0  ;;  %v657_v48 = vpop.f32.mrb[14].mxu1 }
 0x130   : > { %v594_v49 = vadd.f32 %v1451_v50, %v593_v47  ;;  %v658_v51 = vadd.f32 %v1451_v50, %v657_v48  ;;  %v595_v52 = vpop.f32.mrb[15].mxu0  ;;  %v659_v53 = vpop.f32.mrb[15].mxu1  ;;  %v699_v54 = vmax.f32 %v591_v43, 0.0  ;;  %v715_v55 = vmax.f32 %v655_v44, 0.0 }
 0x132   : > { %v700_v56 = vmax.f32 %v594_v49, 0.0  ;;  %v716_v57 = vmax.f32 %v658_v51, 0.0 }
 0x134   : > { %v1100_v58 = vpack.c.bf16 %v700_v56, %v699_v54  ;;  %v1140_v59 = vpack.c.bf16 %v716_v57, %v715_v55 }
 0x135   : > { %v598_v60 = vpop.f32.mrb[16].mxu0  ;;  %v662_v61 = vpop.f32.mrb[16].mxu1 }
 0x136   : > { %1164 = vst [vmem:[%s1461_s29 + $0x18] sm:$0xff] %v1100_v58   ;;  %1172 = vst [vmem:[%s1461_s29 + $0x58] sm:$0xff] %v1140_v59   ;;  %v599_v62 = vadd.f32 %v1451_v50, %v598_v60  ;;  %v663_v63 = vadd.f32 %v1451_v50, %v662_v61  ;;  %v600_v0 = vpop.f32.mrb[17].mxu0  ;;  %v664_v1 = vpop.f32.mrb[17].mxu1 }
 0x137   : > { %v601_v2 = vpop.f32.mrb[18].mxu0  ;;  %v665_v3 = vpop.f32.mrb[18].mxu1 }
 0x138   : > { %v602_v4 = vadd.f32 %v1451_v50, %v601_v2  ;;  %v666_v5 = vadd.f32 %v1451_v50, %v665_v3  ;;  %v603_v6 = vpop.f32.mrb[19].mxu0  ;;  %v667_v7 = vpop.f32.mrb[19].mxu1  ;;  %v701_v8 = vmax.f32 %v599_v62, 0.0  ;;  %v717_v9 = vmax.f32 %v663_v63, 0.0 }
 0x13a   : > { %v702_v10 = vmax.f32 %v602_v4, 0.0  ;;  %v718_v11 = vmax.f32 %v666_v5, 0.0 }
 0x13c   : > { %v1105_v12 = vpack.c.bf16 %v702_v10, %v701_v8  ;;  %v1145_v13 = vpack.c.bf16 %v718_v11, %v717_v9 }
 0x13d   : > { %v606_v14 = vpop.f32.mrb[20].mxu0  ;;  %v670_v15 = vpop.f32.mrb[20].mxu1 }
 0x13e   : > { %1165 = vst [vmem:[%s1461_s29 + $0x20] sm:$0xff] %v1105_v12   ;;  %1173 = vst [vmem:[%s1461_s29 + $0x60] sm:$0xff] %v1145_v13   ;;  %v607_v16 = vadd.f32 %v1451_v50, %v606_v14  ;;  %v671_v17 = vadd.f32 %v1451_v50, %v670_v15  ;;  %v608_v18 = vpop.f32.mrb[21].mxu0  ;;  %v672_v19 = vpop.f32.mrb[21].mxu1 }
 0x13f   : > { %v609_v20 = vpop.f32.mrb[22].mxu0  ;;  %v673_v21 = vpop.f32.mrb[22].mxu1 }
 0x140   : > { %v610_v22 = vadd.f32 %v1451_v50, %v609_v20  ;;  %v674_v23 = vadd.f32 %v1451_v50, %v673_v21  ;;  %v611_v24 = vpop.f32.mrb[23].mxu0  ;;  %v675_v25 = vpop.f32.mrb[23].mxu1  ;;  %v703_v26 = vmax.f32 %v607_v16, 0.0  ;;  %v719_v27 = vmax.f32 %v671_v17, 0.0 }
 0x142   : > { %v704_v28 = vmax.f32 %v610_v22, 0.0  ;;  %v720_v29 = vmax.f32 %v674_v23, 0.0 }
 0x144   : > { %v1110_v30 = vpack.c.bf16 %v704_v28, %v703_v26  ;;  %v1150_v31 = vpack.c.bf16 %v720_v29, %v719_v27 }
 0x145   : > { %v614_v32 = vpop.f32.mrb[24].mxu0  ;;  %v678_v33 = vpop.f32.mrb[24].mxu1 }
 0x146   : > { %1166 = vst [vmem:[%s1461_s29 + $0x28] sm:$0xff] %v1110_v30   ;;  %1174 = vst [vmem:[%s1461_s29 + $0x68] sm:$0xff] %v1150_v31   ;;  %v615_v34 = vadd.f32 %v1451_v50, %v614_v32  ;;  %v679_v35 = vadd.f32 %v1451_v50, %v678_v33  ;;  %v616_v36 = vpop.f32.mrb[25].mxu0  ;;  %v680_v37 = vpop.f32.mrb[25].mxu1 }
 0x147   : > { %v617_v38 = vpop.f32.mrb[26].mxu0  ;;  %v681_v39 = vpop.f32.mrb[26].mxu1 }
 0x148   : > { %v618_v40 = vadd.f32 %v1451_v50, %v617_v38  ;;  %v682_v41 = vadd.f32 %v1451_v50, %v681_v39  ;;  %v619_v42 = vpop.f32.mrb[27].mxu0  ;;  %v683_v43 = vpop.f32.mrb[27].mxu1  ;;  %v705_v44 = vmax.f32 %v615_v34, 0.0  ;;  %v721_v45 = vmax.f32 %v679_v35, 0.0 }
 0x14a   : > { %v706_v46 = vmax.f32 %v618_v40, 0.0  ;;  %v722_v47 = vmax.f32 %v682_v41, 0.0 }
 0x14c   : > { %v1115_v48 = vpack.c.bf16 %v706_v46, %v705_v44  ;;  %v1155_v49 = vpack.c.bf16 %v722_v47, %v721_v45 }
 0x14d   : > { %v622_v51 = vpop.f32.mrb[28].mxu0  ;;  %v686_v52 = vpop.f32.mrb[28].mxu1 }
 0x14e   : > { %1167 = vst [vmem:[%s1461_s29 + $0x30] sm:$0xff] %v1115_v48   ;;  %1175 = vst [vmem:[%s1461_s29 + $0x70] sm:$0xff] %v1155_v49   ;;  %v623_v53 = vadd.f32 %v1451_v50, %v622_v51  ;;  %v687_v54 = vadd.f32 %v1451_v50, %v686_v52  ;;  %v624_v55 = vpop.f32.mrb[29].mxu0  ;;  %v688_v56 = vpop.f32.mrb[29].mxu1 }
 0x14f   : > { %v625_v57 = vpop.f32.mrb[30].mxu0  ;;  %v689_v58 = vpop.f32.mrb[30].mxu1 }
 0x150   : > { %v626_v59 = vadd.f32 %v1451_v50, %v625_v57  ;;  %v690_v60 = vadd.f32 %v1451_v50, %v689_v58  ;;  %v627_v61 = vpop.f32.mrb[31].mxu0  ;;  %v691_v62 = vpop.f32.mrb[31].mxu1  ;;  %v707_v63 = vmax.f32 %v623_v53, 0.0  ;;  %v723_v0 = vmax.f32 %v687_v54, 0.0 }
 0x152   : > { %v708_v1 = vmax.f32 %v626_v59, 0.0  ;;  %v724_v2 = vmax.f32 %v690_v60, 0.0 }
 0x154   : > { %v1120_v3 = vpack.c.bf16 %v708_v1, %v707_v63  ;;  %v1160_v4 = vpack.c.bf16 %v724_v2, %v723_v0 }
 0x156   : > { %1168 = vst [vmem:[%s1461_s29 + $0x38] sm:$0xff] %v1120_v3   ;;  %1176 = vst [vmem:[%s1461_s29 + $0x78] sm:$0xff] %v1160_v4  }
 0x157 PF: > { %s13_s12 = sadd.s32 1, %s1285_s12  }
 0x158   : > { %p10_p4 = scmp.ge.s32.totalorder %s13_s12, 6  }
 0x15a   :  { %12 = sbr.rel (!%p10_p4) target bundleno = 1 (0x1), region = 62 }

// kernel: lipnet_forward.13
= control target key start
LH: loop header
LB: loop body
LE: loop exit
PB: predicated region body
PF: predicated region fallthrough
CT: control target
= control target key end

     0   :  { %vm44_vm0 = vcmask 1041408   ;;  %s657_s0 = inlined_call_operand.vmem [shape: bf16[16,2,4,128], index: 0, kind: input, shape index: {}]   ;;  %s658_s1 = inlined_call_operand.vmem [shape: bf16[16,2,4,128], index: 1, kind: input, shape index: {}]   ;;  %s659_s2 = inlined_call_operand.vmem [shape: bf16[16,4,128], index: 2, kind: output, shape index: {}]  }
   0x1   :  { %v12_v0 = vld [vmem:[%s657_s0] sm:$0x3]  ;;  %v13_v1 = vld [vmem:[%s657_s0 + $0x2] sm:$0x3]  ;;  %v14_v9 = vld [vmem:[%s657_s0 + $0x4] sm:$0x3] }
   0x2   :  { %v158_v2 = vld [vmem:[%s658_s1] sm:$0x3]  ;;  %v47_v3 = vsel %vm44_vm0, %v12_v0, 4286644096  ;;  %v50_v4 = vsel %vm44_vm0, %v13_v1, 4286644096 }
   0x3   :  { %v159_v5 = vld [vmem:[%s658_s1 + $0x2] sm:$0x3]  ;;  %v52_v6 = vmax.bf16 %v50_v4, %v47_v3  ;;  %v191_v7 = vsel %vm44_vm0, %v158_v2, 4286644096  ;;  %v15_v11 = vld [vmem:[%s657_s0 + $0x6] sm:$0x3] }
   0x4   :  { %v194_v8 = vsel %vm44_vm0, %v159_v5, 4286644096  ;;  %v54_v12 = vsel %vm44_vm0, %v14_v9, 4286644096  ;;  %v160_v13 = vld [vmem:[%s658_s1 + $0x4] sm:$0x3] }
   0x5   :  { %v196_v10 = vmax.bf16 %v194_v8, %v191_v7  ;;  %v57_v14 = vsel %vm44_vm0, %v15_v11, 4286644096  ;;  %v161_v15 = vld [vmem:[%s658_s1 + $0x6] sm:$0x3]  ;;  %v198_v16 = vsel %vm44_vm0, %v160_v13, 4286644096 }
   0x6   :  { %v59_v18 = vmax.bf16 %v57_v14, %v54_v12  ;;  %v201_v19 = vsel %vm44_vm0, %v161_v15, 4286644096  ;;  %v16_v20 = vld [vmem:[%s657_s0 + $0x8] sm:$0x3]  ;;  %v17_v21 = vld [vmem:[%s657_s0 + $0xa] sm:$0x3] }
   0x7   :  { %v302_v17 = vmax.bf16 %v196_v10, %v52_v6  ;;  %v203_v22 = vmax.bf16 %v201_v19, %v198_v16  ;;  %v61_v23 = vsel %vm44_vm0, %v16_v20, 4286644096  ;;  %v64_v24 = vsel %vm44_vm0, %v17_v21, 4286644096  ;;  %v162_v25 = vld [vmem:[%s658_s1 + $0x8] sm:$0x3] }
   0x8   :  { %v66_v26 = vmax.bf16 %v64_v24, %v61_v23  ;;  %v163_v27 = vld [vmem:[%s658_s1 + $0xa] sm:$0x3]  ;;  %v205_v28 = vsel %vm44_vm0, %v162_v25, 4286644096  ;;  %v18_v29 = vld [vmem:[%s657_s0 + $0xc] sm:$0x3] }
   0x9   :  { %318 = vst [vmem:[%s659_s2] sm:$0x3] %v302_v17  ;;  %v303_v30 = vmax.bf16 %v203_v22, %v59_v18  ;;  %v208_v31 = vsel %vm44_vm0, %v163_v27, 4286644096  ;;  %v19_v32 = vld [vmem:[%s657_s0 + $0xe] sm:$0x3] }
   0xa   :  { %v68_v33 = vsel %vm44_vm0, %v18_v29, 4286644096  ;;  %v210_v34 = vmax.bf16 %v208_v31, %v205_v28  ;;  %v71_v35 = vsel %vm44_vm0, %v19_v32, 4286644096  ;;  %v164_v36 = vld [vmem:[%s658_s1 + $0xc] sm:$0x3] }
   0xb   :  { %v165_v37 = vld [vmem:[%s658_s1 + $0xe] sm:$0x3]  ;;  %319 = vst [vmem:[%s659_s2 + $0x2] sm:$0x3] %v303_v30  ;;  %v73_v38 = vmax.bf16 %v71_v35, %v68_v33  ;;  %v212_v39 = vsel %vm44_vm0, %v164_v36, 4286644096 }
   0xc   :  { %v215_v40 = vsel %vm44_vm0, %v165_v37, 4286644096  ;;  %v20_v41 = vld [vmem:[%s657_s0 + $0x10] sm:$0x3]  ;;  %v304_v42 = vmax.bf16 %v210_v34, %v66_v26  ;;  %v21_v44 = vld [vmem:[%s657_s0 + $0x12] sm:$0x3] }
   0xd   :  { %v217_v43 = vmax.bf16 %v215_v40, %v212_v39  ;;  %v75_v45 = vsel %vm44_vm0, %v20_v41, 4286644096  ;;  %v166_v46 = vld [vmem:[%s658_s1 + $0x10] sm:$0x3]  ;;  %v78_v47 = vsel %vm44_vm0, %v21_v44, 4286644096 }
   0xe   :  { %v167_v48 = vld [vmem:[%s658_s1 + $0x12] sm:$0x3]  ;;  %v219_v49 = vsel %vm44_vm0, %v166_v46, 4286644096  ;;  %320 = vst [vmem:[%s659_s2 + $0x4] sm:$0x3] %v304_v42  ;;  %v80_v51 = vmax.bf16 %v78_v47, %v75_v45 }
   0xf   :  { %v305_v50 = vmax.bf16 %v217_v43, %v73_v38  ;;  %v222_v52 = vsel %vm44_vm0, %v167_v48, 4286644096  ;;  %v22_v53 = vld [vmem:[%s657_s0 + $0x14] sm:$0x3]  ;;  %v23_v54 = vld [vmem:[%s657_s0 + $0x16] sm:$0x3] }
  0x10   :  { %v224_v55 = vmax.bf16 %v222_v52, %v219_v49  ;;  %v82_v56 = vsel %vm44_vm0, %v22_v53, 4286644096  ;;  %v85_v57 = vsel %vm44_vm0, %v23_v54, 4286644096  ;;  %v168_v58 = vld [vmem:[%s658_s1 + $0x14] sm:$0x3] }
  0x11   :  { %321 = vst [vmem:[%s659_s2 + $0x6] sm:$0x3] %v305_v50  ;;  %v87_v59 = vmax.bf16 %v85_v57, %v82_v56  ;;  %v169_v60 = vld [vmem:[%s658_s1 + $0x16] sm:$0x3]  ;;  %v226_v61 = vsel %vm44_vm0, %v168_v58, 4286644096 }
  0x12   :  { %v24_v62 = vld [vmem:[%s657_s0 + $0x18] sm:$0x3]  ;;  %v306_v63 = vmax.bf16 %v224_v55, %v80_v51  ;;  %v229_v0 = vsel %vm44_vm0, %v169_v60, 4286644096  ;;  %v25_v1 = vld [vmem:[%s657_s0 + $0x1a] sm:$0x3] }
  0x13   :  { %v89_v2 = vsel %vm44_vm0, %v24_v62, 4286644096  ;;  %v231_v3 = vmax.bf16 %v229_v0, %v226_v61  ;;  %v92_v4 = vsel %vm44_vm0, %v25_v1, 4286644096  ;;  %v170_v5 = vld [vmem:[%s658_s1 + $0x18] sm:$0x3] }
  0x14   :  { %v171_v6 = vld [vmem:[%s658_s1 + $0x1a] sm:$0x3]  ;;  %322 = vst [vmem:[%s659_s2 + $0x8] sm:$0x3] %v306_v63  ;;  %v94_v7 = vmax.bf16 %v92_v4, %v89_v2  ;;  %v233_v8 = vsel %vm44_vm0, %v170_v5, 4286644096 }
  0x15   :  { %v236_v9 = vsel %vm44_vm0, %v171_v6, 4286644096  ;;  %v26_v10 = vld [vmem:[%s657_s0 + $0x1c] sm:$0x3]  ;;  %v307_v11 = vmax.bf16 %v231_v3, %v87_v59  ;;  %v27_v13 = vld [vmem:[%s657_s0 + $0x1e] sm:$0x3] }
  0x16   :  { %v238_v12 = vmax.bf16 %v236_v9, %v233_v8  ;;  %v96_v14 = vsel %vm44_vm0, %v26_v10, 4286644096  ;;  %v172_v15 = vld [vmem:[%s658_s1 + $0x1c] sm:$0x3]  ;;  %v99_v16 = vsel %vm44_vm0, %v27_v13, 4286644096 }
  0x17   :  { %v173_v17 = vld [vmem:[%s658_s1 + $0x1e] sm:$0x3]  ;;  %v240_v18 = vsel %vm44_vm0, %v172_v15, 4286644096  ;;  %323 = vst [vmem:[%s659_s2 + $0xa] sm:$0x3] %v307_v11  ;;  %v101_v20 = vmax.bf16 %v99_v16, %v96_v14 }
  0x18   :  { %v308_v19 = vmax.bf16 %v238_v12, %v94_v7  ;;  %v243_v21 = vsel %vm44_vm0, %v173_v17, 4286644096  ;;  %v28_v22 = vld [vmem:[%s657_s0 + $0x20] sm:$0x3]  ;;  %v29_v23 = vld [vmem:[%s657_s0 + $0x22] sm:$0x3] }
  0x19   :  { %v245_v24 = vmax.bf16 %v243_v21, %v240_v18  ;;  %v103_v25 = vsel %vm44_vm0, %v28_v22, 4286644096  ;;  %v106_v26 = vsel %vm44_vm0, %v29_v23, 4286644096  ;;  %v174_v27 = vld [vmem:[%s658_s1 + $0x20] sm:$0x3] }
  0x1a   :  { %324 = vst [vmem:[%s659_s2 + $0xc] sm:$0x3] %v308_v19  ;;  %v108_v28 = vmax.bf16 %v106_v26, %v103_v25  ;;  %v175_v29 = vld [vmem:[%s658_s1 + $0x22] sm:$0x3]  ;;  %v247_v30 = vsel %vm44_vm0, %v174_v27, 4286644096 }
  0x1b   :  { %v30_v31 = vld [vmem:[%s657_s0 + $0x24] sm:$0x3]  ;;  %v309_v32 = vmax.bf16 %v245_v24, %v101_v20  ;;  %v250_v33 = vsel %vm44_vm0, %v175_v29, 4286644096  ;;  %v31_v34 = vld [vmem:[%s657_s0 + $0x26] sm:$0x3] }
  0x1c   :  { %v110_v35 = vsel %vm44_vm0, %v30_v31, 4286644096  ;;  %v252_v36 = vmax.bf16 %v250_v33, %v247_v30  ;;  %v113_v37 = vsel %vm44_vm0, %v31_v34, 4286644096  ;;  %v176_v38 = vld [vmem:[%s658_s1 + $0x24] sm:$0x3] }
  0x1d   :  { %v177_v39 = vld [vmem:[%s658_s1 + $0x26] sm:$0x3]  ;;  %325 = vst [vmem:[%s659_s2 + $0xe] sm:$0x3] %v309_v32  ;;  %v115_v40 = vmax.bf16 %v113_v37, %v110_v35  ;;  %v254_v41 = vsel %vm44_vm0, %v176_v38, 4286644096 }
  0x1e   :  { %v257_v42 = vsel %vm44_vm0, %v177_v39, 4286644096  ;;  %v32_v43 = vld [vmem:[%s657_s0 + $0x28] sm:$0x3]  ;;  %v310_v44 = vmax.bf16 %v252_v36, %v108_v28  ;;  %v33_v46 = vld [vmem:[%s657_s0 + $0x2a] sm:$0x3] }
  0x1f   :  { %v259_v45 = vmax.bf16 %v257_v42, %v254_v41  ;;  %v117_v47 = vsel %vm44_vm0, %v32_v43, 4286644096  ;;  %v178_v48 = vld [vmem:[%s658_s1 + $0x28] sm:$0x3]  ;;  %v120_v49 = vsel %vm44_vm0, %v33_v46, 4286644096 }
  0x20   :  { %v179_v50 = vld [vmem:[%s658_s1 + $0x2a] sm:$0x3]  ;;  %v261_v51 = vsel %vm44_vm0, %v178_v48, 4286644096  ;;  %326 = vst [vmem:[%s659_s2 + $0x10] sm:$0x3] %v310_v44  ;;  %v122_v53 = vmax.bf16 %v120_v49, %v117_v47 }
  0x21   :  { %v311_v52 = vmax.bf16 %v259_v45, %v115_v40  ;;  %v264_v54 = vsel %vm44_vm0, %v179_v50, 4286644096  ;;  %v34_v55 = vld [vmem:[%s657_s0 + $0x2c] sm:$0x3]  ;;  %v35_v56 = vld [vmem:[%s657_s0 + $0x2e] sm:$0x3] }
  0x22   :  { %v266_v57 = vmax.bf16 %v264_v54, %v261_v51  ;;  %v124_v58 = vsel %vm44_vm0, %v34_v55, 4286644096  ;;  %v127_v59 = vsel %vm44_vm0, %v35_v56, 4286644096  ;;  %v180_v60 = vld [vmem:[%s658_s1 + $0x2c] sm:$0x3] }
  0x23   :  { %327 = vst [vmem:[%s659_s2 + $0x12] sm:$0x3] %v311_v52  ;;  %v129_v61 = vmax.bf16 %v127_v59, %v124_v58  ;;  %v181_v62 = vld [vmem:[%s658_s1 + $0x2e] sm:$0x3]  ;;  %v268_v63 = vsel %vm44_vm0, %v180_v60, 4286644096 }
  0x24   :  { %v36_v0 = vld [vmem:[%s657_s0 + $0x30] sm:$0x3]  ;;  %v312_v1 = vmax.bf16 %v266_v57, %v122_v53  ;;  %v271_v2 = vsel %vm44_vm0, %v181_v62, 4286644096  ;;  %v37_v3 = vld [vmem:[%s657_s0 + $0x32] sm:$0x3] }
  0x25   :  { %v131_v4 = vsel %vm44_vm0, %v36_v0, 4286644096  ;;  %v273_v5 = vmax.bf16 %v271_v2, %v268_v63  ;;  %v134_v6 = vsel %vm44_vm0, %v37_v3, 4286644096  ;;  %v182_v7 = vld [vmem:[%s658_s1 + $0x30] sm:$0x3] }
  0x26   :  { %v183_v8 = vld [vmem:[%s658_s1 + $0x32] sm:$0x3]  ;;  %328 = vst [vmem:[%s659_s2 + $0x14] sm:$0x3] %v312_v1  ;;  %v136_v9 = vmax.bf16 %v134_v6, %v131_v4  ;;  %v275_v10 = vsel %vm44_vm0, %v182_v7, 4286644096 }
  0x27   :  { %v278_v11 = vsel %vm44_vm0, %v183_v8, 4286644096  ;;  %v38_v12 = vld [vmem:[%s657_s0 + $0x34] sm:$0x3]  ;;  %v313_v13 = vmax.bf16 %v273_v5, %v129_v61  ;;  %v39_v15 = vld [vmem:[%s657_s0 + $0x36] sm:$0x3] }
  0x28   :  { %v280_v14 = vmax.bf16 %v278_v11, %v275_v10  ;;  %v138_v16 = vsel %vm44_vm0, %v38_v12, 4286644096  ;;  %v184_v17 = vld [vmem:[%s658_s1 + $0x34] sm:$0x3]  ;;  %v141_v18 = vsel %vm44_vm0, %v39_v15, 4286644096 }
  0x29   :  { %v185_v19 = vld [vmem:[%s658_s1 + $0x36] sm:$0x3]  ;;  %v282_v20 = vsel %vm44_vm0, %v184_v17, 4286644096  ;;  %329 = vst [vmem:[%s659_s2 + $0x16] sm:$0x3] %v313_v13  ;;  %v143_v22 = vmax.bf16 %v141_v18, %v138_v16 }
  0x2a   :  { %v314_v21 = vmax.bf16 %v280_v14, %v136_v9  ;;  %v285_v23 = vsel %vm44_vm0, %v185_v19, 4286644096  ;;  %v40_v24 = vld [vmem:[%s657_s0 + $0x38] sm:$0x3]  ;;  %v41_v25 = vld [vmem:[%s657_s0 + $0x3a] sm:$0x3] }
  0x2b   :  { %v287_v26 = vmax.bf16 %v285_v23, %v282_v20  ;;  %v145_v27 = vsel %vm44_vm0, %v40_v24, 4286644096  ;;  %v148_v28 = vsel %vm44_vm0, %v41_v25, 4286644096  ;;  %v186_v29 = vld [vmem:[%s658_s1 + $0x38] sm:$0x3] }
  0x2c   :  { %330 = vst [vmem:[%s659_s2 + $0x18] sm:$0x3] %v314_v21  ;;  %v150_v30 = vmax.bf16 %v148_v28, %v145_v27  ;;  %v187_v31 = vld [vmem:[%s658_s1 + $0x3a] sm:$0x3]  ;;  %v289_v32 = vsel %vm44_vm0, %v186_v29, 4286644096 }
  0x2d   :  { %v42_v33 = vld [vmem:[%s657_s0 + $0x3c] sm:$0x3]  ;;  %v315_v34 = vmax.bf16 %v287_v26, %v143_v22  ;;  %v292_v35 = vsel %vm44_vm0, %v187_v31, 4286644096  ;;  %v43_v36 = vld [vmem:[%s657_s0 + $0x3e] sm:$0x3] }
  0x2e   :  { %v152_v37 = vsel %vm44_vm0, %v42_v33, 4286644096  ;;  %v294_v38 = vmax.bf16 %v292_v35, %v289_v32  ;;  %v155_v39 = vsel %vm44_vm0, %v43_v36, 4286644096  ;;  %v188_v40 = vld [vmem:[%s658_s1 + $0x3c] sm:$0x3] }
  0x2f   :  { %v189_v41 = vld [vmem:[%s658_s1 + $0x3e] sm:$0x3]  ;;  %331 = vst [vmem:[%s659_s2 + $0x1a] sm:$0x3] %v315_v34  ;;  %v157_v42 = vmax.bf16 %v155_v39, %v152_v37  ;;  %v296_v43 = vsel %vm44_vm0, %v188_v40, 4286644096 }
  0x30   :  { %v299_v44 = vsel %vm44_vm0, %v189_v41, 4286644096  ;;  %v316_v45 = vmax.bf16 %v294_v38, %v150_v30 }
  0x31   :  { %v301_v46 = vmax.bf16 %v299_v44, %v296_v43 }
  0x32   :  { %332 = vst [vmem:[%s659_s2 + $0x1c] sm:$0x3] %v316_v45 }
  0x33   :  { %v317_v47 = vmax.bf16 %v301_v46, %v157_v42 }
  0x35   :  { %333 = vst [vmem:[%s659_s2 + $0x1e] sm:$0x3] %v317_v47 }

// kernel: lipnet_forward.15
= control target key start
LH: loop header
LB: loop body
LE: loop exit
PB: predicated region body
PF: predicated region fallthrough
CT: control target
= control target key end

     0   :  { %vm28_vm0 = vcmask 1040384   ;;  %s345_s0 = inlined_call_operand.vmem [shape: bf16[8,2,2,128], index: 0, kind: input, shape index: {}]   ;;  %s346_s1 = inlined_call_operand.vmem [shape: bf16[8,2,2,128], index: 1, kind: input, shape index: {}]   ;;  %s347_s2 = inlined_call_operand.vmem [shape: bf16[8,2,128], index: 2, kind: output, shape index: {}]  }
   0x1   :  { %v12_v0 = vld [vmem:[%s345_s0] sm:$0x1]  ;;  %v13_v1 = vld [vmem:[%s345_s0 + $0x1] sm:$0x1]  ;;  %v14_v9 = vld [vmem:[%s345_s0 + $0x2] sm:$0x1] }
   0x2   :  { %v86_v2 = vld [vmem:[%s346_s1] sm:$0x1]  ;;  %v31_v3 = vsel %vm28_vm0, %v12_v0, 4286644096  ;;  %v34_v4 = vsel %vm28_vm0, %v13_v1, 4286644096 }
   0x3   :  { %v87_v5 = vld [vmem:[%s346_s1 + $0x1] sm:$0x1]  ;;  %v36_v6 = vmax.bf16 %v34_v4, %v31_v3  ;;  %v103_v7 = vsel %vm28_vm0, %v86_v2, 4286644096  ;;  %v15_v11 = vld [vmem:[%s345_s0 + $0x3] sm:$0x1] }
   0x4   :  { %v106_v8 = vsel %vm28_vm0, %v87_v5, 4286644096  ;;  %v38_v12 = vsel %vm28_vm0, %v14_v9, 4286644096  ;;  %v88_v13 = vld [vmem:[%s346_s1 + $0x2] sm:$0x1] }
   0x5   :  { %v108_v10 = vmax.bf16 %v106_v8, %v103_v7  ;;  %v41_v14 = vsel %vm28_vm0, %v15_v11, 4286644096  ;;  %v89_v15 = vld [vmem:[%s346_s1 + $0x3] sm:$0x1]  ;;  %v110_v16 = vsel %vm28_vm0, %v88_v13, 4286644096 }
   0x6   :  { %v43_v18 = vmax.bf16 %v41_v14, %v38_v12  ;;  %v113_v19 = vsel %vm28_vm0, %v89_v15, 4286644096  ;;  %v16_v20 = vld [vmem:[%s345_s0 + $0x4] sm:$0x1]  ;;  %v17_v21 = vld [vmem:[%s345_s0 + $0x5] sm:$0x1] }
   0x7   :  { %v158_v17 = vmax.bf16 %v108_v10, %v36_v6  ;;  %v115_v22 = vmax.bf16 %v113_v19, %v110_v16  ;;  %v45_v23 = vsel %vm28_vm0, %v16_v20, 4286644096  ;;  %v48_v24 = vsel %vm28_vm0, %v17_v21, 4286644096  ;;  %v90_v25 = vld [vmem:[%s346_s1 + $0x4] sm:$0x1] }
   0x8   :  { %v50_v26 = vmax.bf16 %v48_v24, %v45_v23  ;;  %v91_v27 = vld [vmem:[%s346_s1 + $0x5] sm:$0x1]  ;;  %v117_v28 = vsel %vm28_vm0, %v90_v25, 4286644096  ;;  %v18_v29 = vld [vmem:[%s345_s0 + $0x6] sm:$0x1] }
   0x9   :  { %166 = vst [vmem:[%s347_s2] sm:$0x1] %v158_v17  ;;  %v159_v30 = vmax.bf16 %v115_v22, %v43_v18  ;;  %v120_v31 = vsel %vm28_vm0, %v91_v27, 4286644096  ;;  %v19_v32 = vld [vmem:[%s345_s0 + $0x7] sm:$0x1] }
   0xa   :  { %v52_v33 = vsel %vm28_vm0, %v18_v29, 4286644096  ;;  %v122_v34 = vmax.bf16 %v120_v31, %v117_v28  ;;  %v55_v35 = vsel %vm28_vm0, %v19_v32, 4286644096  ;;  %v92_v36 = vld [vmem:[%s346_s1 + $0x6] sm:$0x1] }
   0xb   :  { %v93_v37 = vld [vmem:[%s346_s1 + $0x7] sm:$0x1]  ;;  %167 = vst [vmem:[%s347_s2 + $0x1] sm:$0x1] %v159_v30  ;;  %v57_v38 = vmax.bf16 %v55_v35, %v52_v33  ;;  %v124_v39 = vsel %vm28_vm0, %v92_v36, 4286644096 }
   0xc   :  { %v127_v40 = vsel %vm28_vm0, %v93_v37, 4286644096  ;;  %v20_v41 = vld [vmem:[%s345_s0 + $0x8] sm:$0x1]  ;;  %v160_v42 = vmax.bf16 %v122_v34, %v50_v26  ;;  %v21_v44 = vld [vmem:[%s345_s0 + $0x9] sm:$0x1] }
   0xd   :  { %v129_v43 = vmax.bf16 %v127_v40, %v124_v39  ;;  %v59_v45 = vsel %vm28_vm0, %v20_v41, 4286644096  ;;  %v94_v46 = vld [vmem:[%s346_s1 + $0x8] sm:$0x1]  ;;  %v62_v47 = vsel %vm28_vm0, %v21_v44, 4286644096 }
   0xe   :  { %v95_v48 = vld [vmem:[%s346_s1 + $0x9] sm:$0x1]  ;;  %v131_v49 = vsel %vm28_vm0, %v94_v46, 4286644096  ;;  %168 = vst [vmem:[%s347_s2 + $0x2] sm:$0x1] %v160_v42  ;;  %v64_v51 = vmax.bf16 %v62_v47, %v59_v45 }
   0xf   :  { %v161_v50 = vmax.bf16 %v129_v43, %v57_v38  ;;  %v134_v52 = vsel %vm28_vm0, %v95_v48, 4286644096  ;;  %v22_v53 = vld [vmem:[%s345_s0 + $0xa] sm:$0x1]  ;;  %v23_v54 = vld [vmem:[%s345_s0 + $0xb] sm:$0x1] }
  0x10   :  { %v136_v55 = vmax.bf16 %v134_v52, %v131_v49  ;;  %v66_v56 = vsel %vm28_vm0, %v22_v53, 4286644096  ;;  %v69_v57 = vsel %vm28_vm0, %v23_v54, 4286644096  ;;  %v96_v58 = vld [vmem:[%s346_s1 + $0xa] sm:$0x1] }
  0x11   :  { %169 = vst [vmem:[%s347_s2 + $0x3] sm:$0x1] %v161_v50  ;;  %v71_v59 = vmax.bf16 %v69_v57, %v66_v56  ;;  %v97_v60 = vld [vmem:[%s346_s1 + $0xb] sm:$0x1]  ;;  %v138_v61 = vsel %vm28_vm0, %v96_v58, 4286644096 }
  0x12   :  { %v24_v62 = vld [vmem:[%s345_s0 + $0xc] sm:$0x1]  ;;  %v162_v63 = vmax.bf16 %v136_v55, %v64_v51  ;;  %v141_v0 = vsel %vm28_vm0, %v97_v60, 4286644096  ;;  %v25_v1 = vld [vmem:[%s345_s0 + $0xd] sm:$0x1] }
  0x13   :  { %v73_v2 = vsel %vm28_vm0, %v24_v62, 4286644096  ;;  %v143_v3 = vmax.bf16 %v141_v0, %v138_v61  ;;  %v76_v4 = vsel %vm28_vm0, %v25_v1, 4286644096  ;;  %v98_v5 = vld [vmem:[%s346_s1 + $0xc] sm:$0x1] }
  0x14   :  { %v99_v6 = vld [vmem:[%s346_s1 + $0xd] sm:$0x1]  ;;  %170 = vst [vmem:[%s347_s2 + $0x4] sm:$0x1] %v162_v63  ;;  %v78_v7 = vmax.bf16 %v76_v4, %v73_v2  ;;  %v145_v8 = vsel %vm28_vm0, %v98_v5, 4286644096 }
  0x15   :  { %v148_v9 = vsel %vm28_vm0, %v99_v6, 4286644096  ;;  %v26_v10 = vld [vmem:[%s345_s0 + $0xe] sm:$0x1]  ;;  %v163_v11 = vmax.bf16 %v143_v3, %v71_v59  ;;  %v27_v13 = vld [vmem:[%s345_s0 + $0xf] sm:$0x1] }
  0x16   :  { %v150_v12 = vmax.bf16 %v148_v9, %v145_v8  ;;  %v80_v14 = vsel %vm28_vm0, %v26_v10, 4286644096  ;;  %v100_v15 = vld [vmem:[%s346_s1 + $0xe] sm:$0x1]  ;;  %v83_v16 = vsel %vm28_vm0, %v27_v13, 4286644096 }
  0x17   :  { %v101_v17 = vld [vmem:[%s346_s1 + $0xf] sm:$0x1]  ;;  %v152_v18 = vsel %vm28_vm0, %v100_v15, 4286644096  ;;  %171 = vst [vmem:[%s347_s2 + $0x5] sm:$0x1] %v163_v11  ;;  %v85_v20 = vmax.bf16 %v83_v16, %v80_v14 }
  0x18   :  { %v164_v19 = vmax.bf16 %v150_v12, %v78_v7  ;;  %v155_v21 = vsel %vm28_vm0, %v101_v17, 4286644096 }
  0x19   :  { %v157_v22 = vmax.bf16 %v155_v21, %v152_v18 }
  0x1a   :  { %172 = vst [vmem:[%s347_s2 + $0x6] sm:$0x1] %v164_v19 }
  0x1b   :  { %v165_v23 = vmax.bf16 %v157_v22, %v85_v20 }
  0x1d   :  { %173 = vst [vmem:[%s347_s2 + $0x7] sm:$0x1] %v165_v23 }

// kernel: lipnet_forward.12
= control target key start
LH: loop header
LB: loop body
LE: loop exit
PB: predicated region body
PF: predicated region fallthrough
CT: control target
= control target key end

     0   :  { %vm3062_vm0 = vcmask 785408   ;;  %s9550_s1 = inlined_call_operand.vmem [shape: bf16[2400,128], index: 1, kind: input, shape index: {}]   ;;  %s9551_s0 = inlined_call_operand.vmem [shape: bf16[256,2400], index: 0, kind: input, shape index: {}]   ;;  %s9552_s2 = inlined_call_operand.vmem [shape: f32[1,128], index: 2, kind: input, shape index: {}]   ;;  %s9553_s3 = inlined_call_operand.vmem [shape: bf16[256,128], index: 3, kind: output, shape index: {}]  }
   0x1   :  { %v6637_v0 = vld [vmem:[%s9550_s1 + $0x40] sm:$0xff]   ;;  %v6639_v2 = vld [vmem:[%s9550_s1 + $0x48] sm:$0xff]   ;;  %v6641_v4 = vld [vmem:[%s9550_s1 + $0x50] sm:$0xff]  }
   0x2   :  { %v6638_v1 = vld [vmem:[%s9550_s1] sm:$0xff]   ;;  %5547 = vmatprep.subr.bf16.mxu0 %v6637_v0  ;;  %6621 = vmatprep.subr.bf16.mxu1 %v6637_v0  ;;  %v6640_v3 = vld [vmem:[%s9550_s1 + $0x8] sm:$0xff]   ;;  %v6642_v5 = vld [vmem:[%s9550_s1 + $0x10] sm:$0xff]  }
   0x3   :  { %5548 = vmatpush3.bf16.msra.mxu0 %v6638_v1  ;;  %6629 = vmatpush3.bf16.msra.mxu1 %v6638_v1  ;;  %v6643_v6 = vld [vmem:[%s9550_s1 + $0x58] sm:$0xff]   ;;  %v6645_v8 = vld [vmem:[%s9550_s1 + $0x60] sm:$0xff]   ;;  %v6647_v10 = vld [vmem:[%s9550_s1 + $0x68] sm:$0xff]  }
   0x4   :  { %5549 = vmatprep.subr.bf16.mxu0 %v6639_v2  ;;  %6622 = vmatprep.subr.bf16.mxu1 %v6639_v2  ;;  %v6644_v7 = vld [vmem:[%s9550_s1 + $0x18] sm:$0xff]   ;;  %v6646_v9 = vld [vmem:[%s9550_s1 + $0x20] sm:$0xff]   ;;  %v6648_v13 = vld [vmem:[%s9550_s1 + $0x28] sm:$0xff]  }
   0x5   :  { %v6655_v11 = vld [vmem:[%s9551_s0 + $0x4] ss:$76 sps:$4 sm:$0xff]   ;;  %v6651_v16 = vld [vmem:[%s9550_s1 + $0x78] sm:$0xff]   ;;  %v6653_v19 = vld [vmem:[%s9551_s0] ss:$76 sps:$4 sm:$0xff]  }
   0x6   :  { %v6658_v12 = vld [vmem:[%s9551_s0 + $0x724] ss:$76 sps:$4 sm:$0xff]   ;;  %3143 = vmatprep.mubr.bf16.mxu0 %v6655_v11  ;;  %v6652_v17 = vld [vmem:[%s9550_s1 + $0x38] sm:$0xff]   ;;  %v6656_v20 = vld [vmem:[%s9551_s0 + $0x720] ss:$76 sps:$4 sm:$0xff]  }
   0x7   :  { %5550 = vmatpush3.bf16.msra.mxu0 %v6640_v3  ;;  %6630 = vmatpush3.bf16.msra.mxu1 %v6640_v3  ;;  %v6649_v14 = vld [vmem:[%s9550_s1 + $0x70] sm:$0xff]   ;;  %v6659_v18 = vld [vmem:[%s9550_s1 + $0xc0] sm:$0xff]   ;;  %v6663_v24 = vld [vmem:[%s9550_s1 + $0xc8] sm:$0xff]  }
   0x8   :  { %5551 = vmatprep.subr.bf16.mxu0 %v6641_v4  ;;  %6623 = vmatprep.subr.bf16.mxu1 %v6641_v4  ;;  %v6650_v15 = vld [vmem:[%s9550_s1 + $0x30] sm:$0xff]   ;;  %v6660_v21 = vld [vmem:[%s9550_s1 + $0x140] sm:$0xff]   ;;  %v6665_v25 = vld [vmem:[%s9551_s0 + $0x9c] ss:$76 sps:$4 sm:$0xff]  }
   0x9   :  { %3239 = vmatprep.mubr.bf16.mxu1 %v6658_v12  ;;  %v6661_v22 = vld [vmem:[%s9550_s1 + $0x80] sm:$0xff]   ;;  %v6667_v26 = vld [vmem:[%s9551_s0 + $0x7bc] ss:$76 sps:$4 sm:$0xff]   ;;  %v6671_v32 = vld [vmem:[%s9550_s1 + $0xd0] sm:$0xff]  }
   0xa   :  { %v6662_v23 = vld [vmem:[%s9550_s1 + $0x100] sm:$0xff]   ;;  %v6674_v27 = vld [vmem:[%s9550_s1 + $0x148] sm:$0xff]   ;;  %v6672_v33 = vld [vmem:[%s9550_s1 + $0x90] sm:$0xff]  }
   0xb   :  { %5552 = vmatpush3.bf16.msra.mxu0 %v6642_v5  ;;  %6631 = vmatpush3.bf16.msra.mxu1 %v6642_v5  ;;  %v6664_v28 = vld [vmem:[%s9550_s1 + $0x88] sm:$0xff]   ;;  %v6669_v30 = vld [vmem:[%s9551_s0 + $0x98] ss:$76 sps:$4 sm:$0xff]   ;;  %v6677_v35 = vld [vmem:[%s9551_s0 + $0x134] ss:$76 sps:$4 sm:$0xff]  }
   0xc   :  { %5553 = vmatprep.subr.bf16.mxu0 %v6643_v6  ;;  %6624 = vmatprep.subr.bf16.mxu1 %v6643_v6  ;;  %v6676_v29 = vld [vmem:[%s9550_s1 + $0x108] sm:$0xff]   ;;  %v6670_v31 = vld [vmem:[%s9551_s0 + $0x7b8] ss:$76 sps:$4 sm:$0xff]   ;;  %v6679_v36 = vld [vmem:[%s9551_s0 + $0x854] ss:$76 sps:$4 sm:$0xff]  }
   0xd   :  { %v6673_v34 = vld [vmem:[%s9550_s1 + $0xd8] sm:$0xff]   ;;  %v6683_v38 = vld [vmem:[%s9550_s1 + $0xe0] sm:$0xff]   ;;  %v6694_v41 = vld [vmem:[%s9550_s1 + $0x150] sm:$0xff]  }
   0xe   :  { %v6675_v37 = vld [vmem:[%s9550_s1 + $0x98] sm:$0xff]   ;;  %v6684_v42 = vld [vmem:[%s9550_s1 + $0xa0] sm:$0xff]   ;;  %v6685_v43 = vld [vmem:[%s9550_s1 + $0xe8] sm:$0xff]  }
   0xf   :  { %5554 = vmatpush3.bf16.msra.mxu0 %v6644_v7  ;;  %6632 = vmatpush3.bf16.msra.mxu1 %v6644_v7  ;;  %v6681_v39 = vld [vmem:[%s9551_s0 + $0x130] ss:$76 sps:$4 sm:$0xff]   ;;  %v6687_v45 = vld [vmem:[%s9551_s0 + $0x1cc] ss:$76 sps:$4 sm:$0xff]   ;;  %v6691_v49 = vld [vmem:[%s9551_s0 + $0x1c8] ss:$76 sps:$4 sm:$0xff]  }
  0x10   :  { %5555 = vmatprep.subr.bf16.mxu0 %v6645_v8  ;;  %6625 = vmatprep.subr.bf16.mxu1 %v6645_v8  ;;  %v6682_v40 = vld [vmem:[%s9551_s0 + $0x850] ss:$76 sps:$4 sm:$0xff]   ;;  %v6689_v46 = vld [vmem:[%s9551_s0 + $0x8ec] ss:$76 sps:$4 sm:$0xff]   ;;  %v6692_v50 = vld [vmem:[%s9551_s0 + $0x8e8] ss:$76 sps:$4 sm:$0xff]  }
  0x11   :  { %v6696_v44 = vld [vmem:[%s9550_s1 + $0x110] sm:$0xff]   ;;  %v6686_v47 = vld [vmem:[%s9550_s1 + $0xa8] sm:$0xff]   ;;  %v6705_v51 = vld [vmem:[%s9550_s1 + $0x158] sm:$0xff]  }
  0x12   :  { %v6693_v48 = vld [vmem:[%s9550_s1 + $0xf0] sm:$0xff]   ;;  %v6697_v53 = vld [vmem:[%s9550_s1 + $0xf8] sm:$0xff]   ;;  %v6704_v59 = vld [vmem:[%s9551_s0 + $0x260] ss:$76 sps:$4 sm:$0xff]  }
  0x13   :  { %5556 = vmatpush3.bf16.msra.mxu0 %v6646_v9  ;;  %6633 = vmatpush3.bf16.msra.mxu1 %v6646_v9  ;;  %v6695_v52 = vld [vmem:[%s9550_s1 + $0xb0] sm:$0xff]   ;;  %v6707_v54 = vld [vmem:[%s9550_s1 + $0x118] sm:$0xff]   ;;  %v6706_v60 = vld [vmem:[%s9550_s1 + $0x1c0] sm:$0xff]  }
  0x14   :  { %5557 = vmatprep.subr.bf16.mxu0 %v6647_v10  ;;  %6626 = vmatprep.subr.bf16.mxu1 %v6647_v10  ;;  %v6699_v55 = vld [vmem:[%s9551_s0 + $0x264] ss:$76 sps:$4 sm:$0xff]   ;;  %v6703_v56 = vld [vmem:[%s9551_s0 + $0xc] ss:$76 sps:$4 sm:$0xff]   ;;  %v6701_v58 = vld [vmem:[%s9551_s0 + $0x8] ss:$76 sps:$4 sm:$0xff]  }
  0x15   :  { %v6698_v57 = vld [vmem:[%s9550_s1 + $0xb8] sm:$0xff]   ;;  %v6708_v61 = vld [vmem:[%s9550_s1 + $0x180] sm:$0xff]   ;;  %v6723_v2 = vld [vmem:[%s9550_s1 + $0x1c8] sm:$0xff]  }
  0x16   :  { %v6709_v62 = vld [vmem:[%s9551_s0 + $0x2fc] ss:$76 sps:$4 sm:$0xff]   ;;  %v6721_v63 = vld [vmem:[%s9550_s1 + $0x160] sm:$0xff]   ;;  %v6739_v10 = vld [vmem:[%s9550_s1 + $0x1d0] sm:$0xff]  }
  0x17   :  { %5558 = vmatpush3.bf16.msra.mxu0 %v6648_v13  ;;  %6634 = vmatpush3.bf16.msra.mxu1 %v6648_v13  ;;  %v6722_v0 = vld [vmem:[%s9550_s1 + $0x120] sm:$0xff]   ;;  %v6724_v3 = vld [vmem:[%s9550_s1 + $0x188] sm:$0xff]   ;;  %v6740_v11 = vld [vmem:[%s9550_s1 + $0x190] sm:$0xff]  }
  0x18   :  { %5559 = vmatprep.subr.bf16.mxu0 %v6649_v14  ;;  %6627 = vmatprep.subr.bf16.mxu1 %v6649_v14  ;;  %v6711_v1 = vld [vmem:[%s9551_s0 + $0xa4] ss:$76 sps:$4 sm:$0xff]   ;;  %v6731_v5 = vld [vmem:[%s9550_s1 + $0x168] sm:$0xff]   ;;  %v6715_v8 = vld [vmem:[%s9551_s0 + $0x394] ss:$76 sps:$4 sm:$0xff]  }
  0x19   :  { %v6713_v4 = vld [vmem:[%s9551_s0 + $0x2f8] ss:$76 sps:$4 sm:$0xff]   ;;  %v6732_v6 = vld [vmem:[%s9550_s1 + $0x128] sm:$0xff]   ;;  %v6719_v12 = vld [vmem:[%s9551_s0 + $0x390] ss:$76 sps:$4 sm:$0xff]  }
  0x1a   :  { %v6714_v7 = vld [vmem:[%s9551_s0 + $0xa0] ss:$76 sps:$4 sm:$0xff]   ;;  %v6717_v9 = vld [vmem:[%s9551_s0 + $0x13c] ss:$76 sps:$4 sm:$0xff]   ;;  %v6720_v13 = vld [vmem:[%s9551_s0 + $0x138] ss:$76 sps:$4 sm:$0xff]  }
  0x1b   :  { %5560 = vmatpush3.bf16.msra.mxu0 %v6650_v15  ;;  %6635 = vmatpush3.bf16.msra.mxu1 %v6650_v15  ;;  %v6725_v14 = vld [vmem:[%s9551_s0 + $0x42c] ss:$76 sps:$4 sm:$0xff]   ;;  %v6747_v15 = vld [vmem:[%s9550_s1 + $0x170] sm:$0xff]  }
  0x1c   :  { %5561 = vmatprep.subr.bf16.mxu0 %v6651_v16  ;;  %6628 = vmatprep.subr.bf16.mxu1 %v6651_v16  ;;  %v6748_v16 = vld [vmem:[%s9550_s1 + $0x130] sm:$0xff]  }
  0x1f   :  { %5562 = vmatpush3.bf16.msra.mxu0 %v6652_v17  ;;  %6636 = vmatpush3.bf16.msra.mxu1 %v6652_v17  ;;  %v6727_v17 = vld [vmem:[%s9551_s0 + $0x1d4] ss:$76 sps:$4 sm:$0xff]  }
  0x20   :  { %5659 = vmatprep.subr.bf16.mxu1 %v6659_v18  ;;  %5771 = vmatprep.subr.bf16.mxu0 %v6660_v21  ;;  %v6755_v18 = vld [vmem:[%s9550_s1 + $0x178] sm:$0xff]  }
  0x21   :  { %v6757_v21 = vld [vmem:[%s9550_s1 + $0x138] sm:$0xff]  }
  0x22   :  { %3144 = vmatmul.mubr.bf16.vlgmr.msra.gmra.mrb[0].mxu0 %v6653_v19  ;;  %3240 = vmatmul.mubr.bf16.vlgmr.msra.gmra.mrb[0].mxu1 %v6656_v20  ;;  %v6756_v19 = vld [vmem:[%s9550_s1 + $0x1d8] sm:$0xff]   ;;  %v6729_v20 = vld [vmem:[%s9551_s0 + $0x428] ss:$76 sps:$4 sm:$0xff]  }
  0x23   :  { %5660 = vmatpush3.bf16.msra.mxu1 %v6661_v22  ;;  %5772 = vmatpush3.bf16.msra.mxu0 %v6662_v23  ;;  %v6758_v22 = vld [vmem:[%s9550_s1 + $0x198] sm:$0xff]  }
  0x24   :  { %5661 = vmatprep.subr.bf16.mxu1 %v6663_v24  ;;  %3151 = vmatprep.mubr.bf16.mxu0 %v6665_v25  ;;  %v6730_v23 = vld [vmem:[%s9551_s0 + $0x1d0] ss:$76 sps:$4 sm:$0xff]   ;;  %v6735_v25 = vld [vmem:[%s9551_s0 + $0x26c] ss:$76 sps:$4 sm:$0xff]  }
  0x25   :  { %3247 = vmatprep.mubr.bf16.mxu1 %v6667_v26  ;;  %5773 = vmatprep.subr.bf16.mxu0 %v6674_v27  ;;  %v6733_v24 = vld [vmem:[%s9551_s0 + $0x4c4] ss:$76 sps:$4 sm:$0xff]   ;;  %v6737_v27 = vld [vmem:[%s9551_s0 + $0x4c0] ss:$76 sps:$4 sm:$0xff]  }
  0x26   :  { %v6771_v26 = vld [vmem:[%s9550_s1 + $0x240] sm:$0xff]  }
  0x27   :  { %5662 = vmatpush3.bf16.msra.mxu1 %v6664_v28  ;;  %5774 = vmatpush3.bf16.msra.mxu0 %v6676_v29  ;;  %v6738_v28 = vld [vmem:[%s9551_s0 + $0x268] ss:$76 sps:$4 sm:$0xff]  }
  0x28   :  { %5663 = vmatprep.subr.bf16.mxu1 %v6671_v32  ;;  %5775 = vmatprep.subr.bf16.mxu0 %v6694_v41  ;;  %v6741_v29 = vld [vmem:[%s9551_s0 + $0x55c] ss:$76 sps:$4 sm:$0xff]   ;;  %v6743_v32 = vld [vmem:[%s9551_s0 + $0x304] ss:$76 sps:$4 sm:$0xff]   ;;  %v6759_v41 = vld [vmem:[%s9551_s0 + $0x68c] ss:$76 sps:$4 sm:$0xff]  }
  0x2a   :  { %3152 = vmatmul.mubr.bf16.gmra.mrb[4].mxu0 %v6669_v30  ;;  %3248 = vmatmul.mubr.bf16.gmra.mrb[4].mxu1 %v6670_v31  ;;  %v6773_v30 = vld [vmem:[%s9550_s1 + $0x1e0] sm:$0xff]  }
  0x2b   :  { %5664 = vmatpush3.bf16.msra.mxu1 %v6672_v33  ;;  %3159 = vmatprep.mubr.bf16.mxu0 %v6677_v35  ;;  %v6774_v31 = vld [vmem:[%s9550_s1 + $0x1a0] sm:$0xff]  }
  0x2c   :  { %5665 = vmatprep.subr.bf16.mxu1 %v6673_v34  ;;  %3255 = vmatprep.mubr.bf16.mxu1 %v6679_v36  ;;  %v6745_v33 = vld [vmem:[%s9551_s0 + $0x558] ss:$76 sps:$4 sm:$0xff]   ;;  %v6746_v34 = vld [vmem:[%s9551_s0 + $0x300] ss:$76 sps:$4 sm:$0xff]   ;;  %v6751_v36 = vld [vmem:[%s9551_s0 + $0x39c] ss:$76 sps:$4 sm:$0xff]  }
  0x2d   :  { %5776 = vmatpush3.bf16.msra.mxu0 %v6696_v44  ;;  %v6749_v35 = vld [vmem:[%s9551_s0 + $0x5f4] ss:$76 sps:$4 sm:$0xff]  }
  0x2e   :  { %5777 = vmatprep.subr.bf16.mxu0 %v6705_v51  ;;  %v6806_v44 = vld [vmem:[%s9550_s1 + $0x1b0] sm:$0xff]  }
  0x2f   :  { %5666 = vmatpush3.bf16.msra.mxu1 %v6675_v37  ;;  %v6789_v37 = vld [vmem:[%s9550_s1 + $0x1e8] sm:$0xff]   ;;  %v6767_v51 = vld [vmem:[%s9551_s0 + $0x10] ss:$76 sps:$4 sm:$0xff]  }
  0x30   :  { %5667 = vmatprep.subr.bf16.mxu1 %v6683_v38  ;;  %v6790_v38 = vld [vmem:[%s9550_s1 + $0x1a8] sm:$0xff]  }
  0x31   :  { %5778 = vmatpush3.bf16.msra.mxu0 %v6707_v54  ;;  %v6775_v54 = vld [vmem:[%s9551_s0 + $0x564] ss:$76 sps:$4 sm:$0xff]  }
  0x32   :  { %3160 = vmatmul.mubr.bf16.gmra.mrb[8].mxu0 %v6681_v39  ;;  %3256 = vmatmul.mubr.bf16.gmra.mrb[8].mxu1 %v6682_v40  ;;  %v6753_v39 = vld [vmem:[%s9551_s0 + $0x5f0] ss:$76 sps:$4 sm:$0xff]   ;;  %v6754_v40 = vld [vmem:[%s9551_s0 + $0x398] ss:$76 sps:$4 sm:$0xff]  }
  0x33   :  { %5668 = vmatpush3.bf16.msra.mxu1 %v6684_v42  ;;  %3167 = vmatprep.mubr.bf16.mxu0 %v6687_v45  ;;  %v6761_v42 = vld [vmem:[%s9551_s0 + $0x434] ss:$76 sps:$4 sm:$0xff]  }
  0x34   :  { %5669 = vmatprep.subr.bf16.mxu1 %v6685_v43  ;;  %3263 = vmatprep.mubr.bf16.mxu1 %v6689_v46  ;;  %v6805_v43 = vld [vmem:[%s9550_s1 + $0x1f0] sm:$0xff]  }
  0x35   :  { %5779 = vmatprep.subr.bf16.mxu0 %v6721_v63  ;;  %v6763_v45 = vld [vmem:[%s9551_s0 + $0x688] ss:$76 sps:$4 sm:$0xff]   ;;  %v6764_v46 = vld [vmem:[%s9551_s0 + $0x430] ss:$76 sps:$4 sm:$0xff]  }
  0x36   :  { %5780 = vmatpush3.bf16.msra.mxu0 %v6722_v0  ;;  %v6783_v63 = vld [vmem:[%s9551_s0 + $0x144] ss:$76 sps:$4 sm:$0xff]  }
  0x37   :  { %5670 = vmatpush3.bf16.msra.mxu1 %v6686_v47  ;;  %5781 = vmatprep.subr.bf16.mxu0 %v6731_v5  ;;  %v6765_v47 = vld [vmem:[%s9551_s0 + $0x4cc] ss:$76 sps:$4 sm:$0xff]   ;;  %v6804_v0 = vld [vmem:[%s9550_s1 + $0x210] sm:$0xff]  }
  0x38   :  { %5671 = vmatprep.subr.bf16.mxu1 %v6693_v48  ;;  %v6769_v48 = vld [vmem:[%s9551_s0 + $0x14] ss:$76 sps:$4 sm:$0xff]  }
  0x39   :  { %v6786_v5 = vld [vmem:[%s9551_s0 + $0x140] ss:$76 sps:$4 sm:$0xff]  }
  0x3a   :  { %3168 = vmatmul.mubr.bf16.gmra.mrb[12].mxu0 %v6691_v49  ;;  %3264 = vmatmul.mubr.bf16.gmra.mrb[12].mxu1 %v6692_v50  ;;  %v6821_v49 = vld [vmem:[%s9550_s1 + $0x1f8] sm:$0xff]  }
  0x3b   :  { %5672 = vmatpush3.bf16.msra.mxu1 %v6695_v52  ;;  %3175 = vmatprep.mubr.bf16.mxu0 %v6699_v55  ;;  %v6822_v50 = vld [vmem:[%s9550_s1 + $0x1b8] sm:$0xff]   ;;  %v6770_v52 = vld [vmem:[%s9551_s0 + $0x4c8] ss:$76 sps:$4 sm:$0xff]  }
  0x3c   :  { %5673 = vmatprep.subr.bf16.mxu1 %v6697_v53  ;;  %3304 = vmatprep.mubr.bf16.mxu1 %v6703_v56  ;;  %v6772_v53 = vld [vmem:[%s9550_s1 + $0x200] sm:$0xff]   ;;  %v6777_v55 = vld [vmem:[%s9551_s0 + $0xac] ss:$76 sps:$4 sm:$0xff]  }
  0x3d   :  { %5782 = vmatpush3.bf16.msra.mxu0 %v6732_v6  ;;  %v6787_v56 = vld [vmem:[%s9550_s1 + $0x248] sm:$0xff]   ;;  %v6791_v6 = vld [vmem:[%s9551_s0 + $0x694] ss:$76 sps:$4 sm:$0xff]  }
  0x3e   :  { %5783 = vmatprep.subr.bf16.mxu0 %v6747_v15  ;;  %v6799_v15 = vld [vmem:[%s9551_s0 + $0x274] ss:$76 sps:$4 sm:$0xff]  }
  0x3f   :  { %5674 = vmatpush3.bf16.msra.mxu1 %v6698_v57  ;;  %v6837_v57 = vld [vmem:[%s9550_s1 + $0x2c0] sm:$0xff]  }
  0x40   :  { %5883 = vmatprep.subr.bf16.mxu1 %v6706_v60  ;;  %v6779_v60 = vld [vmem:[%s9551_s0 + $0x560] ss:$76 sps:$4 sm:$0xff]  }
  0x41   :  { %5784 = vmatpush3.bf16.msra.mxu0 %v6748_v16  ;;  %v6868_v16 = vld [vmem:[%s9550_s1 + $0x230] sm:$0xff]  }
  0x42   :  { %3176 = vmatmul.mubr.bf16.gmra.mrb[16].mxu0 %v6704_v59  ;;  %3305 = vmatmul.mubr.bf16.vlgmr.msra.gmra.mrb[16].mxu1 %v6701_v58  ;;  %v6788_v58 = vld [vmem:[%s9550_s1 + $0x208] sm:$0xff]   ;;  %v6803_v59 = vld [vmem:[%s9550_s1 + $0x250] sm:$0xff]  }
  0x43   :  { %5884 = vmatpush3.bf16.msra.mxu1 %v6708_v61  ;;  %3183 = vmatprep.mubr.bf16.mxu0 %v6709_v62  ;;  %v6780_v61 = vld [vmem:[%s9551_s0 + $0xa8] ss:$76 sps:$4 sm:$0xff]  }
  0x44   :  { %3312 = vmatprep.mubr.bf16.mxu1 %v6711_v1  ;;  %5885 = vmatprep.subr.bf16.mxu1 %v6723_v2  ;;  %v6781_v62 = vld [vmem:[%s9551_s0 + $0x5fc] ss:$76 sps:$4 sm:$0xff]   ;;  %v6785_v2 = vld [vmem:[%s9551_s0 + $0x5f8] ss:$76 sps:$4 sm:$0xff]  }
  0x45   :  { %5785 = vmatprep.subr.bf16.mxu0 %v6755_v18  ;;  %v6819_v1 = vld [vmem:[%s9550_s1 + $0x258] sm:$0xff]  }
  0x46   :  { %5786 = vmatpush3.bf16.msra.mxu0 %v6757_v21  ;;  %v6802_v18 = vld [vmem:[%s9551_s0 + $0x270] ss:$76 sps:$4 sm:$0xff]  }
  0x47   :  { %5886 = vmatpush3.bf16.msra.mxu1 %v6724_v3  ;;  %5995 = vmatprep.subr.bf16.mxu0 %v6771_v26  ;;  %v6820_v3 = vld [vmem:[%s9550_s1 + $0x218] sm:$0xff]   ;;  %v6807_v21 = vld [vmem:[%s9551_s0 + $0x7c4] ss:$76 sps:$4 sm:$0xff]  }
  0x48   :  { %5887 = vmatprep.subr.bf16.mxu1 %v6739_v10  ;;  %v6795_v10 = vld [vmem:[%s9551_s0 + $0x690] ss:$76 sps:$4 sm:$0xff]   ;;  %v6899_v26 = vld [vmem:[%s9550_s1 + $0x340] sm:$0xff]  }
  0x4a   :  { %3184 = vmatmul.mubr.bf16.gmra.mrb[20].mxu0 %v6713_v4  ;;  %3313 = vmatmul.mubr.bf16.gmra.mrb[20].mxu1 %v6714_v7  ;;  %v6835_v4 = vld [vmem:[%s9550_s1 + $0x260] sm:$0xff]   ;;  %v6793_v7 = vld [vmem:[%s9551_s0 + $0x1dc] ss:$76 sps:$4 sm:$0xff]  }
  0x4b   :  { %3191 = vmatprep.mubr.bf16.mxu0 %v6715_v8  ;;  %3320 = vmatprep.mubr.bf16.mxu1 %v6717_v9  ;;  %v6836_v8 = vld [vmem:[%s9550_s1 + $0x220] sm:$0xff]   ;;  %v6851_v9 = vld [vmem:[%s9550_s1 + $0x268] sm:$0xff]  }
  0x4c   :  { %5888 = vmatpush3.bf16.msra.mxu1 %v6740_v11  ;;  %v6796_v11 = vld [vmem:[%s9551_s0 + $0x1d8] ss:$76 sps:$4 sm:$0xff]  }
  0x4d   :  { %5889 = vmatprep.subr.bf16.mxu1 %v6756_v19  ;;  %v6883_v19 = vld [vmem:[%s9550_s1 + $0x278] sm:$0xff]  }
  0x50   :  { %5890 = vmatpush3.bf16.msra.mxu1 %v6758_v22  ;;  %v6809_v22 = vld [vmem:[%s9551_s0 + $0x30c] ss:$76 sps:$4 sm:$0xff]  }
  0x51   :  { %5891 = vmatprep.subr.bf16.mxu1 %v6773_v30  ;;  %v6823_v30 = vld [vmem:[%s9551_s0 + $0x8f4] ss:$76 sps:$4 sm:$0xff]  }
  0x52   :  { %3192 = vmatmul.mubr.bf16.gmra.mrb[24].mxu0 %v6719_v12  ;;  %3321 = vmatmul.mubr.bf16.gmra.mrb[24].mxu1 %v6720_v13  ;;  %v6852_v12 = vld [vmem:[%s9550_s1 + $0x228] sm:$0xff]   ;;  %v6867_v13 = vld [vmem:[%s9550_s1 + $0x270] sm:$0xff]  }
  0x53   :  { %3199 = vmatprep.mubr.bf16.mxu0 %v6725_v14  ;;  %3328 = vmatprep.mubr.bf16.mxu1 %v6727_v17  ;;  %v6797_v14 = vld [vmem:[%s9551_s0 + $0x72c] ss:$76 sps:$4 sm:$0xff]   ;;  %v6801_v17 = vld [vmem:[%s9551_s0 + $0x728] ss:$76 sps:$4 sm:$0xff]  }
  0x54   :  { %5892 = vmatpush3.bf16.msra.mxu1 %v6774_v31  ;;  %v6825_v31 = vld [vmem:[%s9551_s0 + $0x43c] ss:$76 sps:$4 sm:$0xff]  }
  0x55   :  { %5893 = vmatprep.subr.bf16.mxu1 %v6789_v37  ;;  %v6834_v37 = vld [vmem:[%s9551_s0 + $0x4d0] ss:$76 sps:$4 sm:$0xff]  }
  0x58   :  { %5894 = vmatpush3.bf16.msra.mxu1 %v6790_v38  ;;  %v6838_v38 = vld [vmem:[%s9550_s1 + $0x280] sm:$0xff]  }
  0x59   :  { %5895 = vmatprep.subr.bf16.mxu1 %v6805_v43  ;;  %v6869_v43 = vld [vmem:[%s9550_s1 + $0x2d0] sm:$0xff]  }
  0x5a   :  { %3200 = vmatmul.mubr.bf16.gmra.mrb[28].mxu0 %v6729_v20  ;;  %3329 = vmatmul.mubr.bf16.gmra.mrb[28].mxu1 %v6730_v23  ;;  %v6884_v20 = vld [vmem:[%s9550_s1 + $0x238] sm:$0xff]   ;;  %v6811_v23 = vld [vmem:[%s9551_s0 + $0x7c0] ss:$76 sps:$4 sm:$0xff]  }
  0x5b   :  { %3207 = vmatprep.mubr.bf16.mxu0 %v6733_v24  ;;  %3336 = vmatprep.mubr.bf16.mxu1 %v6735_v25  ;;  %v6812_v24 = vld [vmem:[%s9551_s0 + $0x308] ss:$76 sps:$4 sm:$0xff]  }
  0x5c   :  { %5896 = vmatpush3.bf16.msra.mxu1 %v6806_v44  ;;  %v6813_v25 = vld [vmem:[%s9551_s0 + $0x85c] ss:$76 sps:$4 sm:$0xff]  }
  0x5d   :  { %5897 = vmatprep.subr.bf16.mxu1 %v6821_v49  ;;  %v6843_v44 = vld [vmem:[%s9551_s0 + $0x568] ss:$76 sps:$4 sm:$0xff]   ;;  %v6885_v49 = vld [vmem:[%s9550_s1 + $0x2d8] sm:$0xff]  }
  0x60   :  { %5898 = vmatpush3.bf16.msra.mxu1 %v6822_v50  ;;  %v6849_v50 = vld [vmem:[%s9551_s0 + $0x600] ss:$76 sps:$4 sm:$0xff]  }
  0x61   :  { %6107 = vmatprep.subr.bf16.mxu1 %v6837_v57  ;;  %v6917_v57 = vld [vmem:[%s9550_s1 + $0x2e8] sm:$0xff]  }
  0x62   :  { %3208 = vmatmul.mubr.bf16.gmra.mrb[32].mxu0 %v6737_v27  ;;  %3337 = vmatmul.mubr.bf16.gmra.mrb[32].mxu1 %v6738_v28  ;;  %v6815_v27 = vld [vmem:[%s9551_s0 + $0x3a4] ss:$76 sps:$4 sm:$0xff]  }
  0x63   :  { %3215 = vmatprep.mubr.bf16.mxu0 %v6741_v29  ;;  %3344 = vmatprep.mubr.bf16.mxu1 %v6743_v32  ;;  %v6817_v28 = vld [vmem:[%s9551_s0 + $0x858] ss:$76 sps:$4 sm:$0xff]   ;;  %v6818_v29 = vld [vmem:[%s9551_s0 + $0x3a0] ss:$76 sps:$4 sm:$0xff]   ;;  %v6827_v32 = vld [vmem:[%s9551_s0 + $0x8f0] ss:$76 sps:$4 sm:$0xff]  }
  0x6a   :  { %3216 = vmatmul.mubr.bf16.gmra.mrb[36].mxu0 %v6745_v33  ;;  %3345 = vmatmul.mubr.bf16.gmra.mrb[36].mxu1 %v6746_v34  ;;  %v6828_v33 = vld [vmem:[%s9551_s0 + $0x438] ss:$76 sps:$4 sm:$0xff]   ;;  %v6829_v34 = vld [vmem:[%s9551_s0 + $0x4d4] ss:$76 sps:$4 sm:$0xff]  }
  0x6b   :  { %3223 = vmatprep.mubr.bf16.mxu0 %v6749_v35  ;;  %3352 = vmatprep.mubr.bf16.mxu1 %v6751_v36  ;;  %v6833_v35 = vld [vmem:[%s9551_s0 + $0x1c] ss:$76 sps:$4 sm:$0xff]   ;;  %v6831_v36 = vld [vmem:[%s9551_s0 + $0x18] ss:$76 sps:$4 sm:$0xff]  }
  0x72   :  { %3224 = vmatmul.mubr.bf16.gmra.mrb[40].mxu0 %v6753_v39  ;;  %3353 = vmatmul.mubr.bf16.gmra.mrb[40].mxu1 %v6754_v40  ;;  %v6839_v39 = vld [vmem:[%s9551_s0 + $0x56c] ss:$76 sps:$4 sm:$0xff]   ;;  %v6841_v40 = vld [vmem:[%s9551_s0 + $0xb4] ss:$76 sps:$4 sm:$0xff]  }
  0x73   :  { %3231 = vmatprep.mubr.bf16.mxu0 %v6759_v41  ;;  %3360 = vmatprep.mubr.bf16.mxu1 %v6761_v42  ;;  %v6853_v41 = vld [vmem:[%s9550_s1 + $0x2c8] sm:$0xff]  }
  0x74   :  { %v6854_v42 = vld [vmem:[%s9550_s1 + $0x288] sm:$0xff]  }
  0x7a   :  { %3232 = vmatmul.mubr.bf16.gmra.mrb[44].mxu0 %v6763_v45  ;;  %3361 = vmatmul.mubr.bf16.gmra.mrb[44].mxu1 %v6764_v46  ;;  %v6844_v45 = vld [vmem:[%s9551_s0 + $0xb0] ss:$76 sps:$4 sm:$0xff]  }
  0x7b   :  { %3368 = vmatprep.mubr.bf16.mxu1 %v6765_v47  ;;  %3465 = vmatprep.mubr.bf16.mxu0 %v6769_v48  ;;  %v6845_v46 = vld [vmem:[%s9551_s0 + $0x604] ss:$76 sps:$4 sm:$0xff]   ;;  %v6847_v47 = vld [vmem:[%s9551_s0 + $0x14c] ss:$76 sps:$4 sm:$0xff]  }
  0x7c   :  { %v6870_v48 = vld [vmem:[%s9550_s1 + $0x290] sm:$0xff]  }
  0x82   :  { %3369 = vmatmul.mubr.bf16.gmra.mrb[48].mxu1 %v6770_v52  ;;  %3466 = vmatmul.mubr.bf16.vlgmr.msra.gmra.mrb[48].mxu0 %v6767_v51  ;;  %v6850_v51 = vld [vmem:[%s9551_s0 + $0x148] ss:$76 sps:$4 sm:$0xff]   ;;  %v6886_v52 = vld [vmem:[%s9550_s1 + $0x298] sm:$0xff]  }
  0x83   :  { %5996 = vmatpush3.bf16.msra.mxu0 %v6772_v53  ;;  %3376 = vmatprep.mubr.bf16.mxu1 %v6775_v54  ;;  %v6901_v53 = vld [vmem:[%s9550_s1 + $0x2e0] sm:$0xff]   ;;  %v6855_v54 = vld [vmem:[%s9551_s0 + $0x69c] ss:$76 sps:$4 sm:$0xff]  }
  0x84   :  { %3473 = vmatprep.mubr.bf16.mxu0 %v6777_v55  ;;  %5997 = vmatprep.subr.bf16.mxu0 %v6787_v56  ;;  %v6857_v55 = vld [vmem:[%s9551_s0 + $0x1e4] ss:$76 sps:$4 sm:$0xff]  }
  0x85   :  { %v6902_v56 = vld [vmem:[%s9550_s1 + $0x2a0] sm:$0xff]  }
  0x87   :  { %5998 = vmatpush3.bf16.msra.mxu0 %v6788_v58  ;;  %v6859_v58 = vld [vmem:[%s9551_s0 + $0x698] ss:$76 sps:$4 sm:$0xff]  }
  0x88   :  { %5999 = vmatprep.subr.bf16.mxu0 %v6803_v59  ;;  %v6860_v59 = vld [vmem:[%s9551_s0 + $0x1e0] ss:$76 sps:$4 sm:$0xff]  }
  0x8a   :  { %3377 = vmatmul.mubr.bf16.gmra.mrb[52].mxu1 %v6779_v60  ;;  %3474 = vmatmul.mubr.bf16.gmra.mrb[52].mxu0 %v6780_v61  ;;  %v6918_v60 = vld [vmem:[%s9550_s1 + $0x2a8] sm:$0xff]   ;;  %v6861_v61 = vld [vmem:[%s9551_s0 + $0x734] ss:$76 sps:$4 sm:$0xff]  }
  0x8b   :  { %3384 = vmatprep.mubr.bf16.mxu1 %v6781_v62  ;;  %3481 = vmatprep.mubr.bf16.mxu0 %v6783_v63  ;;  %v6933_v62 = vld [vmem:[%s9550_s1 + $0x2f0] sm:$0xff]   ;;  %v6863_v63 = vld [vmem:[%s9551_s0 + $0x27c] ss:$76 sps:$4 sm:$0xff]  }
  0x8c   :  { %6000 = vmatpush3.bf16.msra.mxu0 %v6804_v0  ;;  %v6934_v0 = vld [vmem:[%s9550_s1 + $0x2b0] sm:$0xff]  }
  0x8d   :  { %6001 = vmatprep.subr.bf16.mxu0 %v6819_v1  ;;  %v6949_v1 = vld [vmem:[%s9550_s1 + $0x2f8] sm:$0xff]  }
  0x90   :  { %6002 = vmatpush3.bf16.msra.mxu0 %v6820_v3  ;;  %v6965_v3 = vld [vmem:[%s9550_s1 + $0x3c0] sm:$0xff]  }
  0x91   :  { %6003 = vmatprep.subr.bf16.mxu0 %v6835_v4  ;;  %v6865_v4 = vld [vmem:[%s9551_s0 + $0x730] ss:$76 sps:$4 sm:$0xff]  }
  0x92   :  { %3385 = vmatmul.mubr.bf16.gmra.mrb[56].mxu1 %v6785_v2  ;;  %3482 = vmatmul.mubr.bf16.gmra.mrb[56].mxu0 %v6786_v5  ;;  %v6950_v2 = vld [vmem:[%s9550_s1 + $0x2b8] sm:$0xff]  }
  0x93   :  { %3392 = vmatprep.mubr.bf16.mxu1 %v6791_v6  ;;  %3489 = vmatprep.mubr.bf16.mxu0 %v6793_v7  ;;  %v6866_v5 = vld [vmem:[%s9551_s0 + $0x278] ss:$76 sps:$4 sm:$0xff]   ;;  %v6873_v7 = vld [vmem:[%s9551_s0 + $0x314] ss:$76 sps:$4 sm:$0xff]  }
  0x94   :  { %6004 = vmatpush3.bf16.msra.mxu0 %v6836_v8  ;;  %v6871_v6 = vld [vmem:[%s9551_s0 + $0x7cc] ss:$76 sps:$4 sm:$0xff]   ;;  %v6875_v8 = vld [vmem:[%s9551_s0 + $0x7c8] ss:$76 sps:$4 sm:$0xff]  }
  0x95   :  { %6005 = vmatprep.subr.bf16.mxu0 %v6851_v9  ;;  %v6876_v9 = vld [vmem:[%s9551_s0 + $0x310] ss:$76 sps:$4 sm:$0xff]  }
  0x98   :  { %6006 = vmatpush3.bf16.msra.mxu0 %v6852_v12  ;;  %v6881_v12 = vld [vmem:[%s9551_s0 + $0x860] ss:$76 sps:$4 sm:$0xff]  }
  0x99   :  { %6007 = vmatprep.subr.bf16.mxu0 %v6867_v13  ;;  %v6882_v13 = vld [vmem:[%s9551_s0 + $0x3a8] ss:$76 sps:$4 sm:$0xff]  }
  0x9a   :  { %3393 = vmatmul.mubr.bf16.gmra.mrb[60].mxu1 %v6795_v10  ;;  %3490 = vmatmul.mubr.bf16.gmra.mrb[60].mxu0 %v6796_v11  ;;  %v6877_v10 = vld [vmem:[%s9551_s0 + $0x864] ss:$76 sps:$4 sm:$0xff]   ;;  %v6879_v11 = vld [vmem:[%s9551_s0 + $0x3ac] ss:$76 sps:$4 sm:$0xff]  }
  0x9b   :  { %3400 = vmatprep.mubr.bf16.mxu1 %v6797_v14  ;;  %3497 = vmatprep.mubr.bf16.mxu0 %v6799_v15  ;;  %v6887_v14 = vld [vmem:[%s9551_s0 + $0x8fc] ss:$76 sps:$4 sm:$0xff]   ;;  %v6889_v15 = vld [vmem:[%s9551_s0 + $0x444] ss:$76 sps:$4 sm:$0xff]  }
  0x9c   :  { %6008 = vmatpush3.bf16.msra.mxu0 %v6868_v16  ;;  %v6891_v16 = vld [vmem:[%s9551_s0 + $0x8f8] ss:$76 sps:$4 sm:$0xff]  }
  0x9d   :  { %6009 = vmatprep.subr.bf16.mxu0 %v6883_v19 }
  0xa0   :  { %6010 = vmatpush3.bf16.msra.mxu0 %v6884_v20 }
  0xa1   :  { %6219 = vmatprep.subr.bf16.mxu0 %v6899_v26  ;;  %v6893_v26 = vld [vmem:[%s9551_s0 + $0x4dc] ss:$76 sps:$4 sm:$0xff]  }
  0xa2   :  { %3401 = vmatmul.mubr.bf16.gmra.mrb[64].mxu1 %v6801_v17  ;;  %3498 = vmatmul.mubr.bf16.gmra.mrb[64].mxu0 %v6802_v18  ;;  %v6892_v17 = vld [vmem:[%s9551_s0 + $0x440] ss:$76 sps:$4 sm:$0xff]  }
  0xa3   :  { %3408 = vmatprep.mubr.bf16.mxu1 %v6807_v21  ;;  %3505 = vmatprep.mubr.bf16.mxu0 %v6809_v22 }
  0xaa   :  { %3409 = vmatmul.mubr.bf16.gmra.mrb[68].mxu1 %v6811_v23  ;;  %3506 = vmatmul.mubr.bf16.gmra.mrb[68].mxu0 %v6812_v24 }
  0xab   :  { %3416 = vmatprep.mubr.bf16.mxu1 %v6813_v25  ;;  %3513 = vmatprep.mubr.bf16.mxu0 %v6815_v27  ;;  %v6897_v27 = vld [vmem:[%s9551_s0 + $0x24] ss:$76 sps:$4 sm:$0xff]  }
  0xb2   :  { %3417 = vmatmul.mubr.bf16.gmra.mrb[72].mxu1 %v6817_v28  ;;  %3514 = vmatmul.mubr.bf16.gmra.mrb[72].mxu0 %v6818_v29 }
  0xb3   :  { %3424 = vmatprep.mubr.bf16.mxu1 %v6823_v30  ;;  %3521 = vmatprep.mubr.bf16.mxu0 %v6825_v31 }
  0xba   :  { %3425 = vmatmul.mubr.bf16.gmra.mrb[76].mxu1 %v6827_v32  ;;  %3522 = vmatmul.mubr.bf16.gmra.mrb[76].mxu0 %v6828_v33  ;;  %v6895_v32 = vld [vmem:[%s9551_s0 + $0x20] ss:$76 sps:$4 sm:$0xff]   ;;  %v6898_v33 = vld [vmem:[%s9551_s0 + $0x4d8] ss:$76 sps:$4 sm:$0xff]  }
  0xbb   :  { %3529 = vmatprep.mubr.bf16.mxu0 %v6829_v34  ;;  %3626 = vmatprep.mubr.bf16.mxu1 %v6833_v35 }
  0xc2   :  { %3530 = vmatmul.mubr.bf16.gmra.mrb[80].mxu0 %v6834_v37  ;;  %3627 = vmatmul.mubr.bf16.vlgmr.msra.gmra.mrb[80].mxu1 %v6831_v36 }
  0xc3   :  { %6108 = vmatpush3.bf16.msra.mxu1 %v6838_v38  ;;  %3537 = vmatprep.mubr.bf16.mxu0 %v6839_v39 }
  0xc4   :  { %3634 = vmatprep.mubr.bf16.mxu1 %v6841_v40  ;;  %6109 = vmatprep.subr.bf16.mxu1 %v6853_v41 }
  0xc7   :  { %6110 = vmatpush3.bf16.msra.mxu1 %v6854_v42  ;;  %v6900_v42 = vld [vmem:[%s9550_s1 + $0x300] sm:$0xff]  }
  0xc8   :  { %6111 = vmatprep.subr.bf16.mxu1 %v6869_v43  ;;  %v6903_v43 = vld [vmem:[%s9551_s0 + $0x574] ss:$76 sps:$4 sm:$0xff]  }
  0xca   :  { %3538 = vmatmul.mubr.bf16.gmra.mrb[84].mxu0 %v6843_v44  ;;  %3635 = vmatmul.mubr.bf16.gmra.mrb[84].mxu1 %v6844_v45 }
  0xcb   :  { %3545 = vmatprep.mubr.bf16.mxu0 %v6845_v46  ;;  %3642 = vmatprep.mubr.bf16.mxu1 %v6847_v47  ;;  %v6905_v46 = vld [vmem:[%s9551_s0 + $0xbc] ss:$76 sps:$4 sm:$0xff]  }
  0xcc   :  { %6112 = vmatpush3.bf16.msra.mxu1 %v6870_v48  ;;  %v6915_v47 = vld [vmem:[%s9550_s1 + $0x348] sm:$0xff]  }
  0xcd   :  { %6113 = vmatprep.subr.bf16.mxu1 %v6885_v49 }
  0xd0   :  { %6114 = vmatpush3.bf16.msra.mxu1 %v6886_v52  ;;  %v6907_v52 = vld [vmem:[%s9551_s0 + $0x570] ss:$76 sps:$4 sm:$0xff]  }
  0xd1   :  { %6115 = vmatprep.subr.bf16.mxu1 %v6901_v53  ;;  %v6908_v53 = vld [vmem:[%s9551_s0 + $0xb8] ss:$76 sps:$4 sm:$0xff]  }
  0xd2   :  { %3546 = vmatmul.mubr.bf16.gmra.mrb[88].mxu0 %v6849_v50  ;;  %3643 = vmatmul.mubr.bf16.gmra.mrb[88].mxu1 %v6850_v51  ;;  %v6916_v50 = vld [vmem:[%s9550_s1 + $0x308] sm:$0xff]   ;;  %v6931_v51 = vld [vmem:[%s9550_s1 + $0x350] sm:$0xff]  }
  0xd3   :  { %3553 = vmatprep.mubr.bf16.mxu0 %v6855_v54  ;;  %3650 = vmatprep.mubr.bf16.mxu1 %v6857_v55 }
  0xd4   :  { %6116 = vmatpush3.bf16.msra.mxu1 %v6902_v56 }
  0xd5   :  { %6117 = vmatprep.subr.bf16.mxu1 %v6917_v57 }
  0xd8   :  { %6118 = vmatpush3.bf16.msra.mxu1 %v6918_v60 }
  0xd9   :  { %6119 = vmatprep.subr.bf16.mxu1 %v6933_v62  ;;  %v6909_v62 = vld [vmem:[%s9551_s0 + $0x60c] ss:$76 sps:$4 sm:$0xff]  }
  0xda   :  { %3554 = vmatmul.mubr.bf16.gmra.mrb[92].mxu0 %v6859_v58  ;;  %3651 = vmatmul.mubr.bf16.gmra.mrb[92].mxu1 %v6860_v59 }
  0xdb   :  { %3561 = vmatprep.mubr.bf16.mxu0 %v6861_v61  ;;  %3658 = vmatprep.mubr.bf16.mxu1 %v6863_v63  ;;  %v6911_v63 = vld [vmem:[%s9551_s0 + $0x154] ss:$76 sps:$4 sm:$0xff]  }
  0xdc   :  { %6120 = vmatpush3.bf16.msra.mxu1 %v6934_v0 }
  0xdd   :  { %6121 = vmatprep.subr.bf16.mxu1 %v6949_v1 }
  0xe0   :  { %6122 = vmatpush3.bf16.msra.mxu1 %v6950_v2  ;;  %v6932_v2 = vld [vmem:[%s9550_s1 + $0x310] sm:$0xff]  }
  0xe1   :  { %6331 = vmatprep.subr.bf16.mxu1 %v6965_v3 }
  0xe2   :  { %3562 = vmatmul.mubr.bf16.gmra.mrb[96].mxu0 %v6865_v4  ;;  %3659 = vmatmul.mubr.bf16.gmra.mrb[96].mxu1 %v6866_v5  ;;  %v6947_v5 = vld [vmem:[%s9550_s1 + $0x358] sm:$0xff]  }
  0xe3   :  { %3569 = vmatprep.mubr.bf16.mxu0 %v6871_v6  ;;  %3666 = vmatprep.mubr.bf16.mxu1 %v6873_v7  ;;  %v6948_v6 = vld [vmem:[%s9550_s1 + $0x318] sm:$0xff]   ;;  %v6963_v7 = vld [vmem:[%s9550_s1 + $0x360] sm:$0xff]  }
  0xea   :  { %3570 = vmatmul.mubr.bf16.gmra.mrb[100].mxu0 %v6875_v8  ;;  %3667 = vmatmul.mubr.bf16.gmra.mrb[100].mxu1 %v6876_v9  ;;  %v6913_v8 = vld [vmem:[%s9551_s0 + $0x608] ss:$76 sps:$4 sm:$0xff]   ;;  %v6914_v9 = vld [vmem:[%s9551_s0 + $0x150] ss:$76 sps:$4 sm:$0xff]  }
  0xeb   :  { %3577 = vmatprep.mubr.bf16.mxu0 %v6877_v10  ;;  %3674 = vmatprep.mubr.bf16.mxu1 %v6879_v11 }
  0xf2   :  { %3578 = vmatmul.mubr.bf16.gmra.mrb[104].mxu0 %v6881_v12  ;;  %3675 = vmatmul.mubr.bf16.gmra.mrb[104].mxu1 %v6882_v13 }
  0xf3   :  { %3585 = vmatprep.mubr.bf16.mxu0 %v6887_v14  ;;  %3682 = vmatprep.mubr.bf16.mxu1 %v6889_v15 }
  0xf5   :  { %v5563_v18 = vpop.f32.mrb[0].mxu0  ;;  %v5635_v19 = vpop.f32.mrb[0].mxu1 }
  0xf6   :  { %v5564_v20 = vpop.f32.mrb[1].mxu0  ;;  %v5636_v21 = vpop.f32.mrb[1].mxu1 }
  0xf7   :  { %v7886_v22 = vadd.f32 %v5564_v20, %v5563_v18  ;;  %v5566_v23 = vpop.f32.mrb[2].mxu0  ;;  %v7888_v24 = vadd.f32 %v5636_v21, %v5635_v19  ;;  %v5638_v25 = vpop.f32.mrb[2].mxu1  ;;  %v6919_v18 = vld [vmem:[%s9551_s0 + $0x6a4] ss:$76 sps:$4 sm:$0xff]   ;;  %v6921_v19 = vld [vmem:[%s9551_s0 + $0x1ec] ss:$76 sps:$4 sm:$0xff]  }
  0xf8   :  { %v5567_v28 = vpop.f32.mrb[3].mxu0  ;;  %v5639_v29 = vpop.f32.mrb[3].mxu1 }
  0xf9   :  { %v7896_v30 = vadd.f32 %v5567_v28, %v5566_v23  ;;  %v7898_v31 = vadd.f32 %v5639_v29, %v5638_v25  ;;  %v6964_v23 = vld [vmem:[%s9550_s1 + $0x320] sm:$0xff]   ;;  %v6979_v25 = vld [vmem:[%s9550_s1 + $0x368] sm:$0xff]  }
  0xfa   :  { %3586 = vmatmul.mubr.bf16.gmra.mrb[108].mxu0 %v6891_v16  ;;  %3683 = vmatmul.mubr.bf16.gmra.mrb[108].mxu1 %v6892_v17  ;;  %v7993_v28 = vld [vmem:[%s9552_s2] ss:$0 sm:$0xff]  ;;  %v6980_v29 = vld [vmem:[%s9550_s1 + $0x328] sm:$0xff]  }
  0xfb   :  { %3690 = vmatprep.mubr.bf16.mxu1 %v6893_v26  ;;  %3787 = vmatprep.mubr.bf16.mxu0 %v6897_v27 }
  0xfd   :  { %v5569_v34 = vpop.f32.mrb[4].mxu0  ;;  %v5641_v35 = vpop.f32.mrb[4].mxu1 }
  0xfe   :  { %v5570_v36 = vpop.f32.mrb[5].mxu0  ;;  %v5642_v37 = vpop.f32.mrb[5].mxu1 }
  0xff   :  { %v7906_v38 = vadd.f32 %v5570_v36, %v5569_v34  ;;  %v5572_v39 = vpop.f32.mrb[6].mxu0  ;;  %v7908_v40 = vadd.f32 %v5642_v37, %v5641_v35  ;;  %v5644_v41 = vpop.f32.mrb[6].mxu1  ;;  %v6924_v34 = vld [vmem:[%s9551_s0 + $0x1e8] ss:$76 sps:$4 sm:$0xff]  }
 0x100   :  { %v5573_v44 = vpop.f32.mrb[7].mxu0  ;;  %v5645_v45 = vpop.f32.mrb[7].mxu1 }
 0x101   :  { %v7922_v48 = vadd.f32 %v5573_v44, %v5572_v39  ;;  %v7924_v49 = vadd.f32 %v5645_v45, %v5644_v41  ;;  %v3146_v41 = vadd.f32 %v7886_v22, %v7993_v28  ;;  %v6996_v22 = vld [vmem:[%s9550_s1 + $0x330] sm:$0xff]  }
 0x102   :  { %3691 = vmatmul.mubr.bf16.gmra.mrb[112].mxu1 %v6898_v33  ;;  %3788 = vmatmul.mubr.bf16.vlgmr.msra.gmra.mrb[112].mxu0 %v6895_v32  ;;  %v6995_v32 = vld [vmem:[%s9550_s1 + $0x370] sm:$0xff]   ;;  %v6923_v33 = vld [vmem:[%s9551_s0 + $0x6a0] ss:$76 sps:$4 sm:$0xff]  }
 0x103   :  { %6220 = vmatpush3.bf16.msra.mxu0 %v6900_v42  ;;  %3698 = vmatprep.mubr.bf16.mxu1 %v6903_v43 }
 0x104   :  { %3795 = vmatprep.mubr.bf16.mxu0 %v6905_v46  ;;  %6221 = vmatprep.subr.bf16.mxu0 %v6915_v47  ;;  %v6925_v46 = vld [vmem:[%s9551_s0 + $0x73c] ss:$76 sps:$4 sm:$0xff]   ;;  %v6927_v47 = vld [vmem:[%s9551_s0 + $0x284] ss:$76 sps:$4 sm:$0xff]  }
 0x105   :  { %v5575_v54 = vpop.f32.mrb[8].mxu0  ;;  %v5647_v55 = vpop.f32.mrb[8].mxu1 }
 0x106   :  { %v5576_v56 = vpop.f32.mrb[9].mxu0  ;;  %v5648_v57 = vpop.f32.mrb[9].mxu1 }
 0x107   :  { %v7938_v58 = vadd.f32 %v5576_v56, %v5575_v54  ;;  %v5578_v59 = vpop.f32.mrb[10].mxu0  ;;  %v7940_v60 = vadd.f32 %v5648_v57, %v5647_v55  ;;  %v5650_v61 = vpop.f32.mrb[10].mxu1  ;;  %6222 = vmatpush3.bf16.msra.mxu0 %v6916_v50  ;;  %v7011_v56 = vld [vmem:[%s9550_s1 + $0x378] sm:$0xff]  }
 0x108   :  { %v5579_v0 = vpop.f32.mrb[11].mxu0  ;;  %v5651_v1 = vpop.f32.mrb[11].mxu1  ;;  %6223 = vmatprep.subr.bf16.mxu0 %v6931_v51  ;;  %v7012_v57 = vld [vmem:[%s9550_s1 + $0x338] sm:$0xff]  }
 0x109   :  { %v7951_v3 = vadd.f32 %v5579_v0, %v5578_v59  ;;  %v7953_v4 = vadd.f32 %v5651_v1, %v5650_v61  ;;  %v6929_v61 = vld [vmem:[%s9551_s0 + $0x738] ss:$76 sps:$4 sm:$0xff]  }
 0x10a   :  { %3699 = vmatmul.mubr.bf16.gmra.mrb[116].mxu1 %v6907_v52  ;;  %3796 = vmatmul.mubr.bf16.gmra.mrb[116].mxu0 %v6908_v53  ;;  %v3149_v52 = vadd.f32 %v7896_v30, %v7993_v28  ;;  %v7027_v30 = vld [vmem:[%s9550_s1 + $0x440] sm:$0xff]  }
 0x10b   :  { %3706 = vmatprep.mubr.bf16.mxu1 %v6909_v62  ;;  %3803 = vmatprep.mubr.bf16.mxu0 %v6911_v63  ;;  %v6930_v62 = vld [vmem:[%s9551_s0 + $0x280] ss:$76 sps:$4 sm:$0xff]  }
 0x10c   :  { %6224 = vmatpush3.bf16.msra.mxu0 %v6932_v2 }
 0x10d   :  { %v5581_v10 = vpop.f32.mrb[12].mxu0  ;;  %v5653_v11 = vpop.f32.mrb[12].mxu1  ;;  %6225 = vmatprep.subr.bf16.mxu0 %v6947_v5  ;;  %v3154_v5 = vadd.f32 %v7906_v38, %v7993_v28 }
 0x10e   :  { %v5582_v12 = vpop.f32.mrb[13].mxu0  ;;  %v5654_v13 = vpop.f32.mrb[13].mxu1 }
 0x10f   :  { %v7970_v14 = vadd.f32 %v5582_v12, %v5581_v10  ;;  %v5584_v15 = vpop.f32.mrb[14].mxu0  ;;  %v7972_v16 = vadd.f32 %v5654_v13, %v5653_v11  ;;  %v5656_v17 = vpop.f32.mrb[14].mxu1  ;;  %v6935_v10 = vld [vmem:[%s9551_s0 + $0x7d4] ss:$76 sps:$4 sm:$0xff]   ;;  %v6937_v11 = vld [vmem:[%s9551_s0 + $0x31c] ss:$76 sps:$4 sm:$0xff]  }
 0x110   :  { %v5585_v20 = vpop.f32.mrb[15].mxu0  ;;  %v5657_v21 = vpop.f32.mrb[15].mxu1  ;;  %6226 = vmatpush3.bf16.msra.mxu0 %v6948_v6 }
 0x111   :  { %v7986_v26 = vadd.f32 %v5585_v20, %v5584_v15  ;;  %v7988_v27 = vadd.f32 %v5657_v21, %v5656_v17  ;;  %6227 = vmatprep.subr.bf16.mxu0 %v6963_v7  ;;  %v3157_v15 = vadd.f32 %v7922_v48, %v7993_v28  ;;  %v6939_v20 = vld [vmem:[%s9551_s0 + $0x7d0] ss:$76 sps:$4 sm:$0xff]   ;;  %v6940_v48 = vld [vmem:[%s9551_s0 + $0x318] ss:$76 sps:$4 sm:$0xff]  }
 0x112   :  { %3707 = vmatmul.mubr.bf16.gmra.mrb[120].mxu1 %v6913_v8  ;;  %3804 = vmatmul.mubr.bf16.gmra.mrb[120].mxu0 %v6914_v9 }
 0x113   :  { %3714 = vmatprep.mubr.bf16.mxu1 %v6919_v18  ;;  %3811 = vmatprep.mubr.bf16.mxu0 %v6921_v19 }
 0x114   :  { %6228 = vmatpush3.bf16.msra.mxu0 %v6964_v23 }
 0x115   :  { %v5587_v35 = vpop.f32.mrb[16].mxu0  ;;  %v5675_v36 = vpop.f32.mrb[16].mxu1  ;;  %6229 = vmatprep.subr.bf16.mxu0 %v6979_v25 }
 0x116   :  { %v5588_v37 = vpop.f32.mrb[17].mxu0  ;;  %v5676_v39 = vpop.f32.mrb[17].mxu1 }
 0x117   :  { %v8009_v42 = vadd.f32 %v5588_v37, %v5587_v35  ;;  %v5677_v43 = vadd.f32 %v5676_v39, %v5675_v36  ;;  %v5590_v44 = vpop.f32.mrb[18].mxu0  ;;  %v5678_v45 = vpop.f32.mrb[18].mxu1  ;;  %v6941_v37 = vld [vmem:[%s9551_s0 + $0x86c] ss:$76 sps:$4 sm:$0xff]   ;;  %v6943_v39 = vld [vmem:[%s9551_s0 + $0x3b4] ss:$76 sps:$4 sm:$0xff]  }
 0x118   :  { %v5591_v50 = vpop.f32.mrb[19].mxu0  ;;  %v5679_v51 = vpop.f32.mrb[19].mxu1  ;;  %6230 = vmatpush3.bf16.msra.mxu0 %v6980_v29 }
 0x119   :  { %v8022_v53 = vadd.f32 %v5591_v50, %v5590_v44  ;;  %v5680_v54 = vadd.f32 %v5679_v51, %v5678_v45  ;;  %v8024_v55 = vadd.f32 %v5677_v43, %v3146_v41  ;;  %6231 = vmatprep.subr.bf16.mxu0 %v6995_v32  ;;  %v3162_v32 = vadd.f32 %v7938_v58, %v7993_v28  ;;  %v6945_v50 = vld [vmem:[%s9551_s0 + $0x868] ss:$76 sps:$4 sm:$0xff]   ;;  %v6946_v51 = vld [vmem:[%s9551_s0 + $0x3b0] ss:$76 sps:$4 sm:$0xff]  }
 0x11a   :  { %3715 = vmatmul.mubr.bf16.gmra.mrb[124].mxu1 %v6923_v33  ;;  %3812 = vmatmul.mubr.bf16.gmra.mrb[124].mxu0 %v6924_v34  ;;  %v3165_v44 = vadd.f32 %v7951_v3, %v7993_v28 }
 0x11b   :  { %3722 = vmatprep.mubr.bf16.mxu1 %v6925_v46  ;;  %3819 = vmatprep.mubr.bf16.mxu0 %v6927_v47  ;;  %v8032_v59 = vadd.f32 %v5680_v54, %v3149_v52 }
 0x11c   :  { %6232 = vmatpush3.bf16.msra.mxu0 %v6996_v22 }
 0x11d   :  { %v5593_v63 = vpop.f32.mrb[20].mxu0  ;;  %v5681_v0 = vpop.f32.mrb[20].mxu1  ;;  %6233 = vmatprep.subr.bf16.mxu0 %v7011_v56  ;;  %v3170_v56 = vadd.f32 %v7970_v14, %v7993_v28 }
 0x11e   :  { %v5594_v1 = vpop.f32.mrb[21].mxu0  ;;  %v5682_v2 = vpop.f32.mrb[21].mxu1 }
 0x11f   :  { %v8045_v6 = vadd.f32 %v5594_v1, %v5593_v63  ;;  %v5683_v7 = vadd.f32 %v5682_v2, %v5681_v0  ;;  %v5596_v8 = vpop.f32.mrb[22].mxu0  ;;  %v5684_v9 = vpop.f32.mrb[22].mxu1  ;;  %v6951_v63 = vld [vmem:[%s9551_s0 + $0x904] ss:$76 sps:$4 sm:$0xff]   ;;  %v6953_v0 = vld [vmem:[%s9551_s0 + $0x44c] ss:$76 sps:$4 sm:$0xff]  }
 0x120   :  { %v5597_v12 = vpop.f32.mrb[23].mxu0  ;;  %v5685_v13 = vpop.f32.mrb[23].mxu1  ;;  %6234 = vmatpush3.bf16.msra.mxu0 %v7012_v57 }
 0x121   :  { %v8055_v38 = vadd.f32 %v5597_v12, %v5596_v8  ;;  %v5686_v17 = vadd.f32 %v5685_v13, %v5684_v9  ;;  %v8057_v18 = vadd.f32 %v5683_v7, %v3154_v5  ;;  %6443 = vmatprep.subr.bf16.mxu0 %v7027_v30  ;;  %v3173_v5 = vadd.f32 %v7986_v26, %v7993_v28 }
 0x122   :  { %3723 = vmatmul.mubr.bf16.gmra.mrb[128].mxu1 %v6929_v61  ;;  %3820 = vmatmul.mubr.bf16.gmra.mrb[128].mxu0 %v6930_v62 }
 0x123   :  { %3730 = vmatprep.mubr.bf16.mxu1 %v6935_v10  ;;  %3827 = vmatprep.mubr.bf16.mxu0 %v6937_v11  ;;  %v8059_v19 = vadd.f32 %v5686_v17, %v3157_v15  ;;  %v6955_v10 = vld [vmem:[%s9551_s0 + $0x900] ss:$76 sps:$4 sm:$0xff]   ;;  %v6956_v11 = vld [vmem:[%s9551_s0 + $0x448] ss:$76 sps:$4 sm:$0xff]   ;;  %v3178_v17 = vadd.f32 %v8009_v42, %v7993_v28 }
 0x125   :  { %v5599_v21 = vpop.f32.mrb[24].mxu0  ;;  %v5687_v23 = vpop.f32.mrb[24].mxu1 }
 0x126   :  { %v5600_v25 = vpop.f32.mrb[25].mxu0  ;;  %v5688_v29 = vpop.f32.mrb[25].mxu1 }
 0x127   :  { %v8069_v33 = vadd.f32 %v5600_v25, %v5599_v21  ;;  %v5689_v34 = vadd.f32 %v5688_v29, %v5687_v23  ;;  %v5602_v35 = vpop.f32.mrb[26].mxu0  ;;  %v5690_v36 = vpop.f32.mrb[26].mxu1  ;;  %v6957_v25 = vld [vmem:[%s9551_s0 + $0x4e4] ss:$76 sps:$4 sm:$0xff]   ;;  %v6961_v29 = vld [vmem:[%s9551_s0 + $0x2c] ss:$76 sps:$4 sm:$0xff]  }
 0x128   :  { %v5603_v41 = vpop.f32.mrb[27].mxu0  ;;  %v5691_v43 = vpop.f32.mrb[27].mxu1 }
 0x129   :  { %v8079_v45 = vadd.f32 %v5603_v41, %v5602_v35  ;;  %v5692_v58 = vadd.f32 %v5691_v43, %v5690_v36  ;;  %v8081_v46 = vadd.f32 %v5689_v34, %v3162_v32  ;;  %v3181_v35 = vadd.f32 %v8022_v53, %v7993_v28  ;;  %v6959_v41 = vld [vmem:[%s9551_s0 + $0x28] ss:$76 sps:$4 sm:$0xff]   ;;  %v6962_v43 = vld [vmem:[%s9551_s0 + $0x4e0] ss:$76 sps:$4 sm:$0xff]  }
 0x12a   :  { %3731 = vmatmul.mubr.bf16.gmra.mrb[132].mxu1 %v6939_v20  ;;  %3828 = vmatmul.mubr.bf16.gmra.mrb[132].mxu0 %v6940_v48 }
 0x12b   :  { %3738 = vmatprep.mubr.bf16.mxu1 %v6941_v37  ;;  %3835 = vmatprep.mubr.bf16.mxu0 %v6943_v39  ;;  %v8083_v47 = vadd.f32 %v5692_v58, %v3165_v44 }
 0x12d   :  { %v5605_v3 = vpop.f32.mrb[28].mxu0  ;;  %v5693_v22 = vpop.f32.mrb[28].mxu1 }
 0x12e   :  { %v5606_v52 = vpop.f32.mrb[29].mxu0  ;;  %v5694_v54 = vpop.f32.mrb[29].mxu1 }
 0x12f   :  { %v8093_v57 = vadd.f32 %v5606_v52, %v5605_v3  ;;  %v5695_v30 = vadd.f32 %v5694_v54, %v5693_v22  ;;  %v5608_v61 = vpop.f32.mrb[30].mxu0  ;;  %v5696_v62 = vpop.f32.mrb[30].mxu1 }
 0x130   :  { %v5609_v1 = vpop.f32.mrb[31].mxu0  ;;  %v5697_v2 = vpop.f32.mrb[31].mxu1 }
 0x131   :  { %v8103_v7 = vadd.f32 %v5609_v1, %v5608_v61  ;;  %v5698_v14 = vadd.f32 %v5697_v2, %v5696_v62  ;;  %v8105_v8 = vadd.f32 %v5695_v30, %v3170_v56  ;;  %v6966_v56 = vld [vmem:[%s9550_s1 + $0x380] sm:$0xff]   ;;  %v6967_v30 = vld [vmem:[%s9551_s0 + $0x57c] ss:$76 sps:$4 sm:$0xff]  }
 0x132   :  { %3739 = vmatmul.mubr.bf16.gmra.mrb[136].mxu1 %v6945_v50  ;;  %3836 = vmatmul.mubr.bf16.gmra.mrb[136].mxu0 %v6946_v51  ;;  %v3186_v51 = vadd.f32 %v8045_v6, %v7993_v28  ;;  %v6981_v6 = vld [vmem:[%s9550_s1 + $0x3c8] sm:$0xff]  }
 0x133   :  { %3746 = vmatprep.mubr.bf16.mxu1 %v6951_v63  ;;  %3843 = vmatprep.mubr.bf16.mxu0 %v6953_v0  ;;  %v8107_v9 = vadd.f32 %v5698_v14, %v3173_v5  ;;  %v6969_v63 = vld [vmem:[%s9551_s0 + $0xc4] ss:$76 sps:$4 sm:$0xff]   ;;  %v3189_v0 = vadd.f32 %v8055_v38, %v7993_v28  ;;  %v6982_v14 = vld [vmem:[%s9550_s1 + $0x388] sm:$0xff]  }
 0x134   :  { %v6971_v38 = vld [vmem:[%s9551_s0 + $0x578] ss:$76 sps:$4 sm:$0xff]  }
 0x135   :  { %v5611_v26 = vpop.f32.mrb[32].mxu0  ;;  %v5699_v12 = vpop.f32.mrb[32].mxu1 }
 0x136   :  { %v5612_v13 = vpop.f32.mrb[33].mxu0  ;;  %v5700_v15 = vpop.f32.mrb[33].mxu1 }
 0x137   :  { %v8117_v20 = vadd.f32 %v5612_v13, %v5611_v26  ;;  %v5701_v48 = vadd.f32 %v5700_v15, %v5699_v12  ;;  %v5614_v21 = vpop.f32.mrb[34].mxu0  ;;  %v5702_v23 = vpop.f32.mrb[34].mxu1  ;;  %v6972_v26 = vld [vmem:[%s9551_s0 + $0xc0] ss:$76 sps:$4 sm:$0xff]  }
 0x138   :  { %v5615_v32 = vpop.f32.mrb[35].mxu0  ;;  %v5703_v34 = vpop.f32.mrb[35].mxu1 }
 0x139   :  { %v8127_v36 = vadd.f32 %v5615_v32, %v5614_v21  ;;  %v5704_v42 = vadd.f32 %v5703_v34, %v5702_v23  ;;  %v8129_v37 = vadd.f32 %v5701_v48, %v3178_v17  ;;  %v3194_v48 = vadd.f32 %v8069_v33, %v7993_v28  ;;  %v6973_v32 = vld [vmem:[%s9551_s0 + $0x614] ss:$76 sps:$4 sm:$0xff]   ;;  %v6975_v34 = vld [vmem:[%s9551_s0 + $0x15c] ss:$76 sps:$4 sm:$0xff]  }
 0x13a   :  { %3747 = vmatmul.mubr.bf16.gmra.mrb[140].mxu1 %v6955_v10  ;;  %3844 = vmatmul.mubr.bf16.gmra.mrb[140].mxu0 %v6956_v11  ;;  %v6997_v10 = vld [vmem:[%s9550_s1 + $0x3d0] sm:$0xff]  }
 0x13b   :  { %3851 = vmatprep.mubr.bf16.mxu0 %v6957_v25  ;;  %3948 = vmatprep.mubr.bf16.mxu1 %v6961_v29  ;;  %v8131_v39 = vadd.f32 %v5704_v42, %v3181_v35  ;;  %v6998_v33 = vld [vmem:[%s9550_s1 + $0x390] sm:$0xff]  }
 0x13d   :  { %v5617_v53 = vpop.f32.mrb[36].mxu0  ;;  %v5705_v44 = vpop.f32.mrb[36].mxu1 }
 0x13e   :  { %v5618_v58 = vpop.f32.mrb[37].mxu0  ;;  %v5706_v50 = vpop.f32.mrb[37].mxu1 }
 0x13f   :  { %v8141_v3 = vadd.f32 %v5618_v58, %v5617_v53  ;;  %v5707_v22 = vadd.f32 %v5706_v50, %v5705_v44  ;;  %v5620_v52 = vpop.f32.mrb[38].mxu0  ;;  %v5708_v54 = vpop.f32.mrb[38].mxu1  ;;  %v7013_v44 = vld [vmem:[%s9550_s1 + $0x3d8] sm:$0xff]  }
 0x140   :  { %v5621_v61 = vpop.f32.mrb[39].mxu0  ;;  %v5709_v62 = vpop.f32.mrb[39].mxu1  ;;  %v7014_v50 = vld [vmem:[%s9550_s1 + $0x398] sm:$0xff]  }
 0x141   :  { %v8157_v1 = vadd.f32 %v5621_v61, %v5620_v52  ;;  %v5710_v2 = vadd.f32 %v5709_v62, %v5708_v54  ;;  %v8159_v5 = vadd.f32 %v5707_v22, %v3186_v51  ;;  %v6977_v22 = vld [vmem:[%s9551_s0 + $0x610] ss:$76 sps:$4 sm:$0xff]   ;;  %v6978_v52 = vld [vmem:[%s9551_s0 + $0x158] ss:$76 sps:$4 sm:$0xff]   ;;  %v3202_v62 = vadd.f32 %v8093_v57, %v7993_v28 }
 0x142   :  { %3852 = vmatmul.mubr.bf16.gmra.mrb[144].mxu0 %v6962_v43  ;;  %3949 = vmatmul.mubr.bf16.vlgmr.msra.gmra.mrb[144].mxu1 %v6959_v41  ;;  %v3197_v41 = vadd.f32 %v8079_v45, %v7993_v28  ;;  %v7029_v45 = vld [vmem:[%s9550_s1 + $0x3e0] sm:$0xff]  }
 0x143   :  { %6332 = vmatpush3.bf16.msra.mxu1 %v6966_v56  ;;  %3859 = vmatprep.mubr.bf16.mxu0 %v6967_v30  ;;  %v8167_v11 = vadd.f32 %v5710_v2, %v3189_v0  ;;  %v7030_v57 = vld [vmem:[%s9550_s1 + $0x3a0] sm:$0xff]  }
 0x144   :  { %3956 = vmatprep.mubr.bf16.mxu1 %v6969_v63  ;;  %6333 = vmatprep.subr.bf16.mxu1 %v6981_v6 }
 0x145   :  { %v5623_v12 = vpop.f32.mrb[40].mxu0  ;;  %v5711_v13 = vpop.f32.mrb[40].mxu1 }
 0x146   :  { %v5624_v15 = vpop.f32.mrb[41].mxu0  ;;  %v5712_v17 = vpop.f32.mrb[41].mxu1 }
 0x147   :  { %v8177_v21 = vadd.f32 %v5624_v15, %v5623_v12  ;;  %v5713_v23 = vadd.f32 %v5712_v17, %v5711_v13  ;;  %v5626_v25 = vpop.f32.mrb[42].mxu0  ;;  %v5714_v29 = vpop.f32.mrb[42].mxu1  ;;  %6334 = vmatpush3.bf16.msra.mxu1 %v6982_v14  ;;  %v6983_v14 = vld [vmem:[%s9551_s0 + $0x6ac] ss:$76 sps:$4 sm:$0xff]   ;;  %v3205_v12 = vadd.f32 %v8103_v7, %v7993_v28 }
 0x148   :  { %v5627_v35 = vpop.f32.mrb[43].mxu0  ;;  %v5715_v42 = vpop.f32.mrb[43].mxu1  ;;  %6335 = vmatprep.subr.bf16.mxu1 %v6997_v10  ;;  %v6985_v10 = vld [vmem:[%s9551_s0 + $0x1f4] ss:$76 sps:$4 sm:$0xff]   ;;  %v7046_v7 = vld [vmem:[%s9550_s1 + $0x3a8] sm:$0xff]  }
 0x149   :  { %v8190_v43 = vadd.f32 %v5627_v35, %v5626_v25  ;;  %v5716_v53 = vadd.f32 %v5715_v42, %v5714_v29  ;;  %v8195_v58 = vadd.f32 %v5713_v23, %v3194_v48  ;;  %v7045_v48 = vld [vmem:[%s9550_s1 + $0x3e8] sm:$0xff]  }
 0x14a   :  { %3860 = vmatmul.mubr.bf16.gmra.mrb[148].mxu0 %v6971_v38  ;;  %3957 = vmatmul.mubr.bf16.gmra.mrb[148].mxu1 %v6972_v26  ;;  %v6987_v42 = vld [vmem:[%s9551_s0 + $0x6a8] ss:$76 sps:$4 sm:$0xff]  }
 0x14b   :  { %3867 = vmatprep.mubr.bf16.mxu0 %v6973_v32  ;;  %3964 = vmatprep.mubr.bf16.mxu1 %v6975_v34  ;;  %v8203_v51 = vadd.f32 %v5716_v53, %v3197_v41  ;;  %v7061_v32 = vld [vmem:[%s9550_s1 + $0x3f0] sm:$0xff]   ;;  %v3210_v41 = vadd.f32 %v8117_v20, %v7993_v28 }
 0x14c   :  { %6336 = vmatpush3.bf16.msra.mxu1 %v6998_v33  ;;  %v6988_v33 = vld [vmem:[%s9551_s0 + $0x1f0] ss:$76 sps:$4 sm:$0xff]  }
 0x14d   :  { %v5629_v54 = vpop.f32.mrb[44].mxu0  ;;  %v5717_v56 = vpop.f32.mrb[44].mxu1  ;;  %6337 = vmatprep.subr.bf16.mxu1 %v7013_v44  ;;  %v7062_v20 = vld [vmem:[%s9550_s1 + $0x3b0] sm:$0xff]  }
 0x14e   :  { %v5630_v30 = vpop.f32.mrb[45].mxu0  ;;  %v5718_v61 = vpop.f32.mrb[45].mxu1 }
 0x14f   :  { %v8213_v63 = vadd.f32 %v5630_v30, %v5629_v54  ;;  %v5719_v6 = vadd.f32 %v5718_v61, %v5717_v56  ;;  %v5632_v0 = vpop.f32.mrb[46].mxu0  ;;  %v5720_v2 = vpop.f32.mrb[46].mxu1  ;;  %v3213_v54 = vadd.f32 %v8127_v36, %v7993_v28 }
 0x150   :  { %v5633_v38 = vpop.f32.mrb[47].mxu0  ;;  %v5721_v26 = vpop.f32.mrb[47].mxu1  ;;  %6338 = vmatpush3.bf16.msra.mxu1 %v7014_v50 }
 0x151   :  { %v8226_v13 = vadd.f32 %v5633_v38, %v5632_v0  ;;  %v5722_v15 = vadd.f32 %v5721_v26, %v5720_v2  ;;  %6339 = vmatprep.subr.bf16.mxu1 %v7029_v45  ;;  %v8228_v17 = vadd.f32 %v5719_v6, %v3202_v62  ;;  %v7077_v2 = vld [vmem:[%s9550_s1 + $0x3f8] sm:$0xff]   ;;  %v8279_v26 = vld [vmem:[%s9550_s1 + $0x480] sm:$0xff]  }
 0x152   :  { %3868 = vmatmul.mubr.bf16.gmra.mrb[152].mxu0 %v6977_v22  ;;  %3965 = vmatmul.mubr.bf16.gmra.mrb[152].mxu1 %v6978_v52  ;;  %v6989_v22 = vld [vmem:[%s9551_s0 + $0x744] ss:$76 sps:$4 sm:$0xff]   ;;  %v6991_v52 = vld [vmem:[%s9551_s0 + $0x28c] ss:$76 sps:$4 sm:$0xff]  }
 0x153   :  { %3875 = vmatprep.mubr.bf16.mxu0 %v6983_v14  ;;  %3972 = vmatprep.mubr.bf16.mxu1 %v6985_v10  ;;  %v8233_v23 = vadd.f32 %v5722_v15, %v3205_v12  ;;  %v6994_v15 = vld [vmem:[%s9551_s0 + $0x288] ss:$76 sps:$4 sm:$0xff]  }
 0x154   :  { %6340 = vmatpush3.bf16.msra.mxu1 %v7030_v57 }
 0x155   :  { %v5723_v25 = vpop.f32.mrb[48].mxu1  ;;  %v5787_v29 = vpop.f32.mrb[48].mxu0  ;;  %6341 = vmatprep.subr.bf16.mxu1 %v7045_v48  ;;  %v3218_v48 = vadd.f32 %v8141_v3, %v7993_v28 }
 0x156   :  { %v5724_v34 = vpop.f32.mrb[49].mxu1  ;;  %v5788_v35 = vpop.f32.mrb[49].mxu0 }
 0x157   :  { %v5725_v53 = vadd.f32 %v5724_v34, %v5723_v25  ;;  %v5789_v44 = vadd.f32 %v5788_v35, %v5787_v29  ;;  %v5726_v50 = vpop.f32.mrb[50].mxu1  ;;  %v5790_v45 = vpop.f32.mrb[50].mxu0  ;;  %v6999_v34 = vld [vmem:[%s9551_s0 + $0x7dc] ss:$76 sps:$4 sm:$0xff]   ;;  %v7001_v35 = vld [vmem:[%s9551_s0 + $0x324] ss:$76 sps:$4 sm:$0xff]  }
 0x158   :  { %v5727_v56 = vpop.f32.mrb[51].mxu1  ;;  %v5791_v30 = vpop.f32.mrb[51].mxu0  ;;  %6342 = vmatpush3.bf16.msra.mxu1 %v7046_v7 }
 0x159   :  { %v8260_v61 = vadd.f32 %v5725_v53, %v3210_v41  ;;  %v8263_v62 = vadd.f32 %v5789_v44, %v8024_v55  ;;  %v5728_v6 = vadd.f32 %v5727_v56, %v5726_v50  ;;  %v5792_v0 = vadd.f32 %v5791_v30, %v5790_v45  ;;  %6343 = vmatprep.subr.bf16.mxu1 %v7061_v32  ;;  %v7078_v55 = vld [vmem:[%s9550_s1 + $0x3b8] sm:$0xff]   ;;  %v7004_v30 = vld [vmem:[%s9551_s0 + $0x320] ss:$76 sps:$4 sm:$0xff]  }
 0x15a   :  { %3876 = vmatmul.mubr.bf16.gmra.mrb[156].mxu0 %v6987_v42  ;;  %3973 = vmatmul.mubr.bf16.gmra.mrb[156].mxu1 %v6988_v33  ;;  %v3221_v42 = vadd.f32 %v8157_v1, %v7993_v28 }
 0x15b   :  { %v8268_v36 = vadd.f32 %v5728_v6, %v3213_v54  ;;  %v8271_v14 = vadd.f32 %v5792_v0, %v8032_v59  ;;  %3883 = vmatprep.mubr.bf16.mxu0 %v6989_v22  ;;  %3980 = vmatprep.mubr.bf16.mxu1 %v6991_v52  ;;  %v6993_v59 = vld [vmem:[%s9551_s0 + $0x740] ss:$76 sps:$4 sm:$0xff]  }
 0x15c   :  { %6344 = vmatpush3.bf16.msra.mxu1 %v7062_v20  ;;  %v3226_v20 = vadd.f32 %v8177_v21, %v7993_v28 }
 0x15d   :  { %v5729_v10 = vpop.f32.mrb[52].mxu1  ;;  %v5793_v38 = vpop.f32.mrb[52].mxu0  ;;  %6345 = vmatprep.subr.bf16.mxu1 %v7077_v2 }
 0x15e   :  { %v5730_v57 = vpop.f32.mrb[53].mxu1  ;;  %v5794_v12 = vpop.f32.mrb[53].mxu0 }
 0x15f   :  { %v5731_v7 = vadd.f32 %v5730_v57, %v5729_v10  ;;  %v5795_v25 = vadd.f32 %v5794_v12, %v5793_v38  ;;  %v5732_v29 = vpop.f32.mrb[54].mxu1  ;;  %v5796_v32 = vpop.f32.mrb[54].mxu0  ;;  %v7007_v10 = vld [vmem:[%s9551_s0 + $0x3bc] ss:$76 sps:$4 sm:$0xff]   ;;  %v3229_v38 = vadd.f32 %v8190_v43, %v7993_v28 }
 0x160   :  { %v5733_v33 = vpop.f32.mrb[55].mxu1  ;;  %v5797_v41 = vpop.f32.mrb[55].mxu0  ;;  %6346 = vmatpush3.bf16.msra.mxu1 %v7078_v55  ;;  %v7005_v55 = vld [vmem:[%s9551_s0 + $0x874] ss:$76 sps:$4 sm:$0xff]  }
 0x161   :  { %v8297_v53 = vadd.f32 %v5731_v7, %v3218_v48  ;;  %v8300_v3 = vadd.f32 %v5795_v25, %v8057_v18  ;;  %v5734_v44 = vadd.f32 %v5733_v33, %v5732_v29  ;;  %v5798_v50 = vadd.f32 %v5797_v41, %v5796_v32  ;;  %6577 = vmatprep.subr.bf16.mxu1 %v8279_v26  ;;  %v7003_v18 = vld [vmem:[%s9551_s0 + $0x7d8] ss:$76 sps:$4 sm:$0xff]  }
 0x162   :  { %3884 = vmatmul.mubr.bf16.gmra.mrb[160].mxu0 %v6993_v59  ;;  %3981 = vmatmul.mubr.bf16.gmra.mrb[160].mxu1 %v6994_v15 }
 0x163   :  { %v8303_v45 = vadd.f32 %v5734_v44, %v3221_v42  ;;  %v8306_v22 = vadd.f32 %v5798_v50, %v8059_v19  ;;  %3891 = vmatprep.mubr.bf16.mxu0 %v6999_v34  ;;  %3988 = vmatprep.mubr.bf16.mxu1 %v7001_v35  ;;  %v7010_v35 = vld [vmem:[%s9551_s0 + $0x3b8] ss:$76 sps:$4 sm:$0xff]   ;;  %v3234_v42 = vadd.f32 %v8213_v63, %v7993_v28 }
 0x164   :  { %v7015_v50 = vld [vmem:[%s9551_s0 + $0x90c] ss:$76 sps:$4 sm:$0xff]  }
 0x165   :  { %v5735_v1 = vpop.f32.mrb[56].mxu1  ;;  %v5799_v52 = vpop.f32.mrb[56].mxu0 }
 0x166   :  { %v5736_v54 = vpop.f32.mrb[57].mxu1  ;;  %v5800_v56 = vpop.f32.mrb[57].mxu0 }
 0x167   :  { %v5737_v6 = vadd.f32 %v5736_v54, %v5735_v1  ;;  %v5801_v19 = vadd.f32 %v5800_v56, %v5799_v52  ;;  %v5738_v0 = vpop.f32.mrb[58].mxu1  ;;  %v5802_v2 = vpop.f32.mrb[58].mxu0  ;;  %v7017_v1 = vld [vmem:[%s9551_s0 + $0x454] ss:$76 sps:$4 sm:$0xff]   ;;  %v3237_v52 = vadd.f32 %v8226_v13, %v7993_v28 }
 0x168   :  { %v5739_v57 = vpop.f32.mrb[59].mxu1  ;;  %v5803_v12 = vpop.f32.mrb[59].mxu0 }
 0x169   :  { %v8324_v59 = vadd.f32 %v5737_v6, %v3226_v20  ;;  %v8327_v21 = vadd.f32 %v5801_v19, %v8081_v46  ;;  %v5740_v15 = vadd.f32 %v5739_v57, %v5738_v0  ;;  %v5804_v48 = vadd.f32 %v5803_v12, %v5802_v2  ;;  %v7009_v46 = vld [vmem:[%s9551_s0 + $0x870] ss:$76 sps:$4 sm:$0xff]  }
 0x16a   :  { %3892 = vmatmul.mubr.bf16.gmra.mrb[164].mxu0 %v7003_v18  ;;  %3989 = vmatmul.mubr.bf16.gmra.mrb[164].mxu1 %v7004_v30 }
 0x16b   :  { %v8329_v7 = vadd.f32 %v5740_v15, %v3229_v38  ;;  %v8332_v25 = vadd.f32 %v5804_v48, %v8083_v47  ;;  %3899 = vmatprep.mubr.bf16.mxu0 %v7005_v55  ;;  %3996 = vmatprep.mubr.bf16.mxu1 %v7007_v10  ;;  %v7020_v10 = vld [vmem:[%s9551_s0 + $0x450] ss:$76 sps:$4 sm:$0xff]   ;;  %v3242_v38 = vadd.f32 %v7888_v24, %v7993_v28  ;;  %v7021_v48 = vld [vmem:[%s9551_s0 + $0x4ec] ss:$76 sps:$4 sm:$0xff]  }
 0x16d   :  { %v5741_v29 = vpop.f32.mrb[60].mxu1  ;;  %v5805_v43 = vpop.f32.mrb[60].mxu0 }
 0x16e   :  { %v5742_v32 = vpop.f32.mrb[61].mxu1  ;;  %v5806_v34 = vpop.f32.mrb[61].mxu0 }
 0x16f   :  { %v5743_v33 = vadd.f32 %v5742_v32, %v5741_v29  ;;  %v5807_v47 = vadd.f32 %v5806_v34, %v5805_v43  ;;  %v5744_v41 = vpop.f32.mrb[62].mxu1  ;;  %v5808_v44 = vpop.f32.mrb[62].mxu0  ;;  %v7025_v29 = vld [vmem:[%s9551_s0 + $0x34] ss:$76 sps:$4 sm:$0xff]   ;;  %v3245_v43 = vadd.f32 %v7898_v31, %v7993_v28 }
 0x170   :  { %v5745_v54 = vpop.f32.mrb[63].mxu1  ;;  %v5809_v56 = vpop.f32.mrb[63].mxu0 }
 0x171   :  { %v8350_v18 = vadd.f32 %v5743_v33, %v3234_v42  ;;  %v8353_v63 = vadd.f32 %v5807_v47, %v8105_v8  ;;  %v5746_v30 = vadd.f32 %v5745_v54, %v5744_v41  ;;  %v5810_v20 = vadd.f32 %v5809_v56, %v5808_v44  ;;  %v7019_v8 = vld [vmem:[%s9551_s0 + $0x908] ss:$76 sps:$4 sm:$0xff]  }
 0x172   :  { %3900 = vmatmul.mubr.bf16.gmra.mrb[168].mxu0 %v7009_v46  ;;  %3997 = vmatmul.mubr.bf16.gmra.mrb[168].mxu1 %v7010_v35 }
 0x173   :  { %v8355_v6 = vadd.f32 %v5746_v30, %v3237_v52  ;;  %v8358_v19 = vadd.f32 %v5810_v20, %v8107_v9  ;;  %3907 = vmatprep.mubr.bf16.mxu0 %v7015_v50  ;;  %4004 = vmatprep.mubr.bf16.mxu1 %v7017_v1  ;;  %v7026_v1 = vld [vmem:[%s9551_s0 + $0x4e8] ss:$76 sps:$4 sm:$0xff]   ;;  %v3250_v52 = vadd.f32 %v7908_v40, %v7993_v28  ;;  %v7028_v20 = vld [vmem:[%s9550_s1 + $0x400] sm:$0xff]   ;;  %v7033_v40 = vld [vmem:[%s9551_s0 + $0xcc] ss:$76 sps:$4 sm:$0xff]  }
 0x175   :  { %v5747_v0 = vpop.f32.mrb[64].mxu1  ;;  %v5811_v13 = vpop.f32.mrb[64].mxu0 }
 0x176   :  { %v5748_v2 = vpop.f32.mrb[65].mxu1  ;;  %v5812_v55 = vpop.f32.mrb[65].mxu0 }
 0x177   :  { %v5749_v57 = vadd.f32 %v5748_v2, %v5747_v0  ;;  %v5813_v9 = vadd.f32 %v5812_v55, %v5811_v13  ;;  %v5750_v12 = vpop.f32.mrb[66].mxu1  ;;  %v5814_v15 = vpop.f32.mrb[66].mxu0  ;;  %v7031_v0 = vld [vmem:[%s9551_s0 + $0x584] ss:$76 sps:$4 sm:$0xff]   ;;  %v3253_v13 = vadd.f32 %v7924_v49, %v7993_v28 }
 0x178   :  { %v5751_v32 = vpop.f32.mrb[67].mxu1  ;;  %v5815_v34 = vpop.f32.mrb[67].mxu0 }
 0x179   :  { %v8376_v46 = vadd.f32 %v5749_v57, %v3242_v38  ;;  %v8379_v24 = vadd.f32 %v5813_v9, %v8129_v37  ;;  %v5752_v35 = vadd.f32 %v5751_v32, %v5750_v12  ;;  %v5816_v42 = vadd.f32 %v5815_v34, %v5814_v15  ;;  %v7023_v37 = vld [vmem:[%s9551_s0 + $0x30] ss:$76 sps:$4 sm:$0xff]   ;;  %v7044_v12 = vld [vmem:[%s9550_s1 + $0x408] sm:$0xff]   ;;  %v7235_v34 = vld [vmem:[%s9552_s2] ss:$0 sm:$0xff] }
 0x17a   :  { %3908 = vmatmul.mubr.bf16.gmra.mrb[172].mxu0 %v7019_v8  ;;  %4005 = vmatmul.mubr.bf16.gmra.mrb[172].mxu1 %v7020_v10  ;;  %v7043_v8 = vld [vmem:[%s9550_s1 + $0x448] sm:$0xff]  }
 0x17b   :  { %v8381_v33 = vadd.f32 %v5752_v35, %v3245_v43  ;;  %v8384_v47 = vadd.f32 %v5816_v42, %v8131_v39  ;;  %4012 = vmatprep.mubr.bf16.mxu1 %v7021_v48  ;;  %4109 = vmatprep.mubr.bf16.mxu0 %v7025_v29  ;;  %v7036_v32 = vld [vmem:[%s9551_s0 + $0xc8] ss:$76 sps:$4 sm:$0xff]   ;;  %v3258_v35 = vadd.f32 %v7235_v34, %v7940_v60 }
 0x17c   :  { %v7060_v60 = vld [vmem:[%s9550_s1 + $0x410] sm:$0xff]  }
 0x17d   :  { %v5753_v41 = vpop.f32.mrb[68].mxu1  ;;  %v5817_v31 = vpop.f32.mrb[68].mxu0 }
 0x17e   :  { %v5754_v44 = vpop.f32.mrb[69].mxu1  ;;  %v5818_v50 = vpop.f32.mrb[69].mxu0 }
 0x17f   :  { %v5755_v54 = vadd.f32 %v5754_v44, %v5753_v41  ;;  %v5819_v39 = vadd.f32 %v5818_v50, %v5817_v31  ;;  %v5756_v56 = vpop.f32.mrb[70].mxu1  ;;  %v5820_v30 = vpop.f32.mrb[70].mxu0  ;;  %v7037_v50 = vld [vmem:[%s9551_s0 + $0x61c] ss:$76 sps:$4 sm:$0xff]  }
 0x180   :  { %v5757_v2 = vpop.f32.mrb[71].mxu1  ;;  %v5821_v55 = vpop.f32.mrb[71].mxu0 }
 0x181   :  { %v8408_v10 = vadd.f32 %v5755_v54, %v3250_v52  ;;  %v8411_v38 = vadd.f32 %v5819_v39, %v8159_v5  ;;  %v5758_v57 = vadd.f32 %v5757_v2, %v5756_v56  ;;  %v5822_v9 = vadd.f32 %v5821_v55, %v5820_v30  ;;  %v7059_v5 = vld [vmem:[%s9550_s1 + $0x450] sm:$0xff]  }
 0x182   :  { %4013 = vmatmul.mubr.bf16.gmra.mrb[176].mxu1 %v7026_v1  ;;  %4110 = vmatmul.mubr.bf16.vlgmr.msra.gmra.mrb[176].mxu0 %v7023_v37  ;;  %v7039_v37 = vld [vmem:[%s9551_s0 + $0x164] ss:$76 sps:$4 sm:$0xff]   ;;  %v3261_v1 = vadd.f32 %v7235_v34, %v7953_v4 }
 0x183   :  { %v8413_v49 = vadd.f32 %v5758_v57, %v3253_v13  ;;  %v8416_v28 = vadd.f32 %v5822_v9, %v8167_v11  ;;  %6444 = vmatpush3.bf16.msra.mxu0 %v7028_v20  ;;  %4020 = vmatprep.mubr.bf16.mxu1 %v7031_v0  ;;  %v7035_v11 = vld [vmem:[%s9551_s0 + $0x580] ss:$76 sps:$4 sm:$0xff]   ;;  %v7075_v0 = vld [vmem:[%s9550_s1 + $0x458] sm:$0xff]  }
 0x184   :  { %4117 = vmatprep.mubr.bf16.mxu0 %v7033_v40  ;;  %6445 = vmatprep.subr.bf16.mxu0 %v7043_v8  ;;  %v7091_v40 = vld [vmem:[%s9550_s1 + $0x460] sm:$0xff]  }
 0x185   :  { %v5759_v15 = vpop.f32.mrb[72].mxu1  ;;  %v5823_v48 = vpop.f32.mrb[72].mxu0  ;;  %v7042_v9 = vld [vmem:[%s9551_s0 + $0x160] ss:$76 sps:$4 sm:$0xff]  }
 0x186   :  { %v5760_v29 = vpop.f32.mrb[73].mxu1  ;;  %v5824_v43 = vpop.f32.mrb[73].mxu0 }
 0x187   :  { %v5761_v42 = vadd.f32 %v5760_v29, %v5759_v15  ;;  %v5825_v41 = vadd.f32 %v5824_v43, %v5823_v48  ;;  %v5762_v31 = vpop.f32.mrb[74].mxu1  ;;  %v5826_v44 = vpop.f32.mrb[74].mxu0  ;;  %6446 = vmatpush3.bf16.msra.mxu0 %v7044_v12  ;;  %v3266_v12 = vadd.f32 %v7235_v34, %v7972_v16  ;;  %v7047_v43 = vld [vmem:[%s9551_s0 + $0x6b4] ss:$76 sps:$4 sm:$0xff]  }
 0x188   :  { %v5763_v52 = vpop.f32.mrb[75].mxu1  ;;  %v5827_v54 = vpop.f32.mrb[75].mxu0  ;;  %6447 = vmatprep.subr.bf16.mxu0 %v7059_v5  ;;  %v7092_v16 = vld [vmem:[%s9550_s1 + $0x420] sm:$0xff]  }
 0x189   :  { %v8444_v39 = vadd.f32 %v5761_v42, %v3258_v35  ;;  %v8447_v56 = vadd.f32 %v5825_v41, %v8195_v58  ;;  %v5764_v30 = vadd.f32 %v5763_v52, %v5762_v31  ;;  %v5828_v20 = vadd.f32 %v5827_v54, %v5826_v44  ;;  %v7076_v58 = vld [vmem:[%s9550_s1 + $0x418] sm:$0xff]   ;;  %v7121_v54 = vld [vmem:[%s9550_s1 + $0x470] sm:$0xff]  }
 0x18a   :  { %4021 = vmatmul.mubr.bf16.gmra.mrb[180].mxu1 %v7035_v11  ;;  %4118 = vmatmul.mubr.bf16.gmra.mrb[180].mxu0 %v7036_v32  ;;  %v7049_v11 = vld [vmem:[%s9551_s0 + $0x1fc] ss:$76 sps:$4 sm:$0xff]   ;;  %v3269_v32 = vadd.f32 %v7235_v34, %v7988_v27 }
 0x18b   :  { %v8452_v4 = vadd.f32 %v5764_v30, %v3261_v1  ;;  %v8455_v13 = vadd.f32 %v5828_v20, %v8203_v51  ;;  %4028 = vmatprep.mubr.bf16.mxu1 %v7037_v50  ;;  %4125 = vmatprep.mubr.bf16.mxu0 %v7039_v37  ;;  %v7041_v51 = vld [vmem:[%s9551_s0 + $0x618] ss:$76 sps:$4 sm:$0xff]   ;;  %v7106_v37 = vld [vmem:[%s9550_s1 + $0x468] sm:$0xff]  }
 0x18c   :  { %6448 = vmatpush3.bf16.msra.mxu0 %v7060_v60  ;;  %v7052_v20 = vld [vmem:[%s9551_s0 + $0x1f8] ss:$76 sps:$4 sm:$0xff]  }
 0x18d   :  { %v5765_v2 = vpop.f32.mrb[76].mxu1  ;;  %v5829_v55 = vpop.f32.mrb[76].mxu0  ;;  %6449 = vmatprep.subr.bf16.mxu0 %v7075_v0 }
 0x18e   :  { %v5766_v8 = vpop.f32.mrb[77].mxu1  ;;  %v5830_v57 = vpop.f32.mrb[77].mxu0 }
 0x18f   :  { %v5767_v5 = vadd.f32 %v5766_v8, %v5765_v2  ;;  %v5831_v15 = vadd.f32 %v5830_v57, %v5829_v55  ;;  %v5768_v48 = vpop.f32.mrb[78].mxu1  ;;  %v5832_v29 = vpop.f32.mrb[78].mxu0  ;;  %v7055_v8 = vld [vmem:[%s9551_s0 + $0x294] ss:$76 sps:$4 sm:$0xff]  }
 0x190   :  { %v5769_v35 = vpop.f32.mrb[79].mxu1  ;;  %v5833_v42 = vpop.f32.mrb[79].mxu0  ;;  %6450 = vmatpush3.bf16.msra.mxu0 %v7076_v58 }
 0x191   :  { %v8480_v41 = vadd.f32 %v5767_v5, %v3266_v12  ;;  %v8483_v31 = vadd.f32 %v5831_v15, %v8228_v17  ;;  %v5770_v44 = vadd.f32 %v5769_v35, %v5768_v48  ;;  %v5834_v50 = vadd.f32 %v5833_v42, %v5832_v29  ;;  %6451 = vmatprep.subr.bf16.mxu0 %v7091_v40  ;;  %v7107_v17 = vld [vmem:[%s9550_s1 + $0x428] sm:$0xff]   ;;  %v7136_v29 = vld [vmem:[%s9550_s1 + $0x478] sm:$0xff]  }
 0x192   :  { %4029 = vmatmul.mubr.bf16.gmra.mrb[184].mxu1 %v7041_v51  ;;  %4126 = vmatmul.mubr.bf16.gmra.mrb[184].mxu0 %v7042_v9  ;;  %v7053_v40 = vld [vmem:[%s9551_s0 + $0x74c] ss:$76 sps:$4 sm:$0xff]   ;;  %v7122_v9 = vld [vmem:[%s9550_s1 + $0x430] sm:$0xff]  }
 0x193   :  { %v8488_v27 = vadd.f32 %v5770_v44, %v3269_v32  ;;  %v8491_v34 = vadd.f32 %v5834_v50, %v8233_v23  ;;  %4036 = vmatprep.mubr.bf16.mxu1 %v7047_v43  ;;  %4133 = vmatprep.mubr.bf16.mxu0 %v7049_v11  ;;  %v7051_v23 = vld [vmem:[%s9551_s0 + $0x6b0] ss:$76 sps:$4 sm:$0xff]  }
 0x194   :  { %6452 = vmatpush3.bf16.msra.mxu0 %v7092_v16 }
 0x195   :  { %v5835_v1 = vpop.f32.mrb[80].mxu0  ;;  %v5899_v52 = vpop.f32.mrb[80].mxu1  ;;  %6453 = vmatprep.subr.bf16.mxu0 %v7106_v37 }
 0x196   :  { %v5836_v60 = vpop.f32.mrb[81].mxu0  ;;  %v5900_v30 = vpop.f32.mrb[81].mxu1 }
 0x197   :  { %v5837_v0 = vadd.f32 %v5836_v60, %v5835_v1  ;;  %v5901_v58 = vadd.f32 %v5900_v30, %v5899_v52  ;;  %v5838_v2 = vpop.f32.mrb[82].mxu0  ;;  %v5902_v55 = vpop.f32.mrb[82].mxu1  ;;  %v7065_v1 = vld [vmem:[%s9551_s0 + $0x32c] ss:$76 sps:$4 sm:$0xff]  }
 0x198   :  { %v5839_v57 = vpop.f32.mrb[83].mxu0  ;;  %v5903_v51 = vpop.f32.mrb[83].mxu1  ;;  %6454 = vmatpush3.bf16.msra.mxu0 %v7107_v17  ;;  %v7063_v17 = vld [vmem:[%s9551_s0 + $0x7e4] ss:$76 sps:$4 sm:$0xff]  }
 0x199   :  { %v8515_v12 = vadd.f32 %v5837_v0, %v8260_v61  ;;  %v8518_v5 = vadd.f32 %v5901_v58, %v8263_v62  ;;  %v5840_v15 = vadd.f32 %v5839_v57, %v5838_v2  ;;  %v5904_v48 = vadd.f32 %v5903_v51, %v5902_v55  ;;  %6455 = vmatprep.subr.bf16.mxu0 %v7121_v54  ;;  %v7137_v61 = vld [vmem:[%s9550_s1 + $0x438] sm:$0xff]  }
 0x19a   :  { %4037 = vmatmul.mubr.bf16.gmra.mrb[188].mxu1 %v7051_v23  ;;  %4134 = vmatmul.mubr.bf16.gmra.mrb[188].mxu0 %v7052_v20 }
 0x19b   :  { %v8524_v43 = vadd.f32 %v5840_v15, %v8268_v36  ;;  %v8527_v11 = vadd.f32 %v5904_v48, %v8271_v14  ;;  %4044 = vmatprep.mubr.bf16.mxu1 %v7053_v40  ;;  %4141 = vmatprep.mubr.bf16.mxu0 %v7055_v8  ;;  %v7057_v36 = vld [vmem:[%s9551_s0 + $0x748] ss:$76 sps:$4 sm:$0xff]   ;;  %v7058_v14 = vld [vmem:[%s9551_s0 + $0x290] ss:$76 sps:$4 sm:$0xff]  }
 0x19c   :  { %6456 = vmatpush3.bf16.msra.mxu0 %v7122_v9  ;;  %v7068_v8 = vld [vmem:[%s9551_s0 + $0x328] ss:$76 sps:$4 sm:$0xff]   ;;  %v7071_v15 = vld [vmem:[%s9551_s0 + $0x3c4] ss:$76 sps:$4 sm:$0xff]  }
 0x19d   :  { %v5841_v62 = vpop.f32.mrb[84].mxu0  ;;  %v5905_v32 = vpop.f32.mrb[84].mxu1  ;;  %6457 = vmatprep.subr.bf16.mxu0 %v7136_v29 }
 0x19e   :  { %v5842_v35 = vpop.f32.mrb[85].mxu0  ;;  %v5906_v42 = vpop.f32.mrb[85].mxu1 }
 0x19f   :  { %v5843_v16 = vadd.f32 %v5842_v35, %v5841_v62  ;;  %v5907_v44 = vadd.f32 %v5906_v42, %v5905_v32  ;;  %v5844_v50 = vpop.f32.mrb[86].mxu0  ;;  %v5908_v37 = vpop.f32.mrb[86].mxu1 }
 0x1a0   :  { %v5845_v52 = vpop.f32.mrb[87].mxu0  ;;  %v5909_v54 = vpop.f32.mrb[87].mxu1  ;;  %6458 = vmatpush3.bf16.msra.mxu0 %v7137_v61 }
 0x1a1   :  { %v8545_v60 = vadd.f32 %v5843_v16, %v8297_v53  ;;  %v8548_v30 = vadd.f32 %v5907_v44, %v8300_v3  ;;  %v5846_v23 = vadd.f32 %v5845_v52, %v5844_v50  ;;  %v5910_v20 = vadd.f32 %v5909_v54, %v5908_v37  ;;  %v7067_v3 = vld [vmem:[%s9551_s0 + $0x7e0] ss:$76 sps:$4 sm:$0xff]   ;;  %v7081_v52 = vld [vmem:[%s9551_s0 + $0x45c] ss:$76 sps:$4 sm:$0xff]  }
 0x1a2   :  { %4045 = vmatmul.mubr.bf16.gmra.mrb[192].mxu1 %v7057_v36  ;;  %4142 = vmatmul.mubr.bf16.gmra.mrb[192].mxu0 %v7058_v14  ;;  %v7074_v50 = vld [vmem:[%s9551_s0 + $0x3c0] ss:$76 sps:$4 sm:$0xff]  }
 0x1a3   :  { %v8551_v0 = vadd.f32 %v5846_v23, %v8303_v45  ;;  %v8554_v58 = vadd.f32 %v5910_v20, %v8306_v22  ;;  %4052 = vmatprep.mubr.bf16.mxu1 %v7063_v17  ;;  %4149 = vmatprep.mubr.bf16.mxu0 %v7065_v1  ;;  %v7069_v22 = vld [vmem:[%s9551_s0 + $0x87c] ss:$76 sps:$4 sm:$0xff]  }
 0x1a5   :  { %v5847_v2 = vpop.f32.mrb[88].mxu0  ;;  %v5911_v55 = vpop.f32.mrb[88].mxu1 }
 0x1a6   :  { %v5848_v40 = vpop.f32.mrb[89].mxu0  ;;  %v5912_v53 = vpop.f32.mrb[89].mxu1 }
 0x1a7   :  { %v5849_v57 = vadd.f32 %v5848_v40, %v5847_v2  ;;  %v5913_v45 = vadd.f32 %v5912_v53, %v5911_v55  ;;  %v5850_v51 = vpop.f32.mrb[90].mxu0  ;;  %v5914_v9 = vpop.f32.mrb[90].mxu1 }
 0x1a8   :  { %v5851_v48 = vpop.f32.mrb[91].mxu0  ;;  %v5915_v29 = vpop.f32.mrb[91].mxu1 }
 0x1a9   :  { %v8569_v61 = vadd.f32 %v5849_v57, %v8324_v59  ;;  %v8572_v62 = vadd.f32 %v5913_v45, %v8327_v21  ;;  %v5852_v32 = vadd.f32 %v5851_v48, %v5850_v51  ;;  %v5916_v35 = vadd.f32 %v5915_v29, %v5914_v9  ;;  %v7073_v21 = vld [vmem:[%s9551_s0 + $0x878] ss:$76 sps:$4 sm:$0xff]   ;;  %v7089_v48 = vld [vmem:[%s9551_s0 + $0x3c] ss:$76 sps:$4 sm:$0xff]  }
 0x1aa   :  { %4053 = vmatmul.mubr.bf16.gmra.mrb[196].mxu1 %v7067_v3  ;;  %4150 = vmatmul.mubr.bf16.gmra.mrb[196].mxu0 %v7068_v8  ;;  %v7084_v51 = vld [vmem:[%s9551_s0 + $0x458] ss:$76 sps:$4 sm:$0xff]  }
 0x1ab   :  { %v8575_v42 = vadd.f32 %v5852_v32, %v8329_v7  ;;  %v8578_v36 = vadd.f32 %v5916_v35, %v8332_v25  ;;  %4060 = vmatprep.mubr.bf16.mxu1 %v7069_v22  ;;  %4157 = vmatprep.mubr.bf16.mxu0 %v7071_v15  ;;  %v7079_v25 = vld [vmem:[%s9551_s0 + $0x914] ss:$76 sps:$4 sm:$0xff]  }
 0x1ad   :  { %v5853_v14 = vpop.f32.mrb[92].mxu0  ;;  %v5917_v16 = vpop.f32.mrb[92].mxu1 }
 0x1ae   :  { %v5854_v44 = vpop.f32.mrb[93].mxu0  ;;  %v5918_v59 = vpop.f32.mrb[93].mxu1 }
 0x1af   :  { %v5855_v37 = vadd.f32 %v5854_v44, %v5853_v14  ;;  %v5919_v7 = vadd.f32 %v5918_v59, %v5917_v16  ;;  %v5856_v17 = vpop.f32.mrb[94].mxu0  ;;  %v5920_v1 = vpop.f32.mrb[94].mxu1 }
 0x1b0   :  { %v5857_v54 = vpop.f32.mrb[95].mxu0  ;;  %v5921_v23 = vpop.f32.mrb[95].mxu1 }
 0x1b1   :  { %v8593_v20 = vadd.f32 %v5855_v37, %v8350_v18  ;;  %v8596_v2 = vadd.f32 %v5919_v7, %v8353_v63  ;;  %v5858_v55 = vadd.f32 %v5857_v54, %v5856_v17  ;;  %v5922_v40 = vadd.f32 %v5921_v23, %v5920_v1  ;;  %v7083_v63 = vld [vmem:[%s9551_s0 + $0x910] ss:$76 sps:$4 sm:$0xff]  }
 0x1b2   :  { %4061 = vmatmul.mubr.bf16.gmra.mrb[200].mxu1 %v7073_v21  ;;  %4158 = vmatmul.mubr.bf16.gmra.mrb[200].mxu0 %v7074_v50  ;;  %v7090_v17 = vld [vmem:[%s9551_s0 + $0x4f0] ss:$76 sps:$4 sm:$0xff]  }
 0x1b3   :  { %v8599_v53 = vadd.f32 %v5858_v55, %v8355_v6  ;;  %v8602_v3 = vadd.f32 %v5922_v40, %v8358_v19  ;;  %4068 = vmatprep.mubr.bf16.mxu1 %v7079_v25  ;;  %4165 = vmatprep.mubr.bf16.mxu0 %v7081_v52  ;;  %v7085_v19 = vld [vmem:[%s9551_s0 + $0x4f4] ss:$76 sps:$4 sm:$0xff]   ;;  %v7114_v40 = vld [vmem:[%s9550_s1 + $0x488] sm:$0xff]  }
 0x1b4   :  { %v7096_v55 = vld [vmem:[%s9551_s0 + $0xd4] ss:$76 sps:$4 sm:$0xff]  }
 0x1b5   :  { %v5859_v8 = vpop.f32.mrb[96].mxu0  ;;  %v5923_v57 = vpop.f32.mrb[96].mxu1 }
 0x1b6   :  { %v5860_v45 = vpop.f32.mrb[97].mxu0  ;;  %v5924_v18 = vpop.f32.mrb[97].mxu1 }
 0x1b7   :  { %v5861_v9 = vadd.f32 %v5860_v45, %v5859_v8  ;;  %v5925_v6 = vadd.f32 %v5924_v18, %v5923_v57  ;;  %v5862_v22 = vpop.f32.mrb[98].mxu0  ;;  %v5926_v15 = vpop.f32.mrb[98].mxu1 }
 0x1b8   :  { %v5863_v29 = vpop.f32.mrb[99].mxu0  ;;  %v5927_v32 = vpop.f32.mrb[99].mxu1 }
 0x1b9   :  { %v8617_v35 = vadd.f32 %v5861_v9, %v8376_v46  ;;  %v8620_v14 = vadd.f32 %v5925_v6, %v8379_v24  ;;  %v5864_v16 = vadd.f32 %v5863_v29, %v5862_v22  ;;  %v5928_v44 = vadd.f32 %v5927_v32, %v5926_v15  ;;  %v7087_v24 = vld [vmem:[%s9551_s0 + $0x38] ss:$76 sps:$4 sm:$0xff]  }
 0x1ba   :  { %4069 = vmatmul.mubr.bf16.gmra.mrb[204].mxu1 %v7083_v63  ;;  %4166 = vmatmul.mubr.bf16.gmra.mrb[204].mxu0 %v7084_v51  ;;  %v7100_v29 = vld [vmem:[%s9551_s0 + $0x624] ss:$76 sps:$4 sm:$0xff]   ;;  %v7102_v32 = vld [vmem:[%s9551_s0 + $0x16c] ss:$76 sps:$4 sm:$0xff]  }
 0x1bb   :  { %v8623_v59 = vadd.f32 %v5864_v16, %v8381_v33  ;;  %v8626_v21 = vadd.f32 %v5928_v44, %v8384_v47  ;;  %4173 = vmatprep.mubr.bf16.mxu0 %v7085_v19  ;;  %4270 = vmatprep.mubr.bf16.mxu1 %v7089_v48  ;;  %v7094_v47 = vld [vmem:[%s9551_s0 + $0x58c] ss:$76 sps:$4 sm:$0xff]  }
 0x1bd   :  { %v5865_v50 = vpop.f32.mrb[100].mxu0  ;;  %v5929_v37 = vpop.f32.mrb[100].mxu1 }
 0x1be   :  { %v5866_v7 = vpop.f32.mrb[101].mxu0  ;;  %v5930_v46 = vpop.f32.mrb[101].mxu1 }
 0x1bf   :  { %v5867_v1 = vadd.f32 %v5866_v7, %v5865_v50  ;;  %v5931_v33 = vadd.f32 %v5930_v46, %v5929_v37  ;;  %v5868_v25 = vpop.f32.mrb[102].mxu0  ;;  %v5932_v52 = vpop.f32.mrb[102].mxu1 }
 0x1c0   :  { %v5869_v54 = vpop.f32.mrb[103].mxu0  ;;  %v5933_v23 = vpop.f32.mrb[103].mxu1 }
 0x1c1   :  { %v8644_v8 = vadd.f32 %v5867_v1, %v8408_v10  ;;  %v8647_v57 = vadd.f32 %v5931_v33, %v8411_v38  ;;  %v5870_v45 = vadd.f32 %v5869_v54, %v5868_v25  ;;  %v5934_v18 = vadd.f32 %v5933_v23, %v5932_v52  ;;  %v7133_v10 = vld [vmem:[%s9550_s1 + $0x490] sm:$0xff]   ;;  %v7169_v33 = vld [vmem:[%s9550_s1 + $0x4a0] sm:$0xff]  }
 0x1c2   :  { %4174 = vmatmul.mubr.bf16.gmra.mrb[208].mxu0 %v7090_v17  ;;  %4271 = vmatmul.mubr.bf16.vlgmr.msra.gmra.mrb[208].mxu1 %v7087_v24  ;;  %v7150_v24 = vld [vmem:[%s9550_s1 + $0x498] sm:$0xff]  }
 0x1c3   :  { %v8650_v63 = vadd.f32 %v5870_v45, %v8413_v49  ;;  %v8653_v51 = vadd.f32 %v5934_v18, %v8416_v28  ;;  %6578 = vmatpush3.bf16.msra.mxu1 %v8279_v26  ;;  %4181 = vmatprep.mubr.bf16.mxu0 %v7094_v47  ;;  %v7098_v49 = vld [vmem:[%s9551_s0 + $0x588] ss:$76 sps:$4 sm:$0xff]   ;;  %v7099_v28 = vld [vmem:[%s9551_s0 + $0xd0] ss:$76 sps:$4 sm:$0xff]  }
 0x1c4   :  { %4278 = vmatprep.mubr.bf16.mxu1 %v7096_v55  ;;  %6579 = vmatprep.subr.bf16.mxu1 %v7114_v40  ;;  %v7110_v45 = vld [vmem:[%s9551_s0 + $0x204] ss:$76 sps:$4 sm:$0xff]  }
 0x1c5   :  { %v5871_v38 = vpop.f32.mrb[104].mxu0  ;;  %v5935_v9 = vpop.f32.mrb[104].mxu1 }
 0x1c6   :  { %v5872_v6 = vpop.f32.mrb[105].mxu0  ;;  %v5936_v22 = vpop.f32.mrb[105].mxu1 }
 0x1c7   :  { %v5873_v26 = vadd.f32 %v5872_v6, %v5871_v38  ;;  %v5937_v15 = vadd.f32 %v5936_v22, %v5935_v9  ;;  %v5874_v19 = vpop.f32.mrb[106].mxu0  ;;  %v5938_v48 = vpop.f32.mrb[106].mxu1  ;;  %6580 = vmatpush3.bf16.msra.mxu1 %v7114_v40  ;;  %v7108_v40 = vld [vmem:[%s9551_s0 + $0x6bc] ss:$76 sps:$4 sm:$0xff]  }
 0x1c8   :  { %v5875_v16 = vpop.f32.mrb[107].mxu0  ;;  %v5939_v44 = vpop.f32.mrb[107].mxu1  ;;  %6581 = vmatprep.subr.bf16.mxu1 %v7133_v10 }
 0x1c9   :  { %v8672_v50 = vadd.f32 %v5873_v26, %v8444_v39  ;;  %v8675_v37 = vadd.f32 %v5937_v15, %v8447_v56  ;;  %v5876_v7 = vadd.f32 %v5875_v16, %v5874_v19  ;;  %v5940_v46 = vadd.f32 %v5939_v44, %v5938_v48  ;;  %v7112_v48 = vld [vmem:[%s9551_s0 + $0x6b8] ss:$76 sps:$4 sm:$0xff]   ;;  %v7115_v44 = vld [vmem:[%s9551_s0 + $0x754] ss:$76 sps:$4 sm:$0xff]  }
 0x1ca   :  { %4182 = vmatmul.mubr.bf16.gmra.mrb[212].mxu0 %v7098_v49  ;;  %4279 = vmatmul.mubr.bf16.gmra.mrb[212].mxu1 %v7099_v28  ;;  %v7188_v49 = vld [vmem:[%s9550_s1 + $0x4a8] sm:$0xff]  }
 0x1cb   :  { %v8681_v17 = vadd.f32 %v5876_v7, %v8452_v4  ;;  %v8684_v1 = vadd.f32 %v5940_v46, %v8455_v13  ;;  %4189 = vmatprep.mubr.bf16.mxu0 %v7100_v29  ;;  %4286 = vmatprep.mubr.bf16.mxu1 %v7102_v32  ;;  %v7104_v4 = vld [vmem:[%s9551_s0 + $0x620] ss:$76 sps:$4 sm:$0xff]   ;;  %v7105_v13 = vld [vmem:[%s9551_s0 + $0x168] ss:$76 sps:$4 sm:$0xff]  }
 0x1cc   :  { %6582 = vmatpush3.bf16.msra.mxu1 %v7133_v10  ;;  %v7117_v7 = vld [vmem:[%s9551_s0 + $0x29c] ss:$76 sps:$4 sm:$0xff]  }
 0x1cd   :  { %v5877_v39 = vpop.f32.mrb[108].mxu0  ;;  %v5941_v56 = vpop.f32.mrb[108].mxu1  ;;  %6583 = vmatprep.subr.bf16.mxu1 %v7150_v24 }
 0x1ce   :  { %v5878_v25 = vpop.f32.mrb[109].mxu0  ;;  %v5942_v52 = vpop.f32.mrb[109].mxu1 }
 0x1cf   :  { %v5879_v47 = vadd.f32 %v5878_v25, %v5877_v39  ;;  %v5943_v54 = vadd.f32 %v5942_v52, %v5941_v56  ;;  %v5880_v23 = vpop.f32.mrb[110].mxu0  ;;  %v5944_v55 = vpop.f32.mrb[110].mxu1 }
 0x1d0   :  { %v5881_v18 = vpop.f32.mrb[111].mxu0  ;;  %v5945_v10 = vpop.f32.mrb[111].mxu1  ;;  %6584 = vmatpush3.bf16.msra.mxu1 %v7150_v24 }
 0x1d1   :  { %v8702_v38 = vadd.f32 %v5879_v47, %v8480_v41  ;;  %v8705_v9 = vadd.f32 %v5943_v54, %v8483_v31  ;;  %v5882_v6 = vadd.f32 %v5881_v18, %v5880_v23  ;;  %v5946_v22 = vadd.f32 %v5945_v10, %v5944_v55  ;;  %6585 = vmatprep.subr.bf16.mxu1 %v7169_v33  ;;  %v7120_v23 = vld [vmem:[%s9551_s0 + $0x298] ss:$76 sps:$4 sm:$0xff]   ;;  %v7125_v18 = vld [vmem:[%s9551_s0 + $0x334] ss:$76 sps:$4 sm:$0xff]  }
 0x1d2   :  { %4190 = vmatmul.mubr.bf16.gmra.mrb[216].mxu0 %v7104_v4  ;;  %4287 = vmatmul.mubr.bf16.gmra.mrb[216].mxu1 %v7105_v13 }
 0x1d3   :  { %v8711_v28 = vadd.f32 %v5882_v6, %v8488_v27  ;;  %v8714_v26 = vadd.f32 %v5946_v22, %v8491_v34  ;;  %4197 = vmatprep.mubr.bf16.mxu0 %v7108_v40  ;;  %4294 = vmatprep.mubr.bf16.mxu1 %v7110_v45  ;;  %v7113_v27 = vld [vmem:[%s9551_s0 + $0x200] ss:$76 sps:$4 sm:$0xff]  }
 0x1d4   :  { %6586 = vmatpush3.bf16.msra.mxu1 %v7169_v33 }
 0x1d5   :  { %v5947_v41 = vpop.f32.mrb[112].mxu1  ;;  %v6011_v31 = vpop.f32.mrb[112].mxu0  ;;  %6587 = vmatprep.subr.bf16.mxu1 %v7188_v49 }
 0x1d6   :  { %v5948_v15 = vpop.f32.mrb[113].mxu1  ;;  %v6012_v19 = vpop.f32.mrb[113].mxu0 }
 0x1d7   :  { %v5949_v29 = vadd.f32 %v5948_v15, %v5947_v41  ;;  %v6013_v32 = vadd.f32 %v6012_v19, %v6011_v31  ;;  %v5950_v34 = vpop.f32.mrb[114].mxu1  ;;  %v6014_v16 = vpop.f32.mrb[114].mxu0 }
 0x1d8   :  { %v5951_v46 = vpop.f32.mrb[115].mxu1  ;;  %v6015_v24 = vpop.f32.mrb[115].mxu0  ;;  %6588 = vmatpush3.bf16.msra.mxu1 %v7188_v49 }
 0x1d9   :  { %v8729_v39 = vadd.f32 %v5949_v29, %v8515_v12  ;;  %v8732_v56 = vadd.f32 %v6013_v32, %v8518_v5  ;;  %v5952_v33 = vadd.f32 %v5951_v46, %v5950_v34  ;;  %v6016_v25 = vadd.f32 %v6015_v24, %v6014_v16  ;;  %v7119_v5 = vld [vmem:[%s9551_s0 + $0x750] ss:$76 sps:$4 sm:$0xff]  }
 0x1da   :  { %4198 = vmatmul.mubr.bf16.gmra.mrb[220].mxu0 %v7112_v48  ;;  %4295 = vmatmul.mubr.bf16.gmra.mrb[220].mxu1 %v7113_v27  ;;  %v7128_v32 = vld [vmem:[%s9551_s0 + $0x330] ss:$76 sps:$4 sm:$0xff]  }
 0x1db   :  { %v8735_v52 = vadd.f32 %v5952_v33, %v8524_v43  ;;  %v8738_v4 = vadd.f32 %v6016_v25, %v8527_v11  ;;  %4205 = vmatprep.mubr.bf16.mxu0 %v7115_v44  ;;  %4302 = vmatprep.mubr.bf16.mxu1 %v7117_v7  ;;  %v7123_v11 = vld [vmem:[%s9551_s0 + $0x7ec] ss:$76 sps:$4 sm:$0xff]  }
 0x1dc   :  { %v7131_v7 = vld [vmem:[%s9551_s0 + $0x3cc] ss:$76 sps:$4 sm:$0xff]  }
 0x1dd   :  { %v5953_v13 = vpop.f32.mrb[116].mxu1  ;;  %v6017_v47 = vpop.f32.mrb[116].mxu0 }
 0x1de   :  { %v5954_v54 = vpop.f32.mrb[117].mxu1  ;;  %v6018_v12 = vpop.f32.mrb[117].mxu0 }
 0x1df   :  { %v5955_v55 = vadd.f32 %v5954_v54, %v5953_v13  ;;  %v6019_v43 = vadd.f32 %v6018_v12, %v6017_v47  ;;  %v5956_v40 = vpop.f32.mrb[118].mxu1  ;;  %v6020_v45 = vpop.f32.mrb[118].mxu0 }
 0x1e0   :  { %v5957_v10 = vpop.f32.mrb[119].mxu1  ;;  %v6021_v6 = vpop.f32.mrb[119].mxu0 }
 0x1e1   :  { %v8753_v22 = vadd.f32 %v5955_v55, %v8545_v60  ;;  %v8756_v49 = vadd.f32 %v6019_v43, %v8548_v30  ;;  %v5958_v41 = vadd.f32 %v5957_v10, %v5956_v40  ;;  %v6022_v31 = vadd.f32 %v6021_v6, %v6020_v45  ;;  %v7127_v30 = vld [vmem:[%s9551_s0 + $0x7e8] ss:$76 sps:$4 sm:$0xff]  }
 0x1e2   :  { %4206 = vmatmul.mubr.bf16.gmra.mrb[224].mxu0 %v7119_v5  ;;  %4303 = vmatmul.mubr.bf16.gmra.mrb[224].mxu1 %v7120_v23  ;;  %v7135_v43 = vld [vmem:[%s9551_s0 + $0x3c8] ss:$76 sps:$4 sm:$0xff]  }
 0x1e3   :  { %v8759_v15 = vadd.f32 %v5958_v41, %v8551_v0  ;;  %v8762_v19 = vadd.f32 %v6022_v31, %v8554_v58  ;;  %4213 = vmatprep.mubr.bf16.mxu0 %v7123_v11  ;;  %4310 = vmatprep.mubr.bf16.mxu1 %v7125_v18  ;;  %v7129_v58 = vld [vmem:[%s9551_s0 + $0x884] ss:$76 sps:$4 sm:$0xff]  }
 0x1e4   :  { %v7140_v18 = vld [vmem:[%s9551_s0 + $0x464] ss:$76 sps:$4 sm:$0xff]  }
 0x1e5   :  { %v5959_v48 = vpop.f32.mrb[120].mxu1  ;;  %v6023_v27 = vpop.f32.mrb[120].mxu0 }
 0x1e6   :  { %v5960_v29 = vpop.f32.mrb[121].mxu1  ;;  %v6024_v60 = vpop.f32.mrb[121].mxu0 }
 0x1e7   :  { %v5961_v34 = vadd.f32 %v5960_v29, %v5959_v48  ;;  %v6025_v0 = vadd.f32 %v6024_v60, %v6023_v27  ;;  %v5962_v16 = vpop.f32.mrb[122].mxu1  ;;  %v6026_v44 = vpop.f32.mrb[122].mxu0 }
 0x1e8   :  { %v5963_v46 = vpop.f32.mrb[123].mxu1  ;;  %v6027_v24 = vpop.f32.mrb[123].mxu0 }
 0x1e9   :  { %v8777_v33 = vadd.f32 %v5961_v34, %v8569_v61  ;;  %v8780_v25 = vadd.f32 %v6025_v0, %v8572_v62  ;;  %v5964_v13 = vadd.f32 %v5963_v46, %v5962_v16  ;;  %v6028_v47 = vadd.f32 %v6027_v24, %v6026_v44  ;;  %v7134_v62 = vld [vmem:[%s9551_s0 + $0x880] ss:$76 sps:$4 sm:$0xff]  }
 0x1ea   :  { %4214 = vmatmul.mubr.bf16.gmra.mrb[228].mxu0 %v7127_v30  ;;  %4311 = vmatmul.mubr.bf16.gmra.mrb[228].mxu1 %v7128_v32  ;;  %v7143_v0 = vld [vmem:[%s9551_s0 + $0x460] ss:$76 sps:$4 sm:$0xff]  }
 0x1eb   :  { %v8783_v54 = vadd.f32 %v5964_v13, %v8575_v42  ;;  %v8786_v12 = vadd.f32 %v6028_v47, %v8578_v36  ;;  %4221 = vmatprep.mubr.bf16.mxu0 %v7129_v58  ;;  %4318 = vmatprep.mubr.bf16.mxu1 %v7131_v7  ;;  %v7138_v36 = vld [vmem:[%s9551_s0 + $0x91c] ss:$76 sps:$4 sm:$0xff]   ;;  %v7148_v7 = vld [vmem:[%s9551_s0 + $0x44] ss:$76 sps:$4 sm:$0xff]  }
 0x1ed   :  { %v5965_v5 = vpop.f32.mrb[124].mxu1  ;;  %v6029_v23 = vpop.f32.mrb[124].mxu0 }
 0x1ee   :  { %v5966_v55 = vpop.f32.mrb[125].mxu1  ;;  %v6030_v61 = vpop.f32.mrb[125].mxu0 }
 0x1ef   :  { %v5967_v40 = vadd.f32 %v5966_v55, %v5965_v5  ;;  %v6031_v42 = vadd.f32 %v6030_v61, %v6029_v23  ;;  %v5968_v45 = vpop.f32.mrb[126].mxu1  ;;  %v6032_v11 = vpop.f32.mrb[126].mxu0 }
 0x1f0   :  { %v5969_v10 = vpop.f32.mrb[127].mxu1  ;;  %v6033_v6 = vpop.f32.mrb[127].mxu0 }
 0x1f1   :  { %v8801_v41 = vadd.f32 %v5967_v40, %v8593_v20  ;;  %v8804_v31 = vadd.f32 %v6031_v42, %v8596_v2  ;;  %v5970_v48 = vadd.f32 %v5969_v10, %v5968_v45  ;;  %v6034_v27 = vadd.f32 %v6033_v6, %v6032_v11  ;;  %v7142_v2 = vld [vmem:[%s9551_s0 + $0x918] ss:$76 sps:$4 sm:$0xff]  }
 0x1f2   :  { %4222 = vmatmul.mubr.bf16.gmra.mrb[232].mxu0 %v7134_v62  ;;  %4319 = vmatmul.mubr.bf16.gmra.mrb[232].mxu1 %v7135_v43  ;;  %v7149_v42 = vld [vmem:[%s9551_s0 + $0x4f8] ss:$76 sps:$4 sm:$0xff]  }
 0x1f3   :  { %v8807_v29 = vadd.f32 %v5970_v48, %v8599_v53  ;;  %v8810_v60 = vadd.f32 %v6034_v27, %v8602_v3  ;;  %4229 = vmatprep.mubr.bf16.mxu0 %v7138_v36  ;;  %4326 = vmatprep.mubr.bf16.mxu1 %v7140_v18  ;;  %v7144_v3 = vld [vmem:[%s9551_s0 + $0x4fc] ss:$76 sps:$4 sm:$0xff]  }
 0x1f4   :  { %v7153_v18 = vld [vmem:[%s9551_s0 + $0xdc] ss:$76 sps:$4 sm:$0xff]  }
 0x1f5   :  { %v5971_v30 = vpop.f32.mrb[128].mxu1  ;;  %v6035_v32 = vpop.f32.mrb[128].mxu0 }
 0x1f6   :  { %v5972_v34 = vpop.f32.mrb[129].mxu1  ;;  %v6036_v20 = vpop.f32.mrb[129].mxu0 }
 0x1f7   :  { %v5973_v16 = vadd.f32 %v5972_v34, %v5971_v30  ;;  %v6037_v53 = vadd.f32 %v6036_v20, %v6035_v32  ;;  %v5974_v44 = vpop.f32.mrb[130].mxu1  ;;  %v6038_v58 = vpop.f32.mrb[130].mxu0 }
 0x1f8   :  { %v5975_v46 = vpop.f32.mrb[131].mxu1  ;;  %v6039_v24 = vpop.f32.mrb[131].mxu0 }
 0x1f9   :  { %v8825_v13 = vadd.f32 %v5973_v16, %v8617_v35  ;;  %v8828_v47 = vadd.f32 %v6037_v53, %v8620_v14  ;;  %v5976_v5 = vadd.f32 %v5975_v46, %v5974_v44  ;;  %v6040_v23 = vadd.f32 %v6039_v24, %v6038_v58  ;;  %v7146_v14 = vld [vmem:[%s9551_s0 + $0x40] ss:$76 sps:$4 sm:$0xff]   ;;  %v7156_v53 = vld [vmem:[%s9551_s0 + $0xd8] ss:$76 sps:$4 sm:$0xff]  }
 0x1fa   :  { %4230 = vmatmul.mubr.bf16.gmra.mrb[236].mxu0 %v7142_v2  ;;  %4327 = vmatmul.mubr.bf16.gmra.mrb[236].mxu1 %v7143_v0 }
 0x1fb   :  { %v8831_v55 = vadd.f32 %v5976_v5, %v8623_v59  ;;  %v8834_v61 = vadd.f32 %v6040_v23, %v8626_v21  ;;  %4334 = vmatprep.mubr.bf16.mxu1 %v7144_v3  ;;  %4431 = vmatprep.mubr.bf16.mxu0 %v7148_v7  ;;  %v7151_v21 = vld [vmem:[%s9551_s0 + $0x594] ss:$76 sps:$4 sm:$0xff]  }
 0x1fc   :  { %v7159_v7 = vld [vmem:[%s9551_s0 + $0x174] ss:$76 sps:$4 sm:$0xff]  }
 0x1fd   :  { %v5977_v62 = vpop.f32.mrb[132].mxu1  ;;  %v6041_v43 = vpop.f32.mrb[132].mxu0 }
 0x1fe   :  { %v5978_v40 = vpop.f32.mrb[133].mxu1  ;;  %v6042_v35 = vpop.f32.mrb[133].mxu0 }
 0x1ff   :  { %v5979_v45 = vadd.f32 %v5978_v40, %v5977_v62  ;;  %v6043_v59 = vadd.f32 %v6042_v35, %v6041_v43  ;;  %v5980_v11 = vpop.f32.mrb[134].mxu1  ;;  %v6044_v36 = vpop.f32.mrb[134].mxu0 }
 0x200   :  { %v5981_v10 = vpop.f32.mrb[135].mxu1  ;;  %v6045_v6 = vpop.f32.mrb[135].mxu0 }
 0x201   :  { %v8849_v48 = vadd.f32 %v5979_v45, %v8644_v8  ;;  %v8852_v27 = vadd.f32 %v6043_v59, %v8647_v57  ;;  %v5982_v30 = vadd.f32 %v5981_v10, %v5980_v11  ;;  %v6046_v32 = vadd.f32 %v6045_v6, %v6044_v36  ;;  %v7155_v57 = vld [vmem:[%s9551_s0 + $0x590] ss:$76 sps:$4 sm:$0xff]  }
 0x202   :  { %4335 = vmatmul.mubr.bf16.gmra.mrb[240].mxu1 %v7149_v42  ;;  %4432 = vmatmul.mubr.bf16.vlgmr.msra.gmra.mrb[240].mxu0 %v7146_v14  ;;  %v7162_v59 = vld [vmem:[%s9551_s0 + $0x170] ss:$76 sps:$4 sm:$0xff]  }
 0x203   :  { %v8855_v34 = vadd.f32 %v5982_v30, %v8650_v63  ;;  %v8858_v20 = vadd.f32 %v6046_v32, %v8653_v51  ;;  %4342 = vmatprep.mubr.bf16.mxu1 %v7151_v21  ;;  %4439 = vmatprep.mubr.bf16.mxu0 %v7153_v18  ;;  %v7157_v51 = vld [vmem:[%s9551_s0 + $0x62c] ss:$76 sps:$4 sm:$0xff]  }
 0x204   :  { %v7165_v18 = vld [vmem:[%s9551_s0 + $0x20c] ss:$76 sps:$4 sm:$0xff]  }
 0x205   :  { %v5983_v2 = vpop.f32.mrb[136].mxu1  ;;  %v6047_v0 = vpop.f32.mrb[136].mxu0 }
 0x206   :  { %v5984_v16 = vpop.f32.mrb[137].mxu1  ;;  %v6048_v8 = vpop.f32.mrb[137].mxu0 }
 0x207   :  { %v5985_v44 = vadd.f32 %v5984_v16, %v5983_v2  ;;  %v6049_v63 = vadd.f32 %v6048_v8, %v6047_v0  ;;  %v5986_v58 = vpop.f32.mrb[138].mxu1  ;;  %v6050_v3 = vpop.f32.mrb[138].mxu0 }
 0x208   :  { %v5987_v46 = vpop.f32.mrb[139].mxu1  ;;  %v6051_v24 = vpop.f32.mrb[139].mxu0 }
 0x209   :  { %v8873_v5 = vadd.f32 %v5985_v44, %v8672_v50  ;;  %v8876_v23 = vadd.f32 %v6049_v63, %v8675_v37  ;;  %v5988_v62 = vadd.f32 %v5987_v46, %v5986_v58  ;;  %v6052_v43 = vadd.f32 %v6051_v24, %v6050_v3  ;;  %v7161_v37 = vld [vmem:[%s9551_s0 + $0x628] ss:$76 sps:$4 sm:$0xff]  }
 0x20a   :  { %4343 = vmatmul.mubr.bf16.gmra.mrb[244].mxu1 %v7155_v57  ;;  %4440 = vmatmul.mubr.bf16.gmra.mrb[244].mxu0 %v7156_v53  ;;  %v7168_v63 = vld [vmem:[%s9551_s0 + $0x208] ss:$76 sps:$4 sm:$0xff]  }
 0x20b   :  { %v8879_v40 = vadd.f32 %v5988_v62, %v8681_v17  ;;  %v8882_v35 = vadd.f32 %v6052_v43, %v8684_v1  ;;  %4350 = vmatprep.mubr.bf16.mxu1 %v7157_v51  ;;  %4447 = vmatprep.mubr.bf16.mxu0 %v7159_v7  ;;  %v7163_v1 = vld [vmem:[%s9551_s0 + $0x6c4] ss:$76 sps:$4 sm:$0xff]  }
 0x20c   :  { %v7175_v7 = vld [vmem:[%s9551_s0 + $0x2a4] ss:$76 sps:$4 sm:$0xff]  }
 0x20d   :  { %v5989_v14 = vpop.f32.mrb[140].mxu1  ;;  %v6053_v42 = vpop.f32.mrb[140].mxu0 }
 0x20e   :  { %v5990_v45 = vpop.f32.mrb[141].mxu1  ;;  %v6054_v50 = vpop.f32.mrb[141].mxu0 }
 0x20f   :  { %v5991_v11 = vadd.f32 %v5990_v45, %v5989_v14  ;;  %v6055_v17 = vadd.f32 %v6054_v50, %v6053_v42  ;;  %v5992_v36 = vpop.f32.mrb[142].mxu1  ;;  %v6056_v21 = vpop.f32.mrb[142].mxu0 }
 0x210   :  { %v5993_v10 = vpop.f32.mrb[143].mxu1  ;;  %v6057_v6 = vpop.f32.mrb[143].mxu0 }
 0x211   :  { %v8897_v30 = vadd.f32 %v5991_v11, %v8702_v38  ;;  %v8900_v32 = vadd.f32 %v6055_v17, %v8705_v9  ;;  %v5994_v2 = vadd.f32 %v5993_v10, %v5992_v36  ;;  %v6058_v0 = vadd.f32 %v6057_v6, %v6056_v21  ;;  %v7167_v9 = vld [vmem:[%s9551_s0 + $0x6c0] ss:$76 sps:$4 sm:$0xff]  }
 0x212   :  { %4351 = vmatmul.mubr.bf16.gmra.mrb[248].mxu1 %v7161_v37  ;;  %4448 = vmatmul.mubr.bf16.gmra.mrb[248].mxu0 %v7162_v59  ;;  %v7173_v17 = vld [vmem:[%s9551_s0 + $0x2a0] ss:$76 sps:$4 sm:$0xff]  }
 0x213   :  { %v8903_v16 = vadd.f32 %v5994_v2, %v8711_v28  ;;  %v8906_v8 = vadd.f32 %v6058_v0, %v8714_v26  ;;  %4358 = vmatprep.mubr.bf16.mxu1 %v7163_v1  ;;  %4455 = vmatprep.mubr.bf16.mxu0 %v7165_v18  ;;  %v7172_v26 = vld [vmem:[%s9551_s0 + $0x75c] ss:$76 sps:$4 sm:$0xff]  }
 0x214   :  { %v7181_v18 = vld [vmem:[%s9551_s0 + $0x33c] ss:$76 sps:$4 sm:$0xff]  }
 0x215   :  { %v6059_v57 = vpop.f32.mrb[144].mxu0  ;;  %v6123_v53 = vpop.f32.mrb[144].mxu1 }
 0x216   :  { %v6060_v44 = vpop.f32.mrb[145].mxu0  ;;  %v6124_v38 = vpop.f32.mrb[145].mxu1 }
 0x217   :  { %v6061_v58 = vadd.f32 %v6060_v44, %v6059_v57  ;;  %v6125_v28 = vadd.f32 %v6124_v38, %v6123_v53  ;;  %v6062_v3 = vpop.f32.mrb[146].mxu0  ;;  %v6126_v51 = vpop.f32.mrb[146].mxu1 }
 0x218   :  { %v6063_v46 = vpop.f32.mrb[147].mxu0  ;;  %v6127_v24 = vpop.f32.mrb[147].mxu1 }
 0x219   :  { %v8921_v62 = vadd.f32 %v6061_v58, %v8729_v39  ;;  %v8924_v43 = vadd.f32 %v6125_v28, %v8732_v56  ;;  %v6064_v14 = vadd.f32 %v6063_v46, %v6062_v3  ;;  %v6128_v42 = vadd.f32 %v6127_v24, %v6126_v51  ;;  %v7170_v56 = vld [vmem:[%s9551_s0 + $0x758] ss:$76 sps:$4 sm:$0xff]  }
 0x21a   :  { %4359 = vmatmul.mubr.bf16.gmra.mrb[252].mxu1 %v7167_v9  ;;  %4456 = vmatmul.mubr.bf16.gmra.mrb[252].mxu0 %v7168_v63  ;;  %v7179_v28 = vld [vmem:[%s9551_s0 + $0x338] ss:$76 sps:$4 sm:$0xff]  }
 0x21b   :  { %v8927_v45 = vadd.f32 %v6064_v14, %v8735_v52  ;;  %v8930_v50 = vadd.f32 %v6128_v42, %v8738_v4  ;;  %4366 = vmatprep.mubr.bf16.mxu1 %v7172_v26  ;;  %4463 = vmatprep.mubr.bf16.mxu0 %v7175_v7  ;;  %v7178_v4 = vld [vmem:[%s9551_s0 + $0x7f4] ss:$76 sps:$4 sm:$0xff]  }
 0x21c   :  { %v7187_v7 = vld [vmem:[%s9551_s0 + $0x3d4] ss:$76 sps:$4 sm:$0xff]  }
 0x21d   :  { %v6065_v37 = vpop.f32.mrb[148].mxu0  ;;  %v6129_v59 = vpop.f32.mrb[148].mxu1 }
 0x21e   :  { %v6066_v11 = vpop.f32.mrb[149].mxu0  ;;  %v6130_v39 = vpop.f32.mrb[149].mxu1 }
 0x21f   :  { %v6067_v36 = vadd.f32 %v6066_v11, %v6065_v37  ;;  %v6131_v52 = vadd.f32 %v6130_v39, %v6129_v59  ;;  %v6068_v21 = vpop.f32.mrb[150].mxu0  ;;  %v6132_v1 = vpop.f32.mrb[150].mxu1 }
 0x220   :  { %v6069_v10 = vpop.f32.mrb[151].mxu0  ;;  %v6133_v6 = vpop.f32.mrb[151].mxu1 }
 0x221   :  { %v8945_v2 = vadd.f32 %v6067_v36, %v8753_v22  ;;  %v8948_v0 = vadd.f32 %v6131_v52, %v8756_v49  ;;  %v6070_v57 = vadd.f32 %v6069_v10, %v6068_v21  ;;  %v6134_v53 = vadd.f32 %v6133_v6, %v6132_v1  ;;  %v7176_v49 = vld [vmem:[%s9551_s0 + $0x7f0] ss:$76 sps:$4 sm:$0xff]  }
 0x222   :  { %4367 = vmatmul.mubr.bf16.gmra.mrb[0].mxu1 %v7170_v56  ;;  %4464 = vmatmul.mubr.bf16.gmra.mrb[0].mxu0 %v7173_v17  ;;  %v7185_v52 = vld [vmem:[%s9551_s0 + $0x3d0] ss:$76 sps:$4 sm:$0xff]  }
 0x223   :  { %v8951_v44 = vadd.f32 %v6070_v57, %v8759_v15  ;;  %v8954_v38 = vadd.f32 %v6134_v53, %v8762_v19  ;;  %4374 = vmatprep.mubr.bf16.mxu1 %v7178_v4  ;;  %4471 = vmatprep.mubr.bf16.mxu0 %v7181_v18  ;;  %v7184_v19 = vld [vmem:[%s9551_s0 + $0x88c] ss:$76 sps:$4 sm:$0xff]  }
 0x224   :  { %v7194_v18 = vld [vmem:[%s9551_s0 + $0x46c] ss:$76 sps:$4 sm:$0xff]  }
 0x225   :  { %v6071_v9 = vpop.f32.mrb[152].mxu0  ;;  %v6135_v63 = vpop.f32.mrb[152].mxu1 }
 0x226   :  { %v6072_v58 = vpop.f32.mrb[153].mxu0  ;;  %v6136_v22 = vpop.f32.mrb[153].mxu1 }
 0x227   :  { %v6073_v3 = vadd.f32 %v6072_v58, %v6071_v9  ;;  %v6137_v15 = vadd.f32 %v6136_v22, %v6135_v63  ;;  %v6074_v51 = vpop.f32.mrb[154].mxu0  ;;  %v6138_v26 = vpop.f32.mrb[154].mxu1 }
 0x228   :  { %v6075_v46 = vpop.f32.mrb[155].mxu0  ;;  %v6139_v24 = vpop.f32.mrb[155].mxu1 }
 0x229   :  { %v8969_v14 = vadd.f32 %v6073_v3, %v8777_v33  ;;  %v8972_v42 = vadd.f32 %v6137_v15, %v8780_v25  ;;  %v6076_v37 = vadd.f32 %v6075_v46, %v6074_v51  ;;  %v6140_v59 = vadd.f32 %v6139_v24, %v6138_v26  ;;  %v7182_v25 = vld [vmem:[%s9551_s0 + $0x888] ss:$76 sps:$4 sm:$0xff]  }
 0x22a   :  { %4375 = vmatmul.mubr.bf16.gmra.mrb[4].mxu1 %v7176_v49  ;;  %4472 = vmatmul.mubr.bf16.gmra.mrb[4].mxu0 %v7179_v28  ;;  %v7192_v15 = vld [vmem:[%s9551_s0 + $0x468] ss:$76 sps:$4 sm:$0xff]  }
 0x22b   :  { %v8975_v11 = vadd.f32 %v6076_v37, %v8783_v54  ;;  %v8978_v39 = vadd.f32 %v6140_v59, %v8786_v12  ;;  %4382 = vmatprep.mubr.bf16.mxu1 %v7184_v19  ;;  %4479 = vmatprep.mubr.bf16.mxu0 %v7187_v7  ;;  %v7191_v12 = vld [vmem:[%s9551_s0 + $0x924] ss:$76 sps:$4 sm:$0xff]   ;;  %v7198_v7 = vld [vmem:[%s9551_s0 + $0x48] ss:$76 sps:$4 sm:$0xff]  }
 0x22d   :  { %v6077_v56 = vpop.f32.mrb[156].mxu0  ;;  %v6141_v17 = vpop.f32.mrb[156].mxu1 }
 0x22e   :  { %v6078_v36 = vpop.f32.mrb[157].mxu0  ;;  %v6142_v33 = vpop.f32.mrb[157].mxu1 }
 0x22f   :  { %v6079_v21 = vadd.f32 %v6078_v36, %v6077_v56  ;;  %v6143_v54 = vadd.f32 %v6142_v33, %v6141_v17  ;;  %v6080_v1 = vpop.f32.mrb[158].mxu0  ;;  %v6144_v4 = vpop.f32.mrb[158].mxu1 }
 0x230   :  { %v6081_v10 = vpop.f32.mrb[159].mxu0  ;;  %v6145_v6 = vpop.f32.mrb[159].mxu1 }
 0x231   :  { %v8993_v57 = vadd.f32 %v6079_v21, %v8801_v41  ;;  %v8996_v53 = vadd.f32 %v6143_v54, %v8804_v31  ;;  %v6082_v9 = vadd.f32 %v6081_v10, %v6080_v1  ;;  %v6146_v63 = vadd.f32 %v6145_v6, %v6144_v4  ;;  %v7189_v31 = vld [vmem:[%s9551_s0 + $0x920] ss:$76 sps:$4 sm:$0xff]  }
 0x232   :  { %4383 = vmatmul.mubr.bf16.gmra.mrb[8].mxu1 %v7182_v25  ;;  %4480 = vmatmul.mubr.bf16.gmra.mrb[8].mxu0 %v7185_v52  ;;  %v7199_v54 = vld [vmem:[%s9551_s0 + $0xe0] ss:$76 sps:$4 sm:$0xff]  }
 0x233   :  { %v8999_v58 = vadd.f32 %v6082_v9, %v8807_v29  ;;  %v9002_v22 = vadd.f32 %v6146_v63, %v8810_v60  ;;  %4390 = vmatprep.mubr.bf16.mxu1 %v7191_v12  ;;  %4487 = vmatprep.mubr.bf16.mxu0 %v7194_v18  ;;  %v7197_v60 = vld [vmem:[%s9551_s0 + $0x504] ss:$76 sps:$4 sm:$0xff]   ;;  %v7202_v12 = vld [vmem:[%s9551_s0 + $0x59c] ss:$76 sps:$4 sm:$0xff]  }
 0x234   :  { %v7203_v18 = vld [vmem:[%s9551_s0 + $0x178] ss:$76 sps:$4 sm:$0xff]  }
 0x235   :  { %v6083_v49 = vpop.f32.mrb[160].mxu0  ;;  %v6147_v28 = vpop.f32.mrb[160].mxu1 }
 0x236   :  { %v6084_v3 = vpop.f32.mrb[161].mxu0  ;;  %v6148_v41 = vpop.f32.mrb[161].mxu1 }
 0x237   :  { %v6085_v51 = vadd.f32 %v6084_v3, %v6083_v49  ;;  %v6149_v29 = vadd.f32 %v6148_v41, %v6147_v28  ;;  %v6086_v26 = vpop.f32.mrb[162].mxu0  ;;  %v6150_v19 = vpop.f32.mrb[162].mxu1 }
 0x238   :  { %v6087_v46 = vpop.f32.mrb[163].mxu0  ;;  %v6151_v24 = vpop.f32.mrb[163].mxu1 }
 0x239   :  { %v9017_v37 = vadd.f32 %v6085_v51, %v8825_v13  ;;  %v9020_v59 = vadd.f32 %v6149_v29, %v8828_v47  ;;  %v6088_v56 = vadd.f32 %v6087_v46, %v6086_v26  ;;  %v6152_v17 = vadd.f32 %v6151_v24, %v6150_v19  ;;  %v7195_v47 = vld [vmem:[%s9551_s0 + $0x500] ss:$76 sps:$4 sm:$0xff]   ;;  %v7204_v29 = vld [vmem:[%s9551_s0 + $0x210] ss:$76 sps:$4 sm:$0xff]  }
 0x23a   :  { %4391 = vmatmul.mubr.bf16.gmra.mrb[12].mxu1 %v7189_v31  ;;  %4488 = vmatmul.mubr.bf16.gmra.mrb[12].mxu0 %v7192_v15 }
 0x23b   :  { %v9023_v36 = vadd.f32 %v6088_v56, %v8831_v55  ;;  %v9026_v33 = vadd.f32 %v6152_v17, %v8834_v61  ;;  %4495 = vmatprep.mubr.bf16.mxu0 %v7197_v60  ;;  %6589 = vmatprep.mubr.msk.bf16.mxu1 %vm3062_vm0, %v7198_v7  ;;  %v7207_v60 = vld [vmem:[%s9551_s0 + $0x634] ss:$76 sps:$4 sm:$0xff]  }
 0x23c   :  { %v7208_v7 = vld [vmem:[%s9551_s0 + $0x2a8] ss:$76 sps:$4 sm:$0xff]  }
 0x23d   :  { %v6089_v25 = vpop.f32.mrb[164].mxu0  ;;  %v6153_v52 = vpop.f32.mrb[164].mxu1 }
 0x23e   :  { %v6090_v13 = vpop.f32.mrb[165].mxu0  ;;  %v6154_v21 = vpop.f32.mrb[165].mxu1 }
 0x23f   :  { %v6091_v55 = vadd.f32 %v6090_v13, %v6089_v25  ;;  %v6155_v1 = vadd.f32 %v6154_v21, %v6153_v52  ;;  %v6092_v4 = vpop.f32.mrb[166].mxu0  ;;  %v6156_v61 = vpop.f32.mrb[166].mxu1 }
 0x240   :  { %v6093_v10 = vpop.f32.mrb[167].mxu0  ;;  %v6157_v6 = vpop.f32.mrb[167].mxu1 }
 0x241   :  { %v9042_v9 = vadd.f32 %v6091_v55, %v8849_v48  ;;  %v9045_v63 = vadd.f32 %v6155_v1, %v8852_v27  ;;  %v6094_v49 = vadd.f32 %v6093_v10, %v6092_v4  ;;  %v6158_v28 = vadd.f32 %v6157_v6, %v6156_v61  ;;  %v7200_v27 = vld [vmem:[%s9551_s0 + $0x598] ss:$76 sps:$4 sm:$0xff]   ;;  %v7209_v1 = vld [vmem:[%s9551_s0 + $0x340] ss:$76 sps:$4 sm:$0xff]  }
 0x242   :  { %4496 = vmatmul.mubr.bf16.gmra.mrb[16].mxu0 %v7195_v47  ;;  %6590 = vmatmul.mubr.msk.bf16.vlgmr.msra.gmra.mrb[16].mxu1 %vm3062_vm0, %v7199_v54 }
 0x243   :  { %v9049_v3 = vadd.f32 %v6094_v49, %v8855_v34  ;;  %v9052_v41 = vadd.f32 %v6158_v28, %v8858_v20  ;;  %4503 = vmatprep.mubr.bf16.mxu0 %v7202_v12  ;;  %6593 = vmatprep.mubr.msk.bf16.mxu1 %vm3062_vm0, %v7203_v18  ;;  %v7212_v12 = vld [vmem:[%s9551_s0 + $0x6cc] ss:$76 sps:$4 sm:$0xff]  }
 0x244   :  { %v7213_v18 = vld [vmem:[%s9551_s0 + $0x3d8] ss:$76 sps:$4 sm:$0xff]  }
 0x245   :  { %v6095_v31 = vpop.f32.mrb[168].mxu0  ;;  %v6159_v48 = vpop.f32.mrb[168].mxu1 }
 0x246   :  { %v6096_v15 = vpop.f32.mrb[169].mxu0  ;;  %v6160_v51 = vpop.f32.mrb[169].mxu1 }
 0x247   :  { %v6097_v34 = vadd.f32 %v6096_v15, %v6095_v31  ;;  %v6161_v26 = vadd.f32 %v6160_v51, %v6159_v48  ;;  %v6098_v19 = vpop.f32.mrb[170].mxu0  ;;  %v6162_v20 = vpop.f32.mrb[170].mxu1 }
 0x248   :  { %v6099_v46 = vpop.f32.mrb[171].mxu0  ;;  %v6163_v24 = vpop.f32.mrb[171].mxu1 }
 0x249   :  { %v9068_v56 = vadd.f32 %v6097_v34, %v8873_v5  ;;  %v9071_v17 = vadd.f32 %v6161_v26, %v8876_v23  ;;  %v6100_v25 = vadd.f32 %v6099_v46, %v6098_v19  ;;  %v6164_v52 = vadd.f32 %v6163_v24, %v6162_v20  ;;  %v7205_v23 = vld [vmem:[%s9551_s0 + $0x630] ss:$76 sps:$4 sm:$0xff]  }
 0x24a   :  { %4504 = vmatmul.mubr.bf16.gmra.mrb[20].mxu0 %v7200_v27  ;;  %6594 = vmatmul.mubr.msk.bf16.gmra.mrb[20].mxu1 %vm3062_vm0, %v7204_v29  ;;  %v7214_v26 = vld [vmem:[%s9551_s0 + $0x470] ss:$76 sps:$4 sm:$0xff]  }
 0x24b   :  { %v9075_v13 = vadd.f32 %v6100_v25, %v8879_v40  ;;  %v9078_v21 = vadd.f32 %v6164_v52, %v8882_v35  ;;  %4511 = vmatprep.mubr.bf16.mxu0 %v7207_v60  ;;  %6597 = vmatprep.mubr.msk.bf16.mxu1 %vm3062_vm0, %v7208_v7  ;;  %v7217_v60 = vld [vmem:[%s9551_s0 + $0x764] ss:$76 sps:$4 sm:$0xff]   ;;  %v7218_v7 = vld [vmem:[%s9551_s0 + $0x508] ss:$76 sps:$4 sm:$0xff]  }
 0x24d   :  { %v6101_v47 = vpop.f32.mrb[172].mxu0  ;;  %v6165_v5 = vpop.f32.mrb[172].mxu1 }
 0x24e   :  { %v6102_v54 = vpop.f32.mrb[173].mxu0  ;;  %v6166_v55 = vpop.f32.mrb[173].mxu1 }
 0x24f   :  { %v6103_v40 = vadd.f32 %v6102_v54, %v6101_v47  ;;  %v6167_v4 = vadd.f32 %v6166_v55, %v6165_v5  ;;  %v6104_v61 = vpop.f32.mrb[174].mxu0  ;;  %v6168_v35 = vpop.f32.mrb[174].mxu1 }
 0x250   :  { %v6105_v10 = vpop.f32.mrb[175].mxu0  ;;  %v6169_v6 = vpop.f32.mrb[175].mxu1 }
 0x251   :  { %v9094_v49 = vadd.f32 %v6103_v40, %v8897_v30  ;;  %v9097_v28 = vadd.f32 %v6167_v4, %v8900_v32  ;;  %v6106_v31 = vadd.f32 %v6105_v10, %v6104_v61  ;;  %v6170_v48 = vadd.f32 %v6169_v6, %v6168_v35  ;;  %v7210_v32 = vld [vmem:[%s9551_s0 + $0x6c8] ss:$76 sps:$4 sm:$0xff]   ;;  %v7219_v4 = vld [vmem:[%s9551_s0 + $0x5a0] ss:$76 sps:$4 sm:$0xff]  }
 0x252   :  { %4512 = vmatmul.mubr.bf16.gmra.mrb[24].mxu0 %v7205_v23  ;;  %6598 = vmatmul.mubr.msk.bf16.gmra.mrb[24].mxu1 %vm3062_vm0, %v7209_v1 }
 0x253   :  { %v9101_v15 = vadd.f32 %v6106_v31, %v8903_v16  ;;  %v9104_v51 = vadd.f32 %v6170_v48, %v8906_v8  ;;  %4519 = vmatprep.mubr.bf16.mxu0 %v7212_v12  ;;  %6601 = vmatprep.mubr.msk.bf16.mxu1 %vm3062_vm0, %v7213_v18  ;;  %v7222_v12 = vld [vmem:[%s9551_s0 + $0x7fc] ss:$76 sps:$4 sm:$0xff]   ;;  %v7223_v18 = vld [vmem:[%s9551_s0 + $0x638] ss:$76 sps:$4 sm:$0xff]  }
 0x255   :  { %v6171_v27 = vpop.f32.mrb[176].mxu1  ;;  %v6235_v30 = vpop.f32.mrb[176].mxu0 }
 0x256   :  { %v6172_v29 = vpop.f32.mrb[177].mxu1  ;;  %v6236_v34 = vpop.f32.mrb[177].mxu0 }
 0x257   :  { %v6173_v16 = vadd.f32 %v6172_v29, %v6171_v27  ;;  %v6237_v19 = vadd.f32 %v6236_v34, %v6235_v30  ;;  %v6174_v20 = vpop.f32.mrb[178].mxu1  ;;  %v6238_v8 = vpop.f32.mrb[178].mxu0 }
 0x258   :  { %v6175_v46 = vpop.f32.mrb[179].mxu1  ;;  %v6239_v24 = vpop.f32.mrb[179].mxu0 }
 0x259   :  { %v9120_v25 = vadd.f32 %v6173_v16, %v8921_v62  ;;  %v9123_v52 = vadd.f32 %v6237_v19, %v8924_v43  ;;  %v6176_v47 = vadd.f32 %v6175_v46, %v6174_v20  ;;  %v6240_v5 = vadd.f32 %v6239_v24, %v6238_v8  ;;  %v7215_v43 = vld [vmem:[%s9551_s0 + $0x760] ss:$76 sps:$4 sm:$0xff]   ;;  %v7224_v19 = vld [vmem:[%s9551_s0 + $0x6d0] ss:$76 sps:$4 sm:$0xff]  }
 0x25a   :  { %4520 = vmatmul.mubr.bf16.gmra.mrb[28].mxu0 %v7210_v32  ;;  %6602 = vmatmul.mubr.msk.bf16.gmra.mrb[28].mxu1 %vm3062_vm0, %v7214_v26 }
 0x25b   :  { %v9127_v54 = vadd.f32 %v6176_v47, %v8927_v45  ;;  %v9130_v55 = vadd.f32 %v6240_v5, %v8930_v50  ;;  %4527 = vmatprep.mubr.bf16.mxu0 %v7217_v60  ;;  %6605 = vmatprep.mubr.msk.bf16.mxu1 %vm3062_vm0, %v7218_v7  ;;  %v7227_v60 = vld [vmem:[%s9551_s0 + $0x894] ss:$76 sps:$4 sm:$0xff]  }
 0x25c   :  { %v7228_v7 = vld [vmem:[%s9551_s0 + $0x768] ss:$76 sps:$4 sm:$0xff]  }
 0x25d   :  { %v6177_v23 = vpop.f32.mrb[180].mxu1  ;;  %v6241_v62 = vpop.f32.mrb[180].mxu0 }
 0x25e   :  { %v6178_v1 = vpop.f32.mrb[181].mxu1  ;;  %v6242_v40 = vpop.f32.mrb[181].mxu0 }
 0x25f   :  { %v6179_v45 = vadd.f32 %v6178_v1, %v6177_v23  ;;  %v6243_v61 = vadd.f32 %v6242_v40, %v6241_v62  ;;  %v6180_v35 = vpop.f32.mrb[182].mxu1  ;;  %v6244_v50 = vpop.f32.mrb[182].mxu0 }
 0x260   :  { %v6181_v10 = vpop.f32.mrb[183].mxu1  ;;  %v6245_v6 = vpop.f32.mrb[183].mxu0 }
 0x261   :  { %v9146_v31 = vadd.f32 %v6179_v45, %v8945_v2  ;;  %v9149_v48 = vadd.f32 %v6243_v61, %v8948_v0  ;;  %v6182_v27 = vadd.f32 %v6181_v10, %v6180_v35  ;;  %v6246_v30 = vadd.f32 %v6245_v6, %v6244_v50  ;;  %v7220_v0 = vld [vmem:[%s9551_s0 + $0x7f8] ss:$76 sps:$4 sm:$0xff]   ;;  %v7229_v61 = vld [vmem:[%s9551_s0 + $0x800] ss:$76 sps:$4 sm:$0xff]  }
 0x262   :  { %4528 = vmatmul.mubr.bf16.gmra.mrb[32].mxu0 %v7215_v43  ;;  %6606 = vmatmul.mubr.msk.bf16.gmra.mrb[32].mxu1 %vm3062_vm0, %v7219_v4 }
 0x263   :  { %v9153_v29 = vadd.f32 %v6182_v27, %v8951_v44  ;;  %v9156_v34 = vadd.f32 %v6246_v30, %v8954_v38  ;;  %4535 = vmatprep.mubr.bf16.mxu0 %v7222_v12  ;;  %6609 = vmatprep.mubr.msk.bf16.mxu1 %vm3062_vm0, %v7223_v18  ;;  %v7232_v12 = vld [vmem:[%s9551_s0 + $0x92c] ss:$76 sps:$4 sm:$0xff]  }
 0x264   :  { %v7233_v18 = vld [vmem:[%s9551_s0 + $0x898] ss:$76 sps:$4 sm:$0xff]  }
 0x265   :  { %v6183_v32 = vpop.f32.mrb[184].mxu1  ;;  %v6247_v2 = vpop.f32.mrb[184].mxu0 }
 0x266   :  { %v6184_v26 = vpop.f32.mrb[185].mxu1  ;;  %v6248_v16 = vpop.f32.mrb[185].mxu0 }
 0x267   :  { %v6185_v44 = vadd.f32 %v6184_v26, %v6183_v32  ;;  %v6249_v20 = vadd.f32 %v6248_v16, %v6247_v2  ;;  %v6186_v8 = vpop.f32.mrb[186].mxu1  ;;  %v6250_v38 = vpop.f32.mrb[186].mxu0 }
 0x268   :  { %v6187_v46 = vpop.f32.mrb[187].mxu1  ;;  %v6251_v24 = vpop.f32.mrb[187].mxu0 }
 0x269   :  { %v9172_v47 = vadd.f32 %v6185_v44, %v8969_v14  ;;  %v9175_v5 = vadd.f32 %v6249_v20, %v8972_v42  ;;  %v6188_v23 = vadd.f32 %v6187_v46, %v6186_v8  ;;  %v6252_v62 = vadd.f32 %v6251_v24, %v6250_v38  ;;  %v7225_v42 = vld [vmem:[%s9551_s0 + $0x890] ss:$76 sps:$4 sm:$0xff]  }
 0x26a   :  { %4536 = vmatmul.mubr.bf16.gmra.mrb[36].mxu0 %v7220_v0  ;;  %6610 = vmatmul.mubr.msk.bf16.gmra.mrb[36].mxu1 %vm3062_vm0, %v7224_v19  ;;  %v7234_v20 = vld [vmem:[%s9551_s0 + $0x930] ss:$76 sps:$4 sm:$0xff]  }
 0x26b   :  { %v9179_v1 = vadd.f32 %v6188_v23, %v8975_v11  ;;  %v9182_v40 = vadd.f32 %v6252_v62, %v8978_v39  ;;  %4543 = vmatprep.mubr.bf16.mxu0 %v7227_v60  ;;  %6613 = vmatprep.mubr.msk.bf16.mxu1 %vm3062_vm0, %v7228_v7 }
 0x26d   :  { %v6189_v43 = vpop.f32.mrb[188].mxu1  ;;  %v6253_v14 = vpop.f32.mrb[188].mxu0 }
 0x26e   :  { %v6190_v4 = vpop.f32.mrb[189].mxu1  ;;  %v6254_v45 = vpop.f32.mrb[189].mxu0 }
 0x26f   :  { %v6191_v11 = vadd.f32 %v6190_v4, %v6189_v43  ;;  %v6255_v35 = vadd.f32 %v6254_v45, %v6253_v14  ;;  %v6192_v50 = vpop.f32.mrb[190].mxu1  ;;  %v6256_v39 = vpop.f32.mrb[190].mxu0 }
 0x270   :  { %v6193_v10 = vpop.f32.mrb[191].mxu1  ;;  %v6257_v6 = vpop.f32.mrb[191].mxu0 }
 0x271   :  { %v9198_v27 = vadd.f32 %v6191_v11, %v8993_v57  ;;  %v9201_v30 = vadd.f32 %v6255_v35, %v8996_v53  ;;  %v6194_v32 = vadd.f32 %v6193_v10, %v6192_v50  ;;  %v6258_v2 = vadd.f32 %v6257_v6, %v6256_v39  ;;  %v7230_v53 = vld [vmem:[%s9551_s0 + $0x928] ss:$76 sps:$4 sm:$0xff]  }
 0x272   :  { %4544 = vmatmul.mubr.bf16.gmra.mrb[40].mxu0 %v7225_v42  ;;  %6614 = vmatmul.mubr.msk.bf16.gmra.mrb[40].mxu1 %vm3062_vm0, %v7229_v61 }
 0x273   :  { %v9205_v26 = vadd.f32 %v6194_v32, %v8999_v58  ;;  %v9208_v16 = vadd.f32 %v6258_v2, %v9002_v22  ;;  %4551 = vmatprep.mubr.bf16.mxu0 %v7232_v12  ;;  %6617 = vmatprep.mubr.msk.bf16.mxu1 %vm3062_vm0, %v7233_v18 }
 0x275   :  { %v6195_v0 = vpop.f32.mrb[192].mxu1  ;;  %v6259_v57 = vpop.f32.mrb[192].mxu0 }
 0x276   :  { %v6196_v19 = vpop.f32.mrb[193].mxu1  ;;  %v6260_v44 = vpop.f32.mrb[193].mxu0 }
 0x277   :  { %v6197_v58 = vadd.f32 %v6196_v19, %v6195_v0  ;;  %v6261_v8 = vadd.f32 %v6260_v44, %v6259_v57  ;;  %v6198_v38 = vpop.f32.mrb[194].mxu1  ;;  %v6262_v22 = vpop.f32.mrb[194].mxu0 }
 0x278   :  { %v6199_v60 = vpop.f32.mrb[195].mxu1  ;;  %v6263_v7 = vpop.f32.mrb[195].mxu0 }
 0x279   :  { %v9218_v46 = vadd.f32 %v6197_v58, %v9017_v37  ;;  %v9221_v24 = vadd.f32 %v6261_v8, %v9020_v59  ;;  %v6200_v23 = vadd.f32 %v6199_v60, %v6198_v38  ;;  %v6264_v62 = vadd.f32 %v6263_v7, %v6262_v22 }
 0x27a   :  { %4552 = vmatmul.mubr.bf16.gmra.mrb[44].mxu0 %v7230_v53  ;;  %6618 = vmatmul.mubr.msk.bf16.gmra.mrb[44].mxu1 %vm3062_vm0, %v7234_v20 }
 0x27b   :  { %v9225_v43 = vadd.f32 %v6200_v23, %v9023_v36  ;;  %v9228_v14 = vadd.f32 %v6264_v62, %v9026_v33 }
 0x27d   :  { %v6201_v4 = vpop.f32.mrb[196].mxu1  ;;  %v6265_v45 = vpop.f32.mrb[196].mxu0 }
 0x27e   :  { %v6202_v42 = vpop.f32.mrb[197].mxu1  ;;  %v6266_v61 = vpop.f32.mrb[197].mxu0 }
 0x27f   :  { %v6203_v37 = vadd.f32 %v6202_v42, %v6201_v4  ;;  %v6267_v11 = vadd.f32 %v6266_v61, %v6265_v45  ;;  %v6204_v35 = vpop.f32.mrb[198].mxu1  ;;  %v6268_v59 = vpop.f32.mrb[198].mxu0 }
 0x280   :  { %v6205_v50 = vpop.f32.mrb[199].mxu1  ;;  %v6269_v39 = vpop.f32.mrb[199].mxu0 }
 0x281   :  { %v9231_v12 = vadd.f32 %v6203_v37, %v9042_v9  ;;  %v9234_v18 = vadd.f32 %v6267_v11, %v9045_v63  ;;  %v6206_v36 = vadd.f32 %v6205_v50, %v6204_v35  ;;  %v6270_v10 = vadd.f32 %v6269_v39, %v6268_v59 }
 0x283   :  { %v9237_v33 = vadd.f32 %v6206_v36, %v9049_v3  ;;  %v9240_v6 = vadd.f32 %v6270_v10, %v9052_v41 }
 0x285   :  { %v6207_v32 = vpop.f32.mrb[200].mxu1  ;;  %v6271_v2 = vpop.f32.mrb[200].mxu0 }
 0x286   :  { %v6208_v0 = vpop.f32.mrb[201].mxu1  ;;  %v6272_v57 = vpop.f32.mrb[201].mxu0 }
 0x287   :  { %v6209_v19 = vadd.f32 %v6208_v0, %v6207_v32  ;;  %v6273_v44 = vadd.f32 %v6272_v57, %v6271_v2  ;;  %v6210_v53 = vpop.f32.mrb[202].mxu1  ;;  %v6274_v9 = vpop.f32.mrb[202].mxu0 }
 0x288   :  { %v6211_v20 = vpop.f32.mrb[203].mxu1  ;;  %v6275_v58 = vpop.f32.mrb[203].mxu0 }
 0x289   :  { %v9243_v63 = vadd.f32 %v6209_v19, %v9068_v56  ;;  %v9246_v8 = vadd.f32 %v6273_v44, %v9071_v17  ;;  %v6212_v3 = vadd.f32 %v6211_v20, %v6210_v53  ;;  %v6276_v38 = vadd.f32 %v6275_v58, %v6274_v9 }
 0x28b   :  { %v9249_v41 = vadd.f32 %v6212_v3, %v9075_v13  ;;  %v9252_v22 = vadd.f32 %v6276_v38, %v9078_v21 }
 0x28d   :  { %v6213_v60 = vpop.f32.mrb[204].mxu1  ;;  %v6277_v7 = vpop.f32.mrb[204].mxu0 }
 0x28e   :  { %v6214_v23 = vpop.f32.mrb[205].mxu1  ;;  %v6278_v62 = vpop.f32.mrb[205].mxu0 }
 0x28f   :  { %v6215_v4 = vadd.f32 %v6214_v23, %v6213_v60  ;;  %v6279_v45 = vadd.f32 %v6278_v62, %v6277_v7  ;;  %v6216_v42 = vpop.f32.mrb[206].mxu1  ;;  %v6280_v56 = vpop.f32.mrb[206].mxu0 }
 0x290   :  { %v6217_v61 = vpop.f32.mrb[207].mxu1  ;;  %v6281_v37 = vpop.f32.mrb[207].mxu0 }
 0x291   :  { %v9255_v17 = vadd.f32 %v6215_v4, %v9094_v49  ;;  %v9258_v11 = vadd.f32 %v6279_v45, %v9097_v28  ;;  %v6218_v13 = vadd.f32 %v6217_v61, %v6216_v42  ;;  %v6282_v35 = vadd.f32 %v6281_v37, %v6280_v56 }
 0x293   :  { %v9261_v21 = vadd.f32 %v6218_v13, %v9101_v15  ;;  %v9264_v59 = vadd.f32 %v6282_v35, %v9104_v51 }
 0x295   :  { %v6283_v50 = vpop.f32.mrb[208].mxu0  ;;  %v6347_v39 = vpop.f32.mrb[208].mxu1 }
 0x296   :  { %v6284_v36 = vpop.f32.mrb[209].mxu0  ;;  %v6348_v10 = vpop.f32.mrb[209].mxu1 }
 0x297   :  { %v6285_v32 = vadd.f32 %v6284_v36, %v6283_v50  ;;  %v6349_v2 = vadd.f32 %v6348_v10, %v6347_v39  ;;  %v6286_v0 = vpop.f32.mrb[210].mxu0  ;;  %v6350_v49 = vpop.f32.mrb[210].mxu1 }
 0x298   :  { %v6287_v57 = vpop.f32.mrb[211].mxu0  ;;  %v6351_v19 = vpop.f32.mrb[211].mxu1 }
 0x299   :  { %v9267_v28 = vadd.f32 %v6285_v32, %v9120_v25  ;;  %v9270_v44 = vadd.f32 %v6349_v2, %v9123_v52  ;;  %v6288_v15 = vadd.f32 %v6287_v57, %v6286_v0  ;;  %v6352_v53 = vadd.f32 %v6351_v19, %v6350_v49 }
 0x29b   :  { %v9273_v51 = vadd.f32 %v6288_v15, %v9127_v54  ;;  %v9276_v9 = vadd.f32 %v6352_v53, %v9130_v55 }
 0x29d   :  { %v6289_v20 = vpop.f32.mrb[212].mxu0  ;;  %v6353_v58 = vpop.f32.mrb[212].mxu1 }
 0x29e   :  { %v6290_v3 = vpop.f32.mrb[213].mxu0  ;;  %v6354_v38 = vpop.f32.mrb[213].mxu1 }
 0x29f   :  { %v6291_v60 = vadd.f32 %v6290_v3, %v6289_v20  ;;  %v6355_v7 = vadd.f32 %v6354_v38, %v6353_v58  ;;  %v6292_v23 = vpop.f32.mrb[214].mxu0  ;;  %v6356_v25 = vpop.f32.mrb[214].mxu1 }
 0x2a0   :  { %v6293_v62 = vpop.f32.mrb[215].mxu0  ;;  %v6357_v4 = vpop.f32.mrb[215].mxu1 }
 0x2a1   :  { %v9279_v52 = vadd.f32 %v6291_v60, %v9146_v31  ;;  %v9282_v45 = vadd.f32 %v6355_v7, %v9149_v48  ;;  %v6294_v54 = vadd.f32 %v6293_v62, %v6292_v23  ;;  %v6358_v42 = vadd.f32 %v6357_v4, %v6356_v25 }
 0x2a3   :  { %v9285_v55 = vadd.f32 %v6294_v54, %v9153_v29  ;;  %v9288_v56 = vadd.f32 %v6358_v42, %v9156_v34 }
 0x2a5   :  { %v6295_v61 = vpop.f32.mrb[216].mxu0  ;;  %v6359_v37 = vpop.f32.mrb[216].mxu1 }
 0x2a6   :  { %v6296_v13 = vpop.f32.mrb[217].mxu0  ;;  %v6360_v35 = vpop.f32.mrb[217].mxu1 }
 0x2a7   :  { %v6297_v50 = vadd.f32 %v6296_v13, %v6295_v61  ;;  %v6361_v39 = vadd.f32 %v6360_v35, %v6359_v37  ;;  %v6298_v36 = vpop.f32.mrb[218].mxu0  ;;  %v6362_v31 = vpop.f32.mrb[218].mxu1 }
 0x2a8   :  { %v6299_v10 = vpop.f32.mrb[219].mxu0  ;;  %v6363_v32 = vpop.f32.mrb[219].mxu1 }
 0x2a9   :  { %v9291_v48 = vadd.f32 %v6297_v50, %v9172_v47  ;;  %v9294_v2 = vadd.f32 %v6361_v39, %v9175_v5  ;;  %v6300_v29 = vadd.f32 %v6299_v10, %v6298_v36  ;;  %v6364_v0 = vadd.f32 %v6363_v32, %v6362_v31 }
 0x2ab   :  { %v9297_v34 = vadd.f32 %v6300_v29, %v9179_v1  ;;  %v9300_v49 = vadd.f32 %v6364_v0, %v9182_v40 }
 0x2ad   :  { %v6301_v57 = vpop.f32.mrb[220].mxu0  ;;  %v6365_v19 = vpop.f32.mrb[220].mxu1 }
 0x2ae   :  { %v6302_v15 = vpop.f32.mrb[221].mxu0  ;;  %v6366_v53 = vpop.f32.mrb[221].mxu1 }
 0x2af   :  { %v6303_v20 = vadd.f32 %v6302_v15, %v6301_v57  ;;  %v6367_v58 = vadd.f32 %v6366_v53, %v6365_v19  ;;  %v6304_v3 = vpop.f32.mrb[222].mxu0  ;;  %v6368_v47 = vpop.f32.mrb[222].mxu1 }
 0x2b0   :  { %v6305_v38 = vpop.f32.mrb[223].mxu0  ;;  %v6369_v60 = vpop.f32.mrb[223].mxu1 }
 0x2b1   :  { %v9303_v5 = vadd.f32 %v6303_v20, %v9198_v27  ;;  %v9306_v7 = vadd.f32 %v6367_v58, %v9201_v30  ;;  %v6306_v1 = vadd.f32 %v6305_v38, %v6304_v3  ;;  %v6370_v23 = vadd.f32 %v6369_v60, %v6368_v47 }
 0x2b3   :  { %v9309_v40 = vadd.f32 %v6306_v1, %v9205_v26  ;;  %v9312_v25 = vadd.f32 %v6370_v23, %v9208_v16 }
 0x2b5   :  { %v6307_v62 = vpop.f32.mrb[224].mxu0  ;;  %v6371_v4 = vpop.f32.mrb[224].mxu1 }
 0x2b6   :  { %v6308_v54 = vpop.f32.mrb[225].mxu0  ;;  %v6372_v42 = vpop.f32.mrb[225].mxu1 }
 0x2b7   :  { %v6309_v61 = vadd.f32 %v6308_v54, %v6307_v62  ;;  %v6373_v37 = vadd.f32 %v6372_v42, %v6371_v4  ;;  %v6310_v13 = vpop.f32.mrb[226].mxu0  ;;  %v6374_v27 = vpop.f32.mrb[226].mxu1 }
 0x2b8   :  { %v6311_v35 = vpop.f32.mrb[227].mxu0  ;;  %v6375_v50 = vpop.f32.mrb[227].mxu1 }
 0x2b9   :  { %v9315_v30 = vadd.f32 %v6309_v61, %v9218_v46  ;;  %v9318_v39 = vadd.f32 %v6373_v37, %v9221_v24  ;;  %v6312_v26 = vadd.f32 %v6311_v35, %v6310_v13  ;;  %v6376_v36 = vadd.f32 %v6375_v50, %v6374_v27 }
 0x2bb   :  { %v9321_v16 = vadd.f32 %v6312_v26, %v9225_v43  ;;  %v9324_v31 = vadd.f32 %v6376_v36, %v9228_v14 }
 0x2bd   :  { %v6313_v10 = vpop.f32.mrb[228].mxu0  ;;  %v6377_v32 = vpop.f32.mrb[228].mxu1 }
 0x2be   :  { %v6314_v29 = vpop.f32.mrb[229].mxu0  ;;  %v6378_v0 = vpop.f32.mrb[229].mxu1 }
 0x2bf   :  { %v6315_v57 = vadd.f32 %v6314_v29, %v6313_v10  ;;  %v6379_v19 = vadd.f32 %v6378_v0, %v6377_v32  ;;  %v6316_v15 = vpop.f32.mrb[230].mxu0  ;;  %v6380_v46 = vpop.f32.mrb[230].mxu1 }
 0x2c0   :  { %v6317_v53 = vpop.f32.mrb[231].mxu0  ;;  %v6381_v20 = vpop.f32.mrb[231].mxu1 }
 0x2c1   :  { %v9327_v24 = vadd.f32 %v6315_v57, %v9231_v12  ;;  %v9330_v58 = vadd.f32 %v6379_v19, %v9234_v18  ;;  %v6318_v43 = vadd.f32 %v6317_v53, %v6316_v15  ;;  %v6382_v3 = vadd.f32 %v6381_v20, %v6380_v46 }
 0x2c3   :  { %v9333_v14 = vadd.f32 %v6318_v43, %v9237_v33  ;;  %v9336_v47 = vadd.f32 %v6382_v3, %v9240_v6 }
 0x2c5   :  { %v6319_v38 = vpop.f32.mrb[232].mxu0  ;;  %v6383_v60 = vpop.f32.mrb[232].mxu1 }
 0x2c6   :  { %v6320_v1 = vpop.f32.mrb[233].mxu0  ;;  %v6384_v23 = vpop.f32.mrb[233].mxu1 }
 0x2c7   :  { %v6321_v62 = vadd.f32 %v6320_v1, %v6319_v38  ;;  %v6385_v4 = vadd.f32 %v6384_v23, %v6383_v60  ;;  %v6322_v54 = vpop.f32.mrb[234].mxu0  ;;  %v6386_v12 = vpop.f32.mrb[234].mxu1 }
 0x2c8   :  { %v6323_v42 = vpop.f32.mrb[235].mxu0  ;;  %v6387_v61 = vpop.f32.mrb[235].mxu1 }
 0x2c9   :  { %v9339_v18 = vadd.f32 %v6321_v62, %v9243_v63  ;;  %v9342_v37 = vadd.f32 %v6385_v4, %v9246_v8  ;;  %v6324_v33 = vadd.f32 %v6323_v42, %v6322_v54  ;;  %v6388_v13 = vadd.f32 %v6387_v61, %v6386_v12 }
 0x2cb   :  { %v9345_v6 = vadd.f32 %v6324_v33, %v9249_v41  ;;  %v9348_v27 = vadd.f32 %v6388_v13, %v9252_v22 }
 0x2cd   :  { %v6325_v35 = vpop.f32.mrb[236].mxu0  ;;  %v6389_v50 = vpop.f32.mrb[236].mxu1 }
 0x2ce   :  { %v6326_v26 = vpop.f32.mrb[237].mxu0  ;;  %v6390_v36 = vpop.f32.mrb[237].mxu1 }
 0x2cf   :  { %v6327_v10 = vadd.f32 %v6326_v26, %v6325_v35  ;;  %v6391_v32 = vadd.f32 %v6390_v36, %v6389_v50  ;;  %v6328_v29 = vpop.f32.mrb[238].mxu0  ;;  %v6392_v63 = vpop.f32.mrb[238].mxu1 }
 0x2d0   :  { %v6329_v0 = vpop.f32.mrb[239].mxu0  ;;  %v6393_v57 = vpop.f32.mrb[239].mxu1 }
 0x2d1   :  { %v9351_v8 = vadd.f32 %v6327_v10, %v9255_v17  ;;  %v9354_v19 = vadd.f32 %v6391_v32, %v9258_v11  ;;  %v6330_v41 = vadd.f32 %v6329_v0, %v6328_v29  ;;  %v6394_v15 = vadd.f32 %v6393_v57, %v6392_v63 }
 0x2d3   :  { %v9357_v22 = vadd.f32 %v6330_v41, %v9261_v21  ;;  %v9360_v46 = vadd.f32 %v6394_v15, %v9264_v59 }
 0x2d5   :  { %v6395_v53 = vpop.f32.mrb[240].mxu1  ;;  %v6459_v20 = vpop.f32.mrb[240].mxu0 }
 0x2d6   :  { %v6396_v43 = vpop.f32.mrb[241].mxu1  ;;  %v6460_v3 = vpop.f32.mrb[241].mxu0 }
 0x2d7   :  { %v6397_v38 = vadd.f32 %v6396_v43, %v6395_v53  ;;  %v6461_v60 = vadd.f32 %v6460_v3, %v6459_v20  ;;  %v6398_v1 = vpop.f32.mrb[242].mxu1  ;;  %v6462_v17 = vpop.f32.mrb[242].mxu0 }
 0x2d8   :  { %v6399_v23 = vpop.f32.mrb[243].mxu1  ;;  %v6463_v62 = vpop.f32.mrb[243].mxu0 }
 0x2d9   :  { %v9363_v11 = vadd.f32 %v6397_v38, %v9267_v28  ;;  %v6400_v4 = vadd.f32 %v6399_v23, %v6398_v1  ;;  %v6464_v54 = vadd.f32 %v6463_v62, %v6462_v17  ;;  %v9366_v21 = vadd.f32 %v6461_v60, %v9270_v44 }
 0x2db   :  { %v9369_v59 = vadd.f32 %v6400_v4, %v9273_v51  ;;  %v9372_v12 = vadd.f32 %v6464_v54, %v9276_v9 }
 0x2dd   :  { %v6401_v42 = vpop.f32.mrb[244].mxu1  ;;  %v6465_v61 = vpop.f32.mrb[244].mxu0 }
 0x2de   :  { %v6402_v33 = vpop.f32.mrb[245].mxu1  ;;  %v6466_v13 = vpop.f32.mrb[245].mxu0 }
 0x2df   :  { %v6403_v35 = vadd.f32 %v6402_v33, %v6401_v42  ;;  %v6467_v50 = vadd.f32 %v6466_v13, %v6465_v61  ;;  %v6404_v26 = vpop.f32.mrb[246].mxu1  ;;  %v6468_v28 = vpop.f32.mrb[246].mxu0 }
 0x2e0   :  { %v6405_v36 = vpop.f32.mrb[247].mxu1  ;;  %v6469_v10 = vpop.f32.mrb[247].mxu0 }
 0x2e1   :  { %v9375_v32 = vadd.f32 %v6403_v35, %v9279_v52  ;;  %v6406_v44 = vadd.f32 %v6405_v36, %v6404_v26  ;;  %v6470_v29 = vadd.f32 %v6469_v10, %v6468_v28  ;;  %v9378_v51 = vadd.f32 %v6467_v50, %v9282_v45 }
 0x2e3   :  { %v9381_v9 = vadd.f32 %v6406_v44, %v9285_v55  ;;  %v9384_v63 = vadd.f32 %v6470_v29, %v9288_v56 }
 0x2e5   :  { %v6407_v0 = vpop.f32.mrb[248].mxu1  ;;  %v6471_v57 = vpop.f32.mrb[248].mxu0 }
 0x2e6   :  { %v6408_v41 = vpop.f32.mrb[249].mxu1  ;;  %v6472_v15 = vpop.f32.mrb[249].mxu0 }
 0x2e7   :  { %v6409_v53 = vadd.f32 %v6408_v41, %v6407_v0  ;;  %v6473_v20 = vadd.f32 %v6472_v15, %v6471_v57  ;;  %v6410_v43 = vpop.f32.mrb[250].mxu1  ;;  %v6474_v52 = vpop.f32.mrb[250].mxu0 }
 0x2e8   :  { %v6411_v3 = vpop.f32.mrb[251].mxu1  ;;  %v6475_v38 = vpop.f32.mrb[251].mxu0 }
 0x2e9   :  { %v9387_v60 = vadd.f32 %v6409_v53, %v9291_v48  ;;  %v6412_v45 = vadd.f32 %v6411_v3, %v6410_v43  ;;  %v6476_v1 = vadd.f32 %v6475_v38, %v6474_v52  ;;  %v9390_v55 = vadd.f32 %v6473_v20, %v9294_v2 }
 0x2eb   :  { %v9393_v56 = vadd.f32 %v6412_v45, %v9297_v34  ;;  %v9396_v17 = vadd.f32 %v6476_v1, %v9300_v49 }
 0x2ed   :  { %v6413_v23 = vpop.f32.mrb[252].mxu1  ;;  %v6477_v62 = vpop.f32.mrb[252].mxu0 }
 0x2ee   :  { %v6414_v4 = vpop.f32.mrb[253].mxu1  ;;  %v6478_v54 = vpop.f32.mrb[253].mxu0 }
 0x2ef   :  { %v6415_v42 = vadd.f32 %v6414_v4, %v6413_v23  ;;  %v6479_v61 = vadd.f32 %v6478_v54, %v6477_v62  ;;  %v6416_v33 = vpop.f32.mrb[254].mxu1  ;;  %v6480_v48 = vpop.f32.mrb[254].mxu0 }
 0x2f0   :  { %v6417_v13 = vpop.f32.mrb[255].mxu1  ;;  %v6481_v35 = vpop.f32.mrb[255].mxu0 }
 0x2f1   :  { %v9399_v50 = vadd.f32 %v6415_v42, %v9303_v5  ;;  %v6418_v2 = vadd.f32 %v6417_v13, %v6416_v33  ;;  %v6482_v26 = vadd.f32 %v6481_v35, %v6480_v48  ;;  %v9402_v34 = vadd.f32 %v6479_v61, %v9306_v7 }
 0x2f3   :  { %v9405_v49 = vadd.f32 %v6418_v2, %v9309_v40  ;;  %v9408_v28 = vadd.f32 %v6482_v26, %v9312_v25 }
 0x2f5   :  { %v6419_v36 = vpop.f32.mrb[0].mxu1  ;;  %v6483_v10 = vpop.f32.mrb[0].mxu0 }
 0x2f6   :  { %v6420_v44 = vpop.f32.mrb[1].mxu1  ;;  %v6484_v29 = vpop.f32.mrb[1].mxu0 }
 0x2f7   :  { %v6421_v0 = vadd.f32 %v6420_v44, %v6419_v36  ;;  %v6485_v57 = vadd.f32 %v6484_v29, %v6483_v10  ;;  %v6422_v41 = vpop.f32.mrb[2].mxu1  ;;  %v6486_v5 = vpop.f32.mrb[2].mxu0 }
 0x2f8   :  { %v6423_v15 = vpop.f32.mrb[3].mxu1  ;;  %v6487_v53 = vpop.f32.mrb[3].mxu0 }
 0x2f9   :  { %v9411_v20 = vadd.f32 %v6421_v0, %v9315_v30  ;;  %v6424_v7 = vadd.f32 %v6423_v15, %v6422_v41  ;;  %v6488_v43 = vadd.f32 %v6487_v53, %v6486_v5  ;;  %v9414_v40 = vadd.f32 %v6485_v57, %v9318_v39 }
 0x2fb   :  { %v9417_v25 = vadd.f32 %v6424_v7, %v9321_v16  ;;  %v9420_v52 = vadd.f32 %v6488_v43, %v9324_v31 }
 0x2fd   :  { %v6425_v3 = vpop.f32.mrb[4].mxu1  ;;  %v6489_v38 = vpop.f32.mrb[4].mxu0 }
 0x2fe   :  { %v6426_v45 = vpop.f32.mrb[5].mxu1  ;;  %v6490_v1 = vpop.f32.mrb[5].mxu0 }
 0x2ff   :  { %v6427_v23 = vadd.f32 %v6426_v45, %v6425_v3  ;;  %v6491_v62 = vadd.f32 %v6490_v1, %v6489_v38  ;;  %v6428_v4 = vpop.f32.mrb[6].mxu1  ;;  %v6492_v30 = vpop.f32.mrb[6].mxu0 }
 0x300   :  { %v6429_v54 = vpop.f32.mrb[7].mxu1  ;;  %v6493_v42 = vpop.f32.mrb[7].mxu0 }
 0x301   :  { %v9423_v61 = vadd.f32 %v6427_v23, %v9327_v24  ;;  %v6430_v39 = vadd.f32 %v6429_v54, %v6428_v4  ;;  %v6494_v33 = vadd.f32 %v6493_v42, %v6492_v30  ;;  %v9426_v16 = vadd.f32 %v6491_v62, %v9330_v58 }
 0x303   :  { %v9429_v31 = vadd.f32 %v6430_v39, %v9333_v14  ;;  %v9432_v48 = vadd.f32 %v6494_v33, %v9336_v47 }
 0x305   :  { %v6431_v13 = vpop.f32.mrb[8].mxu1  ;;  %v6495_v35 = vpop.f32.mrb[8].mxu0 }
 0x306   :  { %v6432_v2 = vpop.f32.mrb[9].mxu1  ;;  %v6496_v26 = vpop.f32.mrb[9].mxu0 }
 0x307   :  { %v6433_v36 = vadd.f32 %v6432_v2, %v6431_v13  ;;  %v6497_v10 = vadd.f32 %v6496_v26, %v6495_v35  ;;  %v6434_v44 = vpop.f32.mrb[10].mxu1  ;;  %v6498_v24 = vpop.f32.mrb[10].mxu0 }
 0x308   :  { %v6435_v29 = vpop.f32.mrb[11].mxu1  ;;  %v6499_v0 = vpop.f32.mrb[11].mxu0 }
 0x309   :  { %v9435_v57 = vadd.f32 %v6433_v36, %v9339_v18  ;;  %v6436_v58 = vadd.f32 %v6435_v29, %v6434_v44  ;;  %v6500_v41 = vadd.f32 %v6499_v0, %v6498_v24  ;;  %v9438_v14 = vadd.f32 %v6497_v10, %v9342_v37 }
 0x30b   :  { %v9441_v47 = vadd.f32 %v6436_v58, %v9345_v6  ;;  %v9444_v5 = vadd.f32 %v6500_v41, %v9348_v27 }
 0x30d   :  { %v6437_v15 = vpop.f32.mrb[12].mxu1  ;;  %v6501_v53 = vpop.f32.mrb[12].mxu0 }
 0x30e   :  { %v6438_v7 = vpop.f32.mrb[13].mxu1  ;;  %v6502_v43 = vpop.f32.mrb[13].mxu0 }
 0x30f   :  { %v6439_v3 = vadd.f32 %v6438_v7, %v6437_v15  ;;  %v6503_v38 = vadd.f32 %v6502_v43, %v6501_v53  ;;  %v6440_v45 = vpop.f32.mrb[14].mxu1  ;;  %v6504_v18 = vpop.f32.mrb[14].mxu0 }
 0x310   :  { %v6441_v1 = vpop.f32.mrb[15].mxu1  ;;  %v6505_v23 = vpop.f32.mrb[15].mxu0 }
 0x311   :  { %v9447_v62 = vadd.f32 %v6439_v3, %v9351_v8  ;;  %v6442_v37 = vadd.f32 %v6441_v1, %v6440_v45  ;;  %v6506_v4 = vadd.f32 %v6505_v23, %v6504_v18  ;;  %v9450_v6 = vadd.f32 %v6503_v38, %v9354_v19 }
 0x313   :  { %v9453_v27 = vadd.f32 %v6442_v37, %v9357_v22  ;;  %v9456_v30 = vadd.f32 %v6506_v4, %v9360_v46 }
 0x315   :  { %v6507_v54 = vpop.f32.mrb[16].mxu0  ;;  %v6591_v42 = vpop.f32.mrb[16].mxu1 }
 0x316   :  { %v4603_v39 = vadd.f32 %v6591_v42, %v9378_v51  ;;  %v6508_v33 = vpop.f32.mrb[17].mxu0  ;;  %v4594_v13 = vpop.f32.mrb[17].mxu1 }
 0x317   :  { %v6509_v35 = vadd.f32 %v6508_v33, %v6507_v54  ;;  %v4595_v8 = vadd.f32 %v4594_v13, %v9366_v21  ;;  %v6510_v2 = vpop.f32.mrb[18].mxu0  ;;  %v6592_v26 = vpop.f32.mrb[18].mxu1 }
 0x318   :  { %v4606_v19 = vadd.f32 %v6592_v26, %v9384_v63  ;;  %v6511_v36 = vpop.f32.mrb[19].mxu0  ;;  %v4597_v10 = vpop.f32.mrb[19].mxu1  ;;  %v4723_v24 = vmax.f32 %v4603_v39, 0.0 }
 0x319   :  { %v6512_v22 = vadd.f32 %v6511_v36, %v6510_v2  ;;  %v4598_v44 = vadd.f32 %v4597_v10, %v9372_v12  ;;  %v9463_v46 = vadd.f32 %v6509_v35, %v9363_v11  ;;  %v4721_v51 = vmax.f32 %v4595_v8, 0.0 }
 0x31a   :  { %v4724_v29 = vmax.f32 %v4606_v19, 0.0 }
 0x31b   :  { %v4722_v0 = vmax.f32 %v4598_v44, 0.0  ;;  %v9466_v58 = vadd.f32 %v6512_v22, %v9369_v59 }
 0x31c   :  { %v5460_v21 = vpack.c.bf16 %v4724_v29, %v4723_v24 }
 0x31d   :  { %v5455_v41 = vpack.c.bf16 %v4722_v0, %v4721_v51  ;;  %v6513_v15 = vpop.f32.mrb[20].mxu0  ;;  %v6595_v53 = vpop.f32.mrb[20].mxu1 }
 0x31e   :  { %5532 = vst [vmem:[%s9553_s3 + $0x8] sm:$0xff] %v5460_v21   ;;  %v4619_v12 = vadd.f32 %v6595_v53, %v9402_v34  ;;  %v6514_v63 = vpop.f32.mrb[21].mxu0  ;;  %v4610_v11 = vpop.f32.mrb[21].mxu1 }
 0x31f   :  { %5456 = vst [vmem:[%s9553_s3] sm:$0xff] %v5455_v41   ;;  %v6515_v7 = vadd.f32 %v6514_v63, %v6513_v15  ;;  %v4611_v59 = vadd.f32 %v4610_v11, %v9390_v55  ;;  %v6516_v43 = vpop.f32.mrb[22].mxu0  ;;  %v6596_v3 = vpop.f32.mrb[22].mxu1 }
 0x320   :  { %v4622_v38 = vadd.f32 %v6596_v3, %v9408_v28  ;;  %v6517_v45 = vpop.f32.mrb[23].mxu0  ;;  %v4613_v18 = vpop.f32.mrb[23].mxu1  ;;  %v4727_v37 = vmax.f32 %v4619_v12, 0.0 }
 0x321   :  { %v6518_v1 = vadd.f32 %v6517_v45, %v6516_v43  ;;  %v4614_v23 = vadd.f32 %v4613_v18, %v9396_v17  ;;  %v4506_v34 = vadd.f32 %v6515_v7, %v9375_v32  ;;  %v4725_v54 = vmax.f32 %v4611_v59, 0.0 }
 0x322   :  { %v4728_v4 = vmax.f32 %v4622_v38, 0.0 }
 0x323   :  { %v4726_v42 = vmax.f32 %v4614_v23, 0.0  ;;  %v4509_v39 = vadd.f32 %v6518_v1, %v9381_v9 }
 0x324   :  { %v5470_v33 = vpack.c.bf16 %v4728_v4, %v4727_v37 }
 0x325   :  { %v5465_v13 = vpack.c.bf16 %v4726_v42, %v4725_v54  ;;  %v6519_v55 = vpop.f32.mrb[24].mxu0  ;;  %v6599_v35 = vpop.f32.mrb[24].mxu1 }
 0x326   :  { %5534 = vst [vmem:[%s9553_s3 + $0x18] sm:$0xff] %v5470_v33   ;;  %v4635_v28 = vadd.f32 %v6599_v35, %v9426_v16  ;;  %v6520_v8 = vpop.f32.mrb[25].mxu0  ;;  %v4626_v17 = vpop.f32.mrb[25].mxu1 }
 0x327   :  { %5533 = vst [vmem:[%s9553_s3 + $0x10] sm:$0xff] %v5465_v13   ;;  %v6521_v32 = vadd.f32 %v6520_v8, %v6519_v55  ;;  %v4627_v2 = vadd.f32 %v4626_v17, %v9414_v40  ;;  %v6522_v9 = vpop.f32.mrb[26].mxu0  ;;  %v6600_v26 = vpop.f32.mrb[26].mxu1 }
 0x328   :  { %v4638_v19 = vadd.f32 %v6600_v26, %v9432_v48  ;;  %v6523_v36 = vpop.f32.mrb[27].mxu0  ;;  %v4629_v10 = vpop.f32.mrb[27].mxu1  ;;  %v4731_v24 = vmax.f32 %v4635_v28, 0.0 }
 0x329   :  { %v6524_v22 = vadd.f32 %v6523_v36, %v6522_v9  ;;  %v4630_v44 = vadd.f32 %v4629_v10, %v9420_v52  ;;  %v9491_v16 = vadd.f32 %v6521_v32, %v9387_v60  ;;  %v4729_v51 = vmax.f32 %v4627_v2, 0.0 }
 0x32a   :  { %v4732_v29 = vmax.f32 %v4638_v19, 0.0 }
 0x32b   :  { %v4730_v0 = vmax.f32 %v4630_v44, 0.0  ;;  %v9494_v21 = vadd.f32 %v6524_v22, %v9393_v56 }
 0x32c   :  { %v5480_v40 = vpack.c.bf16 %v4732_v29, %v4731_v24 }
 0x32d   :  { %v5475_v41 = vpack.c.bf16 %v4730_v0, %v4729_v51  ;;  %v6525_v15 = vpop.f32.mrb[28].mxu0  ;;  %v6603_v53 = vpop.f32.mrb[28].mxu1 }
 0x32e   :  { %5536 = vst [vmem:[%s9553_s3 + $0x28] sm:$0xff] %v5480_v40   ;;  %v4651_v52 = vadd.f32 %v6603_v53, %v9450_v6  ;;  %v6526_v48 = vpop.f32.mrb[29].mxu0  ;;  %v4642_v60 = vpop.f32.mrb[29].mxu1 }
 0x32f   :  { %5535 = vst [vmem:[%s9553_s3 + $0x20] sm:$0xff] %v5475_v41   ;;  %v6527_v12 = vadd.f32 %v6526_v48, %v6525_v15  ;;  %v4643_v56 = vadd.f32 %v4642_v60, %v9438_v14  ;;  %v6528_v63 = vpop.f32.mrb[30].mxu0  ;;  %v6604_v11 = vpop.f32.mrb[30].mxu1 }
 0x330   :  { %v4654_v7 = vadd.f32 %v6604_v11, %v9456_v30  ;;  %v6529_v59 = vpop.f32.mrb[31].mxu0  ;;  %v4645_v43 = vpop.f32.mrb[31].mxu1  ;;  %v4735_v45 = vmax.f32 %v4651_v52, 0.0 }
 0x331   :  { %v6530_v3 = vadd.f32 %v6529_v59, %v6528_v63  ;;  %v4646_v38 = vadd.f32 %v4645_v43, %v9444_v5  ;;  %v4522_v6 = vadd.f32 %v6527_v12, %v9399_v50  ;;  %v4733_v1 = vmax.f32 %v4643_v56, 0.0 }
 0x332   :  { %v4736_v18 = vmax.f32 %v4654_v7, 0.0 }
 0x333   :  { %v4734_v23 = vmax.f32 %v4646_v38, 0.0  ;;  %v4525_v37 = vadd.f32 %v6530_v3, %v9405_v49 }
 0x334   :  { %v5490_v4 = vpack.c.bf16 %v4736_v18, %v4735_v45 }
 0x335   :  { %v5485_v54 = vpack.c.bf16 %v4734_v23, %v4733_v1  ;;  %v6531_v14 = vpop.f32.mrb[32].mxu0  ;;  %v6607_v42 = vpop.f32.mrb[32].mxu1 }
 0x336   :  { %5538 = vst [vmem:[%s9553_s3 + $0x38] sm:$0xff] %v5490_v4   ;;  %v4667_v30 = vadd.f32 %v6607_v42, %v4506_v34  ;;  %v6532_v33 = vpop.f32.mrb[33].mxu0  ;;  %v4658_v13 = vpop.f32.mrb[33].mxu1 }
 0x337   :  { %5537 = vst [vmem:[%s9553_s3 + $0x30] sm:$0xff] %v5485_v54   ;;  %v6533_v50 = vadd.f32 %v6532_v33, %v6531_v14  ;;  %v4659_v5 = vadd.f32 %v4658_v13, %v9463_v46  ;;  %v6534_v55 = vpop.f32.mrb[34].mxu0  ;;  %v6608_v49 = vpop.f32.mrb[34].mxu1 }
 0x338   :  { %v4670_v35 = vadd.f32 %v6608_v49, %v4509_v39  ;;  %v6535_v28 = vpop.f32.mrb[35].mxu0  ;;  %v4661_v8 = vpop.f32.mrb[35].mxu1  ;;  %v4739_v34 = vmax.f32 %v4667_v30, 0.0 }
 0x339   :  { %v6536_v17 = vadd.f32 %v6535_v28, %v6534_v55  ;;  %v4662_v32 = vadd.f32 %v4661_v8, %v9466_v58  ;;  %v4530_v2 = vadd.f32 %v6533_v50, %v9411_v20  ;;  %v4737_v26 = vmax.f32 %v4659_v5, 0.0 }
 0x33a   :  { %v4740_v9 = vmax.f32 %v4670_v35, 0.0 }
 0x33b   :  { %v4738_v19 = vmax.f32 %v4662_v32, 0.0  ;;  %v4533_v36 = vadd.f32 %v6536_v17, %v9417_v25 }
 0x33c   :  { %v5500_v10 = vpack.c.bf16 %v4740_v9, %v4739_v34 }
 0x33d   :  { %v5495_v22 = vpack.c.bf16 %v4738_v19, %v4737_v26  ;;  %v6537_v44 = vpop.f32.mrb[36].mxu0  ;;  %v6611_v46 = vpop.f32.mrb[36].mxu1 }
 0x33e   :  { %5540 = vst [vmem:[%s9553_s3 + $0x48] sm:$0xff] %v5500_v10   ;;  %v4683_v39 = vadd.f32 %v6611_v46, %v4522_v6  ;;  %v6538_v24 = vpop.f32.mrb[37].mxu0  ;;  %v4674_v29 = vpop.f32.mrb[37].mxu1 }
 0x33f   :  { %5539 = vst [vmem:[%s9553_s3 + $0x40] sm:$0xff] %v5495_v22   ;;  %v6539_v20 = vadd.f32 %v6538_v24, %v6537_v44  ;;  %v4675_v58 = vadd.f32 %v4674_v29, %v9491_v16  ;;  %v6540_v51 = vpop.f32.mrb[38].mxu0  ;;  %v6612_v25 = vpop.f32.mrb[38].mxu1 }
 0x340   :  { %v4686_v0 = vadd.f32 %v6612_v25, %v4525_v37  ;;  %v6541_v40 = vpop.f32.mrb[39].mxu0  ;;  %v4677_v41 = vpop.f32.mrb[39].mxu1  ;;  %v4743_v48 = vmax.f32 %v4683_v39, 0.0 }
 0x341   :  { %v6542_v15 = vadd.f32 %v6541_v40, %v6540_v51  ;;  %v4678_v53 = vadd.f32 %v4677_v41, %v9494_v21  ;;  %v4538_v52 = vadd.f32 %v6539_v20, %v9423_v61  ;;  %v4741_v12 = vmax.f32 %v4675_v58, 0.0 }
 0x342   :  { %v4744_v60 = vmax.f32 %v4686_v0, 0.0 }
 0x343   :  { %v4742_v56 = vmax.f32 %v4678_v53, 0.0  ;;  %v4541_v63 = vadd.f32 %v6542_v15, %v9429_v31 }
 0x344   :  { %v5510_v11 = vpack.c.bf16 %v4744_v60, %v4743_v48 }
 0x345   :  { %v5505_v7 = vpack.c.bf16 %v4742_v56, %v4741_v12  ;;  %v6543_v59 = vpop.f32.mrb[40].mxu0  ;;  %v6615_v16 = vpop.f32.mrb[40].mxu1 }
 0x346   :  { %5542 = vst [vmem:[%s9553_s3 + $0x58] sm:$0xff] %v5510_v11   ;;  %v4699_v43 = vadd.f32 %v6615_v16, %v4538_v52  ;;  %v6544_v3 = vpop.f32.mrb[41].mxu0  ;;  %v4690_v38 = vpop.f32.mrb[41].mxu1 }
 0x347   :  { %5541 = vst [vmem:[%s9553_s3 + $0x50] sm:$0xff] %v5505_v7   ;;  %v6545_v61 = vadd.f32 %v6544_v3, %v6543_v59  ;;  %v4691_v21 = vadd.f32 %v4690_v38, %v4530_v2  ;;  %v6546_v6 = vpop.f32.mrb[42].mxu0  ;;  %v6616_v45 = vpop.f32.mrb[42].mxu1 }
 0x348   :  { %v4702_v31 = vadd.f32 %v6616_v45, %v4541_v63  ;;  %v6547_v18 = vpop.f32.mrb[43].mxu0  ;;  %v4693_v1 = vpop.f32.mrb[43].mxu1  ;;  %v4747_v54 = vmax.f32 %v4699_v43, 0.0 }
 0x349   :  { %v6548_v23 = vadd.f32 %v6547_v18, %v6546_v6  ;;  %v4694_v37 = vadd.f32 %v4693_v1, %v4533_v36  ;;  %v4546_v4 = vadd.f32 %v6545_v61, %v9435_v57  ;;  %v4745_v42 = vmax.f32 %v4691_v21, 0.0 }
 0x34a   :  { %v4748_v14 = vmax.f32 %v4702_v31, 0.0 }
 0x34b   :  { %v4746_v30 = vmax.f32 %v4694_v37, 0.0  ;;  %v4549_v33 = vadd.f32 %v6548_v23, %v9441_v47 }
 0x34c   :  { %v5520_v13 = vpack.c.bf16 %v4748_v14, %v4747_v54 }
 0x34d   :  { %v5515_v50 = vpack.c.bf16 %v4746_v30, %v4745_v42  ;;  %v6549_v5 = vpop.f32.mrb[44].mxu0  ;;  %v6619_v55 = vpop.f32.mrb[44].mxu1 }
 0x34e   :  { %5544 = vst [vmem:[%s9553_s3 + $0x68] sm:$0xff] %v5520_v13   ;;  %v6550_v49 = vpop.f32.mrb[45].mxu0  ;;  %v4706_v35 = vpop.f32.mrb[45].mxu1 }
 0x34f   :  { %5543 = vst [vmem:[%s9553_s3 + $0x60] sm:$0xff] %v5515_v50   ;;  %v6551_v57 = vadd.f32 %v6550_v49, %v6549_v5  ;;  %v4707_v28 = vadd.f32 %v4706_v35, %v4546_v4  ;;  %v6552_v8 = vpop.f32.mrb[46].mxu0  ;;  %v6620_v17 = vpop.f32.mrb[46].mxu1 }
 0x350   :  { %v6553_v32 = vpop.f32.mrb[47].mxu0  ;;  %v4709_v47 = vpop.f32.mrb[47].mxu1 }
 0x351   :  { %v4554_v2 = vadd.f32 %v6551_v57, %v9447_v62  ;;  %v6554_v34 = vadd.f32 %v6553_v32, %v6552_v8  ;;  %v4710_v9 = vadd.f32 %v4709_v47, %v4549_v33  ;;  %v4749_v19 = vmax.f32 %v4707_v28, 0.0 }
 0x353   :  { %v4715_v26 = vadd.f32 %v6619_v55, %v4554_v2  ;;  %v4557_v36 = vadd.f32 %v6554_v34, %v9453_v27  ;;  %v4750_v10 = vmax.f32 %v4710_v9, 0.0 }
 0x355   :  { %v4718_v22 = vadd.f32 %v6620_v17, %v4557_v36  ;;  %v5525_v44 = vpack.c.bf16 %v4750_v10, %v4749_v19  ;;  %v4751_v46 = vmax.f32 %v4715_v26, 0.0 }
 0x357   :  { %v4752_v39 = vmax.f32 %v4718_v22, 0.0  ;;  %5545 = vst [vmem:[%s9553_s3 + $0x70] sm:$0xff] %v5525_v44  }
 0x359   :  { %v5530_v24 = vpack.c.bf16 %v4752_v39, %v4751_v46 }
 0x35b   :  { %5546 = vst [vmem:[%s9553_s3 + $0x78] sm:$0xff] %v5530_v24  }

// kernel: lipnet_forward.14
= control target key start
LH: loop header
LB: loop body
LE: loop exit
PB: predicated region body
PF: predicated region fallthrough
CT: control target
= control target key end

     0   :  { %vm1218_vm0 = vcmask 523264   ;;  %s2944_s1 = inlined_call_operand.vmem [shape: bf16[1728,128], index: 1, kind: input, shape index: {}]   ;;  %s2945_s0 = inlined_call_operand.vmem [shape: bf16[64,1728], index: 0, kind: input, shape index: {}]   ;;  %s2946_s2 = inlined_call_operand.vmem [shape: f32[1,128], index: 2, kind: input, shape index: {}]   ;;  %s2947_s3 = inlined_call_operand.vmem [shape: bf16[64,128], index: 3, kind: output, shape index: {}]  }
   0x1   :  { %v2187_v0 = vld [vmem:[%s2944_s1 + $0x40] sm:$0xff]   ;;  %v2189_v2 = vld [vmem:[%s2944_s1 + $0x48] sm:$0xff]   ;;  %v2191_v4 = vld [vmem:[%s2944_s1 + $0x50] sm:$0xff]  }
   0x2   :  { %v2188_v1 = vld [vmem:[%s2944_s1] sm:$0xff]   ;;  %1946 = vmatprep.subr.bf16.mxu1 %v2187_v0  ;;  %v2190_v3 = vld [vmem:[%s2944_s1 + $0x8] sm:$0xff]   ;;  %v2192_v5 = vld [vmem:[%s2944_s1 + $0x10] sm:$0xff]  }
   0x3   :  { %1947 = vmatpush3.bf16.msra.mxu1 %v2188_v1  ;;  %v2193_v6 = vld [vmem:[%s2944_s1 + $0x58] sm:$0xff]   ;;  %v2197_v8 = vld [vmem:[%s2944_s1 + $0x140] sm:$0xff]   ;;  %v2201_v12 = vld [vmem:[%s2944_s1 + $0x148] sm:$0xff]  }
   0x4   :  { %1948 = vmatprep.subr.bf16.mxu1 %v2189_v2  ;;  %v2194_v7 = vld [vmem:[%s2944_s1 + $0x18] sm:$0xff]   ;;  %v2195_v9 = vld [vmem:[%s2944_s1 + $0x60] sm:$0xff]   ;;  %2026 = vmatprep.subr.bf16.mxu0 %v2197_v8  ;;  %v2198_v13 = vld [vmem:[%s2944_s1 + $0x68] sm:$0xff]  }
   0x5   :  { %v2199_v10 = vld [vmem:[%s2944_s1 + $0x100] sm:$0xff]   ;;  %v2203_v14 = vld [vmem:[%s2944_s1 + $0x108] sm:$0xff]   ;;  %v2205_v16 = vld [vmem:[%s2944_s1 + $0x150] sm:$0xff]  }
   0x6   :  { %v2196_v11 = vld [vmem:[%s2944_s1 + $0x20] sm:$0xff]   ;;  %2027 = vmatpush3.bf16.msra.mxu0 %v2199_v10  ;;  %v2200_v15 = vld [vmem:[%s2944_s1 + $0x28] sm:$0xff]   ;;  %v2202_v17 = vld [vmem:[%s2944_s1 + $0x70] sm:$0xff]  }
   0x7   :  { %1949 = vmatpush3.bf16.msra.mxu1 %v2190_v3  ;;  %2028 = vmatprep.subr.bf16.mxu0 %v2201_v12  ;;  %v2207_v18 = vld [vmem:[%s2944_s1 + $0x110] sm:$0xff]   ;;  %v2206_v20 = vld [vmem:[%s2944_s1 + $0x78] sm:$0xff]   ;;  %v2213_v25 = vld [vmem:[%s2944_s1 + $0xc0] sm:$0xff]  }
   0x8   :  { %1950 = vmatprep.subr.bf16.mxu1 %v2191_v4  ;;  %v2204_v19 = vld [vmem:[%s2944_s1 + $0x30] sm:$0xff]   ;;  %v2211_v21 = vld [vmem:[%s2945_s0 + $0x4] ss:$56 sps:$4 sm:$0xff]   ;;  %v2209_v26 = vld [vmem:[%s2945_s0] ss:$56 sps:$4 sm:$0xff]  }
   0x9   :  { %v2212_v22 = vld [vmem:[%s2944_s1 + $0x158] sm:$0xff]   ;;  %1263 = vmatprep.mubr.bf16.mxu1 %v2211_v21  ;;  %v2216_v27 = vld [vmem:[%s2944_s1 + $0x160] sm:$0xff]   ;;  %v2217_v30 = vld [vmem:[%s2944_s1 + $0xc8] sm:$0xff]  }
   0xa   :  { %2029 = vmatpush3.bf16.msra.mxu0 %v2203_v14  ;;  %v2208_v23 = vld [vmem:[%s2944_s1 + $0x38] sm:$0xff]   ;;  %v2215_v28 = vld [vmem:[%s2944_s1 + $0x80] sm:$0xff]   ;;  %v2220_v31 = vld [vmem:[%s2945_s0 + $0x74] ss:$56 sps:$4 sm:$0xff]  }
   0xb   :  { %1951 = vmatpush3.bf16.msra.mxu1 %v2192_v5  ;;  %2030 = vmatprep.subr.bf16.mxu0 %v2205_v16  ;;  %v2214_v24 = vld [vmem:[%s2944_s1 + $0x118] sm:$0xff]   ;;  %v2218_v29 = vld [vmem:[%s2944_s1 + $0x120] sm:$0xff]   ;;  %v2222_v32 = vld [vmem:[%s2944_s1 + $0x168] sm:$0xff]  }
   0xc   :  { %1952 = vmatprep.subr.bf16.mxu1 %v2193_v6  ;;  %v2219_v33 = vld [vmem:[%s2944_s1 + $0x88] sm:$0xff]   ;;  %v2224_v36 = vld [vmem:[%s2944_s1 + $0xd0] sm:$0xff]   ;;  %v2228_v40 = vld [vmem:[%s2944_s1 + $0xd8] sm:$0xff]  }
   0xd   :  { %v2225_v34 = vld [vmem:[%s2944_s1 + $0x128] sm:$0xff]   ;;  %v2227_v37 = vld [vmem:[%s2944_s1 + $0x170] sm:$0xff]   ;;  %v2231_v41 = vld [vmem:[%s2945_s0 + $0xe4] ss:$56 sps:$4 sm:$0xff]  }
   0xe   :  { %2031 = vmatpush3.bf16.msra.mxu0 %v2207_v18  ;;  %v2223_v35 = vld [vmem:[%s2945_s0 + $0x70] ss:$56 sps:$4 sm:$0xff]   ;;  %v2230_v42 = vld [vmem:[%s2944_s1 + $0x98] sm:$0xff]   ;;  %v2235_v44 = vld [vmem:[%s2944_s1 + $0xe0] sm:$0xff]  }
   0xf   :  { %1953 = vmatpush3.bf16.msra.mxu1 %v2194_v7  ;;  %2032 = vmatprep.subr.bf16.mxu0 %v2212_v22  ;;  %v2226_v38 = vld [vmem:[%s2944_s1 + $0x90] sm:$0xff]   ;;  %v2233_v43 = vld [vmem:[%s2944_s1 + $0x178] sm:$0xff]   ;;  %v2237_v47 = vld [vmem:[%s2944_s1 + $0xa0] sm:$0xff]  }
  0x10   :  { %1954 = vmatprep.subr.bf16.mxu1 %v2195_v9  ;;  %v2229_v39 = vld [vmem:[%s2944_s1 + $0x130] sm:$0xff]   ;;  %v2234_v45 = vld [vmem:[%s2945_s0 + $0xe0] ss:$56 sps:$4 sm:$0xff]   ;;  %v2242_v51 = vld [vmem:[%s2944_s1 + $0xe8] sm:$0xff]  }
  0x11   :  { %v2236_v46 = vld [vmem:[%s2944_s1 + $0x138] sm:$0xff]   ;;  %v2238_v48 = vld [vmem:[%s2945_s0 + $0x10] ss:$56 sps:$4 sm:$0xff]   ;;  %v2240_v49 = vld [vmem:[%s2945_s0 + $0x14] ss:$56 sps:$4 sm:$0xff]  }
  0x12   :  { %2033 = vmatpush3.bf16.msra.mxu0 %v2214_v24  ;;  %v2241_v50 = vld [vmem:[%s2944_s1 + $0x240] sm:$0xff]   ;;  %1393 = vmatprep.mubr.bf16.mxu0 %v2240_v49  ;;  %v2244_v53 = vld [vmem:[%s2944_s1 + $0xa8] sm:$0xff]   ;;  %v2249_v57 = vld [vmem:[%s2944_s1 + $0xf0] sm:$0xff]  }
  0x13   :  { %1955 = vmatpush3.bf16.msra.mxu1 %v2196_v11  ;;  %2034 = vmatprep.subr.bf16.mxu0 %v2216_v27  ;;  %v2243_v52 = vld [vmem:[%s2944_s1 + $0x200] sm:$0xff]   ;;  %v2245_v54 = vld [vmem:[%s2945_s0 + $0x154] ss:$56 sps:$4 sm:$0xff]   ;;  %v2248_v56 = vld [vmem:[%s2945_s0 + $0x150] ss:$56 sps:$4 sm:$0xff]  }
  0x14   :  { %1956 = vmatprep.subr.bf16.mxu1 %v2198_v13  ;;  %v2247_v55 = vld [vmem:[%s2944_s1 + $0x248] sm:$0xff]   ;;  %v2251_v59 = vld [vmem:[%s2944_s1 + $0xb0] sm:$0xff]   ;;  %v2252_v60 = vld [vmem:[%s2945_s0 + $0x84] ss:$56 sps:$4 sm:$0xff]  }
  0x15   :  { %v2250_v58 = vld [vmem:[%s2944_s1 + $0x208] sm:$0xff]   ;;  %v2254_v61 = vld [vmem:[%s2944_s1 + $0x250] sm:$0xff]   ;;  %v2255_v62 = vld [vmem:[%s2944_s1 + $0xf8] sm:$0xff]  }
  0x16   :  { %2035 = vmatpush3.bf16.msra.mxu0 %v2218_v29  ;;  %v2256_v63 = vld [vmem:[%s2945_s0 + $0x80] ss:$56 sps:$4 sm:$0xff]   ;;  %v2257_v0 = vld [vmem:[%s2944_s1 + $0x210] sm:$0xff]   ;;  %v2261_v3 = vld [vmem:[%s2945_s0 + $0xc] ss:$56 sps:$4 sm:$0xff]  }
  0x17   :  { %1957 = vmatpush3.bf16.msra.mxu1 %v2200_v15  ;;  %2036 = vmatprep.subr.bf16.mxu0 %v2222_v32  ;;  %v2258_v1 = vld [vmem:[%s2944_s1 + $0xb8] sm:$0xff]   ;;  %v2259_v2 = vld [vmem:[%s2945_s0 + $0x8] ss:$56 sps:$4 sm:$0xff]   ;;  %v2266_v8 = vld [vmem:[%s2945_s0 + $0xf4] ss:$56 sps:$4 sm:$0xff]  }
  0x18   :  { %1958 = vmatprep.subr.bf16.mxu1 %v2202_v17  ;;  %v2262_v4 = vld [vmem:[%s2944_s1 + $0x258] sm:$0xff]   ;;  %v2263_v5 = vld [vmem:[%s2944_s1 + $0x1c0] sm:$0xff]   ;;  %v2269_v10 = vld [vmem:[%s2945_s0 + $0xf0] ss:$56 sps:$4 sm:$0xff]  }
  0x19   :  { %v2264_v6 = vld [vmem:[%s2944_s1 + $0x218] sm:$0xff]   ;;  %v2265_v7 = vld [vmem:[%s2944_s1 + $0x180] sm:$0xff]   ;;  %v2270_v11 = vld [vmem:[%s2944_s1 + $0x1c8] sm:$0xff]  }
  0x1a   :  { %2037 = vmatpush3.bf16.msra.mxu0 %v2225_v34  ;;  %v2268_v9 = vld [vmem:[%s2944_s1 + $0x260] sm:$0xff]   ;;  %v2272_v13 = vld [vmem:[%s2944_s1 + $0x188] sm:$0xff]   ;;  %v2273_v14 = vld [vmem:[%s2945_s0 + $0x7c] ss:$56 sps:$4 sm:$0xff]   ;;  %v2379_v34 = vmov 0  }
  0x1b   :  { %1959 = vmatpush3.bf16.msra.mxu1 %v2204_v19  ;;  %2038 = vmatprep.subr.bf16.mxu0 %v2227_v37  ;;  %v2271_v12 = vld [vmem:[%s2944_s1 + $0x220] sm:$0xff]   ;;  %v2275_v15 = vld [vmem:[%s2944_s1 + $0x268] sm:$0xff]   ;;  %v2276_v16 = vld [vmem:[%s2945_s0 + $0x78] ss:$56 sps:$4 sm:$0xff]  }
  0x1c   :  { %1960 = vmatprep.subr.bf16.mxu1 %v2206_v20  ;;  %v2277_v17 = vld [vmem:[%s2944_s1 + $0x1d0] sm:$0xff]   ;;  %v2278_v18 = vld [vmem:[%s2944_s1 + $0x228] sm:$0xff]   ;;  %v2280_v20 = vld [vmem:[%s2945_s0 + $0x164] ss:$56 sps:$4 sm:$0xff]  }
  0x1d   :  { %v2279_v19 = vld [vmem:[%s2944_s1 + $0x190] sm:$0xff]   ;;  %v2283_v22 = vld [vmem:[%s2945_s0 + $0x160] ss:$56 sps:$4 sm:$0xff]   ;;  %v2299_v37 = vld [vmem:[%s2944_s1 + $0x1a8] sm:$0xff]  }
  0x1e   :  { %2039 = vmatpush3.bf16.msra.mxu0 %v2229_v39  ;;  %v2282_v21 = vld [vmem:[%s2944_s1 + $0x270] sm:$0xff]   ;;  %v2289_v27 = vld [vmem:[%s2944_s1 + $0x278] sm:$0xff]   ;;  %v2291_v29 = vld [vmem:[%s2944_s1 + $0x1e0] sm:$0xff]  }
  0x1f   :  { %1961 = vmatpush3.bf16.msra.mxu1 %v2208_v23  ;;  %2040 = vmatprep.subr.bf16.mxu0 %v2233_v43  ;;  %v2284_v23 = vld [vmem:[%s2944_s1 + $0x1d8] sm:$0xff]   ;;  %v2285_v24 = vld [vmem:[%s2944_s1 + $0x230] sm:$0xff]  }
  0x20   :  { %1986 = vmatprep.subr.bf16.mxu1 %v2213_v25  ;;  %v2286_v25 = vld [vmem:[%s2944_s1 + $0x198] sm:$0xff]  }
  0x21   :  { %v2294_v32 = vld [vmem:[%s2945_s0 + $0x20] ss:$56 sps:$4 sm:$0xff]  }
  0x22   :  { %1264 = vmatmul.mubr.bf16.vlgmr.msra.gmra.mrb[0].mxu1 %v2209_v26  ;;  %2041 = vmatpush3.bf16.msra.mxu0 %v2236_v46  ;;  %v2287_v26 = vld [vmem:[%s2945_s0 + $0xec] ss:$56 sps:$4 sm:$0xff]   ;;  %v2302_v39 = vld [vmem:[%s2945_s0 + $0x158] ss:$56 sps:$4 sm:$0xff]  }
  0x23   :  { %1987 = vmatpush3.bf16.msra.mxu1 %v2215_v28  ;;  %1271 = vmatprep.mubr.bf16.mxu1 %v2220_v31  ;;  %v2290_v28 = vld [vmem:[%s2945_s0 + $0xe8] ss:$56 sps:$4 sm:$0xff]   ;;  %v2306_v43 = vld [vmem:[%s2944_s1 + $0x1f8] sm:$0xff]  }
  0x24   :  { %1988 = vmatprep.subr.bf16.mxu1 %v2217_v30  ;;  %2106 = vmatprep.subr.bf16.mxu0 %v2241_v50  ;;  %v2292_v30 = vld [vmem:[%s2944_s1 + $0x238] sm:$0xff]   ;;  %v2293_v31 = vld [vmem:[%s2944_s1 + $0x1a0] sm:$0xff]  }
  0x25   :  { %1394 = vmatmul.mubr.bf16.vlgmr.msra.gmra.mrb[0].mxu0 %v2238_v48  ;;  %v2309_v46 = vld [vmem:[%s2945_s0 + $0x18] ss:$56 sps:$4 sm:$0xff]   ;;  %v2312_v48 = vld [vmem:[%s2944_s1 + $0x2c0] sm:$0xff]  }
  0x26   :  { %2107 = vmatpush3.bf16.msra.mxu0 %v2243_v52  ;;  %1401 = vmatprep.mubr.bf16.mxu0 %v2252_v60  ;;  %v2313_v49 = vld [vmem:[%s2944_s1 + $0x318] sm:$0xff]   ;;  %v2314_v50 = vld [vmem:[%s2944_s1 + $0x280] sm:$0xff]   ;;  %v2326_v60 = vld [vmem:[%s2945_s0 + $0x90] ss:$56 sps:$4 sm:$0xff]  }
  0x27   :  { %1989 = vmatpush3.bf16.msra.mxu1 %v2219_v33  ;;  %2108 = vmatprep.subr.bf16.mxu0 %v2247_v55  ;;  %v2296_v33 = vld [vmem:[%s2945_s0 + $0x24] ss:$56 sps:$4 sm:$0xff]   ;;  %v2320_v55 = vld [vmem:[%s2945_s0 + $0x88] ss:$56 sps:$4 sm:$0xff]  }
  0x28   :  { %1990 = vmatprep.subr.bf16.mxu1 %v2224_v36  ;;  %v2298_v36 = vld [vmem:[%s2944_s1 + $0x300] sm:$0xff]  }
  0x29   :  { %v2316_v52 = vld [vmem:[%s2944_s1 + $0x320] sm:$0xff]  }
  0x2a   :  { %1272 = vmatmul.mubr.bf16.gmra.mrb[4].mxu1 %v2223_v35  ;;  %2109 = vmatpush3.bf16.msra.mxu0 %v2250_v58  ;;  %v2297_v35 = vld [vmem:[%s2944_s1 + $0x1e8] sm:$0xff]  }
  0x2b   :  { %1991 = vmatpush3.bf16.msra.mxu1 %v2226_v38  ;;  %1279 = vmatprep.mubr.bf16.mxu1 %v2231_v41  ;;  %v2300_v38 = vld [vmem:[%s2945_s0 + $0x15c] ss:$56 sps:$4 sm:$0xff]   ;;  %v2304_v41 = vld [vmem:[%s2944_s1 + $0x308] sm:$0xff]  }
  0x2c   :  { %1992 = vmatprep.subr.bf16.mxu1 %v2228_v40  ;;  %2110 = vmatprep.subr.bf16.mxu0 %v2254_v61  ;;  %v2303_v40 = vld [vmem:[%s2944_s1 + $0x1f0] sm:$0xff]   ;;  %v2327_v61 = vld [vmem:[%s2944_s1 + $0x2d8] sm:$0xff]  }
  0x2d   :  { %1402 = vmatmul.mubr.bf16.gmra.mrb[4].mxu0 %v2256_v63  ;;  %v2323_v58 = vld [vmem:[%s2945_s0 + $0x94] ss:$56 sps:$4 sm:$0xff]   ;;  %v2329_v63 = vld [vmem:[%s2944_s1 + $0x298] sm:$0xff]  }
  0x2e   :  { %2111 = vmatpush3.bf16.msra.mxu0 %v2257_v0  ;;  %1409 = vmatprep.mubr.bf16.mxu0 %v2266_v8  ;;  %v2330_v0 = vld [vmem:[%s2945_s0 + $0xfc] ss:$56 sps:$4 sm:$0xff]   ;;  %v2340_v8 = vld [vmem:[%s2944_s1 + $0x340] sm:$0xff]  }
  0x2f   :  { %1993 = vmatpush3.bf16.msra.mxu1 %v2230_v42  ;;  %2112 = vmatprep.subr.bf16.mxu0 %v2262_v4  ;;  %v2305_v42 = vld [vmem:[%s2944_s1 + $0x1b0] sm:$0xff]   ;;  %v2335_v4 = vld [vmem:[%s2945_s0 + $0x104] ss:$56 sps:$4 sm:$0xff]  }
  0x30   :  { %1994 = vmatprep.subr.bf16.mxu1 %v2235_v44  ;;  %v2307_v44 = vld [vmem:[%s2944_s1 + $0x310] sm:$0xff]  }
  0x32   :  { %1280 = vmatmul.mubr.bf16.gmra.mrb[8].mxu1 %v2234_v45  ;;  %2113 = vmatpush3.bf16.msra.mxu0 %v2264_v6  ;;  %v2308_v45 = vld [vmem:[%s2944_s1 + $0x1b8] sm:$0xff]  }
  0x33   :  { %1995 = vmatpush3.bf16.msra.mxu1 %v2237_v47  ;;  %1287 = vmatprep.mubr.bf16.mxu1 %v2245_v54  ;;  %v2311_v47 = vld [vmem:[%s2945_s0 + $0x1c] ss:$56 sps:$4 sm:$0xff]   ;;  %v2318_v54 = vld [vmem:[%s2945_s0 + $0x8c] ss:$56 sps:$4 sm:$0xff]   ;;  %v2338_v6 = vld [vmem:[%s2945_s0 + $0x100] ss:$56 sps:$4 sm:$0xff]  }
  0x34   :  { %1996 = vmatprep.subr.bf16.mxu1 %v2242_v51  ;;  %2114 = vmatprep.subr.bf16.mxu0 %v2268_v9  ;;  %v2315_v51 = vld [vmem:[%s2944_s1 + $0x2c8] sm:$0xff]  }
  0x35   :  { %1410 = vmatmul.mubr.bf16.gmra.mrb[8].mxu0 %v2269_v10  ;;  %v2341_v9 = vld [vmem:[%s2944_s1 + $0x2a8] sm:$0xff]  }
  0x36   :  { %2115 = vmatpush3.bf16.msra.mxu0 %v2271_v12  ;;  %1417 = vmatprep.mubr.bf16.mxu0 %v2280_v20  ;;  %v2342_v10 = vld [vmem:[%s2945_s0 + $0x16c] ss:$56 sps:$4 sm:$0xff]   ;;  %v2345_v12 = vld [vmem:[%s2944_s1 + $0x2f0] sm:$0xff]   ;;  %v2354_v20 = vld [vmem:[%s2945_s0 + $0x28] ss:$56 sps:$4 sm:$0xff]  }
  0x37   :  { %1997 = vmatpush3.bf16.msra.mxu1 %v2244_v53  ;;  %2116 = vmatprep.subr.bf16.mxu0 %v2275_v15  ;;  %v2317_v53 = vld [vmem:[%s2944_s1 + $0x288] sm:$0xff]   ;;  %v2349_v15 = vld [vmem:[%s2944_s1 + $0x2b0] sm:$0xff]  }
  0x38   :  { %1998 = vmatprep.subr.bf16.mxu1 %v2249_v57  ;;  %v2322_v57 = vld [vmem:[%s2944_s1 + $0x328] sm:$0xff]  }
  0x3a   :  { %1288 = vmatmul.mubr.bf16.gmra.mrb[12].mxu1 %v2248_v56  ;;  %2117 = vmatpush3.bf16.msra.mxu0 %v2278_v18  ;;  %v2321_v56 = vld [vmem:[%s2944_s1 + $0x2d0] sm:$0xff]  }
  0x3b   :  { %1999 = vmatpush3.bf16.msra.mxu1 %v2251_v59  ;;  %1328 = vmatprep.mubr.bf16.mxu1 %v2261_v3  ;;  %v2325_v59 = vld [vmem:[%s2944_s1 + $0x290] sm:$0xff]   ;;  %v2334_v3 = vld [vmem:[%s2944_s1 + $0x338] sm:$0xff]  }
  0x3c   :  { %2000 = vmatprep.subr.bf16.mxu1 %v2255_v62  ;;  %2118 = vmatprep.subr.bf16.mxu0 %v2282_v21  ;;  %v2328_v62 = vld [vmem:[%s2944_s1 + $0x330] sm:$0xff]   ;;  %v2356_v21 = vld [vmem:[%s2945_s0 + $0x2c] ss:$56 sps:$4 sm:$0xff]  }
  0x3d   :  { %1418 = vmatmul.mubr.bf16.gmra.mrb[12].mxu0 %v2283_v22  ;;  %v2352_v18 = vld [vmem:[%s2944_s1 + $0x350] sm:$0xff]   ;;  %v2357_v22 = vld [vmem:[%s2944_s1 + $0x358] sm:$0xff]  }
  0x3e   :  { %2119 = vmatpush3.bf16.msra.mxu0 %v2285_v24  ;;  %1523 = vmatprep.mubr.bf16.mxu0 %v2296_v33  ;;  %v2360_v24 = vld [vmem:[%s2945_s0 + $0x34] ss:$56 sps:$4 sm:$0xff]   ;;  %v2372_v33 = vld [vmem:[%s2945_s0 + $0x110] ss:$56 sps:$4 sm:$0xff]  }
  0x3f   :  { %2001 = vmatpush3.bf16.msra.mxu1 %v2258_v1  ;;  %2120 = vmatprep.subr.bf16.mxu0 %v2289_v27  ;;  %v2332_v1 = vld [vmem:[%s2945_s0 + $0xf8] ss:$56 sps:$4 sm:$0xff]  }
  0x40   :  { %2066 = vmatprep.subr.bf16.mxu1 %v2263_v5  ;;  %v2337_v5 = vld [vmem:[%s2944_s1 + $0x2a0] sm:$0xff]   ;;  %v2363_v27 = vld [vmem:[%s2945_s0 + $0x98] ss:$56 sps:$4 sm:$0xff]  }
  0x42   :  { %1329 = vmatmul.mubr.bf16.vlgmr.msra.gmra.mrb[16].mxu1 %v2259_v2  ;;  %2121 = vmatpush3.bf16.msra.mxu0 %v2292_v30  ;;  %v2333_v2 = vld [vmem:[%s2944_s1 + $0x2e0] sm:$0xff]   ;;  %v2370_v30 = vld [vmem:[%s2945_s0 + $0x114] ss:$56 sps:$4 sm:$0xff]  }
  0x43   :  { %2067 = vmatpush3.bf16.msra.mxu1 %v2265_v7  ;;  %1336 = vmatprep.mubr.bf16.mxu1 %v2273_v14  ;;  %v2339_v7 = vld [vmem:[%s2944_s1 + $0x2e8] sm:$0xff]  }
  0x44   :  { %2068 = vmatprep.subr.bf16.mxu1 %v2270_v11  ;;  %1621 = vmatprep.subr.bf16.mxu0 %v2379_v34  ;;  %v2344_v11 = vld [vmem:[%s2945_s0 + $0x168] ss:$56 sps:$4 sm:$0xff]   ;;  %v2347_v14 = vld [vmem:[%s2945_s0 + $0x174] ss:$56 sps:$4 sm:$0xff]  }
  0x45   :  { %1524 = vmatmul.mubr.bf16.vlgmr.msra.gmra.mrb[16].mxu0 %v2294_v32  ;;  %v2373_v32 = vld [vmem:[%s2945_s0 + $0x17c] ss:$56 sps:$4 sm:$0xff]  }
  0x46   :  { %1622 = vmatpush1.bf16.msra.mxu0 %v2298_v36  ;;  %1531 = vmatprep.mubr.bf16.mxu0 %v2323_v58  ;;  %v2378_v36 = vld [vmem:[%s2945_s0 + $0x180] ss:$56 sps:$4 sm:$0xff]  }
  0x47   :  { %2069 = vmatpush3.bf16.msra.mxu1 %v2272_v13  ;;  %1623 = vmatprep.subr.bf16.mxu0 %v2379_v34  ;;  %v2346_v13 = vld [vmem:[%s2944_s1 + $0x348] sm:$0xff]  }
  0x48   :  { %2070 = vmatprep.subr.bf16.mxu1 %v2277_v17  ;;  %v2351_v17 = vld [vmem:[%s2944_s1 + $0x2f8] sm:$0xff]  }
  0x4a   :  { %1337 = vmatmul.mubr.bf16.gmra.mrb[20].mxu1 %v2276_v16  ;;  %1624 = vmatpush1.bf16.msra.mxu0 %v2304_v41  ;;  %v2350_v16 = vld [vmem:[%s2945_s0 + $0x170] ss:$56 sps:$4 sm:$0xff]  }
  0x4b   :  { %2071 = vmatpush3.bf16.msra.mxu1 %v2279_v19  ;;  %1344 = vmatprep.mubr.bf16.mxu1 %v2287_v26  ;;  %v2353_v19 = vld [vmem:[%s2944_s1 + $0x2b8] sm:$0xff]  }
  0x4c   :  { %2072 = vmatprep.subr.bf16.mxu1 %v2284_v23  ;;  %1625 = vmatprep.subr.bf16.mxu0 %v2379_v34  ;;  %v2358_v23 = vld [vmem:[%s2945_s0 + $0x30] ss:$56 sps:$4 sm:$0xff]   ;;  %v2364_v26 = vld [vmem:[%s2945_s0 + $0xa4] ss:$56 sps:$4 sm:$0xff]  }
  0x4d   :  { %1532 = vmatmul.mubr.bf16.gmra.mrb[20].mxu0 %v2326_v60 }
  0x4e   :  { %1626 = vmatpush1.bf16.msra.mxu0 %v2307_v44  ;;  %1539 = vmatprep.mubr.bf16.mxu0 %v2335_v4 }
  0x4f   :  { %2073 = vmatpush3.bf16.msra.mxu1 %v2286_v25  ;;  %1627 = vmatprep.subr.bf16.mxu0 %v2379_v34  ;;  %v2361_v25 = vld [vmem:[%s2945_s0 + $0x9c] ss:$56 sps:$4 sm:$0xff]  }
  0x50   :  { %2074 = vmatprep.subr.bf16.mxu1 %v2291_v29  ;;  %v2366_v29 = vld [vmem:[%s2945_s0 + $0xa0] ss:$56 sps:$4 sm:$0xff]  }
  0x52   :  { %1345 = vmatmul.mubr.bf16.gmra.mrb[24].mxu1 %v2290_v28  ;;  %1628 = vmatpush1.bf16.msra.mxu0 %v2313_v49  ;;  %v2367_v28 = vld [vmem:[%s2945_s0 + $0x10c] ss:$56 sps:$4 sm:$0xff]  }
  0x53   :  { %2075 = vmatpush3.bf16.msra.mxu1 %v2293_v31  ;;  %1352 = vmatprep.mubr.bf16.mxu1 %v2300_v38  ;;  %v2369_v31 = vld [vmem:[%s2945_s0 + $0x108] ss:$56 sps:$4 sm:$0xff]  }
  0x54   :  { %2076 = vmatprep.subr.bf16.mxu1 %v2297_v35  ;;  %1629 = vmatprep.subr.bf16.mxu0 %v2379_v34  ;;  %v2375_v35 = vld [vmem:[%s2945_s0 + $0x178] ss:$56 sps:$4 sm:$0xff]  }
  0x55   :  { %1540 = vmatmul.mubr.bf16.gmra.mrb[24].mxu0 %v2338_v6 }
  0x56   :  { %1630 = vmatpush1.bf16.msra.mxu0 %v2316_v52  ;;  %1547 = vmatprep.mubr.bf16.mxu0 %v2347_v14 }
  0x57   :  { %2077 = vmatpush3.bf16.msra.mxu1 %v2299_v37  ;;  %1631 = vmatprep.subr.bf16.mxu0 %v2379_v34 }
  0x58   :  { %2078 = vmatprep.subr.bf16.mxu1 %v2303_v40 }
  0x5a   :  { %1353 = vmatmul.mubr.bf16.gmra.mrb[28].mxu1 %v2302_v39  ;;  %1632 = vmatpush1.bf16.msra.mxu0 %v2322_v57 }
  0x5b   :  { %2079 = vmatpush3.bf16.msra.mxu1 %v2305_v42  ;;  %1458 = vmatprep.mubr.bf16.mxu1 %v2311_v47 }
  0x5c   :  { %2080 = vmatprep.subr.bf16.mxu1 %v2306_v43  ;;  %1633 = vmatprep.subr.bf16.mxu0 %v2379_v34 }
  0x5d   :  { %1548 = vmatmul.mubr.bf16.gmra.mrb[28].mxu0 %v2350_v16 }
  0x5e   :  { %1634 = vmatpush1.bf16.msra.mxu0 %v2328_v62  ;;  %1903 = vmatprep.mubr.msk.bf16.mxu0 %vm1218_vm0, %v2360_v24 }
  0x5f   :  { %2081 = vmatpush3.bf16.msra.mxu1 %v2308_v45  ;;  %1635 = vmatprep.subr.bf16.mxu0 %v2379_v34 }
  0x60   :  { %2146 = vmatprep.subr.bf16.mxu1 %v2312_v48 }
  0x62   :  { %1459 = vmatmul.mubr.bf16.vlgmr.msra.gmra.mrb[32].mxu1 %v2309_v46  ;;  %1636 = vmatpush1.bf16.msra.mxu0 %v2334_v3 }
  0x63   :  { %2147 = vmatpush3.bf16.msra.mxu1 %v2314_v50  ;;  %1466 = vmatprep.mubr.bf16.mxu1 %v2318_v54 }
  0x64   :  { %2148 = vmatprep.subr.bf16.mxu1 %v2315_v51  ;;  %1637 = vmatprep.subr.bf16.mxu0 %v2379_v34 }
  0x66   :  { %1638 = vmatpush1.bf16.msra.mxu0 %v2340_v8  ;;  %v1738_v8 = vld [vmem:[%s2946_s2] ss:$0 sm:$0xff] }
  0x67   :  { %2149 = vmatpush3.bf16.msra.mxu1 %v2317_v53  ;;  %1639 = vmatprep.subr.bf16.mxu0 %v2379_v34 }
  0x68   :  { %2150 = vmatprep.subr.bf16.mxu1 %v2321_v56 }
  0x6a   :  { %1467 = vmatmul.mubr.bf16.gmra.mrb[36].mxu1 %v2320_v55  ;;  %1640 = vmatpush1.bf16.msra.mxu0 %v2346_v13 }
  0x6b   :  { %2151 = vmatpush3.bf16.msra.mxu1 %v2325_v59  ;;  %1474 = vmatprep.mubr.bf16.mxu1 %v2330_v0 }
  0x6c   :  { %2152 = vmatprep.subr.bf16.mxu1 %v2327_v61  ;;  %1641 = vmatprep.subr.bf16.mxu0 %v2379_v34 }
  0x6e   :  { %1642 = vmatpush1.bf16.msra.mxu0 %v2352_v18 }
  0x6f   :  { %2153 = vmatpush3.bf16.msra.mxu1 %v2329_v63  ;;  %1643 = vmatprep.subr.bf16.mxu0 %v2379_v34  ;;  %v2376_v34 = vld [vmem:[%s2945_s0 + $0x184] ss:$56 sps:$4 sm:$0xff]  }
  0x70   :  { %2154 = vmatprep.subr.bf16.mxu1 %v2333_v2 }
  0x72   :  { %1475 = vmatmul.mubr.bf16.gmra.mrb[40].mxu1 %v2332_v1  ;;  %1644 = vmatpush1.bf16.msra.mxu0 %v2357_v22 }
  0x73   :  { %2155 = vmatpush3.bf16.msra.mxu1 %v2337_v5  ;;  %1482 = vmatprep.mubr.bf16.mxu1 %v2342_v10 }
  0x74   :  { %2156 = vmatprep.subr.bf16.mxu1 %v2339_v7 }
  0x75   :  { %1654 = vmatmul.mubr.bf16.vlgmr.msra.gmra.mrb[32].mxu0 %v2358_v23 }
  0x76   :  { %1904 = vmatprep.mubr.msk.bf16.mxu0 %vm1218_vm0, %v2364_v26 }
  0x77   :  { %2157 = vmatpush3.bf16.msra.mxu1 %v2341_v9 }
  0x78   :  { %2158 = vmatprep.subr.bf16.mxu1 %v2345_v12 }
  0x7a   :  { %1483 = vmatmul.mubr.bf16.gmra.mrb[44].mxu1 %v2344_v11 }
  0x7b   :  { %2159 = vmatpush3.bf16.msra.mxu1 %v2349_v15  ;;  %1588 = vmatprep.mubr.bf16.mxu1 %v2356_v21 }
  0x7c   :  { %2160 = vmatprep.subr.bf16.mxu1 %v2351_v17 }
  0x7d   :  { %1662 = vmatmul.mubr.bf16.gmra.mrb[36].mxu0 %v2366_v29 }
  0x7e   :  { %1905 = vmatprep.mubr.msk.bf16.mxu0 %vm1218_vm0, %v2370_v30 }
  0x7f   :  { %2161 = vmatpush3.bf16.msra.mxu1 %v2353_v19 }
  0x82   :  { %1589 = vmatmul.mubr.bf16.vlgmr.msra.gmra.mrb[48].mxu1 %v2354_v20 }
  0x83   :  { %1596 = vmatprep.mubr.bf16.mxu1 %v2361_v25 }
  0x85   :  { %1670 = vmatmul.mubr.bf16.gmra.mrb[40].mxu0 %v2372_v33 }
  0x86   :  { %1906 = vmatprep.mubr.msk.bf16.mxu0 %vm1218_vm0, %v2376_v34 }
  0x8a   :  { %1597 = vmatmul.mubr.bf16.gmra.mrb[52].mxu1 %v2363_v27 }
  0x8b   :  { %1604 = vmatprep.mubr.bf16.mxu1 %v2367_v28 }
  0x8d   :  { %1678 = vmatmul.mubr.bf16.gmra.mrb[44].mxu0 %v2378_v36 }
  0x92   :  { %1605 = vmatmul.mubr.bf16.gmra.mrb[56].mxu1 %v2369_v31 }
  0x93   :  { %1612 = vmatprep.mubr.bf16.mxu1 %v2373_v32 }
  0x9a   :  { %1613 = vmatmul.mubr.bf16.gmra.mrb[60].mxu1 %v2375_v35 }
  0xf5   :  { %v1962_v37 = vpop.f32.mrb[0].mxu1 }
  0xf6   :  { %v1963_v38 = vpop.f32.mrb[1].mxu1 }
  0xf7   :  { %v1964_v39 = vadd.f32 %v1963_v38, %v1962_v37  ;;  %v1965_v40 = vpop.f32.mrb[2].mxu1 }
  0xf8   :  { %v1966_v41 = vpop.f32.mrb[3].mxu1  ;;  %v2042_v51 = vpop.f32.mrb[0].mxu0 }
  0xf9   :  { %v1967_v42 = vadd.f32 %v1966_v41, %v1965_v40  ;;  %v2043_v54 = vpop.f32.mrb[1].mxu0  ;;  %v1266_v12 = vadd.f32 %v1964_v39, %v1738_v8 }
  0xfa   :  { %v2044_v56 = vadd.f32 %v2043_v54, %v2042_v51  ;;  %v2045_v57 = vpop.f32.mrb[2].mxu0 }
  0xfb   :  { %v2046_v59 = vpop.f32.mrb[3].mxu0  ;;  %v1269_v16 = vadd.f32 %v1967_v42, %v1738_v8 }
  0xfc   :  { %v2047_v60 = vadd.f32 %v2046_v59, %v2045_v57 }
  0xfd   :  { %v1968_v43 = vpop.f32.mrb[4].mxu1 }
  0xfe   :  { %v1969_v44 = vpop.f32.mrb[5].mxu1 }
  0xff   :  { %v1970_v45 = vadd.f32 %v1969_v44, %v1968_v43  ;;  %v1971_v46 = vpop.f32.mrb[6].mxu1 }
 0x100   :  { %v1972_v47 = vpop.f32.mrb[7].mxu1  ;;  %v2048_v2 = vpop.f32.mrb[4].mxu0 }
 0x101   :  { %v1973_v48 = vadd.f32 %v1972_v47, %v1971_v46  ;;  %v2049_v4 = vpop.f32.mrb[5].mxu0  ;;  %v1274_v30 = vadd.f32 %v1970_v45, %v1738_v8 }
 0x102   :  { %v2050_v5 = vadd.f32 %v2049_v4, %v2048_v2  ;;  %v2051_v6 = vpop.f32.mrb[6].mxu0 }
 0x103   :  { %v2052_v7 = vpop.f32.mrb[7].mxu0  ;;  %v1277_v34 = vadd.f32 %v1973_v48, %v1738_v8 }
 0x104   :  { %v2053_v9 = vadd.f32 %v2052_v7, %v2051_v6 }
 0x105   :  { %v1974_v49 = vpop.f32.mrb[8].mxu1 }
 0x106   :  { %v1975_v50 = vpop.f32.mrb[9].mxu1 }
 0x107   :  { %v1976_v52 = vadd.f32 %v1975_v50, %v1974_v49  ;;  %v1977_v53 = vpop.f32.mrb[10].mxu1 }
 0x108   :  { %v1978_v55 = vpop.f32.mrb[11].mxu1  ;;  %v2054_v19 = vpop.f32.mrb[8].mxu0 }
 0x109   :  { %v1979_v58 = vadd.f32 %v1978_v55, %v1977_v53  ;;  %v2055_v21 = vpop.f32.mrb[9].mxu0  ;;  %v1282_v50 = vadd.f32 %v1976_v52, %v1738_v8 }
 0x10a   :  { %v2056_v23 = vadd.f32 %v2055_v21, %v2054_v19  ;;  %v2057_v24 = vpop.f32.mrb[10].mxu0 }
 0x10b   :  { %v2058_v25 = vpop.f32.mrb[11].mxu0  ;;  %v1285_v54 = vadd.f32 %v1979_v58, %v1738_v8 }
 0x10c   :  { %v2059_v27 = vadd.f32 %v2058_v25, %v2057_v24 }
 0x10d   :  { %v1980_v61 = vpop.f32.mrb[12].mxu1 }
 0x10e   :  { %v1981_v62 = vpop.f32.mrb[13].mxu1 }
 0x10f   :  { %v2908_v63 = vadd.f32 %v1981_v62, %v1980_v61  ;;  %v1983_v0 = vpop.f32.mrb[14].mxu1 }
 0x110   :  { %v1984_v1 = vpop.f32.mrb[15].mxu1  ;;  %v2060_v38 = vpop.f32.mrb[12].mxu0 }
 0x111   :  { %v2910_v3 = vadd.f32 %v1984_v1, %v1983_v0  ;;  %v2061_v40 = vpop.f32.mrb[13].mxu0  ;;  %v1290_v6 = vadd.f32 %v2908_v63, %v1738_v8 }
 0x112   :  { %v2062_v41 = vadd.f32 %v2061_v40, %v2060_v38  ;;  %v2063_v42 = vpop.f32.mrb[14].mxu0 }
 0x113   :  { %v2064_v44 = vpop.f32.mrb[15].mxu0  ;;  %v1293_v58 = vadd.f32 %v2910_v3, %v1738_v8 }
 0x114   :  { %v2065_v46 = vadd.f32 %v2064_v44, %v2063_v42 }
 0x115   :  { %v2002_v10 = vpop.f32.mrb[16].mxu1 }
 0x116   :  { %v2003_v11 = vpop.f32.mrb[17].mxu1 }
 0x117   :  { %v2004_v13 = vadd.f32 %v2003_v11, %v2002_v10  ;;  %v2005_v14 = vpop.f32.mrb[18].mxu1 }
 0x118   :  { %v2006_v15 = vpop.f32.mrb[19].mxu1 }
 0x119   :  { %v1331_v17 = vadd.f32 %v2004_v13, %v1266_v12  ;;  %v2007_v18 = vadd.f32 %v2006_v15, %v2005_v14 }
 0x11b   :  { %v1334_v20 = vadd.f32 %v2007_v18, %v1269_v16  ;;  %v1396_v22 = vadd.f32 %v2044_v56, %v1331_v17  ;;  %v2122_v56 = vpop.f32.mrb[16].mxu0 }
 0x11c   :  { %v2123_v59 = vpop.f32.mrb[17].mxu0 }
 0x11d   :  { %v1399_v26 = vadd.f32 %v2047_v60, %v1334_v20  ;;  %v2008_v28 = vpop.f32.mrb[20].mxu1  ;;  %v2124_v61 = vadd.f32 %v2123_v59, %v2122_v56  ;;  %v2125_v62 = vpop.f32.mrb[18].mxu0 }
 0x11e   :  { %v2009_v29 = vpop.f32.mrb[21].mxu1  ;;  %v2126_v0 = vpop.f32.mrb[19].mxu0 }
 0x11f   :  { %v2010_v31 = vadd.f32 %v2009_v29, %v2008_v28  ;;  %v2011_v32 = vpop.f32.mrb[22].mxu1  ;;  %v2127_v2 = vadd.f32 %v2126_v0, %v2125_v62 }
 0x120   :  { %v2012_v33 = vpop.f32.mrb[23].mxu1  ;;  %v2128_v28 = vpop.f32.mrb[20].mxu0 }
 0x121   :  { %v1339_v35 = vadd.f32 %v2010_v31, %v1274_v30  ;;  %v2013_v36 = vadd.f32 %v2012_v33, %v2011_v32  ;;  %v2129_v8 = vpop.f32.mrb[21].mxu0 }
 0x122   :  { %v2130_v31 = vadd.f32 %v2129_v8, %v2128_v28  ;;  %v2131_v32 = vpop.f32.mrb[22].mxu0 }
 0x123   :  { %v1342_v37 = vadd.f32 %v2013_v36, %v1277_v34  ;;  %v1404_v39 = vadd.f32 %v2050_v5, %v1339_v35  ;;  %v2132_v35 = vpop.f32.mrb[23].mxu0 }
 0x124   :  { %v2133_v36 = vadd.f32 %v2132_v35, %v2131_v32 }
 0x125   :  { %v1407_v43 = vadd.f32 %v2053_v9, %v1342_v37  ;;  %v2014_v47 = vpop.f32.mrb[24].mxu1 }
 0x126   :  { %v2015_v49 = vpop.f32.mrb[25].mxu1 }
 0x127   :  { %v2016_v51 = vadd.f32 %v2015_v49, %v2014_v47  ;;  %v2017_v45 = vpop.f32.mrb[26].mxu1 }
 0x128   :  { %v2018_v53 = vpop.f32.mrb[27].mxu1  ;;  %v2134_v44 = vpop.f32.mrb[24].mxu0 }
 0x129   :  { %v1347_v55 = vadd.f32 %v2016_v51, %v1282_v50  ;;  %v2019_v48 = vadd.f32 %v2018_v53, %v2017_v45  ;;  %v2135_v47 = vpop.f32.mrb[25].mxu0 }
 0x12a   :  { %v2136_v51 = vadd.f32 %v2135_v47, %v2134_v44  ;;  %v2137_v45 = vpop.f32.mrb[26].mxu0 }
 0x12b   :  { %v1350_v57 = vadd.f32 %v2019_v48, %v1285_v54  ;;  %v1412_v60 = vadd.f32 %v2056_v23, %v1347_v55  ;;  %v2138_v53 = vpop.f32.mrb[27].mxu0 }
 0x12c   :  { %v2139_v55 = vadd.f32 %v2138_v53, %v2137_v45 }
 0x12d   :  { %v1415_v1 = vadd.f32 %v2059_v27, %v1350_v57  ;;  %v2020_v4 = vpop.f32.mrb[28].mxu1 }
 0x12e   :  { %v2021_v5 = vpop.f32.mrb[29].mxu1 }
 0x12f   :  { %v2022_v52 = vadd.f32 %v2021_v5, %v2020_v4  ;;  %v2023_v7 = vpop.f32.mrb[30].mxu1 }
 0x130   :  { %v2024_v9 = vpop.f32.mrb[31].mxu1 }
 0x131   :  { %v1355_v10 = vadd.f32 %v2022_v52, %v1290_v6  ;;  %v2025_v11 = vadd.f32 %v2024_v9, %v2023_v7 }
 0x133   :  { %v1358_v12 = vadd.f32 %v2025_v11, %v1293_v58  ;;  %v1420_v13 = vadd.f32 %v2062_v41, %v1355_v10 }
 0x135   :  { %v1423_v14 = vadd.f32 %v2065_v46, %v1358_v12  ;;  %v2082_v15 = vpop.f32.mrb[32].mxu1 }
 0x136   :  { %v2083_v16 = vpop.f32.mrb[33].mxu1 }
 0x137   :  { %v2084_v17 = vadd.f32 %v2083_v16, %v2082_v15  ;;  %v2085_v18 = vpop.f32.mrb[34].mxu1 }
 0x138   :  { %v2086_v19 = vpop.f32.mrb[35].mxu1 }
 0x139   :  { %v1461_v20 = vadd.f32 %v2084_v17, %v1396_v22  ;;  %v2087_v21 = vadd.f32 %v2086_v19, %v2085_v18 }
 0x13b   :  { %v1464_v23 = vadd.f32 %v2087_v21, %v1399_v26  ;;  %v1526_v24 = vadd.f32 %v2124_v61, %v1461_v20  ;;  %v2140_v61 = vpop.f32.mrb[28].mxu0 }
 0x13c   :  { %v2141_v0 = vpop.f32.mrb[29].mxu0 }
 0x13d   :  { %v2088_v63 = vpop.f32.mrb[36].mxu1  ;;  %v1529_v25 = vadd.f32 %v2127_v2, %v1464_v23  ;;  %v2143_v5 = vpop.f32.mrb[30].mxu0 }
 0x13e   :  { %v2089_v27 = vpop.f32.mrb[37].mxu1  ;;  %v2144_v6 = vpop.f32.mrb[31].mxu0 }
 0x13f   :  { %v2090_v29 = vadd.f32 %v2089_v27, %v2088_v63  ;;  %v2091_v3 = vpop.f32.mrb[38].mxu1 }
 0x140   :  { %v2092_v30 = vpop.f32.mrb[39].mxu1 }
 0x141   :  { %v1469_v33 = vadd.f32 %v2090_v29, %v1404_v39  ;;  %v2093_v34 = vadd.f32 %v2092_v30, %v2091_v3 }
 0x143   :  { %v1472_v37 = vadd.f32 %v2093_v34, %v1407_v43  ;;  %v1534_v38 = vadd.f32 %v2130_v31, %v1469_v33 }
 0x145   :  { %v2917_v22 = vadd.f32 %v2133_v36, %v1472_v37  ;;  %v2094_v26 = vpop.f32.mrb[40].mxu1 }
 0x146   :  { %v2095_v40 = vpop.f32.mrb[41].mxu1 }
 0x147   :  { %v2096_v41 = vadd.f32 %v2095_v40, %v2094_v26  ;;  %v2097_v42 = vpop.f32.mrb[42].mxu1 }
 0x148   :  { %v2098_v46 = vpop.f32.mrb[43].mxu1  ;;  %v1655_v15 = vpop.f32.mrb[32].mxu0 }
 0x149   :  { %v1477_v49 = vadd.f32 %v2096_v41, %v1412_v60  ;;  %v2099_v50 = vadd.f32 %v2098_v46, %v2097_v42  ;;  %v2142_v60 = vadd.f32 %v2141_v0, %v2140_v61  ;;  %v1657_v17 = vpop.f32.mrb[33].mxu0 }
 0x14b   :  { %v1480_v39 = vadd.f32 %v2099_v50, %v1415_v1  ;;  %v2919_v54 = vadd.f32 %v2136_v51, %v1477_v49  ;;  %v2145_v1 = vadd.f32 %v2144_v6, %v2143_v5 }
 0x14d   :  { %v2921_v43 = vadd.f32 %v2139_v55, %v1480_v39  ;;  %v2100_v48 = vpop.f32.mrb[44].mxu1 }
 0x14e   :  { %v2101_v56 = vpop.f32.mrb[45].mxu1 }
 0x14f   :  { %v2102_v57 = vadd.f32 %v2101_v56, %v2100_v48  ;;  %v2103_v59 = vpop.f32.mrb[46].mxu1 }
 0x150   :  { %v2104_v62 = vpop.f32.mrb[47].mxu1 }
 0x151   :  { %v1485_v2 = vadd.f32 %v2102_v57, %v1420_v13  ;;  %v2105_v4 = vadd.f32 %v2104_v62, %v2103_v59  ;;  %v1658_v13 = vpop.f32.mrb[34].mxu0 }
 0x152   :  { %v1660_v20 = vpop.f32.mrb[35].mxu0 }
 0x153   :  { %v1488_v52 = vadd.f32 %v2105_v4, %v1423_v14  ;;  %v2923_v7 = vadd.f32 %v2142_v60, %v1485_v2  ;;  %v1663_v30 = vpop.f32.mrb[36].mxu0 }
 0x154   :  { %v1665_v32 = vpop.f32.mrb[37].mxu0 }
 0x155   :  { %v2925_v9 = vadd.f32 %v2145_v1, %v1488_v52  ;;  %v2162_v58 = vpop.f32.mrb[48].mxu1  ;;  %v1666_v36 = vpop.f32.mrb[38].mxu0 }
 0x156   :  { %v2163_v10 = vpop.f32.mrb[49].mxu1  ;;  %v1668_v37 = vpop.f32.mrb[39].mxu0 }
 0x157   :  { %v2164_v11 = vadd.f32 %v2163_v10, %v2162_v58  ;;  %v2165_v12 = vpop.f32.mrb[50].mxu1 }
 0x158   :  { %v2166_v16 = vpop.f32.mrb[51].mxu1  ;;  %v1671_v49 = vpop.f32.mrb[40].mxu0 }
 0x159   :  { %v2167_v18 = vadd.f32 %v2166_v16, %v2165_v12  ;;  %v1591_v19 = vadd.f32 %v2164_v11, %v1526_v24  ;;  %v1673_v51 = vpop.f32.mrb[41].mxu0 }
 0x15a   :  { %v1674_v39 = vpop.f32.mrb[42].mxu0 }
 0x15b   :  { %v1656_v21 = vadd.f32 %v1655_v15, %v1591_v19  ;;  %v1594_v23 = vadd.f32 %v2167_v18, %v1529_v25  ;;  %v1676_v55 = vpop.f32.mrb[43].mxu0 }
 0x15d   :  { %v1659_v63 = vadd.f32 %v1658_v13, %v1594_v23  ;;  %v2168_v14 = vpop.f32.mrb[52].mxu1  ;;  %v1686_v28 = vmax.f32 %v1656_v21, 0.0 }
 0x15e   :  { %v2169_v27 = vpop.f32.mrb[53].mxu1 }
 0x15f   :  { %v1687_v29 = vmax.f32 %v1659_v63, 0.0  ;;  %v2170_v3 = vadd.f32 %v2169_v27, %v2168_v14  ;;  %v2171_v8 = vpop.f32.mrb[54].mxu1 }
 0x160   :  { %v2172_v31 = vpop.f32.mrb[55].mxu1  ;;  %v1679_v4 = vpop.f32.mrb[44].mxu0 }
 0x161   :  { %v1926_v33 = vpack.c.bf16 %v1687_v29, %v1686_v28  ;;  %v2173_v34 = vadd.f32 %v2172_v31, %v2171_v8  ;;  %v1599_v35 = vadd.f32 %v2170_v3, %v1534_v38  ;;  %v1681_v5 = vpop.f32.mrb[45].mxu0 }
 0x162   :  { %v1682_v1 = vpop.f32.mrb[46].mxu0 }
 0x163   :  { %1927 = vst [vmem:[%s2947_s3] sm:$0xff] %v1926_v33   ;;  %v1664_v24 = vadd.f32 %v1663_v30, %v1599_v35  ;;  %v1602_v25 = vadd.f32 %v2173_v34, %v2917_v22  ;;  %v1684_v58 = vpop.f32.mrb[47].mxu0 }
 0x165   :  { %v1667_v26 = vadd.f32 %v1666_v36, %v1602_v25  ;;  %v2174_v40 = vpop.f32.mrb[56].mxu1  ;;  %v1688_v42 = vmax.f32 %v1664_v24, 0.0 }
 0x166   :  { %v2175_v41 = vpop.f32.mrb[57].mxu1 }
 0x167   :  { %v1689_v44 = vmax.f32 %v1667_v26, 0.0  ;;  %v2176_v46 = vadd.f32 %v2175_v41, %v2174_v40  ;;  %v2177_v47 = vpop.f32.mrb[58].mxu1 }
 0x168   :  { %v2178_v50 = vpop.f32.mrb[59].mxu1 }
 0x169   :  { %v1931_v38 = vpack.c.bf16 %v1689_v44, %v1688_v42  ;;  %v2179_v45 = vadd.f32 %v2178_v50, %v2177_v47  ;;  %v1607_v53 = vadd.f32 %v2176_v46, %v2919_v54 }
 0x16b   :  { %1943 = vst [vmem:[%s2947_s3 + $0x8] sm:$0xff] %v1931_v38   ;;  %v1672_v22 = vadd.f32 %v1671_v49, %v1607_v53  ;;  %v1610_v48 = vadd.f32 %v2179_v45, %v2921_v43 }
 0x16d   :  { %v1675_v56 = vadd.f32 %v1674_v39, %v1610_v48  ;;  %v2180_v57 = vpop.f32.mrb[60].mxu1  ;;  %v1690_v61 = vmax.f32 %v1672_v22, 0.0 }
 0x16e   :  { %v2181_v59 = vpop.f32.mrb[61].mxu1 }
 0x16f   :  { %v1691_v62 = vmax.f32 %v1675_v56, 0.0  ;;  %v2182_v0 = vadd.f32 %v2181_v59, %v2180_v57  ;;  %v2183_v2 = vpop.f32.mrb[62].mxu1 }
 0x170   :  { %v2184_v60 = vpop.f32.mrb[63].mxu1 }
 0x171   :  { %v1936_v54 = vpack.c.bf16 %v1691_v62, %v1690_v61  ;;  %v2185_v6 = vadd.f32 %v2184_v60, %v2183_v2  ;;  %v1615_v52 = vadd.f32 %v2182_v0, %v2923_v7 }
 0x173   :  { %1944 = vst [vmem:[%s2947_s3 + $0x10] sm:$0xff] %v1936_v54   ;;  %v1680_v43 = vadd.f32 %v1679_v4, %v1615_v52  ;;  %v1618_v10 = vadd.f32 %v2185_v6, %v2925_v9 }
 0x175   :  { %v1683_v11 = vadd.f32 %v1682_v1, %v1618_v10  ;;  %v1692_v12 = vmax.f32 %v1680_v43, 0.0 }
 0x177   :  { %v1693_v15 = vmax.f32 %v1683_v11, 0.0 }
 0x179   :  { %v1941_v16 = vpack.c.bf16 %v1693_v15, %v1692_v12 }
 0x17b   :  { %1945 = vst [vmem:[%s2947_s3 + $0x18] sm:$0xff] %v1941_v16  }

// kernel: lipnet_forward.16
= control target key start
LH: loop header
LB: loop body
LE: loop exit
PB: predicated region body
PF: predicated region fallthrough
CT: control target
= control target key end

     0   :  { %vm950_vm0 = vcmask 523264   ;;  %s2105_s1 = inlined_call_operand.vmem [shape: bf16[192,1536], index: 1, kind: input, shape index: {}]   ;;  %s2106_s0 = inlined_call_operand.vmem [shape: bf16[8,192], index: 0, kind: input, shape index: {}]   ;;  %s2107_s2 = inlined_call_operand.vmem [shape: f32[1,1536], index: 2, kind: input, shape index: {}]   ;;  %s2108_s3 = inlined_call_operand.vmem [shape: f32[8,1536], index: 3, kind: output, shape index: {}]  }
   0x1   :  { %v1368_v0 = vld [vmem:[%s2105_s1 + $0x4] ss:$48 sps:$4 sm:$0xff]   ;;  %v1370_v1 = vld [vmem:[%s2105_s1 + $0xc] ss:$48 sps:$4 sm:$0xff]   ;;  %v1372_v2 = vld [vmem:[%s2105_s1] ss:$48 sps:$4 sm:$0xff]  }
   0x2   :  { %954 = vmatprep.subr.bf16.mxu0 %v1368_v0  ;;  %v1373_v3 = vld [vmem:[%s2105_s1 + $0x8] ss:$48 sps:$4 sm:$0xff]   ;;  %995 = vmatprep.subr.bf16.mxu1 %v1370_v1  ;;  %v1374_v4 = vld [vmem:[%s2105_s1 + $0x64] ss:$48 sps:$4 sm:$0xff]   ;;  %v1376_v5 = vld [vmem:[%s2105_s1 + $0x6c] ss:$48 sps:$4 sm:$0xff]  }
   0x3   :  { %955 = vmatpush1.bf16.msra.mxu0 %v1372_v2  ;;  %996 = vmatpush1.bf16.msra.mxu1 %v1373_v3  ;;  %v1378_v6 = vld [vmem:[%s2105_s1 + $0x60] ss:$48 sps:$4 sm:$0xff]   ;;  %v1379_v7 = vld [vmem:[%s2105_s1 + $0x68] ss:$48 sps:$4 sm:$0xff]   ;;  %v1380_v8 = vld [vmem:[%s2105_s1 + $0xc4] ss:$48 sps:$4 sm:$0xff]  }
   0x4   :  { %956 = vmatprep.subr.bf16.mxu0 %v1374_v4  ;;  %997 = vmatprep.subr.bf16.mxu1 %v1376_v5  ;;  %v1382_v9 = vld [vmem:[%s2105_s1 + $0xcc] ss:$48 sps:$4 sm:$0xff]   ;;  %v1384_v10 = vld [vmem:[%s2105_s1 + $0xc0] ss:$48 sps:$4 sm:$0xff]   ;;  %v1385_v11 = vld [vmem:[%s2105_s1 + $0xc8] ss:$48 sps:$4 sm:$0xff]  }
   0x5   :  { %v1386_v12 = vld [vmem:[%s2105_s1 + $0x124] ss:$48 sps:$4 sm:$0xff]   ;;  %v1388_v13 = vld [vmem:[%s2105_s1 + $0x12c] ss:$48 sps:$4 sm:$0xff]   ;;  %v1390_v14 = vld [vmem:[%s2105_s1 + $0x120] ss:$48 sps:$4 sm:$0xff]  }
   0x6   :  { %v1391_v15 = vld [vmem:[%s2105_s1 + $0x128] ss:$48 sps:$4 sm:$0xff]   ;;  %v1392_v16 = vld [vmem:[%s2105_s1 + $0x184] ss:$48 sps:$4 sm:$0xff]   ;;  %v1394_v17 = vld [vmem:[%s2105_s1 + $0x18c] ss:$48 sps:$4 sm:$0xff]  }
   0x7   :  { %957 = vmatpush1.bf16.msra.mxu0 %v1378_v6  ;;  %998 = vmatpush1.bf16.msra.mxu1 %v1379_v7  ;;  %v1396_v18 = vld [vmem:[%s2105_s1 + $0x180] ss:$48 sps:$4 sm:$0xff]   ;;  %v1397_v19 = vld [vmem:[%s2105_s1 + $0x188] ss:$48 sps:$4 sm:$0xff]   ;;  %v1398_v20 = vld [vmem:[%s2105_s1 + $0x1e4] ss:$48 sps:$4 sm:$0xff]  }
   0x8   :  { %958 = vmatprep.subr.bf16.mxu0 %v1380_v8  ;;  %999 = vmatprep.subr.bf16.mxu1 %v1382_v9  ;;  %v1400_v21 = vld [vmem:[%s2105_s1 + $0x1ec] ss:$48 sps:$4 sm:$0xff]   ;;  %v1402_v22 = vld [vmem:[%s2105_s1 + $0x1e0] ss:$48 sps:$4 sm:$0xff]   ;;  %v1403_v23 = vld [vmem:[%s2105_s1 + $0x1e8] ss:$48 sps:$4 sm:$0xff]  }
   0x9   :  { %v1404_v24 = vld [vmem:[%s2105_s1 + $0x244] ss:$48 sps:$4 sm:$0xff]   ;;  %v1406_v25 = vld [vmem:[%s2105_s1 + $0x24c] ss:$48 sps:$4 sm:$0xff]   ;;  %v1408_v26 = vld [vmem:[%s2105_s1 + $0x240] ss:$48 sps:$4 sm:$0xff]  }
   0xa   :  { %v1409_v27 = vld [vmem:[%s2105_s1 + $0x248] ss:$48 sps:$4 sm:$0xff]   ;;  %v1410_v28 = vld [vmem:[%s2105_s1 + $0x2a4] ss:$48 sps:$4 sm:$0xff]   ;;  %v1412_v29 = vld [vmem:[%s2105_s1 + $0x2ac] ss:$48 sps:$4 sm:$0xff]  }
   0xb   :  { %959 = vmatpush1.bf16.msra.mxu0 %v1384_v10  ;;  %1000 = vmatpush1.bf16.msra.mxu1 %v1385_v11  ;;  %v1414_v30 = vld [vmem:[%s2105_s1 + $0x2a0] ss:$48 sps:$4 sm:$0xff]   ;;  %v1415_v31 = vld [vmem:[%s2105_s1 + $0x2a8] ss:$48 sps:$4 sm:$0xff]   ;;  %v1416_v32 = vld [vmem:[%s2105_s1 + $0x304] ss:$48 sps:$4 sm:$0xff]  }
   0xc   :  { %960 = vmatprep.subr.bf16.mxu0 %v1386_v12  ;;  %1001 = vmatprep.subr.bf16.mxu1 %v1388_v13  ;;  %v1418_v33 = vld [vmem:[%s2105_s1 + $0x30c] ss:$48 sps:$4 sm:$0xff]   ;;  %v1420_v34 = vld [vmem:[%s2105_s1 + $0x300] ss:$48 sps:$4 sm:$0xff]   ;;  %v1421_v35 = vld [vmem:[%s2105_s1 + $0x308] ss:$48 sps:$4 sm:$0xff]  }
   0xd   :  { %v15_v36 = vld [vmem:[%s2106_s0] sm:$0xff]  ;;  %v1424_v38 = vld [vmem:[%s2105_s1 + $0x36c] ss:$48 sps:$4 sm:$0xff]   ;;  %v1427_v41 = vld [vmem:[%s2105_s1 + $0x368] ss:$48 sps:$4 sm:$0xff]  }
   0xe   :  { %v1422_v37 = vld [vmem:[%s2105_s1 + $0x364] ss:$48 sps:$4 sm:$0xff]   ;;  %v1723_v39 = vcombine.high %v15_v36, %v15_v36  ;;  %v1426_v40 = vld [vmem:[%s2105_s1 + $0x360] ss:$48 sps:$4 sm:$0xff]   ;;  %v1430_v43 = vld [vmem:[%s2105_s1 + $0x3cc] ss:$48 sps:$4 sm:$0xff]   ;;  %v1765_v52 = vcombine.low %v15_v36, %v15_v36 }
   0xf   :  { %961 = vmatpush1.bf16.msra.mxu0 %v1390_v14  ;;  %1002 = vmatpush1.bf16.msra.mxu1 %v1391_v15  ;;  %v1428_v42 = vld [vmem:[%s2105_s1 + $0x3c4] ss:$48 sps:$4 sm:$0xff]   ;;  %v1432_v44 = vld [vmem:[%s2105_s1 + $0x3c0] ss:$48 sps:$4 sm:$0xff]   ;;  %v1433_v45 = vld [vmem:[%s2105_s1 + $0x3c8] ss:$48 sps:$4 sm:$0xff]  }
  0x10   :  { %962 = vmatprep.subr.bf16.mxu0 %v1392_v16  ;;  %1003 = vmatprep.subr.bf16.mxu1 %v1394_v17  ;;  %v1434_v46 = vld [vmem:[%s2105_s1 + $0x424] ss:$48 sps:$4 sm:$0xff]   ;;  %v1436_v47 = vld [vmem:[%s2105_s1 + $0x42c] ss:$48 sps:$4 sm:$0xff]   ;;  %v1438_v48 = vld [vmem:[%s2105_s1 + $0x420] ss:$48 sps:$4 sm:$0xff]  }
  0x11   :  { %1362 = vmatprep.mubr.msk.bf16.mxu0 %vm950_vm0, %v1723_v39  ;;  %1363 = vmatprep.mubr.msk.bf16.mxu1 %vm950_vm0, %v1723_v39  ;;  %v1439_v49 = vld [vmem:[%s2105_s1 + $0x428] ss:$48 sps:$4 sm:$0xff]   ;;  %v1444_v50 = vld [vmem:[%s2105_s1 + $0x14] ss:$48 sps:$4 sm:$0xff]   ;;  %v1447_v51 = vld [vmem:[%s2105_s1 + $0x1c] ss:$48 sps:$4 sm:$0xff]  }
  0x12   :  { %v1442_v53 = vld [vmem:[%s2105_s1 + $0x10] ss:$48 sps:$4 sm:$0xff]   ;;  %v1445_v54 = vld [vmem:[%s2105_s1 + $0x18] ss:$48 sps:$4 sm:$0xff]   ;;  %v1450_v55 = vld [vmem:[%s2105_s1 + $0x74] ss:$48 sps:$4 sm:$0xff]  }
  0x13   :  { %963 = vmatpush1.bf16.msra.mxu0 %v1396_v18  ;;  %1004 = vmatpush1.bf16.msra.mxu1 %v1397_v19  ;;  %v1453_v56 = vld [vmem:[%s2105_s1 + $0x7c] ss:$48 sps:$4 sm:$0xff]   ;;  %v1448_v57 = vld [vmem:[%s2105_s1 + $0x70] ss:$48 sps:$4 sm:$0xff]   ;;  %v1451_v58 = vld [vmem:[%s2105_s1 + $0x78] ss:$48 sps:$4 sm:$0xff]  }
  0x14   :  { %964 = vmatprep.subr.bf16.mxu0 %v1398_v20  ;;  %1005 = vmatprep.subr.bf16.mxu1 %v1400_v21  ;;  %v1456_v59 = vld [vmem:[%s2105_s1 + $0xd4] ss:$48 sps:$4 sm:$0xff]   ;;  %v1459_v60 = vld [vmem:[%s2105_s1 + $0xdc] ss:$48 sps:$4 sm:$0xff]   ;;  %v1454_v61 = vld [vmem:[%s2105_s1 + $0xd0] ss:$48 sps:$4 sm:$0xff]  }
  0x15   :  { %v1457_v62 = vld [vmem:[%s2105_s1 + $0xd8] ss:$48 sps:$4 sm:$0xff]   ;;  %v1462_v63 = vld [vmem:[%s2105_s1 + $0x134] ss:$48 sps:$4 sm:$0xff]   ;;  %v1465_v0 = vld [vmem:[%s2105_s1 + $0x13c] ss:$48 sps:$4 sm:$0xff]  }
  0x16   :  { %v1460_v1 = vld [vmem:[%s2105_s1 + $0x130] ss:$48 sps:$4 sm:$0xff]   ;;  %v1463_v2 = vld [vmem:[%s2105_s1 + $0x138] ss:$48 sps:$4 sm:$0xff]   ;;  %v1468_v3 = vld [vmem:[%s2105_s1 + $0x194] ss:$48 sps:$4 sm:$0xff]  }
  0x17   :  { %965 = vmatpush1.bf16.msra.mxu0 %v1402_v22  ;;  %1006 = vmatpush1.bf16.msra.mxu1 %v1403_v23  ;;  %v1471_v4 = vld [vmem:[%s2105_s1 + $0x19c] ss:$48 sps:$4 sm:$0xff]   ;;  %v1466_v5 = vld [vmem:[%s2105_s1 + $0x190] ss:$48 sps:$4 sm:$0xff]   ;;  %v1469_v6 = vld [vmem:[%s2105_s1 + $0x198] ss:$48 sps:$4 sm:$0xff]  }
  0x18   :  { %966 = vmatprep.subr.bf16.mxu0 %v1404_v24  ;;  %1007 = vmatprep.subr.bf16.mxu1 %v1406_v25  ;;  %v1474_v7 = vld [vmem:[%s2105_s1 + $0x1f4] ss:$48 sps:$4 sm:$0xff]   ;;  %v1477_v8 = vld [vmem:[%s2105_s1 + $0x1fc] ss:$48 sps:$4 sm:$0xff]   ;;  %v1472_v9 = vld [vmem:[%s2105_s1 + $0x1f0] ss:$48 sps:$4 sm:$0xff]  }
  0x19   :  { %v1475_v10 = vld [vmem:[%s2105_s1 + $0x1f8] ss:$48 sps:$4 sm:$0xff]   ;;  %v1480_v11 = vld [vmem:[%s2105_s1 + $0x254] ss:$48 sps:$4 sm:$0xff]   ;;  %v1483_v12 = vld [vmem:[%s2105_s1 + $0x25c] ss:$48 sps:$4 sm:$0xff]  }
  0x1a   :  { %v1478_v13 = vld [vmem:[%s2105_s1 + $0x250] ss:$48 sps:$4 sm:$0xff]   ;;  %v1481_v14 = vld [vmem:[%s2105_s1 + $0x258] ss:$48 sps:$4 sm:$0xff]   ;;  %v1486_v15 = vld [vmem:[%s2105_s1 + $0x2b4] ss:$48 sps:$4 sm:$0xff]  }
  0x1b   :  { %967 = vmatpush1.bf16.msra.mxu0 %v1408_v26  ;;  %1008 = vmatpush1.bf16.msra.mxu1 %v1409_v27  ;;  %v1489_v16 = vld [vmem:[%s2105_s1 + $0x2bc] ss:$48 sps:$4 sm:$0xff]   ;;  %v1484_v17 = vld [vmem:[%s2105_s1 + $0x2b0] ss:$48 sps:$4 sm:$0xff]   ;;  %v1487_v18 = vld [vmem:[%s2105_s1 + $0x2b8] ss:$48 sps:$4 sm:$0xff]  }
  0x1c   :  { %968 = vmatprep.subr.bf16.mxu0 %v1410_v28  ;;  %1009 = vmatprep.subr.bf16.mxu1 %v1412_v29  ;;  %v1492_v19 = vld [vmem:[%s2105_s1 + $0x314] ss:$48 sps:$4 sm:$0xff]   ;;  %v1495_v20 = vld [vmem:[%s2105_s1 + $0x31c] ss:$48 sps:$4 sm:$0xff]   ;;  %v1490_v21 = vld [vmem:[%s2105_s1 + $0x310] ss:$48 sps:$4 sm:$0xff]  }
  0x1d   :  { %v1493_v22 = vld [vmem:[%s2105_s1 + $0x318] ss:$48 sps:$4 sm:$0xff]   ;;  %v1498_v23 = vld [vmem:[%s2105_s1 + $0x374] ss:$48 sps:$4 sm:$0xff]   ;;  %v1501_v24 = vld [vmem:[%s2105_s1 + $0x37c] ss:$48 sps:$4 sm:$0xff]  }
  0x1e   :  { %v1496_v25 = vld [vmem:[%s2105_s1 + $0x370] ss:$48 sps:$4 sm:$0xff]   ;;  %v1499_v26 = vld [vmem:[%s2105_s1 + $0x378] ss:$48 sps:$4 sm:$0xff]   ;;  %v1504_v27 = vld [vmem:[%s2105_s1 + $0x3d4] ss:$48 sps:$4 sm:$0xff]  }
  0x1f   :  { %969 = vmatpush1.bf16.msra.mxu0 %v1414_v30  ;;  %1010 = vmatpush1.bf16.msra.mxu1 %v1415_v31  ;;  %v1507_v28 = vld [vmem:[%s2105_s1 + $0x3dc] ss:$48 sps:$4 sm:$0xff]   ;;  %v1502_v29 = vld [vmem:[%s2105_s1 + $0x3d0] ss:$48 sps:$4 sm:$0xff]   ;;  %v1505_v30 = vld [vmem:[%s2105_s1 + $0x3d8] ss:$48 sps:$4 sm:$0xff]  }
  0x20   :  { %970 = vmatprep.subr.bf16.mxu0 %v1416_v32  ;;  %1011 = vmatprep.subr.bf16.mxu1 %v1418_v33  ;;  %v1510_v31 = vld [vmem:[%s2105_s1 + $0x434] ss:$48 sps:$4 sm:$0xff]   ;;  %v1513_v32 = vld [vmem:[%s2105_s1 + $0x43c] ss:$48 sps:$4 sm:$0xff]   ;;  %v1508_v33 = vld [vmem:[%s2105_s1 + $0x430] ss:$48 sps:$4 sm:$0xff]  }
  0x21   :  { %v1519_v36 = vld [vmem:[%s2105_s1 + $0x2c] ss:$48 sps:$4 sm:$0xff]  }
  0x23   :  { %971 = vmatpush1.bf16.msra.mxu0 %v1420_v34  ;;  %1012 = vmatpush1.bf16.msra.mxu1 %v1421_v35  ;;  %v1511_v34 = vld [vmem:[%s2105_s1 + $0x438] ss:$48 sps:$4 sm:$0xff]   ;;  %v1516_v35 = vld [vmem:[%s2105_s1 + $0x24] ss:$48 sps:$4 sm:$0xff]  }
  0x24   :  { %972 = vmatprep.subr.bf16.mxu0 %v1422_v37  ;;  %1013 = vmatprep.subr.bf16.mxu1 %v1424_v38  ;;  %v1514_v37 = vld [vmem:[%s2105_s1 + $0x20] ss:$48 sps:$4 sm:$0xff]   ;;  %v1517_v38 = vld [vmem:[%s2105_s1 + $0x28] ss:$48 sps:$4 sm:$0xff]  }
  0x27   :  { %973 = vmatpush1.bf16.msra.mxu0 %v1426_v40  ;;  %1014 = vmatpush1.bf16.msra.mxu1 %v1427_v41  ;;  %v1522_v40 = vld [vmem:[%s2105_s1 + $0x84] ss:$48 sps:$4 sm:$0xff]   ;;  %v1525_v41 = vld [vmem:[%s2105_s1 + $0x8c] ss:$48 sps:$4 sm:$0xff]  }
  0x28   :  { %974 = vmatprep.subr.bf16.mxu0 %v1428_v42  ;;  %1015 = vmatprep.subr.bf16.mxu1 %v1430_v43  ;;  %v1520_v42 = vld [vmem:[%s2105_s1 + $0x80] ss:$48 sps:$4 sm:$0xff]   ;;  %v1523_v43 = vld [vmem:[%s2105_s1 + $0x88] ss:$48 sps:$4 sm:$0xff]  }
  0x2b   :  { %975 = vmatpush1.bf16.msra.mxu0 %v1432_v44  ;;  %1016 = vmatpush1.bf16.msra.mxu1 %v1433_v45  ;;  %v1528_v44 = vld [vmem:[%s2105_s1 + $0xe4] ss:$48 sps:$4 sm:$0xff]   ;;  %v1531_v45 = vld [vmem:[%s2105_s1 + $0xec] ss:$48 sps:$4 sm:$0xff]  }
  0x2c   :  { %976 = vmatprep.subr.bf16.mxu0 %v1434_v46  ;;  %1017 = vmatprep.subr.bf16.mxu1 %v1436_v47  ;;  %v1526_v46 = vld [vmem:[%s2105_s1 + $0xe0] ss:$48 sps:$4 sm:$0xff]   ;;  %v1529_v47 = vld [vmem:[%s2105_s1 + $0xe8] ss:$48 sps:$4 sm:$0xff]  }
  0x2f   :  { %977 = vmatpush1.bf16.msra.mxu0 %v1438_v48  ;;  %1018 = vmatpush1.bf16.msra.mxu1 %v1439_v49  ;;  %v1534_v48 = vld [vmem:[%s2105_s1 + $0x144] ss:$48 sps:$4 sm:$0xff]   ;;  %v1532_v49 = vld [vmem:[%s2105_s1 + $0x140] ss:$48 sps:$4 sm:$0xff]  }
  0x30   :  { %1036 = vmatprep.subr.bf16.mxu0 %v1444_v50  ;;  %1077 = vmatprep.subr.bf16.mxu1 %v1447_v51  ;;  %v1535_v50 = vld [vmem:[%s2105_s1 + $0x148] ss:$48 sps:$4 sm:$0xff]   ;;  %v1540_v51 = vld [vmem:[%s2105_s1 + $0x1a4] ss:$48 sps:$4 sm:$0xff]  }
  0x32   :  { %987 = vmatmul.mubr.bf16.vlgmr.msra.gmra.mrb[0].mxu0 %v1765_v52  ;;  %1028 = vmatmul.mubr.bf16.vlgmr.msra.gmra.mrb[0].mxu1 %v1765_v52 }
  0x33   :  { %1037 = vmatpush1.bf16.msra.mxu0 %v1442_v53  ;;  %1078 = vmatpush1.bf16.msra.mxu1 %v1445_v54  ;;  %v1543_v53 = vld [vmem:[%s2105_s1 + $0x1ac] ss:$48 sps:$4 sm:$0xff]   ;;  %v1538_v54 = vld [vmem:[%s2105_s1 + $0x1a0] ss:$48 sps:$4 sm:$0xff]  }
  0x34   :  { %1038 = vmatprep.subr.bf16.mxu0 %v1450_v55  ;;  %1079 = vmatprep.subr.bf16.mxu1 %v1453_v56  ;;  %v1541_v55 = vld [vmem:[%s2105_s1 + $0x1a8] ss:$48 sps:$4 sm:$0xff]   ;;  %v1546_v56 = vld [vmem:[%s2105_s1 + $0x204] ss:$48 sps:$4 sm:$0xff]  }
  0x35   :  { %1364 = vmatprep.mubr.msk.bf16.mxu0 %vm950_vm0, %v1723_v39  ;;  %1365 = vmatprep.mubr.msk.bf16.mxu1 %vm950_vm0, %v1723_v39 }
  0x37   :  { %1039 = vmatpush1.bf16.msra.mxu0 %v1448_v57  ;;  %1080 = vmatpush1.bf16.msra.mxu1 %v1451_v58  ;;  %v1549_v57 = vld [vmem:[%s2105_s1 + $0x20c] ss:$48 sps:$4 sm:$0xff]   ;;  %v1544_v58 = vld [vmem:[%s2105_s1 + $0x200] ss:$48 sps:$4 sm:$0xff]  }
  0x38   :  { %1040 = vmatprep.subr.bf16.mxu0 %v1456_v59  ;;  %1081 = vmatprep.subr.bf16.mxu1 %v1459_v60  ;;  %v1547_v59 = vld [vmem:[%s2105_s1 + $0x208] ss:$48 sps:$4 sm:$0xff]   ;;  %v1552_v60 = vld [vmem:[%s2105_s1 + $0x264] ss:$48 sps:$4 sm:$0xff]  }
  0x3b   :  { %1041 = vmatpush1.bf16.msra.mxu0 %v1454_v61  ;;  %1082 = vmatpush1.bf16.msra.mxu1 %v1457_v62  ;;  %v1555_v61 = vld [vmem:[%s2105_s1 + $0x26c] ss:$48 sps:$4 sm:$0xff]   ;;  %v1550_v62 = vld [vmem:[%s2105_s1 + $0x260] ss:$48 sps:$4 sm:$0xff]  }
  0x3c   :  { %1042 = vmatprep.subr.bf16.mxu0 %v1462_v63  ;;  %1083 = vmatprep.subr.bf16.mxu1 %v1465_v0  ;;  %v1553_v63 = vld [vmem:[%s2105_s1 + $0x268] ss:$48 sps:$4 sm:$0xff]   ;;  %v1558_v0 = vld [vmem:[%s2105_s1 + $0x2c4] ss:$48 sps:$4 sm:$0xff]  }
  0x3f   :  { %1043 = vmatpush1.bf16.msra.mxu0 %v1460_v1  ;;  %1084 = vmatpush1.bf16.msra.mxu1 %v1463_v2  ;;  %v1561_v1 = vld [vmem:[%s2105_s1 + $0x2cc] ss:$48 sps:$4 sm:$0xff]   ;;  %v1556_v2 = vld [vmem:[%s2105_s1 + $0x2c0] ss:$48 sps:$4 sm:$0xff]  }
  0x40   :  { %1044 = vmatprep.subr.bf16.mxu0 %v1468_v3  ;;  %1085 = vmatprep.subr.bf16.mxu1 %v1471_v4  ;;  %v1559_v3 = vld [vmem:[%s2105_s1 + $0x2c8] ss:$48 sps:$4 sm:$0xff]   ;;  %v1564_v4 = vld [vmem:[%s2105_s1 + $0x324] ss:$48 sps:$4 sm:$0xff]  }
  0x43   :  { %1045 = vmatpush1.bf16.msra.mxu0 %v1466_v5  ;;  %1086 = vmatpush1.bf16.msra.mxu1 %v1469_v6  ;;  %v1567_v5 = vld [vmem:[%s2105_s1 + $0x32c] ss:$48 sps:$4 sm:$0xff]   ;;  %v1562_v6 = vld [vmem:[%s2105_s1 + $0x320] ss:$48 sps:$4 sm:$0xff]  }
  0x44   :  { %1046 = vmatprep.subr.bf16.mxu0 %v1474_v7  ;;  %1087 = vmatprep.subr.bf16.mxu1 %v1477_v8  ;;  %v1565_v7 = vld [vmem:[%s2105_s1 + $0x328] ss:$48 sps:$4 sm:$0xff]   ;;  %v1570_v8 = vld [vmem:[%s2105_s1 + $0x384] ss:$48 sps:$4 sm:$0xff]  }
  0x47   :  { %1047 = vmatpush1.bf16.msra.mxu0 %v1472_v9  ;;  %1088 = vmatpush1.bf16.msra.mxu1 %v1475_v10  ;;  %v1573_v9 = vld [vmem:[%s2105_s1 + $0x38c] ss:$48 sps:$4 sm:$0xff]   ;;  %v1568_v10 = vld [vmem:[%s2105_s1 + $0x380] ss:$48 sps:$4 sm:$0xff]  }
  0x48   :  { %1048 = vmatprep.subr.bf16.mxu0 %v1480_v11  ;;  %1089 = vmatprep.subr.bf16.mxu1 %v1483_v12  ;;  %v1571_v11 = vld [vmem:[%s2105_s1 + $0x388] ss:$48 sps:$4 sm:$0xff]   ;;  %v1576_v12 = vld [vmem:[%s2105_s1 + $0x3e4] ss:$48 sps:$4 sm:$0xff]  }
  0x4b   :  { %1049 = vmatpush1.bf16.msra.mxu0 %v1478_v13  ;;  %1090 = vmatpush1.bf16.msra.mxu1 %v1481_v14  ;;  %v1579_v13 = vld [vmem:[%s2105_s1 + $0x3ec] ss:$48 sps:$4 sm:$0xff]   ;;  %v1574_v14 = vld [vmem:[%s2105_s1 + $0x3e0] ss:$48 sps:$4 sm:$0xff]  }
  0x4c   :  { %1050 = vmatprep.subr.bf16.mxu0 %v1486_v15  ;;  %1091 = vmatprep.subr.bf16.mxu1 %v1489_v16  ;;  %v1577_v15 = vld [vmem:[%s2105_s1 + $0x3e8] ss:$48 sps:$4 sm:$0xff]   ;;  %v1582_v16 = vld [vmem:[%s2105_s1 + $0x444] ss:$48 sps:$4 sm:$0xff]  }
  0x4f   :  { %1051 = vmatpush1.bf16.msra.mxu0 %v1484_v17  ;;  %1092 = vmatpush1.bf16.msra.mxu1 %v1487_v18  ;;  %v1585_v17 = vld [vmem:[%s2105_s1 + $0x44c] ss:$48 sps:$4 sm:$0xff]   ;;  %v1580_v18 = vld [vmem:[%s2105_s1 + $0x440] ss:$48 sps:$4 sm:$0xff]  }
  0x50   :  { %1052 = vmatprep.subr.bf16.mxu0 %v1492_v19  ;;  %1093 = vmatprep.subr.bf16.mxu1 %v1495_v20  ;;  %v1583_v19 = vld [vmem:[%s2105_s1 + $0x448] ss:$48 sps:$4 sm:$0xff]   ;;  %v164_v20 = vlaneseq }
  0x53   :  { %1053 = vmatpush1.bf16.msra.mxu0 %v1490_v21  ;;  %1094 = vmatpush1.bf16.msra.mxu1 %v1493_v22  ;;  %v165_v21 = vshrl.u32 %v164_v20, 7 }
  0x54   :  { %1054 = vmatprep.subr.bf16.mxu0 %v1498_v23  ;;  %1095 = vmatprep.subr.bf16.mxu1 %v1501_v24  ;;  %v160_v24 = vld [vmem:[%s2107_s2] sm:$0xff] }
  0x55   :  { %v166_v22 = vsub.s32 0, %v165_v21  ;;  %v174_v23 = vsub.s32 2, %v165_v21 }
  0x57   :  { %1055 = vmatpush1.bf16.msra.mxu0 %v1496_v25  ;;  %1096 = vmatpush1.bf16.msra.mxu1 %v1499_v26  ;;  %v170_v25 = vsub.s32 1, %v165_v21  ;;  %v178_v26 = vsub.s32 3, %v165_v21 }
  0x58   :  { %1056 = vmatprep.subr.bf16.mxu0 %v1504_v27  ;;  %1097 = vmatprep.subr.bf16.mxu1 %v1507_v28  ;;  %v167_v27 = vrot.slane %v160_v24, %v166_v22  ;;  %v175_v28 = vrot.slane %v160_v24, %v174_v23 }
  0x5b   :  { %1057 = vmatpush1.bf16.msra.mxu0 %v1502_v29  ;;  %1098 = vmatpush1.bf16.msra.mxu1 %v1505_v30  ;;  %v171_v29 = vrot.slane %v160_v24, %v170_v25  ;;  %v179_v30 = vrot.slane %v160_v24, %v178_v26 }
  0x5c   :  { %1058 = vmatprep.subr.bf16.mxu0 %v1510_v31  ;;  %1099 = vmatprep.subr.bf16.mxu1 %v1513_v32 }
  0x5f   :  { %1059 = vmatpush1.bf16.msra.mxu0 %v1508_v33  ;;  %1100 = vmatpush1.bf16.msra.mxu1 %v1511_v34 }
  0x60   :  { %1118 = vmatprep.subr.bf16.mxu0 %v1516_v35  ;;  %1159 = vmatprep.subr.bf16.mxu1 %v1519_v36 }
  0x62   :  { %1069 = vmatmul.mubr.bf16.vlgmr.msra.gmra.mrb[4].mxu0 %v1765_v52  ;;  %1110 = vmatmul.mubr.bf16.vlgmr.msra.gmra.mrb[4].mxu1 %v1765_v52 }
  0x63   :  { %1119 = vmatpush1.bf16.msra.mxu0 %v1514_v37  ;;  %1160 = vmatpush1.bf16.msra.mxu1 %v1517_v38 }
  0x64   :  { %1120 = vmatprep.subr.bf16.mxu0 %v1522_v40  ;;  %1161 = vmatprep.subr.bf16.mxu1 %v1525_v41 }
  0x65   :  { %1366 = vmatprep.mubr.msk.bf16.mxu0 %vm950_vm0, %v1723_v39  ;;  %1367 = vmatprep.mubr.msk.bf16.mxu1 %vm950_vm0, %v1723_v39  ;;  %v1537_v39 = vld [vmem:[%s2105_s1 + $0x14c] ss:$48 sps:$4 sm:$0xff]  }
  0x67   :  { %1121 = vmatpush1.bf16.msra.mxu0 %v1520_v42  ;;  %1162 = vmatpush1.bf16.msra.mxu1 %v1523_v43  ;;  %v182_v43 = vsub.s32 4, %v165_v21 }
  0x68   :  { %1122 = vmatprep.subr.bf16.mxu0 %v1528_v44  ;;  %1163 = vmatprep.subr.bf16.mxu1 %v1531_v45  ;;  %v190_v44 = vsub.s32 6, %v165_v21  ;;  %v186_v45 = vsub.s32 5, %v165_v21 }
  0x6b   :  { %1123 = vmatpush1.bf16.msra.mxu0 %v1526_v46  ;;  %1164 = vmatpush1.bf16.msra.mxu1 %v1529_v47  ;;  %v194_v46 = vsub.s32 7, %v165_v21  ;;  %v183_v47 = vrot.slane %v160_v24, %v182_v43 }
  0x6c   :  { %1124 = vmatprep.subr.bf16.mxu0 %v1534_v48  ;;  %1165 = vmatprep.subr.bf16.mxu1 %v1537_v39  ;;  %v191_v48 = vrot.slane %v160_v24, %v190_v44  ;;  %v187_v39 = vrot.slane %v160_v24, %v186_v45 }
  0x6f   :  { %1125 = vmatpush1.bf16.msra.mxu0 %v1532_v49  ;;  %1166 = vmatpush1.bf16.msra.mxu1 %v1535_v50  ;;  %v195_v49 = vrot.slane %v160_v24, %v194_v46 }
  0x70   :  { %1126 = vmatprep.subr.bf16.mxu0 %v1540_v51  ;;  %1167 = vmatprep.subr.bf16.mxu1 %v1543_v53 }
  0x73   :  { %1127 = vmatpush1.bf16.msra.mxu0 %v1538_v54  ;;  %1168 = vmatpush1.bf16.msra.mxu1 %v1541_v55 }
  0x74   :  { %1128 = vmatprep.subr.bf16.mxu0 %v1546_v56  ;;  %1169 = vmatprep.subr.bf16.mxu1 %v1549_v57 }
  0x77   :  { %1129 = vmatpush1.bf16.msra.mxu0 %v1544_v58  ;;  %1170 = vmatpush1.bf16.msra.mxu1 %v1547_v59 }
  0x78   :  { %1130 = vmatprep.subr.bf16.mxu0 %v1552_v60  ;;  %1171 = vmatprep.subr.bf16.mxu1 %v1555_v61 }
  0x7b   :  { %1131 = vmatpush1.bf16.msra.mxu0 %v1550_v62  ;;  %1172 = vmatpush1.bf16.msra.mxu1 %v1553_v63  ;;  %v161_v63 = vld [vmem:[%s2107_s2 + $0x8] sm:$0xf] }
  0x7c   :  { %1132 = vmatprep.subr.bf16.mxu0 %v1558_v0  ;;  %1173 = vmatprep.subr.bf16.mxu1 %v1561_v1  ;;  %v199_v0 = vrot.slane %v161_v63, %v166_v22  ;;  %v207_v1 = vrot.slane %v161_v63, %v174_v23 }
  0x7f   :  { %1133 = vmatpush1.bf16.msra.mxu0 %v1556_v2  ;;  %1174 = vmatpush1.bf16.msra.mxu1 %v1559_v3  ;;  %v203_v2 = vrot.slane %v161_v63, %v170_v25  ;;  %v211_v3 = vrot.slane %v161_v63, %v178_v26 }
  0x80   :  { %1134 = vmatprep.subr.bf16.mxu0 %v1564_v4  ;;  %1175 = vmatprep.subr.bf16.mxu1 %v1567_v5 }
  0x83   :  { %1135 = vmatpush1.bf16.msra.mxu0 %v1562_v6  ;;  %1176 = vmatpush1.bf16.msra.mxu1 %v1565_v7 }
  0x84   :  { %1136 = vmatprep.subr.bf16.mxu0 %v1570_v8  ;;  %1177 = vmatprep.subr.bf16.mxu1 %v1573_v9 }
  0x87   :  { %1137 = vmatpush1.bf16.msra.mxu0 %v1568_v10  ;;  %1178 = vmatpush1.bf16.msra.mxu1 %v1571_v11 }
  0x88   :  { %1138 = vmatprep.subr.bf16.mxu0 %v1576_v12  ;;  %1179 = vmatprep.subr.bf16.mxu1 %v1579_v13 }
  0x8b   :  { %1139 = vmatpush1.bf16.msra.mxu0 %v1574_v14  ;;  %1180 = vmatpush1.bf16.msra.mxu1 %v1577_v15 }
  0x8c   :  { %1140 = vmatprep.subr.bf16.mxu0 %v1582_v16  ;;  %1181 = vmatprep.subr.bf16.mxu1 %v1585_v17 }
  0x8f   :  { %1141 = vmatpush1.bf16.msra.mxu0 %v1580_v18  ;;  %1182 = vmatpush1.bf16.msra.mxu1 %v1583_v19 }
  0x92   :  { %1151 = vmatmul.mubr.bf16.vlgmr.msra.gmra.mrb[8].mxu0 %v1765_v52  ;;  %1192 = vmatmul.mubr.bf16.vlgmr.msra.gmra.mrb[8].mxu1 %v1765_v52 }
 0x105   :  { %v988_v31 = vpop.f32.mrb[0].mxu0  ;;  %v1029_v32 = vpop.f32.mrb[0].mxu1 }
 0x106   :  { %v989_v33 = vadd.f32 %v988_v31, %v167_v27  ;;  %v1030_v34 = vadd.f32 %v1029_v32, %v175_v28  ;;  %v990_v35 = vpop.f32.mrb[1].mxu0  ;;  %v1031_v52 = vpop.f32.mrb[1].mxu1 }
 0x107   :  { %v991_v36 = vadd.f32 %v990_v35, %v171_v29  ;;  %v1032_v37 = vadd.f32 %v1031_v52, %v179_v30  ;;  %v992_v38 = vpop.f32.mrb[2].mxu0  ;;  %v1033_v40 = vpop.f32.mrb[2].mxu1 }
 0x108   :  { %1200 = vst [vmem:[%s2108_s3] sm:$0xff] %v989_v33  ;;  %1202 = vst [vmem:[%s2108_s3 + $0x10] sm:$0xff] %v1030_v34  ;;  %v993_v41 = vpop.f32.mrb[3].mxu0  ;;  %v1034_v42 = vpop.f32.mrb[3].mxu1 }
 0x109   :  { %1201 = vst [vmem:[%s2108_s3 + $0x8] sm:$0xff] %v991_v36  ;;  %1203 = vst [vmem:[%s2108_s3 + $0x18] sm:$0xff] %v1032_v37 }
 0x135   :  { %v1070_v50 = vpop.f32.mrb[4].mxu0  ;;  %v1111_v51 = vpop.f32.mrb[4].mxu1 }
 0x136   :  { %v1071_v53 = vadd.f32 %v1070_v50, %v183_v47  ;;  %v1112_v54 = vadd.f32 %v1111_v51, %v191_v48  ;;  %v1072_v55 = vpop.f32.mrb[5].mxu0  ;;  %v1113_v56 = vpop.f32.mrb[5].mxu1 }
 0x137   :  { %v1073_v57 = vadd.f32 %v1072_v55, %v187_v39  ;;  %v1114_v58 = vadd.f32 %v1113_v56, %v195_v49  ;;  %v1074_v59 = vpop.f32.mrb[6].mxu0  ;;  %v1115_v60 = vpop.f32.mrb[6].mxu1 }
 0x138   :  { %1204 = vst [vmem:[%s2108_s3 + $0x20] sm:$0xff] %v1071_v53  ;;  %1206 = vst [vmem:[%s2108_s3 + $0x30] sm:$0xff] %v1112_v54  ;;  %v1075_v61 = vpop.f32.mrb[7].mxu0  ;;  %v1116_v62 = vpop.f32.mrb[7].mxu1 }
 0x139   :  { %1205 = vst [vmem:[%s2108_s3 + $0x28] sm:$0xff] %v1073_v57  ;;  %1207 = vst [vmem:[%s2108_s3 + $0x38] sm:$0xff] %v1114_v58 }
 0x165   :  { %v1152_v4 = vpop.f32.mrb[8].mxu0  ;;  %v1193_v5 = vpop.f32.mrb[8].mxu1 }
 0x166   :  { %v1153_v6 = vadd.f32 %v1152_v4, %v199_v0  ;;  %v1194_v7 = vadd.f32 %v1193_v5, %v207_v1  ;;  %v1154_v8 = vpop.f32.mrb[9].mxu0  ;;  %v1195_v9 = vpop.f32.mrb[9].mxu1 }
 0x167   :  { %v1155_v10 = vadd.f32 %v1154_v8, %v203_v2  ;;  %v1196_v11 = vadd.f32 %v1195_v9, %v211_v3  ;;  %v1156_v12 = vpop.f32.mrb[10].mxu0  ;;  %v1197_v13 = vpop.f32.mrb[10].mxu1 }
 0x168   :  { %1208 = vst [vmem:[%s2108_s3 + $0x40] sm:$0xff] %v1153_v6  ;;  %1210 = vst [vmem:[%s2108_s3 + $0x50] sm:$0xff] %v1194_v7  ;;  %v1157_v14 = vpop.f32.mrb[11].mxu0  ;;  %v1198_v15 = vpop.f32.mrb[11].mxu1 }
 0x169   :  { %1209 = vst [vmem:[%s2108_s3 + $0x48] sm:$0xff] %v1155_v10  ;;  %1211 = vst [vmem:[%s2108_s3 + $0x58] sm:$0xff] %v1196_v11 }

// kernel: lipnet_forward.17
= control target key start
LH: loop header
LB: loop body
LE: loop exit
PB: predicated region body
PF: predicated region fallthrough
CT: control target
= control target key end

     0   :  { %s3915_s0 = inlined_call_operand.vmem [shape: f32[4,2,2,768], index: 0, kind: input, shape index: {}]   ;;  %s3916_s1 = inlined_call_operand.vmem [shape: f32[2,256,768], index: 1, kind: input, shape index: {}]   ;;  %s3917_s3 = inlined_call_operand.vmem [shape: f32[4,2,2,256], index: 3, kind: output, shape index: {}]   ;;  %s3918_s2 = inlined_call_operand.vmem [shape: f32[2,1,256], index: 2, kind: input, shape index: {}]  }
   0x1   :  { %v1513_v0 = vld [vmem:[%s3916_s1] sm:$0xff]  ;;  %v1518_v1 = vld [vmem:[%s3916_s1 + $0x8] sm:$0xff]  ;;  %v1523_v2 = vld [vmem:[%s3916_s1 + $0x10] sm:$0xff] }
   0x2   :  { %3920 = vst [vmem:[#allocation2_spill] sm:$0xff] %v1513_v0  ;;  %3921 = vst [vmem:[#allocation3_spill] sm:$0xff] %v1518_v1  ;;  %v1528_v3 = vld [vmem:[%s3916_s1 + $0x18] sm:$0xff]  ;;  %v1533_v4 = vld [vmem:[%s3916_s1 + $0x20] sm:$0xff] }
   0x3   :  { %3922 = vst [vmem:[#allocation4_spill] sm:$0xff] %v1523_v2  ;;  %3923 = vst [vmem:[#allocation5_spill] sm:$0xff] %v1528_v3  ;;  %v1538_v5 = vld [vmem:[%s3916_s1 + $0x28] sm:$0xff]  ;;  %v1543_v6 = vld [vmem:[%s3916_s1 + $0x30] sm:$0xff] }
   0x4   :  { %3924 = vst [vmem:[#allocation6_spill] sm:$0xff] %v1533_v4  ;;  %3925 = vst [vmem:[#allocation7_spill] sm:$0xff] %v1538_v5  ;;  %v1548_v7 = vld [vmem:[%s3916_s1 + $0x38] sm:$0xff]  ;;  %v1553_v8 = vld [vmem:[%s3916_s1 + $0x40] sm:$0xff] }
   0x5   :  { %3926 = vst [vmem:[#allocation8_spill] sm:$0xff] %v1543_v6  ;;  %3927 = vst [vmem:[#allocation9_spill] sm:$0xff] %v1548_v7  ;;  %v1558_v9 = vld [vmem:[%s3916_s1 + $0x48] sm:$0xff]  ;;  %v1563_v10 = vld [vmem:[%s3916_s1 + $0x50] sm:$0xff] }
   0x6   :  { %3928 = vst [vmem:[#allocation10_spill] sm:$0xff] %v1553_v8  ;;  %3929 = vst [vmem:[#allocation11_spill] sm:$0xff] %v1558_v9  ;;  %v1568_v11 = vld [vmem:[%s3916_s1 + $0x58] sm:$0xff]  ;;  %v1573_v12 = vld [vmem:[%s3916_s1 + $0x60] sm:$0xff] }
   0x7   :  { %3930 = vst [vmem:[#allocation12_spill] sm:$0xff] %v1563_v10  ;;  %3931 = vst [vmem:[#allocation13_spill] sm:$0xff] %v1568_v11  ;;  %v1578_v13 = vld [vmem:[%s3916_s1 + $0x68] sm:$0xff]  ;;  %v1583_v14 = vld [vmem:[%s3916_s1 + $0x70] sm:$0xff] }
   0x8   :  { %3932 = vst [vmem:[#allocation14_spill] sm:$0xff] %v1573_v12  ;;  %3933 = vst [vmem:[#allocation15_spill] sm:$0xff] %v1578_v13  ;;  %v1588_v15 = vld [vmem:[%s3916_s1 + $0x78] sm:$0xff]  ;;  %v1593_v16 = vld [vmem:[%s3916_s1 + $0x80] sm:$0xff] }
   0x9   :  { %3934 = vst [vmem:[#allocation16_spill] sm:$0xff] %v1583_v14  ;;  %3935 = vst [vmem:[#allocation17_spill] sm:$0xff] %v1588_v15  ;;  %v1598_v17 = vld [vmem:[%s3916_s1 + $0x88] sm:$0xff]  ;;  %v1603_v18 = vld [vmem:[%s3916_s1 + $0x90] sm:$0xff] }
   0xa   :  { %3936 = vst [vmem:[#allocation18_spill] sm:$0xff] %v1593_v16  ;;  %3937 = vst [vmem:[#allocation19_spill] sm:$0xff] %v1598_v17  ;;  %v1608_v19 = vld [vmem:[%s3916_s1 + $0x98] sm:$0xff]  ;;  %v1613_v20 = vld [vmem:[%s3916_s1 + $0xa0] sm:$0xff] }
   0xb   :  { %3938 = vst [vmem:[#allocation20_spill] sm:$0xff] %v1603_v18  ;;  %3939 = vst [vmem:[#allocation21_spill] sm:$0xff] %v1608_v19  ;;  %v1618_v21 = vld [vmem:[%s3916_s1 + $0xa8] sm:$0xff]  ;;  %v1623_v22 = vld [vmem:[%s3916_s1 + $0xb0] sm:$0xff] }
   0xc   :  { %3940 = vst [vmem:[#allocation22_spill] sm:$0xff] %v1613_v20  ;;  %3941 = vst [vmem:[#allocation23_spill] sm:$0xff] %v1618_v21  ;;  %v1628_v23 = vld [vmem:[%s3916_s1 + $0xb8] sm:$0xff]  ;;  %v1633_v24 = vld [vmem:[%s3916_s1 + $0xc0] sm:$0xff] }
   0xd   :  { %3942 = vst [vmem:[#allocation24_spill] sm:$0xff] %v1623_v22  ;;  %3943 = vst [vmem:[#allocation25_spill] sm:$0xff] %v1628_v23  ;;  %v1638_v25 = vld [vmem:[%s3916_s1 + $0xc8] sm:$0xff]  ;;  %v1643_v26 = vld [vmem:[%s3916_s1 + $0xd0] sm:$0xff] }
   0xe   :  { %3944 = vst [vmem:[#allocation26_spill] sm:$0xff] %v1633_v24  ;;  %v1648_v27 = vld [vmem:[%s3916_s1 + $0xd8] sm:$0xff]  ;;  %v1653_v28 = vld [vmem:[%s3916_s1 + $0xe0] sm:$0xff]  ;;  %v1658_v29 = vld [vmem:[%s3916_s1 + $0xe8] sm:$0xff] }
   0xf   :  { %3945 = vst [vmem:[#allocation27_spill] sm:$0xff] %v1653_v28  ;;  %3946 = vst [vmem:[#allocation28_spill] sm:$0xff] %v1658_v29  ;;  %v1663_v30 = vld [vmem:[%s3916_s1 + $0xf0] sm:$0xff]  ;;  %v1668_v31 = vld [vmem:[%s3916_s1 + $0xf8] sm:$0xff] }
  0x10   :  { %v1673_v32 = vld [vmem:[%s3916_s1 + $0x100] sm:$0xff]  ;;  %v1678_v33 = vld [vmem:[%s3916_s1 + $0x108] sm:$0xff]  ;;  %v1683_v34 = vld [vmem:[%s3916_s1 + $0x110] sm:$0xff] }
  0x11   :  { %3947 = vst [vmem:[#allocation29_spill] sm:$0xff] %v1683_v34  ;;  %v1688_v35 = vld [vmem:[%s3916_s1 + $0x118] sm:$0xff]  ;;  %v1693_v36 = vld [vmem:[%s3916_s1 + $0x120] sm:$0xff]  ;;  %v1698_v37 = vld [vmem:[%s3916_s1 + $0x128] sm:$0xff] }
  0x12   :  { %3948 = vst [vmem:[#allocation30_spill] sm:$0xff] %v1688_v35  ;;  %v1703_v38 = vld [vmem:[%s3916_s1 + $0x130] sm:$0xff]  ;;  %v1708_v39 = vld [vmem:[%s3916_s1 + $0x138] sm:$0xff]  ;;  %v1713_v40 = vld [vmem:[%s3916_s1 + $0x140] sm:$0xff] }
  0x13   :  { %3949 = vst [vmem:[#allocation31_spill] sm:$0xff] %v1713_v40  ;;  %v1718_v41 = vld [vmem:[%s3916_s1 + $0x148] sm:$0xff]  ;;  %v1723_v42 = vld [vmem:[%s3916_s1 + $0x150] sm:$0xff]  ;;  %v1728_v43 = vld [vmem:[%s3916_s1 + $0x158] sm:$0xff] }
  0x14   :  { %3950 = vst [vmem:[#allocation32_spill] sm:$0xff] %v1718_v41  ;;  %v1733_v44 = vld [vmem:[%s3916_s1 + $0x160] sm:$0xff]  ;;  %v1738_v45 = vld [vmem:[%s3916_s1 + $0x168] sm:$0xff]  ;;  %v1743_v46 = vld [vmem:[%s3916_s1 + $0x170] sm:$0xff] }
  0x15   :  { %3951 = vst [vmem:[#allocation33_spill] sm:$0xff] %v1743_v46  ;;  %v1748_v47 = vld [vmem:[%s3916_s1 + $0x178] sm:$0xff]  ;;  %v1753_v48 = vld [vmem:[%s3916_s1 + $0x180] sm:$0xff]  ;;  %v1758_v49 = vld [vmem:[%s3916_s1 + $0x188] sm:$0xff] }
  0x16   :  { %3952 = vst [vmem:[#allocation34_spill] sm:$0xff] %v1748_v47  ;;  %v1763_v50 = vld [vmem:[%s3916_s1 + $0x190] sm:$0xff]  ;;  %v1768_v51 = vld [vmem:[%s3916_s1 + $0x198] sm:$0xff]  ;;  %v1773_v52 = vld [vmem:[%s3916_s1 + $0x1a0] sm:$0xff] }
  0x17   :  { %3953 = vst [vmem:[#allocation35_spill] sm:$0xff] %v1773_v52  ;;  %v1778_v53 = vld [vmem:[%s3916_s1 + $0x1a8] sm:$0xff]  ;;  %v1783_v54 = vld [vmem:[%s3916_s1 + $0x1b0] sm:$0xff]  ;;  %v1788_v55 = vld [vmem:[%s3916_s1 + $0x1b8] sm:$0xff] }
  0x18   :  { %3954 = vst [vmem:[#allocation36_spill] sm:$0xff] %v1778_v53  ;;  %v1793_v56 = vld [vmem:[%s3916_s1 + $0x1c0] sm:$0xff]  ;;  %v1798_v57 = vld [vmem:[%s3916_s1 + $0x1c8] sm:$0xff]  ;;  %v1803_v58 = vld [vmem:[%s3916_s1 + $0x1d0] sm:$0xff] }
  0x19   :  { %3955 = vst [vmem:[#allocation37_spill] sm:$0xff] %v1803_v58  ;;  %v1808_v59 = vld [vmem:[%s3916_s1 + $0x1d8] sm:$0xff]  ;;  %v1813_v60 = vld [vmem:[%s3916_s1 + $0x1e0] sm:$0xff]  ;;  %v1818_v61 = vld [vmem:[%s3916_s1 + $0x1e8] sm:$0xff] }
  0x1a   :  { %3956 = vst [vmem:[#allocation38_spill] sm:$0xff] %v1808_v59  ;;  %v1823_v62 = vld [vmem:[%s3916_s1 + $0x1f0] sm:$0xff]  ;;  %v1828_v63 = vld [vmem:[%s3916_s1 + $0x1f8] sm:$0xff]  ;;  %v1833_v58 = vld [vmem:[%s3916_s1 + $0x200] sm:$0xff] }
  0x1b   :  { %3957 = vst [vmem:[#allocation39_spill] sm:$0xff] %v1833_v58  ;;  %v1838_v52 = vld [vmem:[%s3916_s1 + $0x208] sm:$0xff]  ;;  %v1843_v59 = vld [vmem:[%s3916_s1 + $0x210] sm:$0xff]  ;;  %v1848_v53 = vld [vmem:[%s3916_s1 + $0x218] sm:$0xff] }
  0x1c   :  { %3958 = vst [vmem:[#allocation40_spill] sm:$0xff] %v1838_v52  ;;  %v1853_v46 = vld [vmem:[%s3916_s1 + $0x220] sm:$0xff]  ;;  %v1858_v58 = vld [vmem:[%s3916_s1 + $0x228] sm:$0xff]  ;;  %v1863_v52 = vld [vmem:[%s3916_s1 + $0x230] sm:$0xff] }
  0x1d   :  { %3959 = vst [vmem:[#allocation41_spill] sm:$0xff] %v1863_v52  ;;  %v1868_v40 = vld [vmem:[%s3916_s1 + $0x238] sm:$0xff]  ;;  %v1873_v47 = vld [vmem:[%s3916_s1 + $0x240] sm:$0xff]  ;;  %v1878_v41 = vld [vmem:[%s3916_s1 + $0x248] sm:$0xff] }
  0x1e   :  { %3960 = vst [vmem:[#allocation42_spill] sm:$0xff] %v1868_v40  ;;  %3961 = vst [vmem:[#allocation43_spill] sm:$0xff] %v1873_v47  ;;  %v1883_v34 = vld [vmem:[%s3916_s1 + $0x250] sm:$0xff]  ;;  %v1888_v52 = vld [vmem:[%s3916_s1 + $0x258] sm:$0xff]  ;;  %v3450_v47 = vmov 0.0  }
  0x1f   :  { %3962 = vst [vmem:[#allocation44_spill] sm:$0xff] %v1883_v34  ;;  %v1893_v40 = vld [vmem:[%s3916_s1 + $0x260] sm:$0xff]  ;;  %v1898_v28 = vld [vmem:[%s3916_s1 + $0x268] sm:$0xff]  ;;  %v1903_v35 = vld [vmem:[%s3916_s1 + $0x270] sm:$0xff] }
  0x20   :  { %3963 = vst [vmem:[#allocation45_spill] sm:$0xff] %v1893_v40  ;;  %3964 = vst [vmem:[#allocation46_spill] sm:$0xff] %v1898_v28  ;;  %v1908_v29 = vld [vmem:[%s3916_s1 + $0x278] sm:$0xff]  ;;  %v1913_v22 = vld [vmem:[%s3916_s1 + $0x280] sm:$0xff] }
  0x21   :  { %3965 = vst [vmem:[#allocation47_spill] sm:$0xff] %v1903_v35  ;;  %3966 = vst [vmem:[#allocation48_spill] sm:$0xff] %v1913_v22  ;;  %v1918_v40 = vld [vmem:[%s3916_s1 + $0x288] sm:$0xff]  ;;  %v1923_v28 = vld [vmem:[%s3916_s1 + $0x290] sm:$0xff]  ;;  %v3448_v35 = vmov 0.0  }
  0x22   :  { %3967 = vst [vmem:[#allocation49_spill] sm:$0xff] %v1923_v28  ;;  %v1928_v16 = vld [vmem:[%s3916_s1 + $0x298] sm:$0xff]  ;;  %v1933_v23 = vld [vmem:[%s3916_s1 + $0x2a0] sm:$0xff]  ;;  %v1938_v17 = vld [vmem:[%s3916_s1 + $0x2a8] sm:$0xff] }
  0x23   :  { %3968 = vst [vmem:[#allocation50_spill] sm:$0xff] %v1928_v16  ;;  %3969 = vst [vmem:[#allocation51_spill] sm:$0xff] %v1933_v23  ;;  %v1943_v10 = vld [vmem:[%s3916_s1 + $0x2b0] sm:$0xff]  ;;  %v1948_v28 = vld [vmem:[%s3916_s1 + $0x2b8] sm:$0xff] }
  0x24   :  { %3970 = vst [vmem:[#allocation52_spill] sm:$0xff] %v1938_v17  ;;  %3971 = vst [vmem:[#allocation53_spill] sm:$0xff] %v1943_v10  ;;  %v1953_v16 = vld [vmem:[%s3916_s1 + $0x2c0] sm:$0xff]  ;;  %v1958_v4 = vld [vmem:[%s3916_s1 + $0x2c8] sm:$0xff] }
  0x25   :  { %3972 = vst [vmem:[#allocation54_spill] sm:$0xff] %v1948_v28  ;;  %3973 = vst [vmem:[#allocation55_spill] sm:$0xff] %v1953_v16  ;;  %v1963_v11 = vld [vmem:[%s3916_s1 + $0x2d0] sm:$0xff]  ;;  %v1968_v5 = vld [vmem:[%s3916_s1 + $0x2d8] sm:$0xff] }
  0x26   :  { %3974 = vst [vmem:[#allocation56_spill] sm:$0xff] %v1958_v4  ;;  %3975 = vst [vmem:[#allocation57_spill] sm:$0xff] %v1963_v11  ;;  %v1973_v10 = vld [vmem:[%s3916_s1 + $0x2e0] sm:$0xff]  ;;  %v1978_v16 = vld [vmem:[%s3916_s1 + $0x2e8] sm:$0xff] }
  0x27   :  { %3976 = vst [vmem:[#allocation58_spill] sm:$0xff] %v1968_v5  ;;  %3977 = vst [vmem:[#allocation59_spill] sm:$0xff] %v1973_v10  ;;  %v1983_v4 = vld [vmem:[%s3916_s1 + $0x2f0] sm:$0xff]  ;;  %v1988_v11 = vld [vmem:[%s3916_s1 + $0x2f8] sm:$0xff] }
  0x28   :  { %3978 = vst [vmem:[#allocation60_spill] sm:$0xff] %v1978_v16  ;;  %3979 = vst [vmem:[#allocation61_spill] sm:$0xff] %v1983_v4  ;;  %v1993_v23 = vld [vmem:[%s3916_s1 + $0x300] sm:$0xff]  ;;  %v1998_v10 = vld [vmem:[%s3916_s1 + $0x308] sm:$0xff] }
  0x29   :  { %3980 = vst [vmem:[#allocation62_spill] sm:$0xff] %v1988_v11  ;;  %3981 = vst [vmem:[#allocation63_spill] sm:$0xff] %v1993_v23  ;;  %v2003_v16 = vld [vmem:[%s3916_s1 + $0x310] sm:$0xff]  ;;  %v2008_v4 = vld [vmem:[%s3916_s1 + $0x318] sm:$0xff] }
  0x2a   :  { %3982 = vst [vmem:[#allocation64_spill] sm:$0xff] %v1998_v10  ;;  %3983 = vst [vmem:[#allocation65_spill] sm:$0xff] %v2003_v16  ;;  %v2013_v11 = vld [vmem:[%s3916_s1 + $0x320] sm:$0xff]  ;;  %v2018_v23 = vld [vmem:[%s3916_s1 + $0x328] sm:$0xff] }
  0x2b   :  { %3984 = vst [vmem:[#allocation66_spill] sm:$0xff] %v2008_v4  ;;  %3985 = vst [vmem:[#allocation67_spill] sm:$0xff] %v2013_v11  ;;  %v2023_v10 = vld [vmem:[%s3916_s1 + $0x330] sm:$0xff]  ;;  %v2028_v16 = vld [vmem:[%s3916_s1 + $0x338] sm:$0xff] }
  0x2c   :  { %3986 = vst [vmem:[#allocation68_spill] sm:$0xff] %v2018_v23  ;;  %3987 = vst [vmem:[#allocation69_spill] sm:$0xff] %v2023_v10  ;;  %v2033_v4 = vld [vmem:[%s3916_s1 + $0x340] sm:$0xff]  ;;  %v2038_v11 = vld [vmem:[%s3916_s1 + $0x348] sm:$0xff] }
  0x2d   :  { %3988 = vst [vmem:[#allocation70_spill] sm:$0xff] %v2028_v16  ;;  %3989 = vst [vmem:[#allocation71_spill] sm:$0xff] %v2033_v4  ;;  %v2043_v23 = vld [vmem:[%s3916_s1 + $0x350] sm:$0xff]  ;;  %v2048_v10 = vld [vmem:[%s3916_s1 + $0x358] sm:$0xff] }
  0x2e   :  { %3990 = vst [vmem:[#allocation72_spill] sm:$0xff] %v2038_v11  ;;  %3991 = vst [vmem:[#allocation73_spill] sm:$0xff] %v2043_v23  ;;  %v2053_v16 = vld [vmem:[%s3916_s1 + $0x360] sm:$0xff]  ;;  %v2058_v4 = vld [vmem:[%s3916_s1 + $0x368] sm:$0xff] }
  0x2f   :  { %3992 = vst [vmem:[#allocation74_spill] sm:$0xff] %v2048_v10  ;;  %3993 = vst [vmem:[#allocation75_spill] sm:$0xff] %v2053_v16  ;;  %v2063_v11 = vld [vmem:[%s3916_s1 + $0x370] sm:$0xff]  ;;  %v2068_v23 = vld [vmem:[%s3916_s1 + $0x378] sm:$0xff] }
  0x30   :  { %3994 = vst [vmem:[#allocation76_spill] sm:$0xff] %v2058_v4  ;;  %3995 = vst [vmem:[#allocation77_spill] sm:$0xff] %v2063_v11  ;;  %v2073_v10 = vld [vmem:[%s3916_s1 + $0x380] sm:$0xff]  ;;  %v2078_v16 = vld [vmem:[%s3916_s1 + $0x388] sm:$0xff] }
  0x31   :  { %3996 = vst [vmem:[#allocation78_spill] sm:$0xff] %v2068_v23  ;;  %3997 = vst [vmem:[#allocation79_spill] sm:$0xff] %v2073_v10  ;;  %v2083_v4 = vld [vmem:[%s3916_s1 + $0x390] sm:$0xff]  ;;  %v2088_v11 = vld [vmem:[%s3916_s1 + $0x398] sm:$0xff] }
  0x32   :  { %3998 = vst [vmem:[#allocation80_spill] sm:$0xff] %v2078_v16  ;;  %3999 = vst [vmem:[#allocation81_spill] sm:$0xff] %v2083_v4  ;;  %v2093_v23 = vld [vmem:[%s3916_s1 + $0x3a0] sm:$0xff]  ;;  %v2098_v10 = vld [vmem:[%s3916_s1 + $0x3a8] sm:$0xff] }
  0x33   :  { %4000 = vst [vmem:[#allocation82_spill] sm:$0xff] %v2088_v11  ;;  %4001 = vst [vmem:[#allocation83_spill] sm:$0xff] %v2093_v23  ;;  %v2103_v16 = vld [vmem:[%s3916_s1 + $0x3b0] sm:$0xff]  ;;  %v2108_v4 = vld [vmem:[%s3916_s1 + $0x3b8] sm:$0xff] }
  0x34   :  { %4002 = vst [vmem:[#allocation84_spill] sm:$0xff] %v2098_v10  ;;  %4003 = vst [vmem:[#allocation85_spill] sm:$0xff] %v2103_v16  ;;  %v2113_v11 = vld [vmem:[%s3916_s1 + $0x3c0] sm:$0xff]  ;;  %v2118_v23 = vld [vmem:[%s3916_s1 + $0x3c8] sm:$0xff] }
  0x35   :  { %4004 = vst [vmem:[#allocation86_spill] sm:$0xff] %v2108_v4  ;;  %4005 = vst [vmem:[#allocation87_spill] sm:$0xff] %v2113_v11  ;;  %v2123_v10 = vld [vmem:[%s3916_s1 + $0x3d0] sm:$0xff]  ;;  %v2128_v16 = vld [vmem:[%s3916_s1 + $0x3d8] sm:$0xff] }
  0x36   :  { %4006 = vst [vmem:[#allocation88_spill] sm:$0xff] %v2118_v23  ;;  %4007 = vst [vmem:[#allocation89_spill] sm:$0xff] %v2123_v10  ;;  %v2133_v4 = vld [vmem:[%s3916_s1 + $0x3e0] sm:$0xff]  ;;  %v2138_v11 = vld [vmem:[%s3916_s1 + $0x3e8] sm:$0xff] }
  0x37   :  { %4008 = vst [vmem:[#allocation90_spill] sm:$0xff] %v2128_v16  ;;  %4009 = vst [vmem:[#allocation91_spill] sm:$0xff] %v2133_v4  ;;  %v2143_v23 = vld [vmem:[%s3916_s1 + $0x3f0] sm:$0xff]  ;;  %v2148_v10 = vld [vmem:[%s3916_s1 + $0x3f8] sm:$0xff] }
  0x38   :  { %4010 = vst [vmem:[#allocation92_spill] sm:$0xff] %v2138_v11  ;;  %4011 = vst [vmem:[#allocation93_spill] sm:$0xff] %v2143_v23  ;;  %v2153_v16 = vld [vmem:[%s3916_s1 + $0x400] sm:$0xff]  ;;  %v2158_v4 = vld [vmem:[%s3916_s1 + $0x408] sm:$0xff] }
  0x39   :  { %4012 = vst [vmem:[#allocation94_spill] sm:$0xff] %v2148_v10  ;;  %4013 = vst [vmem:[#allocation95_spill] sm:$0xff] %v2153_v16  ;;  %v2163_v11 = vld [vmem:[%s3916_s1 + $0x410] sm:$0xff]  ;;  %v2168_v23 = vld [vmem:[%s3916_s1 + $0x418] sm:$0xff] }
  0x3a   :  { %4014 = vst [vmem:[#allocation96_spill] sm:$0xff] %v2158_v4  ;;  %4015 = vst [vmem:[#allocation97_spill] sm:$0xff] %v2163_v11  ;;  %v2173_v10 = vld [vmem:[%s3916_s1 + $0x420] sm:$0xff]  ;;  %v2178_v16 = vld [vmem:[%s3916_s1 + $0x428] sm:$0xff] }
  0x3b   :  { %4016 = vst [vmem:[#allocation98_spill] sm:$0xff] %v2168_v23  ;;  %4017 = vst [vmem:[#allocation99_spill] sm:$0xff] %v2173_v10  ;;  %v2183_v4 = vld [vmem:[%s3916_s1 + $0x430] sm:$0xff]  ;;  %v2188_v11 = vld [vmem:[%s3916_s1 + $0x438] sm:$0xff] }
  0x3c   :  { %4018 = vst [vmem:[#allocation100_spill] sm:$0xff] %v2178_v16  ;;  %4019 = vst [vmem:[#allocation101_spill] sm:$0xff] %v2183_v4  ;;  %v2193_v23 = vld [vmem:[%s3916_s1 + $0x440] sm:$0xff]  ;;  %v2198_v10 = vld [vmem:[%s3916_s1 + $0x448] sm:$0xff] }
  0x3d   :  { %4020 = vst [vmem:[#allocation102_spill] sm:$0xff] %v2188_v11  ;;  %4021 = vst [vmem:[#allocation103_spill] sm:$0xff] %v2193_v23  ;;  %v2203_v16 = vld [vmem:[%s3916_s1 + $0x450] sm:$0xff]  ;;  %v2208_v4 = vld [vmem:[%s3916_s1 + $0x458] sm:$0xff] }
  0x3e   :  { %4022 = vst [vmem:[#allocation104_spill] sm:$0xff] %v2198_v10  ;;  %4023 = vst [vmem:[#allocation105_spill] sm:$0xff] %v2203_v16  ;;  %v2213_v11 = vld [vmem:[%s3916_s1 + $0x460] sm:$0xff]  ;;  %v2218_v23 = vld [vmem:[%s3916_s1 + $0x468] sm:$0xff] }
  0x3f   :  { %4024 = vst [vmem:[#allocation106_spill] sm:$0xff] %v2208_v4  ;;  %4025 = vst [vmem:[#allocation107_spill] sm:$0xff] %v2213_v11  ;;  %v2223_v10 = vld [vmem:[%s3916_s1 + $0x470] sm:$0xff]  ;;  %v2228_v16 = vld [vmem:[%s3916_s1 + $0x478] sm:$0xff] }
  0x40   :  { %4026 = vst [vmem:[#allocation108_spill] sm:$0xff] %v2218_v23  ;;  %4027 = vst [vmem:[#allocation109_spill] sm:$0xff] %v2223_v10  ;;  %v2233_v4 = vld [vmem:[%s3916_s1 + $0x480] sm:$0xff]  ;;  %v2238_v11 = vld [vmem:[%s3916_s1 + $0x488] sm:$0xff] }
  0x41   :  { %4028 = vst [vmem:[#allocation110_spill] sm:$0xff] %v2228_v16  ;;  %4029 = vst [vmem:[#allocation111_spill] sm:$0xff] %v2233_v4  ;;  %v2243_v23 = vld [vmem:[%s3916_s1 + $0x490] sm:$0xff]  ;;  %v2248_v10 = vld [vmem:[%s3916_s1 + $0x498] sm:$0xff] }
  0x42   :  { %4030 = vst [vmem:[#allocation112_spill] sm:$0xff] %v2238_v11  ;;  %4031 = vst [vmem:[#allocation113_spill] sm:$0xff] %v2243_v23  ;;  %v2253_v16 = vld [vmem:[%s3916_s1 + $0x4a0] sm:$0xff]  ;;  %v2258_v4 = vld [vmem:[%s3916_s1 + $0x4a8] sm:$0xff] }
  0x43   :  { %4032 = vst [vmem:[#allocation114_spill] sm:$0xff] %v2248_v10  ;;  %4033 = vst [vmem:[#allocation115_spill] sm:$0xff] %v2253_v16  ;;  %v2263_v11 = vld [vmem:[%s3916_s1 + $0x4b0] sm:$0xff]  ;;  %v2268_v23 = vld [vmem:[%s3916_s1 + $0x4b8] sm:$0xff] }
  0x44   :  { %4034 = vst [vmem:[#allocation116_spill] sm:$0xff] %v2258_v4  ;;  %4035 = vst [vmem:[#allocation117_spill] sm:$0xff] %v2263_v11  ;;  %v2273_v10 = vld [vmem:[%s3916_s1 + $0x4c0] sm:$0xff]  ;;  %v2278_v16 = vld [vmem:[%s3916_s1 + $0x4c8] sm:$0xff] }
  0x45   :  { %4036 = vst [vmem:[#allocation118_spill] sm:$0xff] %v2268_v23  ;;  %4037 = vst [vmem:[#allocation119_spill] sm:$0xff] %v2273_v10  ;;  %v2283_v4 = vld [vmem:[%s3916_s1 + $0x4d0] sm:$0xff]  ;;  %v2288_v11 = vld [vmem:[%s3916_s1 + $0x4d8] sm:$0xff] }
  0x46   :  { %4038 = vst [vmem:[#allocation120_spill] sm:$0xff] %v2278_v16  ;;  %4039 = vst [vmem:[#allocation121_spill] sm:$0xff] %v2283_v4  ;;  %v2293_v23 = vld [vmem:[%s3916_s1 + $0x4e0] sm:$0xff]  ;;  %v2298_v10 = vld [vmem:[%s3916_s1 + $0x4e8] sm:$0xff] }
  0x47   :  { %4040 = vst [vmem:[#allocation122_spill] sm:$0xff] %v2288_v11  ;;  %4041 = vst [vmem:[#allocation123_spill] sm:$0xff] %v2293_v23  ;;  %v2303_v16 = vld [vmem:[%s3916_s1 + $0x4f0] sm:$0xff]  ;;  %v2308_v4 = vld [vmem:[%s3916_s1 + $0x4f8] sm:$0xff] }
  0x48   :  { %4042 = vst [vmem:[#allocation124_spill] sm:$0xff] %v2298_v10  ;;  %4043 = vst [vmem:[#allocation125_spill] sm:$0xff] %v2303_v16  ;;  %v2313_v11 = vld [vmem:[%s3916_s1 + $0x500] sm:$0xff]  ;;  %v2318_v23 = vld [vmem:[%s3916_s1 + $0x508] sm:$0xff] }
  0x49   :  { %4044 = vst [vmem:[#allocation126_spill] sm:$0xff] %v2308_v4  ;;  %4045 = vst [vmem:[#allocation127_spill] sm:$0xff] %v2313_v11  ;;  %v2323_v10 = vld [vmem:[%s3916_s1 + $0x510] sm:$0xff]  ;;  %v2328_v16 = vld [vmem:[%s3916_s1 + $0x518] sm:$0xff] }
  0x4a   :  { %4046 = vst [vmem:[#allocation128_spill] sm:$0xff] %v2318_v23  ;;  %4047 = vst [vmem:[#allocation129_spill] sm:$0xff] %v2323_v10  ;;  %v2333_v4 = vld [vmem:[%s3916_s1 + $0x520] sm:$0xff]  ;;  %v2338_v11 = vld [vmem:[%s3916_s1 + $0x528] sm:$0xff] }
  0x4b   :  { %4048 = vst [vmem:[#allocation130_spill] sm:$0xff] %v2328_v16  ;;  %4049 = vst [vmem:[#allocation131_spill] sm:$0xff] %v2333_v4  ;;  %v2343_v23 = vld [vmem:[%s3916_s1 + $0x530] sm:$0xff]  ;;  %v2348_v10 = vld [vmem:[%s3916_s1 + $0x538] sm:$0xff] }
  0x4c   :  { %4050 = vst [vmem:[#allocation132_spill] sm:$0xff] %v2338_v11  ;;  %4051 = vst [vmem:[#allocation133_spill] sm:$0xff] %v2343_v23  ;;  %v2353_v16 = vld [vmem:[%s3916_s1 + $0x540] sm:$0xff]  ;;  %v2358_v4 = vld [vmem:[%s3916_s1 + $0x548] sm:$0xff] }
  0x4d   :  { %4052 = vst [vmem:[#allocation134_spill] sm:$0xff] %v2348_v10  ;;  %4053 = vst [vmem:[#allocation135_spill] sm:$0xff] %v2353_v16  ;;  %v2363_v11 = vld [vmem:[%s3916_s1 + $0x550] sm:$0xff]  ;;  %v2368_v23 = vld [vmem:[%s3916_s1 + $0x558] sm:$0xff] }
  0x4e   :  { %4054 = vst [vmem:[#allocation136_spill] sm:$0xff] %v2358_v4  ;;  %4055 = vst [vmem:[#allocation137_spill] sm:$0xff] %v2363_v11  ;;  %v2373_v10 = vld [vmem:[%s3916_s1 + $0x560] sm:$0xff]  ;;  %v2378_v16 = vld [vmem:[%s3916_s1 + $0x568] sm:$0xff] }
  0x4f   :  { %4056 = vst [vmem:[#allocation138_spill] sm:$0xff] %v2368_v23  ;;  %4057 = vst [vmem:[#allocation139_spill] sm:$0xff] %v2373_v10  ;;  %v2383_v4 = vld [vmem:[%s3916_s1 + $0x570] sm:$0xff]  ;;  %v2388_v11 = vld [vmem:[%s3916_s1 + $0x578] sm:$0xff] }
  0x50   :  { %4058 = vst [vmem:[#allocation140_spill] sm:$0xff] %v2378_v16  ;;  %4059 = vst [vmem:[#allocation141_spill] sm:$0xff] %v2383_v4  ;;  %v2393_v23 = vld [vmem:[%s3916_s1 + $0x580] sm:$0xff]  ;;  %v2398_v10 = vld [vmem:[%s3916_s1 + $0x588] sm:$0xff] }
  0x51   :  { %4060 = vst [vmem:[#allocation142_spill] sm:$0xff] %v2388_v11  ;;  %4061 = vst [vmem:[#allocation143_spill] sm:$0xff] %v2393_v23  ;;  %v2403_v16 = vld [vmem:[%s3916_s1 + $0x590] sm:$0xff]  ;;  %v2408_v4 = vld [vmem:[%s3916_s1 + $0x598] sm:$0xff] }
  0x52   :  { %4062 = vst [vmem:[#allocation144_spill] sm:$0xff] %v2398_v10  ;;  %4063 = vst [vmem:[#allocation145_spill] sm:$0xff] %v2403_v16  ;;  %v2413_v11 = vld [vmem:[%s3916_s1 + $0x5a0] sm:$0xff]  ;;  %v2418_v23 = vld [vmem:[%s3916_s1 + $0x5a8] sm:$0xff] }
  0x53   :  { %4064 = vst [vmem:[#allocation146_spill] sm:$0xff] %v2408_v4  ;;  %4065 = vst [vmem:[#allocation147_spill] sm:$0xff] %v2413_v11  ;;  %v2423_v10 = vld [vmem:[%s3916_s1 + $0x5b0] sm:$0xff]  ;;  %v2428_v16 = vld [vmem:[%s3916_s1 + $0x5b8] sm:$0xff] }
  0x54   :  { %4066 = vst [vmem:[#allocation148_spill] sm:$0xff] %v2418_v23  ;;  %4067 = vst [vmem:[#allocation149_spill] sm:$0xff] %v2423_v10  ;;  %v2433_v4 = vld [vmem:[%s3916_s1 + $0x5c0] sm:$0xff]  ;;  %v2438_v11 = vld [vmem:[%s3916_s1 + $0x5c8] sm:$0xff] }
  0x55   :  { %4068 = vst [vmem:[#allocation150_spill] sm:$0xff] %v2428_v16  ;;  %4069 = vst [vmem:[#allocation151_spill] sm:$0xff] %v2433_v4  ;;  %v2443_v23 = vld [vmem:[%s3916_s1 + $0x5d0] sm:$0xff]  ;;  %v2448_v10 = vld [vmem:[%s3916_s1 + $0x5d8] sm:$0xff] }
  0x56   :  { %4070 = vst [vmem:[#allocation152_spill] sm:$0xff] %v2438_v11  ;;  %4071 = vst [vmem:[#allocation153_spill] sm:$0xff] %v2443_v23  ;;  %v2453_v16 = vld [vmem:[%s3916_s1 + $0x5e0] sm:$0xff]  ;;  %v2458_v4 = vld [vmem:[%s3916_s1 + $0x5e8] sm:$0xff] }
  0x57   :  { %4072 = vst [vmem:[#allocation154_spill] sm:$0xff] %v2448_v10  ;;  %4073 = vst [vmem:[#allocation155_spill] sm:$0xff] %v2453_v16  ;;  %v2463_v11 = vld [vmem:[%s3916_s1 + $0x5f0] sm:$0xff]  ;;  %v2468_v23 = vld [vmem:[%s3916_s1 + $0x5f8] sm:$0xff] }
  0x58   :  { %4074 = vst [vmem:[#allocation156_spill] sm:$0xff] %v2458_v4  ;;  %4075 = vst [vmem:[#allocation157_spill] sm:$0xff] %v2463_v11  ;;  %v2473_v10 = vld [vmem:[%s3916_s1 + $0x600] sm:$0xff]  ;;  %v2478_v16 = vld [vmem:[%s3916_s1 + $0x608] sm:$0xff] }
  0x59   :  { %4076 = vst [vmem:[#allocation158_spill] sm:$0xff] %v2468_v23  ;;  %4077 = vst [vmem:[#allocation159_spill] sm:$0xff] %v2473_v10  ;;  %v2483_v4 = vld [vmem:[%s3916_s1 + $0x610] sm:$0xff]  ;;  %v2488_v11 = vld [vmem:[%s3916_s1 + $0x618] sm:$0xff] }
  0x5a   :  { %4078 = vst [vmem:[#allocation160_spill] sm:$0xff] %v2478_v16  ;;  %4079 = vst [vmem:[#allocation161_spill] sm:$0xff] %v2483_v4  ;;  %v2493_v23 = vld [vmem:[%s3916_s1 + $0x620] sm:$0xff]  ;;  %v2498_v10 = vld [vmem:[%s3916_s1 + $0x628] sm:$0xff] }
  0x5b   :  { %4080 = vst [vmem:[#allocation162_spill] sm:$0xff] %v2488_v11  ;;  %4081 = vst [vmem:[#allocation163_spill] sm:$0xff] %v2493_v23  ;;  %v2503_v16 = vld [vmem:[%s3916_s1 + $0x630] sm:$0xff]  ;;  %v2508_v4 = vld [vmem:[%s3916_s1 + $0x638] sm:$0xff] }
  0x5c   :  { %4082 = vst [vmem:[#allocation164_spill] sm:$0xff] %v2498_v10  ;;  %4083 = vst [vmem:[#allocation165_spill] sm:$0xff] %v2503_v16  ;;  %v2513_v11 = vld [vmem:[%s3916_s1 + $0x640] sm:$0xff]  ;;  %v2518_v23 = vld [vmem:[%s3916_s1 + $0x648] sm:$0xff] }
  0x5d   :  { %4084 = vst [vmem:[#allocation166_spill] sm:$0xff] %v2508_v4  ;;  %4085 = vst [vmem:[#allocation167_spill] sm:$0xff] %v2513_v11  ;;  %v2523_v10 = vld [vmem:[%s3916_s1 + $0x650] sm:$0xff]  ;;  %v2528_v16 = vld [vmem:[%s3916_s1 + $0x658] sm:$0xff] }
  0x5e   :  { %4086 = vst [vmem:[#allocation168_spill] sm:$0xff] %v2518_v23  ;;  %4087 = vst [vmem:[#allocation169_spill] sm:$0xff] %v2523_v10  ;;  %v2533_v4 = vld [vmem:[%s3916_s1 + $0x660] sm:$0xff]  ;;  %v2538_v11 = vld [vmem:[%s3916_s1 + $0x668] sm:$0xff] }
  0x5f   :  { %4088 = vst [vmem:[#allocation170_spill] sm:$0xff] %v2528_v16  ;;  %4089 = vst [vmem:[#allocation171_spill] sm:$0xff] %v2533_v4  ;;  %v2543_v23 = vld [vmem:[%s3916_s1 + $0x670] sm:$0xff]  ;;  %v2548_v10 = vld [vmem:[%s3916_s1 + $0x678] sm:$0xff] }
  0x60   :  { %4090 = vst [vmem:[#allocation172_spill] sm:$0xff] %v2538_v11  ;;  %4091 = vst [vmem:[#allocation173_spill] sm:$0xff] %v2543_v23  ;;  %v2553_v16 = vld [vmem:[%s3916_s1 + $0x680] sm:$0xff]  ;;  %v2558_v4 = vld [vmem:[%s3916_s1 + $0x688] sm:$0xff] }
  0x61   :  { %4092 = vst [vmem:[#allocation174_spill] sm:$0xff] %v2548_v10  ;;  %4093 = vst [vmem:[#allocation175_spill] sm:$0xff] %v2553_v16  ;;  %v2563_v11 = vld [vmem:[%s3916_s1 + $0x690] sm:$0xff]  ;;  %v2568_v23 = vld [vmem:[%s3916_s1 + $0x698] sm:$0xff] }
  0x62   :  { %4094 = vst [vmem:[#allocation176_spill] sm:$0xff] %v2558_v4  ;;  %4095 = vst [vmem:[#allocation177_spill] sm:$0xff] %v2563_v11  ;;  %v2573_v10 = vld [vmem:[%s3916_s1 + $0x6a0] sm:$0xff]  ;;  %v2578_v16 = vld [vmem:[%s3916_s1 + $0x6a8] sm:$0xff] }
  0x63   :  { %4096 = vst [vmem:[#allocation178_spill] sm:$0xff] %v2568_v23  ;;  %4097 = vst [vmem:[#allocation179_spill] sm:$0xff] %v2573_v10  ;;  %v2583_v4 = vld [vmem:[%s3916_s1 + $0x6b0] sm:$0xff]  ;;  %v2588_v11 = vld [vmem:[%s3916_s1 + $0x6b8] sm:$0xff] }
  0x64   :  { %4098 = vst [vmem:[#allocation180_spill] sm:$0xff] %v2578_v16  ;;  %4099 = vst [vmem:[#allocation181_spill] sm:$0xff] %v2583_v4  ;;  %v2593_v23 = vld [vmem:[%s3916_s1 + $0x6c0] sm:$0xff]  ;;  %v2598_v10 = vld [vmem:[%s3916_s1 + $0x6c8] sm:$0xff] }
  0x65   :  { %4100 = vst [vmem:[#allocation182_spill] sm:$0xff] %v2588_v11  ;;  %4101 = vst [vmem:[#allocation183_spill] sm:$0xff] %v2593_v23  ;;  %v2603_v16 = vld [vmem:[%s3916_s1 + $0x6d0] sm:$0xff]  ;;  %v2608_v4 = vld [vmem:[%s3916_s1 + $0x6d8] sm:$0xff] }
  0x66   :  { %4102 = vst [vmem:[#allocation184_spill] sm:$0xff] %v2598_v10  ;;  %4103 = vst [vmem:[#allocation185_spill] sm:$0xff] %v2603_v16  ;;  %v2613_v11 = vld [vmem:[%s3916_s1 + $0x6e0] sm:$0xff]  ;;  %v2618_v23 = vld [vmem:[%s3916_s1 + $0x6e8] sm:$0xff] }
  0x67   :  { %4104 = vst [vmem:[#allocation186_spill] sm:$0xff] %v2608_v4  ;;  %4105 = vst [vmem:[#allocation187_spill] sm:$0xff] %v2613_v11  ;;  %v2623_v10 = vld [vmem:[%s3916_s1 + $0x6f0] sm:$0xff]  ;;  %v2628_v16 = vld [vmem:[%s3916_s1 + $0x6f8] sm:$0xff] }
  0x68   :  { %4106 = vst [vmem:[#allocation188_spill] sm:$0xff] %v2618_v23  ;;  %4107 = vst [vmem:[#allocation189_spill] sm:$0xff] %v2623_v10  ;;  %v2633_v4 = vld [vmem:[%s3916_s1 + $0x700] sm:$0xff]  ;;  %v2638_v11 = vld [vmem:[%s3916_s1 + $0x708] sm:$0xff] }
  0x69   :  { %4108 = vst [vmem:[#allocation190_spill] sm:$0xff] %v2628_v16  ;;  %4109 = vst [vmem:[#allocation191_spill] sm:$0xff] %v2633_v4  ;;  %v2643_v23 = vld [vmem:[%s3916_s1 + $0x710] sm:$0xff]  ;;  %v2648_v10 = vld [vmem:[%s3916_s1 + $0x718] sm:$0xff] }
  0x6a   :  { %4110 = vst [vmem:[#allocation192_spill] sm:$0xff] %v2638_v11  ;;  %4111 = vst [vmem:[#allocation193_spill] sm:$0xff] %v2643_v23  ;;  %v2653_v16 = vld [vmem:[%s3916_s1 + $0x720] sm:$0xff]  ;;  %v2658_v4 = vld [vmem:[%s3916_s1 + $0x728] sm:$0xff] }
  0x6b   :  { %4112 = vst [vmem:[#allocation194_spill] sm:$0xff] %v2648_v10  ;;  %4113 = vst [vmem:[#allocation195_spill] sm:$0xff] %v2653_v16  ;;  %v2663_v11 = vld [vmem:[%s3916_s1 + $0x730] sm:$0xff]  ;;  %v2668_v23 = vld [vmem:[%s3916_s1 + $0x738] sm:$0xff] }
  0x6c   :  { %4114 = vst [vmem:[#allocation196_spill] sm:$0xff] %v2658_v4  ;;  %4115 = vst [vmem:[#allocation197_spill] sm:$0xff] %v2663_v11  ;;  %v2673_v10 = vld [vmem:[%s3916_s1 + $0x740] sm:$0xff]  ;;  %v2678_v16 = vld [vmem:[%s3916_s1 + $0x748] sm:$0xff] }
  0x6d   :  { %4116 = vst [vmem:[#allocation198_spill] sm:$0xff] %v2668_v23  ;;  %4117 = vst [vmem:[#allocation199_spill] sm:$0xff] %v2673_v10  ;;  %v2683_v4 = vld [vmem:[%s3916_s1 + $0x750] sm:$0xff]  ;;  %v2688_v11 = vld [vmem:[%s3916_s1 + $0x758] sm:$0xff] }
  0x6e   :  { %4118 = vst [vmem:[#allocation200_spill] sm:$0xff] %v2678_v16  ;;  %4119 = vst [vmem:[#allocation201_spill] sm:$0xff] %v2683_v4  ;;  %v2693_v23 = vld [vmem:[%s3916_s1 + $0x760] sm:$0xff]  ;;  %v2698_v10 = vld [vmem:[%s3916_s1 + $0x768] sm:$0xff] }
  0x6f   :  { %4120 = vst [vmem:[#allocation202_spill] sm:$0xff] %v2688_v11  ;;  %4121 = vst [vmem:[#allocation203_spill] sm:$0xff] %v2693_v23  ;;  %v2703_v16 = vld [vmem:[%s3916_s1 + $0x770] sm:$0xff]  ;;  %v2708_v4 = vld [vmem:[%s3916_s1 + $0x778] sm:$0xff] }
  0x70   :  { %4122 = vst [vmem:[#allocation204_spill] sm:$0xff] %v2698_v10  ;;  %4123 = vst [vmem:[#allocation205_spill] sm:$0xff] %v2703_v16  ;;  %v2713_v11 = vld [vmem:[%s3916_s1 + $0x780] sm:$0xff]  ;;  %v2718_v23 = vld [vmem:[%s3916_s1 + $0x788] sm:$0xff] }
  0x71   :  { %4124 = vst [vmem:[#allocation206_spill] sm:$0xff] %v2708_v4  ;;  %4125 = vst [vmem:[#allocation207_spill] sm:$0xff] %v2713_v11  ;;  %v2723_v10 = vld [vmem:[%s3916_s1 + $0x790] sm:$0xff]  ;;  %v2728_v16 = vld [vmem:[%s3916_s1 + $0x798] sm:$0xff] }
  0x72   :  { %4126 = vst [vmem:[#allocation208_spill] sm:$0xff] %v2718_v23  ;;  %4127 = vst [vmem:[#allocation209_spill] sm:$0xff] %v2723_v10  ;;  %v2733_v4 = vld [vmem:[%s3916_s1 + $0x7a0] sm:$0xff]  ;;  %v2738_v11 = vld [vmem:[%s3916_s1 + $0x7a8] sm:$0xff] }
  0x73   :  { %4128 = vst [vmem:[#allocation210_spill] sm:$0xff] %v2728_v16  ;;  %4129 = vst [vmem:[#allocation211_spill] sm:$0xff] %v2733_v4  ;;  %v2743_v23 = vld [vmem:[%s3916_s1 + $0x7b0] sm:$0xff]  ;;  %v2748_v10 = vld [vmem:[%s3916_s1 + $0x7b8] sm:$0xff] }
  0x74   :  { %4130 = vst [vmem:[#allocation212_spill] sm:$0xff] %v2738_v11  ;;  %4131 = vst [vmem:[#allocation213_spill] sm:$0xff] %v2743_v23  ;;  %v2753_v16 = vld [vmem:[%s3916_s1 + $0x7c0] sm:$0xff]  ;;  %v2758_v4 = vld [vmem:[%s3916_s1 + $0x7c8] sm:$0xff] }
  0x75   :  { %4132 = vst [vmem:[#allocation214_spill] sm:$0xff] %v2748_v10  ;;  %4133 = vst [vmem:[#allocation215_spill] sm:$0xff] %v2753_v16  ;;  %v2763_v11 = vld [vmem:[%s3916_s1 + $0x7d0] sm:$0xff]  ;;  %v2768_v23 = vld [vmem:[%s3916_s1 + $0x7d8] sm:$0xff] }
  0x76   :  { %4134 = vst [vmem:[#allocation216_spill] sm:$0xff] %v2758_v4  ;;  %4135 = vst [vmem:[#allocation217_spill] sm:$0xff] %v2763_v11  ;;  %v2773_v10 = vld [vmem:[%s3916_s1 + $0x7e0] sm:$0xff]  ;;  %v2778_v16 = vld [vmem:[%s3916_s1 + $0x7e8] sm:$0xff] }
  0x77   :  { %4136 = vst [vmem:[#allocation218_spill] sm:$0xff] %v2768_v23  ;;  %4137 = vst [vmem:[#allocation219_spill] sm:$0xff] %v2773_v10  ;;  %v2783_v4 = vld [vmem:[%s3916_s1 + $0x7f0] sm:$0xff]  ;;  %v2788_v11 = vld [vmem:[%s3916_s1 + $0x7f8] sm:$0xff] }
  0x78   :  { %4138 = vst [vmem:[#allocation220_spill] sm:$0xff] %v2778_v16  ;;  %4139 = vst [vmem:[#allocation221_spill] sm:$0xff] %v2783_v4  ;;  %v2793_v23 = vld [vmem:[%s3916_s1 + $0x800] sm:$0xff]  ;;  %v2798_v10 = vld [vmem:[%s3916_s1 + $0x808] sm:$0xff] }
  0x79   :  { %4140 = vst [vmem:[#allocation222_spill] sm:$0xff] %v2788_v11  ;;  %4141 = vst [vmem:[#allocation223_spill] sm:$0xff] %v2793_v23  ;;  %v2803_v16 = vld [vmem:[%s3916_s1 + $0x810] sm:$0xff]  ;;  %v2808_v4 = vld [vmem:[%s3916_s1 + $0x818] sm:$0xff] }
  0x7a   :  { %4142 = vst [vmem:[#allocation224_spill] sm:$0xff] %v2798_v10  ;;  %4143 = vst [vmem:[#allocation225_spill] sm:$0xff] %v2803_v16  ;;  %v2813_v11 = vld [vmem:[%s3916_s1 + $0x820] sm:$0xff]  ;;  %v2818_v23 = vld [vmem:[%s3916_s1 + $0x828] sm:$0xff] }
  0x7b   :  { %4144 = vst [vmem:[#allocation226_spill] sm:$0xff] %v2808_v4  ;;  %4145 = vst [vmem:[#allocation227_spill] sm:$0xff] %v2813_v11  ;;  %v2823_v10 = vld [vmem:[%s3916_s1 + $0x830] sm:$0xff]  ;;  %v2828_v16 = vld [vmem:[%s3916_s1 + $0x838] sm:$0xff] }
  0x7c   :  { %4146 = vst [vmem:[#allocation228_spill] sm:$0xff] %v2818_v23  ;;  %4147 = vst [vmem:[#allocation229_spill] sm:$0xff] %v2823_v10  ;;  %v2833_v4 = vld [vmem:[%s3916_s1 + $0x840] sm:$0xff]  ;;  %v2838_v11 = vld [vmem:[%s3916_s1 + $0x848] sm:$0xff] }
  0x7d   :  { %4148 = vst [vmem:[#allocation230_spill] sm:$0xff] %v2828_v16  ;;  %4149 = vst [vmem:[#allocation231_spill] sm:$0xff] %v2833_v4  ;;  %v2843_v23 = vld [vmem:[%s3916_s1 + $0x850] sm:$0xff]  ;;  %v2848_v10 = vld [vmem:[%s3916_s1 + $0x858] sm:$0xff] }
  0x7e   :  { %4150 = vst [vmem:[#allocation232_spill] sm:$0xff] %v2838_v11  ;;  %4151 = vst [vmem:[#allocation233_spill] sm:$0xff] %v2843_v23  ;;  %v2853_v16 = vld [vmem:[%s3916_s1 + $0x860] sm:$0xff]  ;;  %v2858_v4 = vld [vmem:[%s3916_s1 + $0x868] sm:$0xff] }
  0x7f   :  { %4152 = vst [vmem:[#allocation234_spill] sm:$0xff] %v2848_v10  ;;  %4153 = vst [vmem:[#allocation235_spill] sm:$0xff] %v2853_v16  ;;  %v2863_v11 = vld [vmem:[%s3916_s1 + $0x870] sm:$0xff]  ;;  %v2868_v23 = vld [vmem:[%s3916_s1 + $0x878] sm:$0xff] }
  0x80   :  { %4154 = vst [vmem:[#allocation236_spill] sm:$0xff] %v2858_v4  ;;  %4155 = vst [vmem:[#allocation237_spill] sm:$0xff] %v2863_v11  ;;  %v2873_v10 = vld [vmem:[%s3916_s1 + $0x880] sm:$0xff]  ;;  %v2878_v16 = vld [vmem:[%s3916_s1 + $0x888] sm:$0xff] }
  0x81   :  { %4156 = vst [vmem:[#allocation238_spill] sm:$0xff] %v2868_v23  ;;  %4157 = vst [vmem:[#allocation239_spill] sm:$0xff] %v2873_v10  ;;  %v2883_v4 = vld [vmem:[%s3916_s1 + $0x890] sm:$0xff]  ;;  %v2888_v11 = vld [vmem:[%s3916_s1 + $0x898] sm:$0xff] }
  0x82   :  { %4158 = vst [vmem:[#allocation240_spill] sm:$0xff] %v2878_v16  ;;  %4159 = vst [vmem:[#allocation241_spill] sm:$0xff] %v2883_v4  ;;  %v2893_v23 = vld [vmem:[%s3916_s1 + $0x8a0] sm:$0xff]  ;;  %v2898_v10 = vld [vmem:[%s3916_s1 + $0x8a8] sm:$0xff] }
  0x83   :  { %4160 = vst [vmem:[#allocation242_spill] sm:$0xff] %v2888_v11  ;;  %4161 = vst [vmem:[#allocation243_spill] sm:$0xff] %v2893_v23  ;;  %v2903_v16 = vld [vmem:[%s3916_s1 + $0x8b0] sm:$0xff]  ;;  %v2908_v4 = vld [vmem:[%s3916_s1 + $0x8b8] sm:$0xff] }
  0x84   :  { %4162 = vst [vmem:[#allocation244_spill] sm:$0xff] %v2898_v10  ;;  %4163 = vst [vmem:[#allocation245_spill] sm:$0xff] %v2903_v16  ;;  %v2913_v11 = vld [vmem:[%s3916_s1 + $0x8c0] sm:$0xff]  ;;  %v2918_v23 = vld [vmem:[%s3916_s1 + $0x8c8] sm:$0xff] }
  0x85   :  { %4164 = vst [vmem:[#allocation246_spill] sm:$0xff] %v2908_v4  ;;  %4165 = vst [vmem:[#allocation247_spill] sm:$0xff] %v2913_v11  ;;  %v2923_v10 = vld [vmem:[%s3916_s1 + $0x8d0] sm:$0xff]  ;;  %v2928_v16 = vld [vmem:[%s3916_s1 + $0x8d8] sm:$0xff] }
  0x86   :  { %4166 = vst [vmem:[#allocation248_spill] sm:$0xff] %v2918_v23  ;;  %4167 = vst [vmem:[#allocation249_spill] sm:$0xff] %v2923_v10  ;;  %v2933_v4 = vld [vmem:[%s3916_s1 + $0x8e0] sm:$0xff]  ;;  %v2938_v11 = vld [vmem:[%s3916_s1 + $0x8e8] sm:$0xff] }
  0x87   :  { %4168 = vst [vmem:[#allocation250_spill] sm:$0xff] %v2928_v16  ;;  %4169 = vst [vmem:[#allocation251_spill] sm:$0xff] %v2933_v4  ;;  %v2943_v23 = vld [vmem:[%s3916_s1 + $0x8f0] sm:$0xff]  ;;  %v2948_v10 = vld [vmem:[%s3916_s1 + $0x8f8] sm:$0xff] }
  0x88   :  { %4170 = vst [vmem:[#allocation252_spill] sm:$0xff] %v2938_v11  ;;  %4171 = vst [vmem:[#allocation253_spill] sm:$0xff] %v2943_v23  ;;  %v2953_v16 = vld [vmem:[%s3916_s1 + $0x900] sm:$0xff]  ;;  %v2958_v4 = vld [vmem:[%s3916_s1 + $0x908] sm:$0xff] }
  0x89   :  { %4172 = vst [vmem:[#allocation254_spill] sm:$0xff] %v2948_v10  ;;  %4173 = vst [vmem:[#allocation255_spill] sm:$0xff] %v2953_v16  ;;  %v2963_v11 = vld [vmem:[%s3916_s1 + $0x910] sm:$0xff]  ;;  %v2968_v23 = vld [vmem:[%s3916_s1 + $0x918] sm:$0xff] }
  0x8a   :  { %4174 = vst [vmem:[#allocation256_spill] sm:$0xff] %v2958_v4  ;;  %4175 = vst [vmem:[#allocation257_spill] sm:$0xff] %v2963_v11  ;;  %v2973_v10 = vld [vmem:[%s3916_s1 + $0x920] sm:$0xff]  ;;  %v2978_v16 = vld [vmem:[%s3916_s1 + $0x928] sm:$0xff] }
  0x8b   :  { %4176 = vst [vmem:[#allocation258_spill] sm:$0xff] %v2968_v23  ;;  %4177 = vst [vmem:[#allocation259_spill] sm:$0xff] %v2973_v10  ;;  %v2983_v4 = vld [vmem:[%s3916_s1 + $0x930] sm:$0xff]  ;;  %v2988_v11 = vld [vmem:[%s3916_s1 + $0x938] sm:$0xff] }
  0x8c   :  { %4178 = vst [vmem:[#allocation260_spill] sm:$0xff] %v2978_v16  ;;  %4179 = vst [vmem:[#allocation261_spill] sm:$0xff] %v2983_v4  ;;  %v2993_v23 = vld [vmem:[%s3916_s1 + $0x940] sm:$0xff]  ;;  %v2998_v10 = vld [vmem:[%s3916_s1 + $0x948] sm:$0xff] }
  0x8d   :  { %4180 = vst [vmem:[#allocation262_spill] sm:$0xff] %v2988_v11  ;;  %4181 = vst [vmem:[#allocation263_spill] sm:$0xff] %v2993_v23  ;;  %v3003_v16 = vld [vmem:[%s3916_s1 + $0x950] sm:$0xff]  ;;  %v3008_v4 = vld [vmem:[%s3916_s1 + $0x958] sm:$0xff] }
  0x8e   :  { %4182 = vst [vmem:[#allocation264_spill] sm:$0xff] %v2998_v10  ;;  %4183 = vst [vmem:[#allocation265_spill] sm:$0xff] %v3003_v16  ;;  %v3013_v11 = vld [vmem:[%s3916_s1 + $0x960] sm:$0xff]  ;;  %v3018_v23 = vld [vmem:[%s3916_s1 + $0x968] sm:$0xff] }
  0x8f   :  { %4184 = vst [vmem:[#allocation266_spill] sm:$0xff] %v3008_v4  ;;  %4185 = vst [vmem:[#allocation267_spill] sm:$0xff] %v3013_v11  ;;  %v3023_v10 = vld [vmem:[%s3916_s1 + $0x970] sm:$0xff]  ;;  %v3028_v16 = vld [vmem:[%s3916_s1 + $0x978] sm:$0xff] }
  0x90   :  { %4186 = vst [vmem:[#allocation268_spill] sm:$0xff] %v3018_v23  ;;  %4187 = vst [vmem:[#allocation269_spill] sm:$0xff] %v3023_v10  ;;  %v3033_v4 = vld [vmem:[%s3916_s1 + $0x980] sm:$0xff]  ;;  %v3038_v11 = vld [vmem:[%s3916_s1 + $0x988] sm:$0xff] }
  0x91   :  { %4188 = vst [vmem:[#allocation270_spill] sm:$0xff] %v3028_v16  ;;  %4189 = vst [vmem:[#allocation271_spill] sm:$0xff] %v3033_v4  ;;  %v3043_v23 = vld [vmem:[%s3916_s1 + $0x990] sm:$0xff]  ;;  %v3048_v10 = vld [vmem:[%s3916_s1 + $0x998] sm:$0xff] }
  0x92   :  { %4190 = vst [vmem:[#allocation272_spill] sm:$0xff] %v3038_v11  ;;  %4191 = vst [vmem:[#allocation273_spill] sm:$0xff] %v3043_v23  ;;  %v3053_v16 = vld [vmem:[%s3916_s1 + $0x9a0] sm:$0xff]  ;;  %v3058_v4 = vld [vmem:[%s3916_s1 + $0x9a8] sm:$0xff] }
  0x93   :  { %4192 = vst [vmem:[#allocation274_spill] sm:$0xff] %v3048_v10  ;;  %4193 = vst [vmem:[#allocation275_spill] sm:$0xff] %v3053_v16  ;;  %v3063_v11 = vld [vmem:[%s3916_s1 + $0x9b0] sm:$0xff]  ;;  %v3068_v23 = vld [vmem:[%s3916_s1 + $0x9b8] sm:$0xff] }
  0x94   :  { %4194 = vst [vmem:[#allocation276_spill] sm:$0xff] %v3058_v4  ;;  %4195 = vst [vmem:[#allocation277_spill] sm:$0xff] %v3063_v11  ;;  %v3073_v10 = vld [vmem:[%s3916_s1 + $0x9c0] sm:$0xff]  ;;  %v3078_v16 = vld [vmem:[%s3916_s1 + $0x9c8] sm:$0xff] }
  0x95   :  { %4196 = vst [vmem:[#allocation278_spill] sm:$0xff] %v3068_v23  ;;  %4197 = vst [vmem:[#allocation279_spill] sm:$0xff] %v3073_v10  ;;  %v3083_v4 = vld [vmem:[%s3916_s1 + $0x9d0] sm:$0xff]  ;;  %v3088_v11 = vld [vmem:[%s3916_s1 + $0x9d8] sm:$0xff] }
  0x96   :  { %4198 = vst [vmem:[#allocation280_spill] sm:$0xff] %v3078_v16  ;;  %4199 = vst [vmem:[#allocation281_spill] sm:$0xff] %v3083_v4  ;;  %v3093_v23 = vld [vmem:[%s3916_s1 + $0x9e0] sm:$0xff]  ;;  %v3098_v10 = vld [vmem:[%s3916_s1 + $0x9e8] sm:$0xff] }
  0x97   :  { %4200 = vst [vmem:[#allocation282_spill] sm:$0xff] %v3088_v11  ;;  %4201 = vst [vmem:[#allocation283_spill] sm:$0xff] %v3093_v23  ;;  %v3103_v16 = vld [vmem:[%s3916_s1 + $0x9f0] sm:$0xff]  ;;  %v3108_v4 = vld [vmem:[%s3916_s1 + $0x9f8] sm:$0xff] }
  0x98   :  { %4202 = vst [vmem:[#allocation284_spill] sm:$0xff] %v3098_v10  ;;  %4203 = vst [vmem:[#allocation285_spill] sm:$0xff] %v3103_v16  ;;  %v3113_v11 = vld [vmem:[%s3916_s1 + $0xa00] sm:$0xff]  ;;  %v3118_v23 = vld [vmem:[%s3916_s1 + $0xa08] sm:$0xff] }
  0x99   :  { %4204 = vst [vmem:[#allocation286_spill] sm:$0xff] %v3108_v4  ;;  %4205 = vst [vmem:[#allocation287_spill] sm:$0xff] %v3113_v11  ;;  %v3123_v10 = vld [vmem:[%s3916_s1 + $0xa10] sm:$0xff]  ;;  %v3128_v16 = vld [vmem:[%s3916_s1 + $0xa18] sm:$0xff] }
  0x9a   :  { %4206 = vst [vmem:[#allocation288_spill] sm:$0xff] %v3118_v23  ;;  %4207 = vst [vmem:[#allocation289_spill] sm:$0xff] %v3123_v10  ;;  %v3133_v4 = vld [vmem:[%s3916_s1 + $0xa20] sm:$0xff]  ;;  %v3138_v11 = vld [vmem:[%s3916_s1 + $0xa28] sm:$0xff] }
  0x9b   :  { %4208 = vst [vmem:[#allocation290_spill] sm:$0xff] %v3128_v16  ;;  %4209 = vst [vmem:[#allocation291_spill] sm:$0xff] %v3133_v4  ;;  %v3143_v23 = vld [vmem:[%s3916_s1 + $0xa30] sm:$0xff]  ;;  %v3148_v10 = vld [vmem:[%s3916_s1 + $0xa38] sm:$0xff] }
  0x9c   :  { %4210 = vst [vmem:[#allocation292_spill] sm:$0xff] %v3138_v11  ;;  %4211 = vst [vmem:[#allocation293_spill] sm:$0xff] %v3143_v23  ;;  %v3153_v16 = vld [vmem:[%s3916_s1 + $0xa40] sm:$0xff]  ;;  %v3158_v4 = vld [vmem:[%s3916_s1 + $0xa48] sm:$0xff] }
  0x9d   :  { %4212 = vst [vmem:[#allocation294_spill] sm:$0xff] %v3148_v10  ;;  %4213 = vst [vmem:[#allocation295_spill] sm:$0xff] %v3153_v16  ;;  %v3163_v11 = vld [vmem:[%s3916_s1 + $0xa50] sm:$0xff]  ;;  %v3168_v23 = vld [vmem:[%s3916_s1 + $0xa58] sm:$0xff] }
  0x9e   :  { %4214 = vst [vmem:[#allocation296_spill] sm:$0xff] %v3158_v4  ;;  %4215 = vst [vmem:[#allocation297_spill] sm:$0xff] %v3163_v11  ;;  %v3173_v10 = vld [vmem:[%s3916_s1 + $0xa60] sm:$0xff]  ;;  %v3178_v16 = vld [vmem:[%s3916_s1 + $0xa68] sm:$0xff] }
  0x9f   :  { %4216 = vst [vmem:[#allocation298_spill] sm:$0xff] %v3168_v23  ;;  %4217 = vst [vmem:[#allocation299_spill] sm:$0xff] %v3173_v10  ;;  %v3183_v4 = vld [vmem:[%s3916_s1 + $0xa70] sm:$0xff]  ;;  %v3188_v11 = vld [vmem:[%s3916_s1 + $0xa78] sm:$0xff] }
  0xa0   :  { %4218 = vst [vmem:[#allocation300_spill] sm:$0xff] %v3178_v16  ;;  %4219 = vst [vmem:[#allocation301_spill] sm:$0xff] %v3183_v4  ;;  %v3193_v23 = vld [vmem:[%s3916_s1 + $0xa80] sm:$0xff]  ;;  %v3198_v10 = vld [vmem:[%s3916_s1 + $0xa88] sm:$0xff] }
  0xa1   :  { %4220 = vst [vmem:[#allocation302_spill] sm:$0xff] %v3188_v11  ;;  %4221 = vst [vmem:[#allocation303_spill] sm:$0xff] %v3193_v23  ;;  %v3203_v16 = vld [vmem:[%s3916_s1 + $0xa90] sm:$0xff]  ;;  %v3208_v4 = vld [vmem:[%s3916_s1 + $0xa98] sm:$0xff] }
  0xa2   :  { %4222 = vst [vmem:[#allocation304_spill] sm:$0xff] %v3198_v10  ;;  %4223 = vst [vmem:[#allocation305_spill] sm:$0xff] %v3203_v16  ;;  %v3213_v11 = vld [vmem:[%s3916_s1 + $0xaa0] sm:$0xff]  ;;  %v3218_v23 = vld [vmem:[%s3916_s1 + $0xaa8] sm:$0xff] }
  0xa3   :  { %4224 = vst [vmem:[#allocation306_spill] sm:$0xff] %v3208_v4  ;;  %4225 = vst [vmem:[#allocation307_spill] sm:$0xff] %v3213_v11  ;;  %v3223_v10 = vld [vmem:[%s3916_s1 + $0xab0] sm:$0xff]  ;;  %v3228_v16 = vld [vmem:[%s3916_s1 + $0xab8] sm:$0xff] }
  0xa4   :  { %4226 = vst [vmem:[#allocation308_spill] sm:$0xff] %v3218_v23  ;;  %4227 = vst [vmem:[#allocation309_spill] sm:$0xff] %v3223_v10  ;;  %v3233_v4 = vld [vmem:[%s3916_s1 + $0xac0] sm:$0xff]  ;;  %v3238_v11 = vld [vmem:[%s3916_s1 + $0xac8] sm:$0xff] }
  0xa5   :  { %4228 = vst [vmem:[#allocation310_spill] sm:$0xff] %v3228_v16  ;;  %4229 = vst [vmem:[#allocation311_spill] sm:$0xff] %v3233_v4  ;;  %v3243_v23 = vld [vmem:[%s3916_s1 + $0xad0] sm:$0xff]  ;;  %v3248_v10 = vld [vmem:[%s3916_s1 + $0xad8] sm:$0xff] }
  0xa6   :  { %4230 = vst [vmem:[#allocation312_spill] sm:$0xff] %v3238_v11  ;;  %4231 = vst [vmem:[#allocation313_spill] sm:$0xff] %v3243_v23  ;;  %v3253_v16 = vld [vmem:[%s3916_s1 + $0xae0] sm:$0xff]  ;;  %v3258_v4 = vld [vmem:[%s3916_s1 + $0xae8] sm:$0xff] }
  0xa7   :  { %4232 = vst [vmem:[#allocation314_spill] sm:$0xff] %v3248_v10  ;;  %4233 = vst [vmem:[#allocation315_spill] sm:$0xff] %v3253_v16  ;;  %v3263_v11 = vld [vmem:[%s3916_s1 + $0xaf0] sm:$0xff]  ;;  %v3268_v23 = vld [vmem:[%s3916_s1 + $0xaf8] sm:$0xff] }
  0xa8   :  { %4234 = vst [vmem:[#allocation316_spill] sm:$0xff] %v3258_v4  ;;  %4235 = vst [vmem:[#allocation317_spill] sm:$0xff] %v3263_v11  ;;  %v3273_v10 = vld [vmem:[%s3916_s1 + $0xb00] sm:$0xff]  ;;  %v3278_v16 = vld [vmem:[%s3916_s1 + $0xb08] sm:$0xff]  ;;  %v402_v4 = vlaneseq }
  0xa9   :  { %4236 = vst [vmem:[#allocation318_spill] sm:$0xff] %v3268_v23  ;;  %4237 = vst [vmem:[#allocation319_spill] sm:$0xff] %v3273_v10  ;;  %v3283_v11 = vld [vmem:[%s3916_s1 + $0xb10] sm:$0xff]  ;;  %v3288_v23 = vld [vmem:[%s3916_s1 + $0xb18] sm:$0xff] }
  0xaa   :  { %4238 = vst [vmem:[#allocation320_spill] sm:$0xff] %v3278_v16  ;;  %4239 = vst [vmem:[#allocation321_spill] sm:$0xff] %v3283_v11  ;;  %v3293_v10 = vld [vmem:[%s3916_s1 + $0xb20] sm:$0xff]  ;;  %v3298_v16 = vld [vmem:[%s3916_s1 + $0xb28] sm:$0xff] }
  0xab   :  { %4240 = vst [vmem:[#allocation322_spill] sm:$0xff] %v3288_v23  ;;  %4241 = vst [vmem:[#allocation323_spill] sm:$0xff] %v3293_v10  ;;  %v3303_v28 = vld [vmem:[%s3916_s1 + $0xb30] sm:$0xff]  ;;  %v3308_v11 = vld [vmem:[%s3916_s1 + $0xb38] sm:$0xff] }
  0xac   :  { %4242 = vst [vmem:[#allocation324_spill] sm:$0xff] %v3298_v16  ;;  %4243 = vst [vmem:[#allocation325_spill] sm:$0xff] %v3303_v28  ;;  %v3313_v23 = vld [vmem:[%s3916_s1 + $0xb40] sm:$0xff]  ;;  %v3318_v10 = vld [vmem:[%s3916_s1 + $0xb48] sm:$0xff] }
  0xad   :  { %4244 = vst [vmem:[#allocation326_spill] sm:$0xff] %v3308_v11  ;;  %4245 = vst [vmem:[#allocation327_spill] sm:$0xff] %v3313_v23  ;;  %v3323_v16 = vld [vmem:[%s3916_s1 + $0xb50] sm:$0xff]  ;;  %v3328_v28 = vld [vmem:[%s3916_s1 + $0xb58] sm:$0xff] }
  0xae   :  { %4246 = vst [vmem:[#allocation328_spill] sm:$0xff] %v3318_v10  ;;  %4247 = vst [vmem:[#allocation329_spill] sm:$0xff] %v3323_v16  ;;  %v3333_v11 = vld [vmem:[%s3916_s1 + $0xb60] sm:$0xff]  ;;  %v3338_v23 = vld [vmem:[%s3916_s1 + $0xb68] sm:$0xff]  ;;  %v3340_v10 = vshrl.u32 %v402_v4, 7 }
  0xaf   :  { %4248 = vst [vmem:[#allocation330_spill] sm:$0xff] %v3328_v28  ;;  %4249 = vst [vmem:[#allocation331_spill] sm:$0xff] %v3333_v11  ;;  %v3345_v16 = vld [vmem:[%s3916_s1 + $0xb70] sm:$0xff]  ;;  %v3350_v28 = vld [vmem:[%s3916_s1 + $0xb78] sm:$0xff] }
  0xb0   :  { %4250 = vst [vmem:[#allocation332_spill] sm:$0xff] %v3338_v23  ;;  %4251 = vst [vmem:[#allocation333_spill] sm:$0xff] %v3340_v10  ;;  %v3355_v11 = vld [vmem:[%s3916_s1 + $0xb80] sm:$0xff]  ;;  %v3360_v4 = vld [vmem:[%s3916_s1 + $0xb88] sm:$0xff]  ;;  %v408_v5 = vsub.s32 1, %v3340_v10 }
  0xb1   :  { %4252 = vst [vmem:[#allocation334_spill] sm:$0xff] %v3345_v16  ;;  %4253 = vst [vmem:[#allocation335_spill] sm:$0xff] %v3350_v28  ;;  %v3365_v23 = vld [vmem:[%s3916_s1 + $0xb90] sm:$0xff]  ;;  %v3370_v16 = vld [vmem:[%s3916_s1 + $0xb98] sm:$0xff] }
  0xb2   :  { %4254 = vst [vmem:[#allocation336_spill] sm:$0xff] %v3355_v11  ;;  %4255 = vst [vmem:[#allocation337_spill] sm:$0xff] %v3360_v4  ;;  %v3375_v28 = vld [vmem:[%s3916_s1 + $0xba0] sm:$0xff]  ;;  %v3380_v11 = vld [vmem:[%s3916_s1 + $0xba8] sm:$0xff] }
  0xb3   :  { %4256 = vst [vmem:[#allocation338_spill] sm:$0xff] %v3365_v23  ;;  %4257 = vst [vmem:[#allocation339_spill] sm:$0xff] %v3370_v16  ;;  %v3385_v4 = vld [vmem:[%s3916_s1 + $0xbb0] sm:$0xff]  ;;  %v3390_v23 = vld [vmem:[%s3916_s1 + $0xbb8] sm:$0xff] }
  0xb4   :  { %4258 = vst [vmem:[#allocation340_spill] sm:$0xff] %v3375_v28  ;;  %4259 = vst [vmem:[#allocation341_spill] sm:$0xff] %v3380_v11  ;;  %v3395_v16 = vld [vmem:[%s3916_s1 + $0xbc0] sm:$0xff]  ;;  %v3400_v28 = vld [vmem:[%s3916_s1 + $0xbc8] sm:$0xff]  ;;  %v404_v11 = vsub.s32 0, %v3340_v10 }
  0xb5   :  { %4260 = vst [vmem:[#allocation342_spill] sm:$0xff] %v3385_v4  ;;  %4261 = vst [vmem:[#allocation343_spill] sm:$0xff] %v3390_v23  ;;  %v3407_v4 = vld [vmem:[%s3916_s1 + $0xbd0] sm:$0xff]  ;;  %v3412_v23 = vld [vmem:[%s3916_s1 + $0xbd8] sm:$0xff] }
  0xb6   :  { %4262 = vst [vmem:[#allocation344_spill] sm:$0xff] %v3395_v16  ;;  %4263 = vst [vmem:[#allocation345_spill] sm:$0xff] %v3400_v28  ;;  %v3417_v16 = vld [vmem:[%s3916_s1 + $0xbe0] sm:$0xff]  ;;  %v3422_v28 = vld [vmem:[%s3916_s1 + $0xbe8] sm:$0xff] }
  0xb7   :  { %4264 = vst [vmem:[#allocation346_spill] sm:$0xff] %v3407_v4  ;;  %4265 = vst [vmem:[#allocation347_spill] sm:$0xff] %v3412_v23  ;;  %v3427_v17 = vld [vmem:[%s3916_s1 + $0xbf0] sm:$0xff]  ;;  %v3432_v4 = vld [vmem:[%s3916_s1 + $0xbf8] sm:$0xff]  ;;  %s3452_s1 = smov 0  }
  0xb8   :  { %4266 = vst [vmem:[#allocation348_spill] sm:$0xff] %v3417_v16  ;;  %4267 = vst [vmem:[#allocation349_spill] sm:$0xff] %v3422_v28  ;;  %v398_v23 = vld [vmem:[%s3918_s2] sm:$0x3]  ;;  %v399_v16 = vld [vmem:[%s3918_s2 + $0x2] sm:$0x3] }
  0xb9   :  { %4268 = vst [vmem:[#allocation350_spill] sm:$0xff] %v3427_v17  ;;  %v3440_v22 = vrot.slane %v398_v23, %v404_v11  ;;  %v3442_v28 = vrot.slane %v398_v23, %v408_v5  ;;  %v3444_v34 = vrot.slane %v399_v16, %v404_v11  ;;  %v3446_v17 = vrot.slane %v399_v16, %v408_v5 }
  0xbb   :  { %4269 = vst [vmem:[#allocation351_spill] sm:$0xff] %v3444_v34  ;;  %4270 = vst [vmem:[#allocation352_spill] sm:$0xff] %v3446_v17 }
  0xbc LB: > { %v4271_v1 = vld [vmem:[#allocation3_spill] sm:$0xff]  ;;  %v4272_v7 = vld [vmem:[#allocation9_spill] sm:$0xff]  ;;  %v4275_v0 = vld [vmem:[#allocation2_spill] sm:$0xff]  ;;  %s1034_s2 = smul.u32 24, %s1487_s1  ;;  %s1035_s4 = sshll.u32 %s1487_s1, 3  ;;  %s1487_s1 = sphi %s3452_s1, %s427_s1   ;;  %v1483_v47 = vphi %v3450_v47, %v1001_v47   ;;  %v1479_v35 = vphi %v3448_v35, %v1002_v35  }
  0xbd   : > { %v1036_v5 = vpack.c.bf16 %v4272_v7, %v4271_v1  ;;  %v4273_v3 = vld [vmem:[#allocation5_spill] sm:$0xff]  ;;  %v4274_v9 = vld [vmem:[#allocation11_spill] sm:$0xff]  ;;  %v4276_v6 = vld [vmem:[#allocation8_spill] sm:$0xff]  ;;  %s3896_s7 = scalar_lea.vmem %s3917_s3, %s1035_s4  ;;  %s427_s1 = sadd.s32 1, %s1487_s1  }
  0xbe   : > { %v1100_v11 = vpack.c.bf16 %v4274_v9, %v4273_v3  ;;  %v1038_v16 = vpack.c.bf16 %v4276_v6, %v4275_v0  ;;  %v4277_v2 = vld [vmem:[#allocation4_spill] sm:$0xff]  ;;  %v4278_v8 = vld [vmem:[#allocation10_spill] sm:$0xff]  ;;  %v4279_v13 = vld [vmem:[#allocation15_spill] sm:$0xff]  ;;  %v1044_v0 = vpack.c.bf16 %v1668_v31, %v1638_v25  ;;  %s3882_s30 = scalar_lea.vmem %s3915_s0, %s1034_s2  ;;  %p424_p0 = scmp.ge.s32.totalorder %s427_s1, 4  }
  0xbf   : > { %v1102_v23 = vpack.c.bf16 %v4278_v8, %v4277_v2  ;;  %v4280_v19 = vld [vmem:[#allocation21_spill] sm:$0xff]  ;;  %v4282_v21 = vld [vmem:[#allocation23_spill] sm:$0xff]  ;;  %1037 = vmatprep.subr.bf16.mxu0 %v1036_v5  ;;  %v4283_v12 = vld [vmem:[#allocation14_spill] sm:$0xff]  ;;  %v1108_v2 = vpack.c.bf16 %v1678_v33, %v1648_v27 }
  0xc0   : > { %v1040_v17 = vpack.c.bf16 %v4280_v19, %v4279_v13  ;;  %v4281_v15 = vld [vmem:[#allocation17_spill] sm:$0xff]  ;;  %1101 = vmatprep.subr.bf16.mxu1 %v1100_v11  ;;  %1039 = vmatpush1.bf16.msra.mxu0 %v1038_v16  ;;  %v4284_v18 = vld [vmem:[#allocation20_spill] sm:$0xff]  ;;  %v4286_v20 = vld [vmem:[#allocation22_spill] sm:$0xff]  ;;  %v1110_v11 = vpack.c.bf16 %v1673_v32, %v1643_v26  ;;  %v1489_v16 = vmov 1983009808  }
  0xc1   : > { %v1104_v34 = vpack.c.bf16 %v4282_v21, %v4281_v15  ;;  %1103 = vmatpush1.bf16.msra.mxu1 %v1102_v23  ;;  %v1042_v1 = vpack.c.bf16 %v4284_v18, %v4283_v12  ;;  %v4285_v14 = vld [vmem:[#allocation16_spill] sm:$0xff]  ;;  %v4287_v24 = vld [vmem:[#allocation26_spill] sm:$0xff]  ;;  %v439_v23 = vunpack.c.l.s4 %v1489_v16  ;;  %v4288_v10 = vld [vmem:[#allocation333_spill] sm:$0xff] }
  0xc2   : > { %v1106_v3 = vpack.c.bf16 %v4286_v20, %v4285_v14  ;;  %1041 = vmatprep.subr.bf16.mxu0 %v1040_v17  ;;  %v1046_v5 = vpack.c.bf16 %v1663_v30, %v4287_v24  ;;  %v1048_v17 = vpack.c.bf16 %v1728_v43, %v1698_v37  ;;  %v4292_v7 = vld [vmem:[#allocation48_spill] sm:$0xff]  ;;  %v4295_v13 = vld [vmem:[#allocation54_spill] sm:$0xff]  ;;  %v4300_v18 = vld [vmem:[#allocation59_spill] sm:$0xff] }
  0xc3   : > { %1105 = vmatprep.subr.bf16.mxu1 %v1104_v34  ;;  %v1112_v34 = vpack.c.bf16 %v1738_v45, %v1708_v39  ;;  %v440_v6 = vunpack.c.0.s8 %v439_v23  ;;  %v1058_v23 = vpack.c.bf16 %v1843_v59, %v1813_v60  ;;  %v4293_v9 = vld [vmem:[#allocation52_spill] sm:$0xff]  ;;  %v4306_v19 = vld [vmem:[#allocation69_spill] sm:$0xff]  ;;  %v4308_v20 = vld [vmem:[#allocation71_spill] sm:$0xff] }
  0xc4   : > { %1043 = vmatpush1.bf16.msra.mxu0 %v1042_v1  ;;  %v1050_v1 = vpack.c.bf16 %v1723_v42, %v1693_v36  ;;  %v4296_v14 = vld [vmem:[#allocation60_spill] sm:$0xff] }
  0xc5   : > { %1107 = vmatpush1.bf16.msra.mxu1 %v1106_v3  ;;  %1045 = vmatprep.subr.bf16.mxu0 %v1044_v0  ;;  %v1114_v3 = vpack.c.bf16 %v1733_v44, %v1703_v38  ;;  %v1052_v0 = vpack.c.bf16 %v1788_v55, %v1758_v49  ;;  %v3508_v16 = vsub.s32 %v440_v6, %v4288_v10  ;;  %v4294_v10 = vld [vmem:[#allocation58_spill] sm:$0xff] }
  0xc6   : > { %1109 = vmatprep.subr.bf16.mxu1 %v1108_v2  ;;  %v1116_v2 = vpack.c.bf16 %v1798_v57, %v1768_v51  ;;  %v1064_v12 = vpack.c.bf16 %v4294_v10, %v4293_v9  ;;  %v1128_v15 = vpack.c.bf16 %v4296_v14, %v4295_v13  ;;  %v4303_v10 = vld [vmem:[#allocation66_spill] sm:$0xff]  ;;  %v4305_v14 = vld [vmem:[#allocation63_spill] sm:$0xff] }
  0xc7   : > { %v3520_v6 = vrot.slane %v1483_v47, %v3508_v16 }
  0xc8   : > { %1047 = vmatpush1.bf16.msra.mxu0 %v1046_v5  ;;  %v1054_v5 = vpack.c.bf16 %v1783_v54, %v1753_v48 }
  0xc9   : > { %1111 = vmatpush1.bf16.msra.mxu1 %v1110_v11  ;;  %1049 = vmatprep.subr.bf16.mxu0 %v1048_v17  ;;  %v1118_v11 = vpack.c.bf16 %v1793_v56, %v1763_v50  ;;  %v1056_v17 = vpack.c.bf16 %v1848_v53, %v1818_v61 }
  0xca   : > { %1113 = vmatprep.subr.bf16.mxu1 %v1112_v34  ;;  %v1120_v34 = vpack.c.bf16 %v1858_v58, %v1828_v63 }
  0xcc   : > { %1051 = vmatpush1.bf16.msra.mxu0 %v1050_v1  ;;  %v1122_v1 = vpack.c.bf16 %v1853_v46, %v1823_v62 }
  0xcd   : > { %1115 = vmatpush1.bf16.msra.mxu1 %v1114_v3  ;;  %1053 = vmatprep.subr.bf16.mxu0 %v1052_v0  ;;  %v1060_v3 = vpack.c.bf16 %v1908_v29, %v1878_v41  ;;  %v1124_v0 = vpack.c.bf16 %v1918_v40, %v1888_v52 }
  0xce   : > { %1117 = vmatprep.subr.bf16.mxu1 %v1116_v2  ;;  %v3524_v2 = vcombine.high %v3520_v6, %v3520_v6 }
  0xd0   : > { %1055 = vmatpush1.bf16.msra.mxu0 %v1054_v5  ;;  %v4289_v5 = vld [vmem:[#allocation43_spill] sm:$0xff]  ;;  %512 = vmatprep.mubr.f32.mxu0 %v3524_v2 }
  0xd1   : > { %1119 = vmatpush1.bf16.msra.mxu1 %v1118_v11  ;;  %1057 = vmatprep.subr.bf16.mxu0 %v1056_v17  ;;  %v4290_v11 = vld [vmem:[#allocation47_spill] sm:$0xff] }
  0xd2   : > { %1121 = vmatprep.subr.bf16.mxu1 %v1120_v34  ;;  %v1062_v17 = vpack.c.bf16 %v4290_v11, %v4289_v5  ;;  %v4291_v34 = vld [vmem:[#allocation44_spill] sm:$0xff]  ;;  %583 = vmatprep.mubr.f32.mxu1 %v3524_v2  ;;  %v4299_v11 = vld [vmem:[#allocation53_spill] sm:$0xff] }
  0xd3   : > { %v1126_v8 = vpack.c.bf16 %v4292_v7, %v4291_v34  ;;  %v1130_v7 = vpack.c.bf16 %v4300_v18, %v4299_v11  ;;  %v4304_v34 = vld [vmem:[#allocation72_spill] sm:$0xff]  ;;  %v4310_v18 = vld [vmem:[#allocation82_spill] sm:$0xff] }
  0xd4   : > { %1059 = vmatpush1.bf16.msra.mxu0 %v1058_v23  ;;  %v4297_v23 = vld [vmem:[#allocation51_spill] sm:$0xff]  ;;  %v1132_v13 = vpack.c.bf16 %v4304_v34, %v4303_v10 }
  0xd5   : > { %1123 = vmatpush1.bf16.msra.mxu1 %v1122_v1  ;;  %1061 = vmatprep.subr.bf16.mxu0 %v1060_v3  ;;  %v4298_v1 = vld [vmem:[#allocation57_spill] sm:$0xff]  ;;  %v4301_v3 = vld [vmem:[#allocation64_spill] sm:$0xff]  ;;  %v4316_v10 = vld [vmem:[#allocation83_spill] sm:$0xff] }
  0xd6   : > { %1125 = vmatprep.subr.bf16.mxu1 %v1124_v0  ;;  %v1066_v5 = vpack.c.bf16 %v4298_v1, %v4297_v23  ;;  %v4302_v0 = vld [vmem:[#allocation70_spill] sm:$0xff]  ;;  %v4309_v23 = vld [vmem:[#allocation76_spill] sm:$0xff] }
  0xd7   : > { %v1068_v9 = vpack.c.bf16 %v4302_v0, %v4301_v3  ;;  %v4312_v1 = vld [vmem:[#allocation84_spill] sm:$0xff]  ;;  %v4313_v3 = vld [vmem:[#allocation75_spill] sm:$0xff]  ;;  %v4314_v0 = vld [vmem:[#allocation81_spill] sm:$0xff] }
  0xd8   : > { %1063 = vmatpush1.bf16.msra.mxu0 %v1062_v17  ;;  %v1070_v17 = vpack.c.bf16 %v4306_v19, %v4305_v14  ;;  %v4317_v19 = vld [vmem:[#allocation88_spill] sm:$0xff] }
  0xd9   : > { %1127 = vmatpush1.bf16.msra.mxu1 %v1126_v8  ;;  %1065 = vmatprep.subr.bf16.mxu0 %v1064_v12  ;;  %v4307_v8 = vld [vmem:[#allocation65_spill] sm:$0xff]  ;;  %v1072_v12 = vpack.c.bf16 %v4310_v18, %v4309_v23  ;;  %v4320_v14 = vld [vmem:[#allocation96_spill] sm:$0xff]  ;;  %v4321_v23 = vld [vmem:[#allocation87_spill] sm:$0xff] }
  0xda   : > { %1129 = vmatprep.subr.bf16.mxu1 %v1128_v15  ;;  %v1134_v21 = vpack.c.bf16 %v4308_v20, %v4307_v8  ;;  %v4311_v15 = vld [vmem:[#allocation78_spill] sm:$0xff]  ;;  %v4322_v18 = vld [vmem:[#allocation93_spill] sm:$0xff] }
  0xdb   : > { %v1136_v11 = vpack.c.bf16 %v4312_v1, %v4311_v15  ;;  %v4318_v20 = vld [vmem:[#allocation94_spill] sm:$0xff]  ;;  %v4324_v15 = vld [vmem:[#allocation95_spill] sm:$0xff] }
  0xdc   : > { %1067 = vmatpush1.bf16.msra.mxu0 %v1066_v5  ;;  %v1074_v5 = vpack.c.bf16 %v4314_v0, %v4313_v3  ;;  %v4325_v3 = vld [vmem:[#allocation100_spill] sm:$0xff]  ;;  %v4326_v0 = vld [vmem:[#allocation106_spill] sm:$0xff] }
  0xdd   : > { %1131 = vmatpush1.bf16.msra.mxu1 %v1130_v7  ;;  %1069 = vmatprep.subr.bf16.mxu0 %v1068_v9  ;;  %v4315_v7 = vld [vmem:[#allocation77_spill] sm:$0xff]  ;;  %v1076_v9 = vpack.c.bf16 %v4318_v20, %v4317_v19  ;;  %v4329_v19 = vld [vmem:[#allocation99_spill] sm:$0xff] }
  0xde   : > { %1133 = vmatprep.subr.bf16.mxu1 %v1132_v13  ;;  %v1138_v34 = vpack.c.bf16 %v4316_v10, %v4315_v7  ;;  %v4319_v13 = vld [vmem:[#allocation90_spill] sm:$0xff]  ;;  %v4328_v7 = vld [vmem:[#allocation108_spill] sm:$0xff]  ;;  %v4330_v20 = vld [vmem:[#allocation105_spill] sm:$0xff] }
  0xdf   : > { %v1140_v8 = vpack.c.bf16 %v4320_v14, %v4319_v13  ;;  %v4332_v13 = vld [vmem:[#allocation107_spill] sm:$0xff] }
  0xe0   : > { %1071 = vmatpush1.bf16.msra.mxu0 %v1070_v17  ;;  %v1078_v17 = vpack.c.bf16 %v4322_v18, %v4321_v23  ;;  %v4333_v23 = vld [vmem:[#allocation112_spill] sm:$0xff]  ;;  %v4334_v18 = vld [vmem:[#allocation118_spill] sm:$0xff] }
  0xe1   : > { %1135 = vmatpush1.bf16.msra.mxu1 %v1134_v21  ;;  %1073 = vmatprep.subr.bf16.mxu0 %v1072_v12  ;;  %v4323_v21 = vld [vmem:[#allocation89_spill] sm:$0xff]  ;;  %v1080_v12 = vpack.c.bf16 %v4326_v0, %v4325_v3  ;;  %v4337_v3 = vld [vmem:[#allocation111_spill] sm:$0xff] }
  0xe2   : > { %1137 = vmatprep.subr.bf16.mxu1 %v1136_v11  ;;  %v1142_v1 = vpack.c.bf16 %v4324_v15, %v4323_v21  ;;  %v4327_v11 = vld [vmem:[#allocation102_spill] sm:$0xff]  ;;  %v4336_v21 = vld [vmem:[#allocation120_spill] sm:$0xff]  ;;  %v4338_v0 = vld [vmem:[#allocation117_spill] sm:$0xff] }
  0xe3   : > { %v1144_v10 = vpack.c.bf16 %v4328_v7, %v4327_v11  ;;  %v4340_v11 = vld [vmem:[#allocation119_spill] sm:$0xff] }
  0xe4   : > { %1075 = vmatpush1.bf16.msra.mxu0 %v1074_v5  ;;  %v1082_v5 = vpack.c.bf16 %v4330_v20, %v4329_v19  ;;  %v4341_v19 = vld [vmem:[#allocation124_spill] sm:$0xff]  ;;  %v4342_v20 = vld [vmem:[#allocation130_spill] sm:$0xff] }
  0xe5   : > { %1139 = vmatpush1.bf16.msra.mxu1 %v1138_v34  ;;  %1077 = vmatprep.subr.bf16.mxu0 %v1076_v9  ;;  %v4331_v34 = vld [vmem:[#allocation101_spill] sm:$0xff]  ;;  %v1084_v9 = vpack.c.bf16 %v4334_v18, %v4333_v23  ;;  %v4345_v23 = vld [vmem:[#allocation123_spill] sm:$0xff] }
  0xe6   : > { %1141 = vmatprep.subr.bf16.mxu1 %v1140_v8  ;;  %v1146_v14 = vpack.c.bf16 %v4332_v13, %v4331_v34  ;;  %v4335_v8 = vld [vmem:[#allocation114_spill] sm:$0xff]  ;;  %v4344_v34 = vld [vmem:[#allocation132_spill] sm:$0xff]  ;;  %v4346_v18 = vld [vmem:[#allocation129_spill] sm:$0xff] }
  0xe7   : > { %v1148_v15 = vpack.c.bf16 %v4336_v21, %v4335_v8  ;;  %v4348_v8 = vld [vmem:[#allocation131_spill] sm:$0xff] }
  0xe8   : > { %1079 = vmatpush1.bf16.msra.mxu0 %v1078_v17  ;;  %v1086_v17 = vpack.c.bf16 %v4338_v0, %v4337_v3  ;;  %v4349_v3 = vld [vmem:[#allocation136_spill] sm:$0xff]  ;;  %v4350_v0 = vld [vmem:[#allocation142_spill] sm:$0xff] }
  0xe9   : > { %1143 = vmatpush1.bf16.msra.mxu1 %v1142_v1  ;;  %1081 = vmatprep.subr.bf16.mxu0 %v1080_v12  ;;  %v4339_v1 = vld [vmem:[#allocation113_spill] sm:$0xff]  ;;  %v1088_v12 = vpack.c.bf16 %v4342_v20, %v4341_v19  ;;  %v4353_v19 = vld [vmem:[#allocation135_spill] sm:$0xff] }
  0xea   : > { %1145 = vmatprep.subr.bf16.mxu1 %v1144_v10  ;;  %v1150_v7 = vpack.c.bf16 %v4340_v11, %v4339_v1  ;;  %v4343_v10 = vld [vmem:[#allocation126_spill] sm:$0xff]  ;;  %v4352_v1 = vld [vmem:[#allocation144_spill] sm:$0xff]  ;;  %v4354_v20 = vld [vmem:[#allocation141_spill] sm:$0xff] }
  0xeb   : > { %v1152_v13 = vpack.c.bf16 %v4344_v34, %v4343_v10  ;;  %v4356_v10 = vld [vmem:[#allocation143_spill] sm:$0xff] }
  0xec   : > { %1083 = vmatpush1.bf16.msra.mxu0 %v1082_v5  ;;  %v1090_v5 = vpack.c.bf16 %v4346_v18, %v4345_v23  ;;  %v4357_v23 = vld [vmem:[#allocation148_spill] sm:$0xff]  ;;  %v4358_v18 = vld [vmem:[#allocation154_spill] sm:$0xff] }
  0xed   : > { %1147 = vmatpush1.bf16.msra.mxu1 %v1146_v14  ;;  %1085 = vmatprep.subr.bf16.mxu0 %v1084_v9  ;;  %v4347_v14 = vld [vmem:[#allocation125_spill] sm:$0xff]  ;;  %v1092_v9 = vpack.c.bf16 %v4350_v0, %v4349_v3  ;;  %v4361_v3 = vld [vmem:[#allocation147_spill] sm:$0xff] }
  0xee   : > { %1149 = vmatprep.subr.bf16.mxu1 %v1148_v15  ;;  %v1154_v21 = vpack.c.bf16 %v4348_v8, %v4347_v14  ;;  %v4351_v15 = vld [vmem:[#allocation138_spill] sm:$0xff]  ;;  %v4360_v14 = vld [vmem:[#allocation156_spill] sm:$0xff]  ;;  %v4362_v0 = vld [vmem:[#allocation153_spill] sm:$0xff] }
  0xef   : > { %v1156_v11 = vpack.c.bf16 %v4352_v1, %v4351_v15  ;;  %v4364_v15 = vld [vmem:[#allocation155_spill] sm:$0xff] }
  0xf0   : > { %1087 = vmatpush1.bf16.msra.mxu0 %v1086_v17  ;;  %v1094_v17 = vpack.c.bf16 %v4354_v20, %v4353_v19  ;;  %v4365_v19 = vld [vmem:[#allocation7_spill] sm:$0xff]  ;;  %v4366_v20 = vld [vmem:[#allocation13_spill] sm:$0xff] }
  0xf1   : > { %1151 = vmatpush1.bf16.msra.mxu1 %v1150_v7  ;;  %1089 = vmatprep.subr.bf16.mxu0 %v1088_v12  ;;  %v4355_v7 = vld [vmem:[#allocation137_spill] sm:$0xff]  ;;  %v1096_v12 = vpack.c.bf16 %v4358_v18, %v4357_v23  ;;  %v3610_v23 = vrot.slane %v1479_v35, %v3508_v16 }
  0xf2   : > { %1153 = vmatprep.subr.bf16.mxu1 %v1152_v13  ;;  %v1158_v34 = vpack.c.bf16 %v4356_v10, %v4355_v7  ;;  %v4359_v13 = vld [vmem:[#allocation150_spill] sm:$0xff] }
  0xf3   : > { %v1160_v8 = vpack.c.bf16 %v4360_v14, %v4359_v13  ;;  %v4368_v7 = vld [vmem:[#allocation166_spill] sm:$0xff]  ;;  %v4371_v13 = vld [vmem:[#allocation159_spill] sm:$0xff]  ;;  %v4372_v14 = vld [vmem:[#allocation165_spill] sm:$0xff] }
  0xf4   : > { %1091 = vmatpush1.bf16.msra.mxu0 %v1090_v5  ;;  %v1098_v5 = vpack.c.bf16 %v4362_v0, %v4361_v3  ;;  %v1230_v3 = vpack.c.bf16 %v4372_v14, %v4371_v13  ;;  %v4383_v14 = vld [vmem:[#allocation184_spill] sm:$0xff] }
  0xf5   : > { %1155 = vmatpush1.bf16.msra.mxu1 %v1154_v21  ;;  %1093 = vmatprep.subr.bf16.mxu0 %v1092_v9  ;;  %v4363_v21 = vld [vmem:[#allocation149_spill] sm:$0xff]  ;;  %v1164_v9 = vpack.c.bf16 %v4366_v20, %v4365_v19  ;;  %v3622_v20 = vcombine.high %v3610_v23, %v3610_v23 }
  0xf6   : > { %1157 = vmatprep.subr.bf16.mxu1 %v1156_v11  ;;  %v1162_v1 = vpack.c.bf16 %v4364_v15, %v4363_v21  ;;  %v4367_v11 = vld [vmem:[#allocation160_spill] sm:$0xff]  ;;  %v4376_v15 = vld [vmem:[#allocation178_spill] sm:$0xff] }
  0xf7   : > { %v1228_v10 = vpack.c.bf16 %v4368_v7, %v4367_v11  ;;  %v4375_v21 = vld [vmem:[#allocation172_spill] sm:$0xff]  ;;  %v4379_v11 = vld [vmem:[#allocation171_spill] sm:$0xff]  ;;  %v4380_v7 = vld [vmem:[#allocation177_spill] sm:$0xff] }
  0xf8   : > { %1095 = vmatpush1.bf16.msra.mxu0 %v1094_v17  ;;  %v4369_v17 = vld [vmem:[#allocation6_spill] sm:$0xff]  ;;  %v1232_v19 = vpack.c.bf16 %v4376_v15, %v4375_v21  ;;  %v4387_v15 = vld [vmem:[#allocation183_spill] sm:$0xff] }
  0xf9   : > { %1159 = vmatpush1.bf16.msra.mxu1 %v1158_v34  ;;  %1097 = vmatprep.subr.bf16.mxu0 %v1096_v12  ;;  %v4370_v34 = vld [vmem:[#allocation12_spill] sm:$0xff]  ;;  %v4373_v12 = vld [vmem:[#allocation19_spill] sm:$0xff] }
  0xfa   : > { %1161 = vmatprep.subr.bf16.mxu1 %v1160_v8  ;;  %v1166_v18 = vpack.c.bf16 %v4370_v34, %v4369_v17  ;;  %v4374_v8 = vld [vmem:[#allocation25_spill] sm:$0xff]  ;;  %v4381_v17 = vld [vmem:[#allocation28_spill] sm:$0xff]  ;;  %v4382_v34 = vld [vmem:[#allocation30_spill] sm:$0xff] }
  0xfb   : > { %v1168_v0 = vpack.c.bf16 %v4374_v8, %v4373_v12  ;;  %v1172_v13 = vpack.c.bf16 %v4382_v34, %v4381_v17  ;;  %v4384_v12 = vld [vmem:[#allocation190_spill] sm:$0xff] }
  0xfc   : > { %1099 = vmatpush1.bf16.msra.mxu0 %v1098_v5  ;;  %v4377_v5 = vld [vmem:[#allocation18_spill] sm:$0xff]  ;;  %v1236_v8 = vpack.c.bf16 %v4384_v12, %v4383_v14  ;;  %v4394_v14 = vld [vmem:[#allocation33_spill] sm:$0xff] }
  0xfd   : > { %1163 = vmatpush1.bf16.msra.mxu1 %v1162_v1  ;;  %1165 = vmatprep.subr.bf16.mxu0 %v1164_v9  ;;  %v4378_v1 = vld [vmem:[#allocation24_spill] sm:$0xff]  ;;  %v4392_v17 = vld [vmem:[#allocation202_spill] sm:$0xff]  ;;  %v4396_v12 = vld [vmem:[#allocation201_spill] sm:$0xff] }
  0xfe   : > { %1229 = vmatprep.subr.bf16.mxu1 %v1228_v10  ;;  %v1170_v9 = vpack.c.bf16 %v4378_v1, %v4377_v5  ;;  %v1234_v10 = vpack.c.bf16 %v4380_v7, %v4379_v11  ;;  %v4388_v5 = vld [vmem:[#allocation189_spill] sm:$0xff]  ;;  %v4391_v7 = vld [vmem:[#allocation196_spill] sm:$0xff] }
  0xff   : > { %513 = vmatmul.mubr.f32.vlgmr.msra.gmra.mrb[0].mxu0 %v3520_v6  ;;  %v1238_v1 = vpack.c.bf16 %v4388_v5, %v4387_v15  ;;  %v1240_v34 = vpack.c.bf16 %v4392_v17, %v4391_v7  ;;  %v4400_v15 = vld [vmem:[#allocation214_spill] sm:$0xff]  ;;  %v4404_v7 = vld [vmem:[#allocation213_spill] sm:$0xff] }
 0x100   : > { %584 = vmatmul.mubr.f32.vlgmr.msra.gmra.mrb[0].mxu1 %v3520_v6  ;;  %1167 = vmatpush1.bf16.msra.mxu0 %v1166_v18  ;;  %v4385_v18 = vld [vmem:[#allocation27_spill] sm:$0xff] }
 0x101   : > { %1231 = vmatpush1.bf16.msra.mxu1 %v1230_v3  ;;  %1169 = vmatprep.subr.bf16.mxu0 %v1168_v0  ;;  %v4386_v3 = vld [vmem:[#allocation29_spill] sm:$0xff]  ;;  %v4389_v0 = vld [vmem:[#allocation32_spill] sm:$0xff] }
 0x102   : > { %1233 = vmatprep.subr.bf16.mxu1 %v1232_v19  ;;  %654 = vmatprep.mubr.f32.mxu0 %v3524_v2  ;;  %v1174_v21 = vpack.c.bf16 %v4386_v3, %v4385_v18  ;;  %v4390_v19 = vld [vmem:[#allocation34_spill] sm:$0xff]  ;;  %v4393_v2 = vld [vmem:[#allocation31_spill] sm:$0xff]  ;;  %v4397_v18 = vld [vmem:[#allocation36_spill] sm:$0xff] }
 0x103   : > { %736 = vmatprep.mubr.f32.mxu1 %v3622_v20  ;;  %v1176_v11 = vpack.c.bf16 %v4390_v19, %v4389_v0  ;;  %v4398_v3 = vld [vmem:[#allocation38_spill] sm:$0xff]  ;;  %v4401_v0 = vld [vmem:[#allocation35_spill] sm:$0xff]  ;;  %v4402_v19 = vld [vmem:[#allocation37_spill] sm:$0xff] }
 0x104   : > { %1171 = vmatpush1.bf16.msra.mxu0 %v1170_v9  ;;  %v1178_v9 = vpack.c.bf16 %v4394_v14, %v4393_v2  ;;  %v4405_v2 = vld [vmem:[#allocation40_spill] sm:$0xff]  ;;  %v4406_v14 = vld [vmem:[#allocation42_spill] sm:$0xff] }
 0x105   : > { %1235 = vmatpush1.bf16.msra.mxu1 %v1234_v10  ;;  %1173 = vmatprep.subr.bf16.mxu0 %v1172_v13  ;;  %v4395_v10 = vld [vmem:[#allocation195_spill] sm:$0xff]  ;;  %v1180_v13 = vpack.c.bf16 %v4398_v3, %v4397_v18  ;;  %v4410_v3 = vld [vmem:[#allocation41_spill] sm:$0xff] }
 0x106   : > { %1237 = vmatprep.subr.bf16.mxu1 %v1236_v8  ;;  %v1242_v24 = vpack.c.bf16 %v4396_v12, %v4395_v10  ;;  %v4399_v8 = vld [vmem:[#allocation208_spill] sm:$0xff]  ;;  %v4408_v10 = vld [vmem:[#allocation226_spill] sm:$0xff]  ;;  %v4409_v18 = vld [vmem:[#allocation39_spill] sm:$0xff] }
 0x107   : > { %v1244_v5 = vpack.c.bf16 %v4400_v15, %v4399_v8  ;;  %v4412_v8 = vld [vmem:[#allocation225_spill] sm:$0xff] }
 0x108   : > { %1175 = vmatpush1.bf16.msra.mxu0 %v1174_v21  ;;  %v1182_v21 = vpack.c.bf16 %v4402_v19, %v4401_v0  ;;  %v4413_v0 = vld [vmem:[#allocation46_spill] sm:$0xff] }
 0x109   : > { %1239 = vmatpush1.bf16.msra.mxu1 %v1238_v1  ;;  %1177 = vmatprep.subr.bf16.mxu0 %v1176_v11  ;;  %v4403_v1 = vld [vmem:[#allocation207_spill] sm:$0xff]  ;;  %v1184_v11 = vpack.c.bf16 %v4406_v14, %v4405_v2  ;;  %v4414_v19 = vld [vmem:[#allocation50_spill] sm:$0xff]  ;;  %v4417_v2 = vld [vmem:[#allocation45_spill] sm:$0xff] }
 0x10a   : > { %1241 = vmatprep.subr.bf16.mxu1 %v1240_v34  ;;  %v1246_v17 = vpack.c.bf16 %v4404_v7, %v4403_v1  ;;  %v4407_v34 = vld [vmem:[#allocation220_spill] sm:$0xff]  ;;  %v4416_v1 = vld [vmem:[#allocation238_spill] sm:$0xff]  ;;  %v4418_v14 = vld [vmem:[#allocation49_spill] sm:$0xff] }
 0x10b   : > { %v1248_v12 = vpack.c.bf16 %v4408_v10, %v4407_v34  ;;  %v4420_v34 = vld [vmem:[#allocation237_spill] sm:$0xff] }
 0x10c   : > { %1179 = vmatpush1.bf16.msra.mxu0 %v1178_v9  ;;  %v1186_v9 = vpack.c.bf16 %v4410_v3, %v4409_v18  ;;  %v4421_v18 = vld [vmem:[#allocation56_spill] sm:$0xff]  ;;  %v4422_v3 = vld [vmem:[#allocation62_spill] sm:$0xff] }
 0x10d   : > { %1243 = vmatpush1.bf16.msra.mxu1 %v1242_v24  ;;  %1181 = vmatprep.subr.bf16.mxu0 %v1180_v13  ;;  %v4411_v24 = vld [vmem:[#allocation219_spill] sm:$0xff]  ;;  %v1188_v13 = vpack.c.bf16 %v4414_v19, %v4413_v0  ;;  %v4426_v19 = vld [vmem:[#allocation61_spill] sm:$0xff] }
 0x10e   : > { %1245 = vmatprep.subr.bf16.mxu1 %v1244_v5  ;;  %v1250_v15 = vpack.c.bf16 %v4412_v8, %v4411_v24  ;;  %v4415_v5 = vld [vmem:[#allocation232_spill] sm:$0xff]  ;;  %v4424_v24 = vld [vmem:[#allocation250_spill] sm:$0xff]  ;;  %v4425_v0 = vld [vmem:[#allocation55_spill] sm:$0xff] }
 0x10f   : > { %v1252_v7 = vpack.c.bf16 %v4416_v1, %v4415_v5  ;;  %v4428_v5 = vld [vmem:[#allocation249_spill] sm:$0xff] }
 0x110   : > { %1183 = vmatpush1.bf16.msra.mxu0 %v1182_v21  ;;  %v1190_v21 = vpack.c.bf16 %v4418_v14, %v4417_v2  ;;  %v4429_v2 = vld [vmem:[#allocation68_spill] sm:$0xff]  ;;  %v4430_v14 = vld [vmem:[#allocation74_spill] sm:$0xff] }
 0x111   : > { %1247 = vmatpush1.bf16.msra.mxu1 %v1246_v17  ;;  %1185 = vmatprep.subr.bf16.mxu0 %v1184_v11  ;;  %v4419_v17 = vld [vmem:[#allocation231_spill] sm:$0xff]  ;;  %v1192_v11 = vpack.c.bf16 %v4422_v3, %v4421_v18  ;;  %v4434_v3 = vld [vmem:[#allocation73_spill] sm:$0xff] }
 0x112   : > { %1249 = vmatprep.subr.bf16.mxu1 %v1248_v12  ;;  %v1254_v10 = vpack.c.bf16 %v4420_v34, %v4419_v17  ;;  %v4423_v12 = vld [vmem:[#allocation244_spill] sm:$0xff]  ;;  %v4432_v17 = vld [vmem:[#allocation262_spill] sm:$0xff]  ;;  %v4433_v18 = vld [vmem:[#allocation67_spill] sm:$0xff] }
 0x113   : > { %v1256_v8 = vpack.c.bf16 %v4424_v24, %v4423_v12  ;;  %v4436_v12 = vld [vmem:[#allocation261_spill] sm:$0xff] }
 0x114   : > { %1187 = vmatpush1.bf16.msra.mxu0 %v1186_v9  ;;  %v1194_v9 = vpack.c.bf16 %v4426_v19, %v4425_v0  ;;  %v4437_v0 = vld [vmem:[#allocation80_spill] sm:$0xff]  ;;  %v4438_v19 = vld [vmem:[#allocation86_spill] sm:$0xff] }
 0x115   : > { %1251 = vmatpush1.bf16.msra.mxu1 %v1250_v15  ;;  %1189 = vmatprep.subr.bf16.mxu0 %v1188_v13  ;;  %v4427_v15 = vld [vmem:[#allocation243_spill] sm:$0xff]  ;;  %v1196_v13 = vpack.c.bf16 %v4430_v14, %v4429_v2  ;;  %v4442_v14 = vld [vmem:[#allocation85_spill] sm:$0xff] }
 0x116   : > { %1253 = vmatprep.subr.bf16.mxu1 %v1252_v7  ;;  %v1258_v1 = vpack.c.bf16 %v4428_v5, %v4427_v15  ;;  %v4431_v7 = vld [vmem:[#allocation256_spill] sm:$0xff]  ;;  %v4440_v15 = vld [vmem:[#allocation274_spill] sm:$0xff]  ;;  %v4441_v2 = vld [vmem:[#allocation79_spill] sm:$0xff] }
 0x117   : > { %v1260_v34 = vpack.c.bf16 %v4432_v17, %v4431_v7  ;;  %v4444_v7 = vld [vmem:[#allocation273_spill] sm:$0xff] }
 0x118   : > { %1191 = vmatpush1.bf16.msra.mxu0 %v1190_v21  ;;  %v1198_v21 = vpack.c.bf16 %v4434_v3, %v4433_v18  ;;  %v4445_v18 = vld [vmem:[#allocation92_spill] sm:$0xff]  ;;  %v4446_v3 = vld [vmem:[#allocation98_spill] sm:$0xff] }
 0x119   : > { %1255 = vmatpush1.bf16.msra.mxu1 %v1254_v10  ;;  %1193 = vmatprep.subr.bf16.mxu0 %v1192_v11  ;;  %v4435_v10 = vld [vmem:[#allocation255_spill] sm:$0xff]  ;;  %v1200_v11 = vpack.c.bf16 %v4438_v19, %v4437_v0  ;;  %v4450_v19 = vld [vmem:[#allocation97_spill] sm:$0xff] }
 0x11a   : > { %1257 = vmatprep.subr.bf16.mxu1 %v1256_v8  ;;  %v1262_v24 = vpack.c.bf16 %v4436_v12, %v4435_v10  ;;  %v4439_v8 = vld [vmem:[#allocation268_spill] sm:$0xff]  ;;  %v4448_v10 = vld [vmem:[#allocation286_spill] sm:$0xff]  ;;  %v4449_v0 = vld [vmem:[#allocation91_spill] sm:$0xff] }
 0x11b   : > { %v1264_v5 = vpack.c.bf16 %v4440_v15, %v4439_v8  ;;  %v4452_v8 = vld [vmem:[#allocation285_spill] sm:$0xff] }
 0x11c   : > { %1195 = vmatpush1.bf16.msra.mxu0 %v1194_v9  ;;  %v1202_v9 = vpack.c.bf16 %v4442_v14, %v4441_v2  ;;  %v4453_v2 = vld [vmem:[#allocation104_spill] sm:$0xff]  ;;  %v4454_v14 = vld [vmem:[#allocation110_spill] sm:$0xff] }
 0x11d   : > { %1259 = vmatpush1.bf16.msra.mxu1 %v1258_v1  ;;  %1197 = vmatprep.subr.bf16.mxu0 %v1196_v13  ;;  %v4443_v1 = vld [vmem:[#allocation267_spill] sm:$0xff]  ;;  %v1204_v13 = vpack.c.bf16 %v4446_v3, %v4445_v18  ;;  %v4458_v3 = vld [vmem:[#allocation109_spill] sm:$0xff] }
 0x11e   : > { %1261 = vmatprep.subr.bf16.mxu1 %v1260_v34  ;;  %v1266_v17 = vpack.c.bf16 %v4444_v7, %v4443_v1  ;;  %v4447_v34 = vld [vmem:[#allocation280_spill] sm:$0xff]  ;;  %v4456_v1 = vld [vmem:[#allocation298_spill] sm:$0xff]  ;;  %v4457_v18 = vld [vmem:[#allocation103_spill] sm:$0xff] }
 0x11f   : > { %v1268_v12 = vpack.c.bf16 %v4448_v10, %v4447_v34  ;;  %v4460_v34 = vld [vmem:[#allocation297_spill] sm:$0xff] }
 0x120   : > { %1199 = vmatpush1.bf16.msra.mxu0 %v1198_v21  ;;  %v1206_v21 = vpack.c.bf16 %v4450_v19, %v4449_v0  ;;  %v4461_v0 = vld [vmem:[#allocation116_spill] sm:$0xff]  ;;  %v4462_v19 = vld [vmem:[#allocation122_spill] sm:$0xff] }
 0x121   : > { %1263 = vmatpush1.bf16.msra.mxu1 %v1262_v24  ;;  %1201 = vmatprep.subr.bf16.mxu0 %v1200_v11  ;;  %v4451_v24 = vld [vmem:[#allocation279_spill] sm:$0xff]  ;;  %v1208_v11 = vpack.c.bf16 %v4454_v14, %v4453_v2  ;;  %v4466_v14 = vld [vmem:[#allocation121_spill] sm:$0xff] }
 0x122   : > { %1265 = vmatprep.subr.bf16.mxu1 %v1264_v5  ;;  %v1270_v15 = vpack.c.bf16 %v4452_v8, %v4451_v24  ;;  %v4455_v5 = vld [vmem:[#allocation292_spill] sm:$0xff]  ;;  %v4464_v24 = vld [vmem:[#allocation310_spill] sm:$0xff]  ;;  %v4465_v2 = vld [vmem:[#allocation115_spill] sm:$0xff] }
 0x123   : > { %v1272_v7 = vpack.c.bf16 %v4456_v1, %v4455_v5  ;;  %v4468_v5 = vld [vmem:[#allocation309_spill] sm:$0xff] }
 0x124   : > { %1203 = vmatpush1.bf16.msra.mxu0 %v1202_v9  ;;  %v1210_v9 = vpack.c.bf16 %v4458_v3, %v4457_v18  ;;  %v4469_v18 = vld [vmem:[#allocation128_spill] sm:$0xff]  ;;  %v4470_v3 = vld [vmem:[#allocation134_spill] sm:$0xff] }
 0x125   : > { %1267 = vmatpush1.bf16.msra.mxu1 %v1266_v17  ;;  %1205 = vmatprep.subr.bf16.mxu0 %v1204_v13  ;;  %v4459_v17 = vld [vmem:[#allocation291_spill] sm:$0xff]  ;;  %v1212_v13 = vpack.c.bf16 %v4462_v19, %v4461_v0  ;;  %v4474_v19 = vld [vmem:[#allocation133_spill] sm:$0xff] }
 0x126   : > { %1269 = vmatprep.subr.bf16.mxu1 %v1268_v12  ;;  %v1274_v10 = vpack.c.bf16 %v4460_v34, %v4459_v17  ;;  %v4463_v12 = vld [vmem:[#allocation304_spill] sm:$0xff]  ;;  %v4472_v17 = vld [vmem:[#allocation322_spill] sm:$0xff]  ;;  %v4473_v0 = vld [vmem:[#allocation127_spill] sm:$0xff] }
 0x127   : > { %v1276_v8 = vpack.c.bf16 %v4464_v24, %v4463_v12  ;;  %v4476_v12 = vld [vmem:[#allocation321_spill] sm:$0xff] }
 0x128   : > { %1207 = vmatpush1.bf16.msra.mxu0 %v1206_v21  ;;  %v1214_v21 = vpack.c.bf16 %v4466_v14, %v4465_v2  ;;  %v4477_v2 = vld [vmem:[#allocation140_spill] sm:$0xff]  ;;  %v4478_v14 = vld [vmem:[#allocation146_spill] sm:$0xff] }
 0x129   : > { %1271 = vmatpush1.bf16.msra.mxu1 %v1270_v15  ;;  %1209 = vmatprep.subr.bf16.mxu0 %v1208_v11  ;;  %v4467_v15 = vld [vmem:[#allocation303_spill] sm:$0xff]  ;;  %v1216_v11 = vpack.c.bf16 %v4470_v3, %v4469_v18  ;;  %v4482_v3 = vld [vmem:[#allocation145_spill] sm:$0xff] }
 0x12a   : > { %1273 = vmatprep.subr.bf16.mxu1 %v1272_v7  ;;  %v1278_v1 = vpack.c.bf16 %v4468_v5, %v4467_v15  ;;  %v4471_v7 = vld [vmem:[#allocation316_spill] sm:$0xff]  ;;  %v4480_v15 = vld [vmem:[#allocation335_spill] sm:$0xff] }
 0x12b   : > { %v1280_v34 = vpack.c.bf16 %v4472_v17, %v4471_v7  ;;  %v4481_v18 = vld [vmem:[#allocation139_spill] sm:$0xff]  ;;  %v4484_v7 = vld [vmem:[#allocation334_spill] sm:$0xff] }
 0x12c   : > { %1211 = vmatpush1.bf16.msra.mxu0 %v1210_v9  ;;  %v1218_v9 = vpack.c.bf16 %v4474_v19, %v4473_v0  ;;  %v4485_v0 = vld [vmem:[#allocation152_spill] sm:$0xff]  ;;  %v4486_v19 = vld [vmem:[#allocation158_spill] sm:$0xff] }
 0x12d   : > { %1275 = vmatpush1.bf16.msra.mxu1 %v1274_v10  ;;  %1213 = vmatprep.subr.bf16.mxu0 %v1212_v13  ;;  %v4475_v10 = vld [vmem:[#allocation315_spill] sm:$0xff]  ;;  %v1220_v13 = vpack.c.bf16 %v4478_v14, %v4477_v2  ;;  %v4490_v14 = vld [vmem:[#allocation157_spill] sm:$0xff] }
 0x12e   : > { %1277 = vmatprep.subr.bf16.mxu1 %v1276_v8  ;;  %v1282_v24 = vpack.c.bf16 %v4476_v12, %v4475_v10  ;;  %v4479_v8 = vld [vmem:[#allocation328_spill] sm:$0xff]  ;;  %v4488_v10 = vld [vmem:[#allocation347_spill] sm:$0xff] }
 0x12f   : > { %v1284_v5 = vpack.c.bf16 %v4480_v15, %v4479_v8  ;;  %v4489_v2 = vld [vmem:[#allocation151_spill] sm:$0xff]  ;;  %v4492_v8 = vld [vmem:[#allocation346_spill] sm:$0xff] }
 0x130   : > { %1215 = vmatpush1.bf16.msra.mxu0 %v1214_v21  ;;  %v1222_v21 = vpack.c.bf16 %v4482_v3, %v4481_v18  ;;  %v4493_v18 = vld [vmem:[#allocation162_spill] sm:$0xff]  ;;  %v4494_v3 = vld [vmem:[#allocation168_spill] sm:$0xff] }
 0x131   : > { %1279 = vmatpush1.bf16.msra.mxu1 %v1278_v1  ;;  %1217 = vmatprep.subr.bf16.mxu0 %v1216_v11  ;;  %v4483_v1 = vld [vmem:[#allocation327_spill] sm:$0xff]  ;;  %v1224_v11 = vpack.c.bf16 %v4486_v19, %v4485_v0  ;;  %v4497_v0 = vld [vmem:[#allocation161_spill] sm:$0xff] }
 0x132   : > { %1281 = vmatprep.subr.bf16.mxu1 %v1280_v34  ;;  %v1286_v17 = vpack.c.bf16 %v4484_v7, %v4483_v1  ;;  %v4487_v34 = vld [vmem:[#allocation341_spill] sm:$0xff]  ;;  %v4496_v1 = vld [vmem:[#allocation170_spill] sm:$0xff]  ;;  %v4498_v19 = vld [vmem:[#allocation167_spill] sm:$0xff] }
 0x133   : > { %v1288_v12 = vpack.c.bf16 %v4488_v10, %v4487_v34  ;;  %v4500_v34 = vld [vmem:[#allocation169_spill] sm:$0xff] }
 0x134   : > { %1219 = vmatpush1.bf16.msra.mxu0 %v1218_v9  ;;  %v1226_v9 = vpack.c.bf16 %v4490_v14, %v4489_v2  ;;  %v4501_v2 = vld [vmem:[#allocation174_spill] sm:$0xff]  ;;  %v4502_v14 = vld [vmem:[#allocation180_spill] sm:$0xff] }
 0x135   : > { %1283 = vmatpush1.bf16.msra.mxu1 %v1282_v24  ;;  %1221 = vmatprep.subr.bf16.mxu0 %v1220_v13  ;;  %v4491_v24 = vld [vmem:[#allocation340_spill] sm:$0xff]  ;;  %v1292_v13 = vpack.c.bf16 %v4494_v3, %v4493_v18  ;;  %v4507_v3 = vld [vmem:[#allocation175_spill] sm:$0xff] }
 0x136   : > { %1285 = vmatprep.subr.bf16.mxu1 %v1284_v5  ;;  %v1290_v15 = vpack.c.bf16 %v4492_v8, %v4491_v24  ;;  %v4495_v5 = vld [vmem:[#allocation164_spill] sm:$0xff]  ;;  %v4504_v24 = vld [vmem:[#allocation182_spill] sm:$0xff] }
 0x137   : > { %v1356_v7 = vpack.c.bf16 %v4496_v1, %v4495_v5  ;;  %v4508_v5 = vld [vmem:[#allocation181_spill] sm:$0xff] }
 0x138   : > { %1223 = vmatpush1.bf16.msra.mxu0 %v1222_v21  ;;  %v1294_v21 = vpack.c.bf16 %v4498_v19, %v4497_v0  ;;  %v1362_v1 = vpack.c.bf16 %v4508_v5, %v4507_v3  ;;  %v4511_v19 = vld [vmem:[#allocation188_spill] sm:$0xff]  ;;  %v4521_v5 = vld [vmem:[#allocation197_spill] sm:$0xff] }
 0x139   : > { %1287 = vmatpush1.bf16.msra.mxu1 %v1286_v17  ;;  %1225 = vmatprep.subr.bf16.mxu0 %v1224_v11  ;;  %v4499_v17 = vld [vmem:[#allocation163_spill] sm:$0xff]  ;;  %v1296_v11 = vpack.c.bf16 %v4502_v14, %v4501_v2  ;;  %v4516_v14 = vld [vmem:[#allocation193_spill] sm:$0xff] }
 0x13a   : > { %1289 = vmatprep.subr.bf16.mxu1 %v1288_v12  ;;  %v1358_v10 = vpack.c.bf16 %v4500_v34, %v4499_v17  ;;  %v4503_v12 = vld [vmem:[#allocation176_spill] sm:$0xff]  ;;  %v4512_v17 = vld [vmem:[#allocation194_spill] sm:$0xff]  ;;  %v4515_v2 = vld [vmem:[#allocation187_spill] sm:$0xff] }
 0x13b   : > { %v1360_v8 = vpack.c.bf16 %v4504_v24, %v4503_v12  ;;  %v1364_v34 = vpack.c.bf16 %v4512_v17, %v4511_v19  ;;  %v1366_v12 = vpack.c.bf16 %v4516_v14, %v4515_v2  ;;  %v4518_v24 = vld [vmem:[#allocation204_spill] sm:$0xff]  ;;  %v4525_v19 = vld [vmem:[#allocation210_spill] sm:$0xff]  ;;  %v4529_v2 = vld [vmem:[#allocation209_spill] sm:$0xff] }
 0x13c   : > { %1227 = vmatpush1.bf16.msra.mxu0 %v1226_v9  ;;  %v4505_v9 = vld [vmem:[#allocation173_spill] sm:$0xff]  ;;  %v4526_v17 = vld [vmem:[#allocation216_spill] sm:$0xff]  ;;  %v4530_v14 = vld [vmem:[#allocation215_spill] sm:$0xff] }
 0x13d   : > { %1291 = vmatpush1.bf16.msra.mxu1 %v1290_v15  ;;  %1293 = vmatprep.subr.bf16.mxu0 %v1292_v13  ;;  %v4506_v15 = vld [vmem:[#allocation179_spill] sm:$0xff]  ;;  %v4509_v13 = vld [vmem:[#allocation186_spill] sm:$0xff] }
 0x13e   : > { %1357 = vmatprep.subr.bf16.mxu1 %v1356_v7  ;;  %v1298_v18 = vpack.c.bf16 %v4506_v15, %v4505_v9  ;;  %v4510_v7 = vld [vmem:[#allocation192_spill] sm:$0xff]  ;;  %v4520_v15 = vld [vmem:[#allocation206_spill] sm:$0xff] }
 0x13f   : > { %655 = vmatmul.mubr.f32.vlgmr.msra.gmra.mrb[2].mxu0 %v3520_v6  ;;  %v1300_v0 = vpack.c.bf16 %v4510_v7, %v4509_v13  ;;  %v4513_v6 = vld [vmem:[#allocation185_spill] sm:$0xff]  ;;  %v4519_v9 = vld [vmem:[#allocation200_spill] sm:$0xff] }
 0x140   : > { %737 = vmatmul.mubr.f32.vlgmr.msra.gmra.mrb[2].mxu1 %v3610_v23  ;;  %1295 = vmatpush1.bf16.msra.mxu0 %v1294_v21  ;;  %v4514_v21 = vld [vmem:[#allocation191_spill] sm:$0xff]  ;;  %v1368_v3 = vpack.c.bf16 %v4520_v15, %v4519_v9  ;;  %v4524_v13 = vld [vmem:[#allocation205_spill] sm:$0xff]  ;;  %v4533_v9 = vld [vmem:[#allocation222_spill] sm:$0xff] }
 0x141   : > { %1359 = vmatpush1.bf16.msra.mxu1 %v1358_v10  ;;  %1297 = vmatprep.subr.bf16.mxu0 %v1296_v11  ;;  %v1302_v10 = vpack.c.bf16 %v4514_v21, %v4513_v6  ;;  %v4517_v11 = vld [vmem:[#allocation198_spill] sm:$0xff]  ;;  %v4534_v15 = vld [vmem:[#allocation228_spill] sm:$0xff] }
 0x142   : > { %1361 = vmatprep.subr.bf16.mxu1 %v1360_v8  ;;  %807 = vmatprep.mubr.f32.mxu0 %v3622_v20  ;;  %v1304_v8 = vpack.c.bf16 %v4518_v24, %v4517_v11  ;;  %v4528_v6 = vld [vmem:[#allocation218_spill] sm:$0xff]  ;;  %v4532_v11 = vld [vmem:[#allocation217_spill] sm:$0xff] }
 0x143   : > { %878 = vmatprep.mubr.f32.mxu1 %v3622_v20  ;;  %v4522_v20 = vld [vmem:[#allocation203_spill] sm:$0xff] }
 0x144   : > { %1299 = vmatpush1.bf16.msra.mxu0 %v1298_v18  ;;  %v1306_v18 = vpack.c.bf16 %v4522_v20, %v4521_v5  ;;  %v4536_v5 = vld [vmem:[#allocation230_spill] sm:$0xff] }
 0x145   : > { %1363 = vmatpush1.bf16.msra.mxu1 %v1362_v1  ;;  %1301 = vmatprep.subr.bf16.mxu0 %v1300_v0  ;;  %v4523_v1 = vld [vmem:[#allocation199_spill] sm:$0xff]  ;;  %v1308_v0 = vpack.c.bf16 %v4526_v17, %v4525_v19  ;;  %v4540_v19 = vld [vmem:[#allocation229_spill] sm:$0xff] }
 0x146   : > { %1365 = vmatprep.subr.bf16.mxu1 %v1364_v34  ;;  %v1370_v7 = vpack.c.bf16 %v4524_v13, %v4523_v1  ;;  %v4527_v34 = vld [vmem:[#allocation212_spill] sm:$0xff]  ;;  %v4537_v1 = vld [vmem:[#allocation221_spill] sm:$0xff]  ;;  %v4538_v13 = vld [vmem:[#allocation227_spill] sm:$0xff] }
 0x147   : > { %v1372_v21 = vpack.c.bf16 %v4528_v6, %v4527_v34  ;;  %v4541_v34 = vld [vmem:[#allocation234_spill] sm:$0xff]  ;;  %v4542_v6 = vld [vmem:[#allocation240_spill] sm:$0xff] }
 0x148   : > { %1303 = vmatpush1.bf16.msra.mxu0 %v1302_v10  ;;  %v1310_v10 = vpack.c.bf16 %v4530_v14, %v4529_v2  ;;  %v4544_v2 = vld [vmem:[#allocation242_spill] sm:$0xff] }
 0x149   : > { %1367 = vmatpush1.bf16.msra.mxu1 %v1366_v12  ;;  %1305 = vmatprep.subr.bf16.mxu0 %v1304_v8  ;;  %v4531_v12 = vld [vmem:[#allocation211_spill] sm:$0xff]  ;;  %v1312_v8 = vpack.c.bf16 %v4534_v15, %v4533_v9  ;;  %v4548_v9 = vld [vmem:[#allocation241_spill] sm:$0xff] }
 0x14a   : > { %1369 = vmatprep.subr.bf16.mxu1 %v1368_v3  ;;  %v1374_v24 = vpack.c.bf16 %v4532_v11, %v4531_v12  ;;  %v4535_v3 = vld [vmem:[#allocation224_spill] sm:$0xff]  ;;  %v4545_v12 = vld [vmem:[#allocation233_spill] sm:$0xff]  ;;  %v4546_v11 = vld [vmem:[#allocation239_spill] sm:$0xff] }
 0x14b   : > { %v1376_v20 = vpack.c.bf16 %v4536_v5, %v4535_v3  ;;  %v4549_v3 = vld [vmem:[#allocation246_spill] sm:$0xff]  ;;  %v4550_v5 = vld [vmem:[#allocation252_spill] sm:$0xff] }
 0x14c   : > { %1307 = vmatpush1.bf16.msra.mxu0 %v1306_v18  ;;  %v1314_v18 = vpack.c.bf16 %v4538_v13, %v4537_v1  ;;  %v4552_v1 = vld [vmem:[#allocation254_spill] sm:$0xff] }
 0x14d   : > { %1371 = vmatpush1.bf16.msra.mxu1 %v1370_v7  ;;  %1309 = vmatprep.subr.bf16.mxu0 %v1308_v0  ;;  %v4539_v7 = vld [vmem:[#allocation223_spill] sm:$0xff]  ;;  %v1316_v0 = vpack.c.bf16 %v4542_v6, %v4541_v34  ;;  %v4556_v34 = vld [vmem:[#allocation253_spill] sm:$0xff] }
 0x14e   : > { %1373 = vmatprep.subr.bf16.mxu1 %v1372_v21  ;;  %v1378_v17 = vpack.c.bf16 %v4540_v19, %v4539_v7  ;;  %v4543_v21 = vld [vmem:[#allocation236_spill] sm:$0xff]  ;;  %v4553_v7 = vld [vmem:[#allocation245_spill] sm:$0xff]  ;;  %v4554_v19 = vld [vmem:[#allocation251_spill] sm:$0xff] }
 0x14f   : > { %v1380_v14 = vpack.c.bf16 %v4544_v2, %v4543_v21  ;;  %v4557_v21 = vld [vmem:[#allocation258_spill] sm:$0xff]  ;;  %v4558_v2 = vld [vmem:[#allocation264_spill] sm:$0xff] }
 0x150   : > { %1311 = vmatpush1.bf16.msra.mxu0 %v1310_v10  ;;  %v1318_v10 = vpack.c.bf16 %v4546_v11, %v4545_v12  ;;  %v4560_v12 = vld [vmem:[#allocation266_spill] sm:$0xff] }
 0x151   : > { %1375 = vmatpush1.bf16.msra.mxu1 %v1374_v24  ;;  %1313 = vmatprep.subr.bf16.mxu0 %v1312_v8  ;;  %v4547_v24 = vld [vmem:[#allocation235_spill] sm:$0xff]  ;;  %v1320_v8 = vpack.c.bf16 %v4550_v5, %v4549_v3  ;;  %v4564_v3 = vld [vmem:[#allocation265_spill] sm:$0xff] }
 0x152   : > { %1377 = vmatprep.subr.bf16.mxu1 %v1376_v20  ;;  %v1382_v15 = vpack.c.bf16 %v4548_v9, %v4547_v24  ;;  %v4551_v20 = vld [vmem:[#allocation248_spill] sm:$0xff]  ;;  %v4561_v24 = vld [vmem:[#allocation257_spill] sm:$0xff]  ;;  %v4562_v9 = vld [vmem:[#allocation263_spill] sm:$0xff] }
 0x153   : > { %v1384_v13 = vpack.c.bf16 %v4552_v1, %v4551_v20  ;;  %v4565_v20 = vld [vmem:[#allocation270_spill] sm:$0xff]  ;;  %v4566_v1 = vld [vmem:[#allocation276_spill] sm:$0xff] }
 0x154   : > { %1315 = vmatpush1.bf16.msra.mxu0 %v1314_v18  ;;  %v1322_v18 = vpack.c.bf16 %v4554_v19, %v4553_v7  ;;  %v4568_v7 = vld [vmem:[#allocation278_spill] sm:$0xff] }
 0x155   : > { %1379 = vmatpush1.bf16.msra.mxu1 %v1378_v17  ;;  %1317 = vmatprep.subr.bf16.mxu0 %v1316_v0  ;;  %v4555_v17 = vld [vmem:[#allocation247_spill] sm:$0xff]  ;;  %v1324_v0 = vpack.c.bf16 %v4558_v2, %v4557_v21  ;;  %v4572_v21 = vld [vmem:[#allocation277_spill] sm:$0xff] }
 0x156   : > { %1381 = vmatprep.subr.bf16.mxu1 %v1380_v14  ;;  %v1386_v6 = vpack.c.bf16 %v4556_v34, %v4555_v17  ;;  %v4559_v14 = vld [vmem:[#allocation260_spill] sm:$0xff]  ;;  %v4569_v17 = vld [vmem:[#allocation269_spill] sm:$0xff]  ;;  %v4570_v34 = vld [vmem:[#allocation275_spill] sm:$0xff] }
 0x157   : > { %v1388_v11 = vpack.c.bf16 %v4560_v12, %v4559_v14  ;;  %v4573_v14 = vld [vmem:[#allocation282_spill] sm:$0xff]  ;;  %v4574_v12 = vld [vmem:[#allocation288_spill] sm:$0xff] }
 0x158   : > { %1319 = vmatpush1.bf16.msra.mxu0 %v1318_v10  ;;  %v1326_v10 = vpack.c.bf16 %v4562_v9, %v4561_v24  ;;  %v4576_v24 = vld [vmem:[#allocation290_spill] sm:$0xff] }
 0x159   : > { %1383 = vmatpush1.bf16.msra.mxu1 %v1382_v15  ;;  %1321 = vmatprep.subr.bf16.mxu0 %v1320_v8  ;;  %v4563_v15 = vld [vmem:[#allocation259_spill] sm:$0xff]  ;;  %v1328_v8 = vpack.c.bf16 %v4566_v1, %v4565_v20  ;;  %v4580_v20 = vld [vmem:[#allocation289_spill] sm:$0xff] }
 0x15a   : > { %1385 = vmatprep.subr.bf16.mxu1 %v1384_v13  ;;  %v1390_v5 = vpack.c.bf16 %v4564_v3, %v4563_v15  ;;  %v4567_v13 = vld [vmem:[#allocation272_spill] sm:$0xff]  ;;  %v4577_v15 = vld [vmem:[#allocation281_spill] sm:$0xff]  ;;  %v4578_v3 = vld [vmem:[#allocation287_spill] sm:$0xff] }
 0x15b   : > { %v1392_v19 = vpack.c.bf16 %v4568_v7, %v4567_v13  ;;  %v4581_v13 = vld [vmem:[#allocation294_spill] sm:$0xff]  ;;  %v4582_v7 = vld [vmem:[#allocation300_spill] sm:$0xff] }
 0x15c   : > { %1323 = vmatpush1.bf16.msra.mxu0 %v1322_v18  ;;  %v1330_v18 = vpack.c.bf16 %v4570_v34, %v4569_v17  ;;  %v4584_v17 = vld [vmem:[#allocation302_spill] sm:$0xff] }
 0x15d   : > { %1387 = vmatpush1.bf16.msra.mxu1 %v1386_v6  ;;  %1325 = vmatprep.subr.bf16.mxu0 %v1324_v0  ;;  %v4571_v6 = vld [vmem:[#allocation271_spill] sm:$0xff]  ;;  %v1332_v0 = vpack.c.bf16 %v4574_v12, %v4573_v14  ;;  %v4588_v14 = vld [vmem:[#allocation301_spill] sm:$0xff] }
 0x15e   : > { %1389 = vmatprep.subr.bf16.mxu1 %v1388_v11  ;;  %v1394_v2 = vpack.c.bf16 %v4572_v21, %v4571_v6  ;;  %v4575_v11 = vld [vmem:[#allocation284_spill] sm:$0xff]  ;;  %v4585_v6 = vld [vmem:[#allocation293_spill] sm:$0xff]  ;;  %v4586_v21 = vld [vmem:[#allocation299_spill] sm:$0xff] }
 0x15f   : > { %v1396_v9 = vpack.c.bf16 %v4576_v24, %v4575_v11  ;;  %v4589_v11 = vld [vmem:[#allocation306_spill] sm:$0xff]  ;;  %v4590_v24 = vld [vmem:[#allocation312_spill] sm:$0xff] }
 0x160   : > { %1327 = vmatpush1.bf16.msra.mxu0 %v1326_v10  ;;  %v1334_v10 = vpack.c.bf16 %v4578_v3, %v4577_v15  ;;  %v4592_v15 = vld [vmem:[#allocation314_spill] sm:$0xff] }
 0x161   : > { %1391 = vmatpush1.bf16.msra.mxu1 %v1390_v5  ;;  %1329 = vmatprep.subr.bf16.mxu0 %v1328_v8  ;;  %v4579_v5 = vld [vmem:[#allocation283_spill] sm:$0xff]  ;;  %v1336_v8 = vpack.c.bf16 %v4582_v7, %v4581_v13  ;;  %v4596_v13 = vld [vmem:[#allocation313_spill] sm:$0xff] }
 0x162   : > { %1393 = vmatprep.subr.bf16.mxu1 %v1392_v19  ;;  %v1398_v1 = vpack.c.bf16 %v4580_v20, %v4579_v5  ;;  %v4583_v19 = vld [vmem:[#allocation296_spill] sm:$0xff]  ;;  %v4593_v5 = vld [vmem:[#allocation305_spill] sm:$0xff]  ;;  %v4594_v20 = vld [vmem:[#allocation311_spill] sm:$0xff] }
 0x163   : > { %v1400_v34 = vpack.c.bf16 %v4584_v17, %v4583_v19  ;;  %v4597_v19 = vld [vmem:[#allocation318_spill] sm:$0xff]  ;;  %v4598_v17 = vld [vmem:[#allocation324_spill] sm:$0xff] }
 0x164   : > { %1331 = vmatpush1.bf16.msra.mxu0 %v1330_v18  ;;  %v1338_v18 = vpack.c.bf16 %v4586_v21, %v4585_v6  ;;  %v4600_v6 = vld [vmem:[#allocation326_spill] sm:$0xff] }
 0x165   : > { %1395 = vmatpush1.bf16.msra.mxu1 %v1394_v2  ;;  %1333 = vmatprep.subr.bf16.mxu0 %v1332_v0  ;;  %v4587_v2 = vld [vmem:[#allocation295_spill] sm:$0xff]  ;;  %v1340_v0 = vpack.c.bf16 %v4590_v24, %v4589_v11  ;;  %v4604_v11 = vld [vmem:[#allocation325_spill] sm:$0xff] }
 0x166   : > { %1397 = vmatprep.subr.bf16.mxu1 %v1396_v9  ;;  %v1402_v12 = vpack.c.bf16 %v4588_v14, %v4587_v2  ;;  %v4591_v9 = vld [vmem:[#allocation308_spill] sm:$0xff]  ;;  %v4601_v2 = vld [vmem:[#allocation317_spill] sm:$0xff]  ;;  %v4602_v14 = vld [vmem:[#allocation323_spill] sm:$0xff] }
 0x167   : > { %v1404_v3 = vpack.c.bf16 %v4592_v15, %v4591_v9  ;;  %v4605_v9 = vld [vmem:[#allocation330_spill] sm:$0xff]  ;;  %v4606_v15 = vld [vmem:[#allocation337_spill] sm:$0xff] }
 0x168   : > { %1335 = vmatpush1.bf16.msra.mxu0 %v1334_v10  ;;  %v1342_v10 = vpack.c.bf16 %v4594_v20, %v4593_v5  ;;  %v4608_v5 = vld [vmem:[#allocation339_spill] sm:$0xff] }
 0x169   : > { %1399 = vmatpush1.bf16.msra.mxu1 %v1398_v1  ;;  %1337 = vmatprep.subr.bf16.mxu0 %v1336_v8  ;;  %v4595_v1 = vld [vmem:[#allocation307_spill] sm:$0xff]  ;;  %v1344_v8 = vpack.c.bf16 %v4598_v17, %v4597_v19  ;;  %v4612_v19 = vld [vmem:[#allocation338_spill] sm:$0xff] }
 0x16a   : > { %1401 = vmatprep.subr.bf16.mxu1 %v1400_v34  ;;  %v1406_v7 = vpack.c.bf16 %v4596_v13, %v4595_v1  ;;  %v4599_v34 = vld [vmem:[#allocation320_spill] sm:$0xff]  ;;  %v4609_v1 = vld [vmem:[#allocation329_spill] sm:$0xff] }
 0x16b   : > { %v1408_v21 = vpack.c.bf16 %v4600_v6, %v4599_v34  ;;  %v4610_v13 = vld [vmem:[#allocation336_spill] sm:$0xff]  ;;  %v4613_v34 = vld [vmem:[#allocation343_spill] sm:$0xff]  ;;  %v4614_v6 = vld [vmem:[#allocation349_spill] sm:$0xff] }
 0x16c   : > { %1339 = vmatpush1.bf16.msra.mxu0 %v1338_v18  ;;  %v1346_v18 = vpack.c.bf16 %v4602_v14, %v4601_v2  ;;  %v4616_v14 = vld [vmem:[#allocation342_spill] sm:$0xff] }
 0x16d   : > { %1403 = vmatpush1.bf16.msra.mxu1 %v1402_v12  ;;  %1341 = vmatprep.subr.bf16.mxu0 %v1340_v0  ;;  %v4603_v12 = vld [vmem:[#allocation319_spill] sm:$0xff]  ;;  %v1348_v0 = vpack.c.bf16 %v4606_v15, %v4605_v9 }
 0x16e   : > { %1405 = vmatprep.subr.bf16.mxu1 %v1404_v3  ;;  %v1410_v24 = vpack.c.bf16 %v4604_v11, %v4603_v12  ;;  %v4607_v3 = vld [vmem:[#allocation332_spill] sm:$0xff] }
 0x16f   : > { %v1412_v20 = vpack.c.bf16 %v4608_v5, %v4607_v3  ;;  %v4618_v11 = vld [vmem:[#allocation344_spill] sm:$0xff] }
 0x170   : > { %1343 = vmatpush1.bf16.msra.mxu0 %v1342_v10  ;;  %v1350_v10 = vpack.c.bf16 %v4610_v13, %v4609_v1 }
 0x171   : > { %1407 = vmatpush1.bf16.msra.mxu1 %v1406_v7  ;;  %1345 = vmatprep.subr.bf16.mxu0 %v1344_v8  ;;  %v4611_v7 = vld [vmem:[#allocation331_spill] sm:$0xff]  ;;  %v1352_v8 = vpack.c.bf16 %v4614_v6, %v4613_v34 }
 0x172   : > { %1409 = vmatprep.subr.bf16.mxu1 %v1408_v21  ;;  %v1414_v17 = vpack.c.bf16 %v4612_v19, %v4611_v7  ;;  %v4615_v21 = vld [vmem:[#allocation345_spill] sm:$0xff] }
 0x173   : > { %v1416_v2 = vpack.c.bf16 %v3432_v4, %v4615_v21 }
 0x174   : > { %1347 = vmatpush1.bf16.msra.mxu0 %v1346_v18  ;;  %v4617_v18 = vld [vmem:[#allocation348_spill] sm:$0xff] }
 0x175   : > { %1411 = vmatpush1.bf16.msra.mxu1 %v1410_v24  ;;  %1349 = vmatprep.subr.bf16.mxu0 %v1348_v0  ;;  %v1354_v12 = vpack.c.bf16 %v4617_v18, %v4616_v14  ;;  %v4619_v24 = vld [vmem:[#allocation350_spill] sm:$0xff] }
 0x176   : > { %1413 = vmatprep.subr.bf16.mxu1 %v1412_v20  ;;  %v1418_v9 = vpack.c.bf16 %v4619_v24, %v4618_v11 }
 0x178   : > { %1351 = vmatpush1.bf16.msra.mxu0 %v1350_v10  ;;  %v433_v10 = vld [vmem:[%s3882_s30] sm:$0xff] }
 0x179   : > { %1415 = vmatpush1.bf16.msra.mxu1 %v1414_v17  ;;  %1353 = vmatprep.subr.bf16.mxu0 %v1352_v8  ;;  %v923_v17 = vrot.slane %v433_v10, 4 }
 0x17a   : > { %1417 = vmatprep.subr.bf16.mxu1 %v1416_v2 }
 0x17c   : > { %1355 = vmatpush1.bf16.msra.mxu0 %v1354_v12 }
 0x17d   : > { %1419 = vmatpush1.bf16.msra.mxu1 %v1418_v9 }
 0x17f   : > { %808 = vmatmul.mubr.f32.vlgmr.msra.gmra.mrb[4].mxu0 %v3610_v23 }
 0x180   : > { %879 = vmatmul.mubr.f32.vlgmr.msra.gmra.mrb[4].mxu1 %v3610_v23 }
 0x1d2   : > { %v514_v15 = vpop.f32.mrb[0].mxu0 }
 0x1d3   : > { %v585_v0 = vpop.f32.mrb[0].mxu1  ;;  %v516_v3 = vpop.f32.mrb[1].mxu0 }
 0x1d4   : > { %v587_v5 = vpop.f32.mrb[1].mxu1  ;;  %v889_v20 = vcombine.low %v514_v15, %v516_v3 }
 0x1d5   : > { %v931_v1 = vcombine.low %v585_v0, %v587_v5 }
 0x1d6   : > { %v896_v13 = vrot.slane %v889_v20, %v3508_v16 }
 0x1d7   : > { %v938_v23 = vrot.slane %v931_v1, %v3508_v16  ;;  %v434_v1 = vld [vmem:[%s3882_s30 + $0x8] sm:$0xf] }
 0x1d8   : > { %v907_v7 = vadd.f32 %v896_v13, %v433_v10 }
 0x1d9   : > { %v949_v34 = vadd.f32 %v938_v23, %v923_v17 }
 0x1da   : > { %v1028_v19 = vmul.f32 -1.442695, %v907_v7 }
 0x1db   : > { %v1030_v6 = vmul.f32 -1.442695, %v949_v34 }
 0x1dc   : > { %1445 = vpow2.f32 %v1028_v19 }
 0x1dd   : > { %1447 = vpow2.f32 %v1030_v6 }
 0x1e6   : > { %v1446_v8 = vpop.eup %1445 }
 0x1e7   : > { %v915_v21 = vadd.f32 1.0, %v1446_v8  ;;  %v1448_v18 = vpop.eup %1447  ;;  %v435_v8 = vld [vmem:[%s3882_s30 + $0xc] sm:$0xff] }
 0x1e8   : > { %v957_v0 = vadd.f32 1.0, %v1448_v18 }
 0x1e9   : > { %1449 = vrcp.f32 %v915_v21 }
 0x1ea   : > { %1451 = vrcp.f32 %v957_v0 }
 0x1f3   : > { %v1450_v20 = vpop.eup %1449 }
 0x1f4   : > { %v1452_v7 = vpop.eup %1451 }
 0x1f5   : > { %v995_v19 = vsub.f32 1.0, %v1452_v7  ;;  %v999_v23 = vmul.f32 %v1483_v47, %v1452_v7 }
 0x212   : > { %v656_v2 = vpop.f32.mrb[2].mxu0 }
 0x213   : > { %v738_v14 = vpop.f32.mrb[2].mxu1  ;;  %v963_v12 = vadd.f32 %v656_v2, %v3440_v22  ;;  %v658_v11 = vpop.f32.mrb[3].mxu0 }
 0x214   : > { %v740_v24 = vpop.f32.mrb[3].mxu1  ;;  %v964_v9 = vadd.f32 %v658_v11, %v3442_v28 }
 0x215   : > { %v897_v15 = vcombine.low %v738_v14, %v740_v24  ;;  %v4620_v24 = vld [vmem:[#allocation351_spill] sm:$0xff] }
 0x216   : > { %v971_v3 = vcombine.low %v963_v12, %v964_v9 }
 0x217   : > { %v904_v6 = vrot.slane %v897_v15, %v3508_v16 }
 0x218   : > { %v978_v5 = vrot.slane %v971_v3, %v3508_v16 }
 0x219   : > { %v908_v21 = vadd.f32 %v904_v6, %v435_v8  ;;  %v436_v6 = vld [vmem:[%s3882_s30 + $0x14] sm:$0xf] }
 0x21a   : > { %v989_v13 = vmul.f32 %v1450_v20, %v978_v5  ;;  %v924_v5 = vrot.slane %v435_v8, 4 }
 0x21b   : > { %v1029_v2 = vmul.f32 -1.442695, %v908_v21 }
 0x21c   : > { %v991_v10 = vadd.f32 %v989_v13, %v434_v1  ;;  %v4621_v1 = vld [vmem:[#allocation352_spill] sm:$0xff] }
 0x21e   : > { %1453 = vtanh.f32 %v991_v10 }
 0x21f   : > { %1455 = vpow2.f32 %v1029_v2 }
 0x228   : > { %v1454_v17 = vpop.eup %1453 }
 0x229   : > { %v997_v34 = vmul.f32 %v1454_v17, %v995_v19  ;;  %v1456_v14 = vpop.eup %1455 }
 0x22a   : > { %v916_v18 = vadd.f32 1.0, %v1456_v14 }
 0x22b   : > { %v1001_v47 = vadd.f32 %v999_v23, %v997_v34  }
 0x22c   : > { %1457 = vrcp.f32 %v916_v18 }
 0x22d   : > { %1006 = vst [vmem:[%s3896_s7] sm:$0xf] %v1001_v47 }
 0x236   : > { %v1458_v17 = vpop.eup %1457 }
 0x252   : > { %v809_v12 = vpop.f32.mrb[4].mxu0 }
 0x253   : > { %v880_v11 = vpop.f32.mrb[4].mxu1  ;;  %v811_v0 = vpop.f32.mrb[5].mxu0 }
 0x254   : > { %v965_v9 = vadd.f32 %v880_v11, %v4620_v24  ;;  %v882_v3 = vpop.f32.mrb[5].mxu1  ;;  %v939_v20 = vcombine.low %v809_v12, %v811_v0 }
 0x255   : > { %v966_v13 = vadd.f32 %v882_v3, %v4621_v1 }
 0x256   : > { %v946_v15 = vrot.slane %v939_v20, %v3508_v16 }
 0x257   : > { %v979_v10 = vcombine.low %v965_v9, %v966_v13 }
 0x258   : > { %v950_v7 = vadd.f32 %v946_v15, %v924_v5 }
 0x259   : > { %v986_v19 = vrot.slane %v979_v10, %v3508_v16 }
 0x25a   : > { %v1031_v23 = vmul.f32 -1.442695, %v950_v7 }
 0x25b   : > { %v990_v34 = vmul.f32 %v1458_v17, %v986_v19 }
 0x25c   : > { %1459 = vpow2.f32 %v1031_v23 }
 0x25d   : > { %v992_v14 = vadd.f32 %v990_v34, %v436_v6 }
 0x266   : > { %v1460_v21 = vpop.eup %1459 }
 0x267   : > { %v958_v2 = vadd.f32 1.0, %v1460_v21 }
 0x269   : > { %1461 = vrcp.f32 %v958_v2 }
 0x26a   : > { %1463 = vtanh.f32 %v992_v14 }
 0x273   : > { %v1462_v8 = vpop.eup %1461 }
 0x274   : > { %v996_v18 = vsub.f32 1.0, %v1462_v8  ;;  %v1464_v12 = vpop.eup %1463  ;;  %v1000_v11 = vmul.f32 %v1479_v35, %v1462_v8  ;;  %426 = sbr.rel (!%p424_p0) target bundleno = 188 (0xbc), region = 41 }
 0x276   : > { %v998_v24 = vmul.f32 %v1464_v12, %v996_v18 }
 0x278   : > { %v1002_v35 = vadd.f32 %v1000_v11, %v998_v24  }
 0x27a   : > { %1007 = vst [vmem:[%s3896_s7 + $0x4] sm:$0xf] %v1002_v35 }

// kernel: lipnet_forward.18
= control target key start
LH: loop header
LB: loop body
LE: loop exit
PB: predicated region body
PF: predicated region fallthrough
CT: control target
= control target key end

     0   :  { %s5204_s1 = inlined_call_operand.vmem [shape: bf16[512,1536], index: 1, kind: input, shape index: {}]   ;;  %s5205_s0 = inlined_call_operand.vmem [shape: bf16[8,512], index: 0, kind: input, shape index: {}]   ;;  %s5206_s2 = inlined_call_operand.vmem [shape: f32[1,1536], index: 2, kind: input, shape index: {}]   ;;  %s5207_s3 = inlined_call_operand.vmem [shape: f32[8,1536], index: 3, kind: output, shape index: {}]  }
   0x1   :  { %v3330_v0 = vld [vmem:[%s5204_s1 + $0x4] ss:$48 sps:$4 sm:$0xff]   ;;  %v3332_v1 = vld [vmem:[%s5204_s1 + $0xc] ss:$48 sps:$4 sm:$0xff]   ;;  %v3334_v2 = vld [vmem:[%s5204_s1] ss:$48 sps:$4 sm:$0xff]  }
   0x2   :  { %2398 = vmatprep.subr.bf16.mxu0 %v3330_v0  ;;  %v3335_v3 = vld [vmem:[%s5204_s1 + $0x8] ss:$48 sps:$4 sm:$0xff]   ;;  %2480 = vmatprep.subr.bf16.mxu1 %v3332_v1  ;;  %v3336_v4 = vld [vmem:[%s5204_s1 + $0x64] ss:$48 sps:$4 sm:$0xff]   ;;  %v3338_v5 = vld [vmem:[%s5204_s1 + $0x6c] ss:$48 sps:$4 sm:$0xff]  }
   0x3   :  { %2399 = vmatpush1.bf16.msra.mxu0 %v3334_v2  ;;  %2481 = vmatpush1.bf16.msra.mxu1 %v3335_v3  ;;  %v3340_v6 = vld [vmem:[%s5204_s1 + $0x60] ss:$48 sps:$4 sm:$0xff]   ;;  %v3341_v7 = vld [vmem:[%s5204_s1 + $0x68] ss:$48 sps:$4 sm:$0xff]   ;;  %v3342_v8 = vld [vmem:[%s5204_s1 + $0xc4] ss:$48 sps:$4 sm:$0xff]  }
   0x4   :  { %2400 = vmatprep.subr.bf16.mxu0 %v3336_v4  ;;  %2482 = vmatprep.subr.bf16.mxu1 %v3338_v5  ;;  %v3344_v9 = vld [vmem:[%s5204_s1 + $0xcc] ss:$48 sps:$4 sm:$0xff]   ;;  %v3346_v10 = vld [vmem:[%s5204_s1 + $0xc0] ss:$48 sps:$4 sm:$0xff]   ;;  %v3347_v11 = vld [vmem:[%s5204_s1 + $0xc8] ss:$48 sps:$4 sm:$0xff]  }
   0x5   :  { %v3348_v12 = vld [vmem:[%s5204_s1 + $0x124] ss:$48 sps:$4 sm:$0xff]   ;;  %v3350_v13 = vld [vmem:[%s5204_s1 + $0x12c] ss:$48 sps:$4 sm:$0xff]   ;;  %v3352_v14 = vld [vmem:[%s5204_s1 + $0x120] ss:$48 sps:$4 sm:$0xff]  }
   0x6   :  { %v3353_v15 = vld [vmem:[%s5204_s1 + $0x128] ss:$48 sps:$4 sm:$0xff]   ;;  %v3354_v16 = vld [vmem:[%s5204_s1 + $0x184] ss:$48 sps:$4 sm:$0xff]   ;;  %v3356_v17 = vld [vmem:[%s5204_s1 + $0x18c] ss:$48 sps:$4 sm:$0xff]  }
   0x7   :  { %2401 = vmatpush1.bf16.msra.mxu0 %v3340_v6  ;;  %2483 = vmatpush1.bf16.msra.mxu1 %v3341_v7  ;;  %v3358_v18 = vld [vmem:[%s5204_s1 + $0x180] ss:$48 sps:$4 sm:$0xff]   ;;  %v3359_v19 = vld [vmem:[%s5204_s1 + $0x188] ss:$48 sps:$4 sm:$0xff]   ;;  %v3360_v20 = vld [vmem:[%s5204_s1 + $0x1e4] ss:$48 sps:$4 sm:$0xff]  }
   0x8   :  { %2402 = vmatprep.subr.bf16.mxu0 %v3342_v8  ;;  %2484 = vmatprep.subr.bf16.mxu1 %v3344_v9  ;;  %v3362_v21 = vld [vmem:[%s5204_s1 + $0x1ec] ss:$48 sps:$4 sm:$0xff]   ;;  %v3364_v22 = vld [vmem:[%s5204_s1 + $0x1e0] ss:$48 sps:$4 sm:$0xff]   ;;  %v3365_v23 = vld [vmem:[%s5204_s1 + $0x1e8] ss:$48 sps:$4 sm:$0xff]  }
   0x9   :  { %v3366_v24 = vld [vmem:[%s5204_s1 + $0x244] ss:$48 sps:$4 sm:$0xff]   ;;  %v3368_v25 = vld [vmem:[%s5204_s1 + $0x24c] ss:$48 sps:$4 sm:$0xff]   ;;  %v3370_v26 = vld [vmem:[%s5204_s1 + $0x240] ss:$48 sps:$4 sm:$0xff]  }
   0xa   :  { %v3371_v27 = vld [vmem:[%s5204_s1 + $0x248] ss:$48 sps:$4 sm:$0xff]   ;;  %v3372_v28 = vld [vmem:[%s5204_s1 + $0x2a4] ss:$48 sps:$4 sm:$0xff]   ;;  %v3374_v29 = vld [vmem:[%s5204_s1 + $0x2ac] ss:$48 sps:$4 sm:$0xff]  }
   0xb   :  { %2403 = vmatpush1.bf16.msra.mxu0 %v3346_v10  ;;  %2485 = vmatpush1.bf16.msra.mxu1 %v3347_v11  ;;  %v3376_v30 = vld [vmem:[%s5204_s1 + $0x2a0] ss:$48 sps:$4 sm:$0xff]   ;;  %v3377_v31 = vld [vmem:[%s5204_s1 + $0x2a8] ss:$48 sps:$4 sm:$0xff]   ;;  %v3378_v32 = vld [vmem:[%s5204_s1 + $0x304] ss:$48 sps:$4 sm:$0xff]  }
   0xc   :  { %2404 = vmatprep.subr.bf16.mxu0 %v3348_v12  ;;  %2486 = vmatprep.subr.bf16.mxu1 %v3350_v13  ;;  %v3380_v33 = vld [vmem:[%s5204_s1 + $0x30c] ss:$48 sps:$4 sm:$0xff]   ;;  %v3382_v34 = vld [vmem:[%s5204_s1 + $0x300] ss:$48 sps:$4 sm:$0xff]   ;;  %v3383_v35 = vld [vmem:[%s5204_s1 + $0x308] ss:$48 sps:$4 sm:$0xff]  }
   0xd   :  { %v3384_v36 = vld [vmem:[%s5204_s1 + $0x364] ss:$48 sps:$4 sm:$0xff]   ;;  %v3386_v37 = vld [vmem:[%s5204_s1 + $0x36c] ss:$48 sps:$4 sm:$0xff]   ;;  %v3388_v38 = vld [vmem:[%s5204_s1 + $0x360] ss:$48 sps:$4 sm:$0xff]  }
   0xe   :  { %v3389_v39 = vld [vmem:[%s5204_s1 + $0x368] ss:$48 sps:$4 sm:$0xff]   ;;  %v3390_v40 = vld [vmem:[%s5204_s1 + $0x3c4] ss:$48 sps:$4 sm:$0xff]   ;;  %v3392_v41 = vld [vmem:[%s5204_s1 + $0x3cc] ss:$48 sps:$4 sm:$0xff]  }
   0xf   :  { %2405 = vmatpush1.bf16.msra.mxu0 %v3352_v14  ;;  %2487 = vmatpush1.bf16.msra.mxu1 %v3353_v15  ;;  %v3394_v42 = vld [vmem:[%s5204_s1 + $0x3c0] ss:$48 sps:$4 sm:$0xff]   ;;  %v3395_v43 = vld [vmem:[%s5204_s1 + $0x3c8] ss:$48 sps:$4 sm:$0xff]   ;;  %v3396_v44 = vld [vmem:[%s5204_s1 + $0x424] ss:$48 sps:$4 sm:$0xff]  }
  0x10   :  { %2406 = vmatprep.subr.bf16.mxu0 %v3354_v16  ;;  %2488 = vmatprep.subr.bf16.mxu1 %v3356_v17  ;;  %v3398_v45 = vld [vmem:[%s5204_s1 + $0x42c] ss:$48 sps:$4 sm:$0xff]   ;;  %v14_v46 = vld [vmem:[%s5205_s0] sm:$0xff]  ;;  %v3401_v49 = vld [vmem:[%s5204_s1 + $0x428] ss:$48 sps:$4 sm:$0xff]  }
  0x11   :  { %v3400_v47 = vld [vmem:[%s5204_s1 + $0x420] ss:$48 sps:$4 sm:$0xff]   ;;  %v4074_v48 = vcombine.high %v14_v46, %v14_v46  ;;  %v3402_v50 = vld [vmem:[%s5204_s1 + $0x484] ss:$48 sps:$4 sm:$0xff]   ;;  %v3404_v51 = vld [vmem:[%s5204_s1 + $0x48c] ss:$48 sps:$4 sm:$0xff]   ;;  %v4138_v5 = vcombine.low %v14_v46, %v14_v46 }
  0x12   :  { %v3406_v52 = vld [vmem:[%s5204_s1 + $0x480] ss:$48 sps:$4 sm:$0xff]   ;;  %v3407_v53 = vld [vmem:[%s5204_s1 + $0x488] ss:$48 sps:$4 sm:$0xff]   ;;  %v3408_v54 = vld [vmem:[%s5204_s1 + $0x4e4] ss:$48 sps:$4 sm:$0xff]  }
  0x13   :  { %2407 = vmatpush1.bf16.msra.mxu0 %v3358_v18  ;;  %2489 = vmatpush1.bf16.msra.mxu1 %v3359_v19  ;;  %v3410_v55 = vld [vmem:[%s5204_s1 + $0x4ec] ss:$48 sps:$4 sm:$0xff]   ;;  %v3412_v56 = vld [vmem:[%s5204_s1 + $0x4e0] ss:$48 sps:$4 sm:$0xff]   ;;  %v3413_v57 = vld [vmem:[%s5204_s1 + $0x4e8] ss:$48 sps:$4 sm:$0xff]  }
  0x14   :  { %2408 = vmatprep.subr.bf16.mxu0 %v3360_v20  ;;  %2490 = vmatprep.subr.bf16.mxu1 %v3362_v21  ;;  %v3414_v58 = vld [vmem:[%s5204_s1 + $0x544] ss:$48 sps:$4 sm:$0xff]   ;;  %v3416_v59 = vld [vmem:[%s5204_s1 + $0x54c] ss:$48 sps:$4 sm:$0xff]   ;;  %v3418_v60 = vld [vmem:[%s5204_s1 + $0x540] ss:$48 sps:$4 sm:$0xff]  }
  0x15   :  { %2430 = vmatprep.mubr.bf16.mxu0 %v4074_v48  ;;  %2512 = vmatprep.mubr.bf16.mxu1 %v4074_v48  ;;  %v3419_v61 = vld [vmem:[%s5204_s1 + $0x548] ss:$48 sps:$4 sm:$0xff]   ;;  %v3420_v62 = vld [vmem:[%s5204_s1 + $0x5a4] ss:$48 sps:$4 sm:$0xff]   ;;  %v3422_v63 = vld [vmem:[%s5204_s1 + $0x5ac] ss:$48 sps:$4 sm:$0xff]  }
  0x16   :  { %v3424_v0 = vld [vmem:[%s5204_s1 + $0x5a0] ss:$48 sps:$4 sm:$0xff]   ;;  %v3425_v1 = vld [vmem:[%s5204_s1 + $0x5a8] ss:$48 sps:$4 sm:$0xff]   ;;  %v3429_v2 = vld [vmem:[%s5204_s1 + $0x604] ss:$48 sps:$4 sm:$0xff]  }
  0x17   :  { %2409 = vmatpush1.bf16.msra.mxu0 %v3364_v22  ;;  %2491 = vmatpush1.bf16.msra.mxu1 %v3365_v23  ;;  %v3432_v3 = vld [vmem:[%s5204_s1 + $0x60c] ss:$48 sps:$4 sm:$0xff]   ;;  %v3427_v4 = vld [vmem:[%s5204_s1 + $0x600] ss:$48 sps:$4 sm:$0xff]   ;;  %v3430_v6 = vld [vmem:[%s5204_s1 + $0x608] ss:$48 sps:$4 sm:$0xff]  }
  0x18   :  { %2410 = vmatprep.subr.bf16.mxu0 %v3366_v24  ;;  %2492 = vmatprep.subr.bf16.mxu1 %v3368_v25  ;;  %v3436_v7 = vld [vmem:[%s5204_s1 + $0x664] ss:$48 sps:$4 sm:$0xff]   ;;  %v3439_v8 = vld [vmem:[%s5204_s1 + $0x66c] ss:$48 sps:$4 sm:$0xff]   ;;  %v3434_v9 = vld [vmem:[%s5204_s1 + $0x660] ss:$48 sps:$4 sm:$0xff]  }
  0x19   :  { %v3437_v10 = vld [vmem:[%s5204_s1 + $0x668] ss:$48 sps:$4 sm:$0xff]   ;;  %v3442_v11 = vld [vmem:[%s5204_s1 + $0x6c4] ss:$48 sps:$4 sm:$0xff]   ;;  %v3445_v12 = vld [vmem:[%s5204_s1 + $0x6cc] ss:$48 sps:$4 sm:$0xff]  }
  0x1a   :  { %v3440_v13 = vld [vmem:[%s5204_s1 + $0x6c0] ss:$48 sps:$4 sm:$0xff]   ;;  %v3443_v14 = vld [vmem:[%s5204_s1 + $0x6c8] ss:$48 sps:$4 sm:$0xff]   ;;  %v3448_v15 = vld [vmem:[%s5204_s1 + $0x724] ss:$48 sps:$4 sm:$0xff]  }
  0x1b   :  { %2411 = vmatpush1.bf16.msra.mxu0 %v3370_v26  ;;  %2493 = vmatpush1.bf16.msra.mxu1 %v3371_v27  ;;  %v3451_v16 = vld [vmem:[%s5204_s1 + $0x72c] ss:$48 sps:$4 sm:$0xff]   ;;  %v3446_v17 = vld [vmem:[%s5204_s1 + $0x720] ss:$48 sps:$4 sm:$0xff]   ;;  %v3449_v18 = vld [vmem:[%s5204_s1 + $0x728] ss:$48 sps:$4 sm:$0xff]  }
  0x1c   :  { %2412 = vmatprep.subr.bf16.mxu0 %v3372_v28  ;;  %2494 = vmatprep.subr.bf16.mxu1 %v3374_v29  ;;  %v3454_v19 = vld [vmem:[%s5204_s1 + $0x784] ss:$48 sps:$4 sm:$0xff]   ;;  %v3457_v20 = vld [vmem:[%s5204_s1 + $0x78c] ss:$48 sps:$4 sm:$0xff]   ;;  %v3452_v21 = vld [vmem:[%s5204_s1 + $0x780] ss:$48 sps:$4 sm:$0xff]  }
  0x1d   :  { %v3455_v22 = vld [vmem:[%s5204_s1 + $0x788] ss:$48 sps:$4 sm:$0xff]   ;;  %v3460_v23 = vld [vmem:[%s5204_s1 + $0x7e4] ss:$48 sps:$4 sm:$0xff]   ;;  %v3463_v24 = vld [vmem:[%s5204_s1 + $0x7ec] ss:$48 sps:$4 sm:$0xff]  }
  0x1e   :  { %v3458_v25 = vld [vmem:[%s5204_s1 + $0x7e0] ss:$48 sps:$4 sm:$0xff]   ;;  %v3461_v26 = vld [vmem:[%s5204_s1 + $0x7e8] ss:$48 sps:$4 sm:$0xff]   ;;  %v3466_v27 = vld [vmem:[%s5204_s1 + $0x844] ss:$48 sps:$4 sm:$0xff]  }
  0x1f   :  { %2413 = vmatpush1.bf16.msra.mxu0 %v3376_v30  ;;  %2495 = vmatpush1.bf16.msra.mxu1 %v3377_v31  ;;  %v3469_v28 = vld [vmem:[%s5204_s1 + $0x84c] ss:$48 sps:$4 sm:$0xff]   ;;  %v3464_v31 = vld [vmem:[%s5204_s1 + $0x840] ss:$48 sps:$4 sm:$0xff]  }
  0x20   :  { %2414 = vmatprep.subr.bf16.mxu0 %v3378_v32  ;;  %2496 = vmatprep.subr.bf16.mxu1 %v3380_v33  ;;  %v4214_v29 = vld [vmem:[%s5205_s0 + $0x8] sm:$0xff]  ;;  %v3472_v33 = vld [vmem:[%s5204_s1 + $0x8a4] ss:$48 sps:$4 sm:$0xff]  }
  0x21   :  { %v4218_v30 = vcombine.high %v4214_v29, %v4214_v29  ;;  %v3467_v32 = vld [vmem:[%s5204_s1 + $0x848] ss:$48 sps:$4 sm:$0xff]   ;;  %v3493_v46 = vld [vmem:[%s5204_s1 + $0x9cc] ss:$48 sps:$4 sm:$0xff]  }
  0x23   :  { %2415 = vmatpush1.bf16.msra.mxu0 %v3382_v34  ;;  %2497 = vmatpush1.bf16.msra.mxu1 %v3383_v35  ;;  %v3475_v34 = vld [vmem:[%s5204_s1 + $0x8ac] ss:$48 sps:$4 sm:$0xff]   ;;  %v3470_v35 = vld [vmem:[%s5204_s1 + $0x8a0] ss:$48 sps:$4 sm:$0xff]  }
  0x24   :  { %2416 = vmatprep.subr.bf16.mxu0 %v3384_v36  ;;  %2498 = vmatprep.subr.bf16.mxu1 %v3386_v37  ;;  %v3473_v36 = vld [vmem:[%s5204_s1 + $0x8a8] ss:$48 sps:$4 sm:$0xff]   ;;  %v3478_v37 = vld [vmem:[%s5204_s1 + $0x904] ss:$48 sps:$4 sm:$0xff]  }
  0x27   :  { %2417 = vmatpush1.bf16.msra.mxu0 %v3388_v38  ;;  %2499 = vmatpush1.bf16.msra.mxu1 %v3389_v39  ;;  %v3481_v38 = vld [vmem:[%s5204_s1 + $0x90c] ss:$48 sps:$4 sm:$0xff]   ;;  %v3476_v39 = vld [vmem:[%s5204_s1 + $0x900] ss:$48 sps:$4 sm:$0xff]  }
  0x28   :  { %2418 = vmatprep.subr.bf16.mxu0 %v3390_v40  ;;  %2500 = vmatprep.subr.bf16.mxu1 %v3392_v41  ;;  %v3479_v40 = vld [vmem:[%s5204_s1 + $0x908] ss:$48 sps:$4 sm:$0xff]   ;;  %v3484_v41 = vld [vmem:[%s5204_s1 + $0x964] ss:$48 sps:$4 sm:$0xff]  }
  0x2b   :  { %2419 = vmatpush1.bf16.msra.mxu0 %v3394_v42  ;;  %2501 = vmatpush1.bf16.msra.mxu1 %v3395_v43  ;;  %v3487_v42 = vld [vmem:[%s5204_s1 + $0x96c] ss:$48 sps:$4 sm:$0xff]   ;;  %v3482_v43 = vld [vmem:[%s5204_s1 + $0x960] ss:$48 sps:$4 sm:$0xff]  }
  0x2c   :  { %2420 = vmatprep.subr.bf16.mxu0 %v3396_v44  ;;  %2502 = vmatprep.subr.bf16.mxu1 %v3398_v45  ;;  %v3485_v44 = vld [vmem:[%s5204_s1 + $0x968] ss:$48 sps:$4 sm:$0xff]   ;;  %v3490_v45 = vld [vmem:[%s5204_s1 + $0x9c4] ss:$48 sps:$4 sm:$0xff]  }
  0x2f   :  { %2421 = vmatpush1.bf16.msra.mxu0 %v3400_v47  ;;  %2503 = vmatpush1.bf16.msra.mxu1 %v3401_v49  ;;  %v3488_v47 = vld [vmem:[%s5204_s1 + $0x9c0] ss:$48 sps:$4 sm:$0xff]   ;;  %v3491_v49 = vld [vmem:[%s5204_s1 + $0x9c8] ss:$48 sps:$4 sm:$0xff]  }
  0x30   :  { %2422 = vmatprep.subr.bf16.mxu0 %v3402_v50  ;;  %2504 = vmatprep.subr.bf16.mxu1 %v3404_v51  ;;  %v3496_v50 = vld [vmem:[%s5204_s1 + $0xa24] ss:$48 sps:$4 sm:$0xff]   ;;  %v3499_v51 = vld [vmem:[%s5204_s1 + $0xa2c] ss:$48 sps:$4 sm:$0xff]  }
  0x33   :  { %2423 = vmatpush1.bf16.msra.mxu0 %v3406_v52  ;;  %2505 = vmatpush1.bf16.msra.mxu1 %v3407_v53  ;;  %v3494_v52 = vld [vmem:[%s5204_s1 + $0xa20] ss:$48 sps:$4 sm:$0xff]   ;;  %v3497_v53 = vld [vmem:[%s5204_s1 + $0xa28] ss:$48 sps:$4 sm:$0xff]  }
  0x34   :  { %2424 = vmatprep.subr.bf16.mxu0 %v3408_v54  ;;  %2506 = vmatprep.subr.bf16.mxu1 %v3410_v55  ;;  %v3502_v54 = vld [vmem:[%s5204_s1 + $0xa84] ss:$48 sps:$4 sm:$0xff]   ;;  %v3505_v55 = vld [vmem:[%s5204_s1 + $0xa8c] ss:$48 sps:$4 sm:$0xff]  }
  0x37   :  { %2425 = vmatpush1.bf16.msra.mxu0 %v3412_v56  ;;  %2507 = vmatpush1.bf16.msra.mxu1 %v3413_v57  ;;  %v3500_v56 = vld [vmem:[%s5204_s1 + $0xa80] ss:$48 sps:$4 sm:$0xff]   ;;  %v3503_v57 = vld [vmem:[%s5204_s1 + $0xa88] ss:$48 sps:$4 sm:$0xff]  }
  0x38   :  { %2426 = vmatprep.subr.bf16.mxu0 %v3414_v58  ;;  %2508 = vmatprep.subr.bf16.mxu1 %v3416_v59  ;;  %v3508_v58 = vld [vmem:[%s5204_s1 + $0xae4] ss:$48 sps:$4 sm:$0xff]   ;;  %v3511_v59 = vld [vmem:[%s5204_s1 + $0xaec] ss:$48 sps:$4 sm:$0xff]  }
  0x3b   :  { %2427 = vmatpush1.bf16.msra.mxu0 %v3418_v60  ;;  %2509 = vmatpush1.bf16.msra.mxu1 %v3419_v61  ;;  %v3506_v60 = vld [vmem:[%s5204_s1 + $0xae0] ss:$48 sps:$4 sm:$0xff]   ;;  %v3509_v61 = vld [vmem:[%s5204_s1 + $0xae8] ss:$48 sps:$4 sm:$0xff]  }
  0x3c   :  { %2428 = vmatprep.subr.bf16.mxu0 %v3420_v62  ;;  %2510 = vmatprep.subr.bf16.mxu1 %v3422_v63  ;;  %v3514_v62 = vld [vmem:[%s5204_s1 + $0xb44] ss:$48 sps:$4 sm:$0xff]   ;;  %v3517_v63 = vld [vmem:[%s5204_s1 + $0xb4c] ss:$48 sps:$4 sm:$0xff]  }
  0x3f   :  { %2429 = vmatpush1.bf16.msra.mxu0 %v3424_v0  ;;  %2511 = vmatpush1.bf16.msra.mxu1 %v3425_v1  ;;  %v3512_v0 = vld [vmem:[%s5204_s1 + $0xb40] ss:$48 sps:$4 sm:$0xff]   ;;  %v3515_v1 = vld [vmem:[%s5204_s1 + $0xb48] ss:$48 sps:$4 sm:$0xff]  }
  0x40   :  { %2439 = vmatprep.subr.bf16.mxu0 %v3429_v2  ;;  %2521 = vmatprep.subr.bf16.mxu1 %v3432_v3  ;;  %v3520_v2 = vld [vmem:[%s5204_s1 + $0xba4] ss:$48 sps:$4 sm:$0xff]   ;;  %v3523_v3 = vld [vmem:[%s5204_s1 + $0xbac] ss:$48 sps:$4 sm:$0xff]  }
  0x42   :  { %2431 = vmatmul.mubr.bf16.vlgmr.msra.gmra.mrb[0].mxu0 %v4138_v5  ;;  %2513 = vmatmul.mubr.bf16.vlgmr.msra.gmra.mrb[0].mxu1 %v4138_v5 }
  0x43   :  { %2440 = vmatpush1.bf16.msra.mxu0 %v3427_v4  ;;  %2522 = vmatpush1.bf16.msra.mxu1 %v3430_v6  ;;  %v3518_v4 = vld [vmem:[%s5204_s1 + $0xba0] ss:$48 sps:$4 sm:$0xff]   ;;  %v3521_v6 = vld [vmem:[%s5204_s1 + $0xba8] ss:$48 sps:$4 sm:$0xff]  }
  0x44   :  { %2441 = vmatprep.subr.bf16.mxu0 %v3436_v7  ;;  %2523 = vmatprep.subr.bf16.mxu1 %v3439_v8  ;;  %v3528_v7 = vld [vmem:[%s5204_s1 + $0x14] ss:$48 sps:$4 sm:$0xff]   ;;  %v3531_v8 = vld [vmem:[%s5204_s1 + $0x1c] ss:$48 sps:$4 sm:$0xff]  }
  0x45   :  { %2471 = vmatprep.mubr.bf16.mxu0 %v4218_v30  ;;  %2553 = vmatprep.mubr.bf16.mxu1 %v4218_v30 }
  0x47   :  { %2442 = vmatpush1.bf16.msra.mxu0 %v3434_v9  ;;  %2524 = vmatpush1.bf16.msra.mxu1 %v3437_v10  ;;  %v4344_v9 = vcombine.low %v4214_v29, %v4214_v29  ;;  %v3526_v10 = vld [vmem:[%s5204_s1 + $0x10] ss:$48 sps:$4 sm:$0xff]   ;;  %v3561_v29 = vld [vmem:[%s5204_s1 + $0x1fc] ss:$48 sps:$4 sm:$0xff]  }
  0x48   :  { %2443 = vmatprep.subr.bf16.mxu0 %v3442_v11  ;;  %2525 = vmatprep.subr.bf16.mxu1 %v3445_v12  ;;  %v3529_v11 = vld [vmem:[%s5204_s1 + $0x18] ss:$48 sps:$4 sm:$0xff]   ;;  %v3534_v12 = vld [vmem:[%s5204_s1 + $0x74] ss:$48 sps:$4 sm:$0xff]  }
  0x4b   :  { %2444 = vmatpush1.bf16.msra.mxu0 %v3440_v13  ;;  %2526 = vmatpush1.bf16.msra.mxu1 %v3443_v14  ;;  %v3537_v13 = vld [vmem:[%s5204_s1 + $0x7c] ss:$48 sps:$4 sm:$0xff]   ;;  %v3532_v14 = vld [vmem:[%s5204_s1 + $0x70] ss:$48 sps:$4 sm:$0xff]  }
  0x4c   :  { %2445 = vmatprep.subr.bf16.mxu0 %v3448_v15  ;;  %2527 = vmatprep.subr.bf16.mxu1 %v3451_v16  ;;  %v3535_v15 = vld [vmem:[%s5204_s1 + $0x78] ss:$48 sps:$4 sm:$0xff]   ;;  %v3540_v16 = vld [vmem:[%s5204_s1 + $0xd4] ss:$48 sps:$4 sm:$0xff]  }
  0x4f   :  { %2446 = vmatpush1.bf16.msra.mxu0 %v3446_v17  ;;  %2528 = vmatpush1.bf16.msra.mxu1 %v3449_v18  ;;  %v3543_v17 = vld [vmem:[%s5204_s1 + $0xdc] ss:$48 sps:$4 sm:$0xff]   ;;  %v3538_v18 = vld [vmem:[%s5204_s1 + $0xd0] ss:$48 sps:$4 sm:$0xff]  }
  0x50   :  { %2447 = vmatprep.subr.bf16.mxu0 %v3454_v19  ;;  %2529 = vmatprep.subr.bf16.mxu1 %v3457_v20  ;;  %v3541_v19 = vld [vmem:[%s5204_s1 + $0xd8] ss:$48 sps:$4 sm:$0xff]   ;;  %v3546_v20 = vld [vmem:[%s5204_s1 + $0x134] ss:$48 sps:$4 sm:$0xff]  }
  0x53   :  { %2448 = vmatpush1.bf16.msra.mxu0 %v3452_v21  ;;  %2530 = vmatpush1.bf16.msra.mxu1 %v3455_v22  ;;  %v3549_v21 = vld [vmem:[%s5204_s1 + $0x13c] ss:$48 sps:$4 sm:$0xff]   ;;  %v3544_v22 = vld [vmem:[%s5204_s1 + $0x130] ss:$48 sps:$4 sm:$0xff]  }
  0x54   :  { %2449 = vmatprep.subr.bf16.mxu0 %v3460_v23  ;;  %2531 = vmatprep.subr.bf16.mxu1 %v3463_v24  ;;  %v3547_v23 = vld [vmem:[%s5204_s1 + $0x138] ss:$48 sps:$4 sm:$0xff]   ;;  %v3552_v24 = vld [vmem:[%s5204_s1 + $0x194] ss:$48 sps:$4 sm:$0xff]  }
  0x57   :  { %2450 = vmatpush1.bf16.msra.mxu0 %v3458_v25  ;;  %2532 = vmatpush1.bf16.msra.mxu1 %v3461_v26  ;;  %v3555_v25 = vld [vmem:[%s5204_s1 + $0x19c] ss:$48 sps:$4 sm:$0xff]   ;;  %v3550_v26 = vld [vmem:[%s5204_s1 + $0x190] ss:$48 sps:$4 sm:$0xff]  }
  0x58   :  { %2451 = vmatprep.subr.bf16.mxu0 %v3466_v27  ;;  %2533 = vmatprep.subr.bf16.mxu1 %v3469_v28  ;;  %v3553_v27 = vld [vmem:[%s5204_s1 + $0x198] ss:$48 sps:$4 sm:$0xff]   ;;  %v3558_v28 = vld [vmem:[%s5204_s1 + $0x1f4] ss:$48 sps:$4 sm:$0xff]  }
  0x5b   :  { %2452 = vmatpush1.bf16.msra.mxu0 %v3464_v31  ;;  %2534 = vmatpush1.bf16.msra.mxu1 %v3467_v32  ;;  %v3556_v31 = vld [vmem:[%s5204_s1 + $0x1f0] ss:$48 sps:$4 sm:$0xff]   ;;  %v3559_v32 = vld [vmem:[%s5204_s1 + $0x1f8] ss:$48 sps:$4 sm:$0xff]  }
  0x5c   :  { %2453 = vmatprep.subr.bf16.mxu0 %v3472_v33  ;;  %2535 = vmatprep.subr.bf16.mxu1 %v3475_v34  ;;  %v3564_v33 = vld [vmem:[%s5204_s1 + $0x254] ss:$48 sps:$4 sm:$0xff]   ;;  %v3567_v34 = vld [vmem:[%s5204_s1 + $0x25c] ss:$48 sps:$4 sm:$0xff]  }
  0x5f   :  { %2454 = vmatpush1.bf16.msra.mxu0 %v3470_v35  ;;  %2536 = vmatpush1.bf16.msra.mxu1 %v3473_v36  ;;  %v3562_v35 = vld [vmem:[%s5204_s1 + $0x250] ss:$48 sps:$4 sm:$0xff]   ;;  %v3565_v36 = vld [vmem:[%s5204_s1 + $0x258] ss:$48 sps:$4 sm:$0xff]  }
  0x60   :  { %2455 = vmatprep.subr.bf16.mxu0 %v3478_v37  ;;  %2537 = vmatprep.subr.bf16.mxu1 %v3481_v38  ;;  %v3570_v37 = vld [vmem:[%s5204_s1 + $0x2b4] ss:$48 sps:$4 sm:$0xff]   ;;  %v3573_v38 = vld [vmem:[%s5204_s1 + $0x2bc] ss:$48 sps:$4 sm:$0xff]  }
  0x63   :  { %2456 = vmatpush1.bf16.msra.mxu0 %v3476_v39  ;;  %2538 = vmatpush1.bf16.msra.mxu1 %v3479_v40  ;;  %v3568_v39 = vld [vmem:[%s5204_s1 + $0x2b0] ss:$48 sps:$4 sm:$0xff]   ;;  %v3571_v40 = vld [vmem:[%s5204_s1 + $0x2b8] ss:$48 sps:$4 sm:$0xff]  }
  0x64   :  { %2457 = vmatprep.subr.bf16.mxu0 %v3484_v41  ;;  %2539 = vmatprep.subr.bf16.mxu1 %v3487_v42  ;;  %v3576_v41 = vld [vmem:[%s5204_s1 + $0x314] ss:$48 sps:$4 sm:$0xff]   ;;  %v3579_v42 = vld [vmem:[%s5204_s1 + $0x31c] ss:$48 sps:$4 sm:$0xff]  }
  0x67   :  { %2458 = vmatpush1.bf16.msra.mxu0 %v3482_v43  ;;  %2540 = vmatpush1.bf16.msra.mxu1 %v3485_v44  ;;  %v3574_v43 = vld [vmem:[%s5204_s1 + $0x310] ss:$48 sps:$4 sm:$0xff]   ;;  %v3577_v44 = vld [vmem:[%s5204_s1 + $0x318] ss:$48 sps:$4 sm:$0xff]  }
  0x68   :  { %2459 = vmatprep.subr.bf16.mxu0 %v3490_v45  ;;  %2541 = vmatprep.subr.bf16.mxu1 %v3493_v46  ;;  %v3582_v45 = vld [vmem:[%s5204_s1 + $0x374] ss:$48 sps:$4 sm:$0xff]   ;;  %v3585_v46 = vld [vmem:[%s5204_s1 + $0x37c] ss:$48 sps:$4 sm:$0xff]  }
  0x6b   :  { %2460 = vmatpush1.bf16.msra.mxu0 %v3488_v47  ;;  %2542 = vmatpush1.bf16.msra.mxu1 %v3491_v49  ;;  %v3580_v47 = vld [vmem:[%s5204_s1 + $0x370] ss:$48 sps:$4 sm:$0xff]   ;;  %v3583_v49 = vld [vmem:[%s5204_s1 + $0x378] ss:$48 sps:$4 sm:$0xff]  }
  0x6c   :  { %2461 = vmatprep.subr.bf16.mxu0 %v3496_v50  ;;  %2543 = vmatprep.subr.bf16.mxu1 %v3499_v51  ;;  %v3588_v50 = vld [vmem:[%s5204_s1 + $0x3d4] ss:$48 sps:$4 sm:$0xff]   ;;  %v3591_v51 = vld [vmem:[%s5204_s1 + $0x3dc] ss:$48 sps:$4 sm:$0xff]  }
  0x6f   :  { %2462 = vmatpush1.bf16.msra.mxu0 %v3494_v52  ;;  %2544 = vmatpush1.bf16.msra.mxu1 %v3497_v53  ;;  %v3586_v52 = vld [vmem:[%s5204_s1 + $0x3d0] ss:$48 sps:$4 sm:$0xff]   ;;  %v3589_v53 = vld [vmem:[%s5204_s1 + $0x3d8] ss:$48 sps:$4 sm:$0xff]  }
  0x70   :  { %2463 = vmatprep.subr.bf16.mxu0 %v3502_v54  ;;  %2545 = vmatprep.subr.bf16.mxu1 %v3505_v55  ;;  %v3594_v54 = vld [vmem:[%s5204_s1 + $0x434] ss:$48 sps:$4 sm:$0xff]   ;;  %v3597_v55 = vld [vmem:[%s5204_s1 + $0x43c] ss:$48 sps:$4 sm:$0xff]  }
  0x73   :  { %2464 = vmatpush1.bf16.msra.mxu0 %v3500_v56  ;;  %2546 = vmatpush1.bf16.msra.mxu1 %v3503_v57  ;;  %v3592_v56 = vld [vmem:[%s5204_s1 + $0x430] ss:$48 sps:$4 sm:$0xff]   ;;  %v3595_v57 = vld [vmem:[%s5204_s1 + $0x438] ss:$48 sps:$4 sm:$0xff]  }
  0x74   :  { %2465 = vmatprep.subr.bf16.mxu0 %v3508_v58  ;;  %2547 = vmatprep.subr.bf16.mxu1 %v3511_v59  ;;  %v3600_v58 = vld [vmem:[%s5204_s1 + $0x494] ss:$48 sps:$4 sm:$0xff]   ;;  %v3603_v59 = vld [vmem:[%s5204_s1 + $0x49c] ss:$48 sps:$4 sm:$0xff]  }
  0x77   :  { %2466 = vmatpush1.bf16.msra.mxu0 %v3506_v60  ;;  %2548 = vmatpush1.bf16.msra.mxu1 %v3509_v61  ;;  %v3598_v60 = vld [vmem:[%s5204_s1 + $0x490] ss:$48 sps:$4 sm:$0xff]   ;;  %v3601_v61 = vld [vmem:[%s5204_s1 + $0x498] ss:$48 sps:$4 sm:$0xff]  }
  0x78   :  { %2467 = vmatprep.subr.bf16.mxu0 %v3514_v62  ;;  %2549 = vmatprep.subr.bf16.mxu1 %v3517_v63  ;;  %v3606_v62 = vld [vmem:[%s5204_s1 + $0x4f4] ss:$48 sps:$4 sm:$0xff]   ;;  %v3609_v63 = vld [vmem:[%s5204_s1 + $0x4fc] ss:$48 sps:$4 sm:$0xff]  }
  0x7b   :  { %2468 = vmatpush1.bf16.msra.mxu0 %v3512_v0  ;;  %2550 = vmatpush1.bf16.msra.mxu1 %v3515_v1  ;;  %v3604_v0 = vld [vmem:[%s5204_s1 + $0x4f0] ss:$48 sps:$4 sm:$0xff]   ;;  %v3607_v1 = vld [vmem:[%s5204_s1 + $0x4f8] ss:$48 sps:$4 sm:$0xff]  }
  0x7c   :  { %2469 = vmatprep.subr.bf16.mxu0 %v3520_v2  ;;  %2551 = vmatprep.subr.bf16.mxu1 %v3523_v3  ;;  %v3612_v2 = vld [vmem:[%s5204_s1 + $0x554] ss:$48 sps:$4 sm:$0xff]   ;;  %v3615_v3 = vld [vmem:[%s5204_s1 + $0x55c] ss:$48 sps:$4 sm:$0xff]  }
  0x7f   :  { %2470 = vmatpush1.bf16.msra.mxu0 %v3518_v4  ;;  %2552 = vmatpush1.bf16.msra.mxu1 %v3521_v6  ;;  %v3610_v4 = vld [vmem:[%s5204_s1 + $0x550] ss:$48 sps:$4 sm:$0xff]   ;;  %v3613_v6 = vld [vmem:[%s5204_s1 + $0x558] ss:$48 sps:$4 sm:$0xff]  }
  0x80   :  { %2562 = vmatprep.subr.bf16.mxu0 %v3528_v7  ;;  %2644 = vmatprep.subr.bf16.mxu1 %v3531_v8  ;;  %v3618_v7 = vld [vmem:[%s5204_s1 + $0x5b4] ss:$48 sps:$4 sm:$0xff]   ;;  %v3621_v8 = vld [vmem:[%s5204_s1 + $0x5bc] ss:$48 sps:$4 sm:$0xff]  }
  0x82   :  { %2472 = vmatmul.mubr.bf16.vlgmr.msra.gmra.mrb[0].mxu0 %v4344_v9  ;;  %2554 = vmatmul.mubr.bf16.vlgmr.msra.gmra.mrb[0].mxu1 %v4344_v9 }
  0x83   :  { %2563 = vmatpush1.bf16.msra.mxu0 %v3526_v10  ;;  %2645 = vmatpush1.bf16.msra.mxu1 %v3529_v11  ;;  %v3616_v10 = vld [vmem:[%s5204_s1 + $0x5b0] ss:$48 sps:$4 sm:$0xff]   ;;  %v3619_v11 = vld [vmem:[%s5204_s1 + $0x5b8] ss:$48 sps:$4 sm:$0xff]  }
  0x84   :  { %2564 = vmatprep.subr.bf16.mxu0 %v3534_v12  ;;  %2646 = vmatprep.subr.bf16.mxu1 %v3537_v13  ;;  %v3624_v12 = vld [vmem:[%s5204_s1 + $0x614] ss:$48 sps:$4 sm:$0xff]   ;;  %v3627_v13 = vld [vmem:[%s5204_s1 + $0x61c] ss:$48 sps:$4 sm:$0xff]  }
  0x85   :  { %2594 = vmatprep.mubr.bf16.mxu0 %v4074_v48  ;;  %2676 = vmatprep.mubr.bf16.mxu1 %v4074_v48 }
  0x87   :  { %2565 = vmatpush1.bf16.msra.mxu0 %v3532_v14  ;;  %2647 = vmatpush1.bf16.msra.mxu1 %v3535_v15  ;;  %v3622_v14 = vld [vmem:[%s5204_s1 + $0x610] ss:$48 sps:$4 sm:$0xff]   ;;  %v3625_v15 = vld [vmem:[%s5204_s1 + $0x618] ss:$48 sps:$4 sm:$0xff]  }
  0x88   :  { %2566 = vmatprep.subr.bf16.mxu0 %v3540_v16  ;;  %2648 = vmatprep.subr.bf16.mxu1 %v3543_v17  ;;  %v3630_v16 = vld [vmem:[%s5204_s1 + $0x674] ss:$48 sps:$4 sm:$0xff]   ;;  %v3633_v17 = vld [vmem:[%s5204_s1 + $0x67c] ss:$48 sps:$4 sm:$0xff]  }
  0x8b   :  { %2567 = vmatpush1.bf16.msra.mxu0 %v3538_v18  ;;  %2649 = vmatpush1.bf16.msra.mxu1 %v3541_v19  ;;  %v3628_v18 = vld [vmem:[%s5204_s1 + $0x670] ss:$48 sps:$4 sm:$0xff]   ;;  %v3631_v19 = vld [vmem:[%s5204_s1 + $0x678] ss:$48 sps:$4 sm:$0xff]  }
  0x8c   :  { %2568 = vmatprep.subr.bf16.mxu0 %v3546_v20  ;;  %2650 = vmatprep.subr.bf16.mxu1 %v3549_v21  ;;  %v3636_v20 = vld [vmem:[%s5204_s1 + $0x6d4] ss:$48 sps:$4 sm:$0xff]   ;;  %v3639_v21 = vld [vmem:[%s5204_s1 + $0x6dc] ss:$48 sps:$4 sm:$0xff]  }
  0x8f   :  { %2569 = vmatpush1.bf16.msra.mxu0 %v3544_v22  ;;  %2651 = vmatpush1.bf16.msra.mxu1 %v3547_v23  ;;  %v3634_v22 = vld [vmem:[%s5204_s1 + $0x6d0] ss:$48 sps:$4 sm:$0xff]   ;;  %v3637_v23 = vld [vmem:[%s5204_s1 + $0x6d8] ss:$48 sps:$4 sm:$0xff]  }
  0x90   :  { %2570 = vmatprep.subr.bf16.mxu0 %v3552_v24  ;;  %2652 = vmatprep.subr.bf16.mxu1 %v3555_v25  ;;  %v3642_v24 = vld [vmem:[%s5204_s1 + $0x734] ss:$48 sps:$4 sm:$0xff]   ;;  %v3645_v25 = vld [vmem:[%s5204_s1 + $0x73c] ss:$48 sps:$4 sm:$0xff]  }
  0x93   :  { %2571 = vmatpush1.bf16.msra.mxu0 %v3550_v26  ;;  %2653 = vmatpush1.bf16.msra.mxu1 %v3553_v27  ;;  %v3640_v26 = vld [vmem:[%s5204_s1 + $0x730] ss:$48 sps:$4 sm:$0xff]   ;;  %v3643_v27 = vld [vmem:[%s5204_s1 + $0x738] ss:$48 sps:$4 sm:$0xff]  }
  0x94   :  { %2572 = vmatprep.subr.bf16.mxu0 %v3558_v28  ;;  %2654 = vmatprep.subr.bf16.mxu1 %v3561_v29  ;;  %v3648_v28 = vld [vmem:[%s5204_s1 + $0x794] ss:$48 sps:$4 sm:$0xff]   ;;  %v3651_v29 = vld [vmem:[%s5204_s1 + $0x79c] ss:$48 sps:$4 sm:$0xff]  }
  0x97   :  { %2573 = vmatpush1.bf16.msra.mxu0 %v3556_v31  ;;  %2655 = vmatpush1.bf16.msra.mxu1 %v3559_v32  ;;  %v3646_v31 = vld [vmem:[%s5204_s1 + $0x790] ss:$48 sps:$4 sm:$0xff]   ;;  %v3649_v32 = vld [vmem:[%s5204_s1 + $0x798] ss:$48 sps:$4 sm:$0xff]  }
  0x98   :  { %2574 = vmatprep.subr.bf16.mxu0 %v3564_v33  ;;  %2656 = vmatprep.subr.bf16.mxu1 %v3567_v34  ;;  %v3654_v33 = vld [vmem:[%s5204_s1 + $0x7f4] ss:$48 sps:$4 sm:$0xff]   ;;  %v3657_v34 = vld [vmem:[%s5204_s1 + $0x7fc] ss:$48 sps:$4 sm:$0xff]  }
  0x9b   :  { %2575 = vmatpush1.bf16.msra.mxu0 %v3562_v35  ;;  %2657 = vmatpush1.bf16.msra.mxu1 %v3565_v36  ;;  %v3652_v35 = vld [vmem:[%s5204_s1 + $0x7f0] ss:$48 sps:$4 sm:$0xff]   ;;  %v3655_v36 = vld [vmem:[%s5204_s1 + $0x7f8] ss:$48 sps:$4 sm:$0xff]  }
  0x9c   :  { %2576 = vmatprep.subr.bf16.mxu0 %v3570_v37  ;;  %2658 = vmatprep.subr.bf16.mxu1 %v3573_v38  ;;  %v3660_v37 = vld [vmem:[%s5204_s1 + $0x854] ss:$48 sps:$4 sm:$0xff]   ;;  %v3663_v38 = vld [vmem:[%s5204_s1 + $0x85c] ss:$48 sps:$4 sm:$0xff]  }
  0x9f   :  { %2577 = vmatpush1.bf16.msra.mxu0 %v3568_v39  ;;  %2659 = vmatpush1.bf16.msra.mxu1 %v3571_v40  ;;  %v3658_v39 = vld [vmem:[%s5204_s1 + $0x850] ss:$48 sps:$4 sm:$0xff]   ;;  %v3661_v40 = vld [vmem:[%s5204_s1 + $0x858] ss:$48 sps:$4 sm:$0xff]  }
  0xa0   :  { %2578 = vmatprep.subr.bf16.mxu0 %v3576_v41  ;;  %2660 = vmatprep.subr.bf16.mxu1 %v3579_v42  ;;  %v3666_v41 = vld [vmem:[%s5204_s1 + $0x8b4] ss:$48 sps:$4 sm:$0xff]   ;;  %v3669_v42 = vld [vmem:[%s5204_s1 + $0x8bc] ss:$48 sps:$4 sm:$0xff]  }
  0xa3   :  { %2579 = vmatpush1.bf16.msra.mxu0 %v3574_v43  ;;  %2661 = vmatpush1.bf16.msra.mxu1 %v3577_v44  ;;  %v3664_v43 = vld [vmem:[%s5204_s1 + $0x8b0] ss:$48 sps:$4 sm:$0xff]   ;;  %v3667_v44 = vld [vmem:[%s5204_s1 + $0x8b8] ss:$48 sps:$4 sm:$0xff]  }
  0xa4   :  { %2580 = vmatprep.subr.bf16.mxu0 %v3582_v45  ;;  %2662 = vmatprep.subr.bf16.mxu1 %v3585_v46  ;;  %v3672_v45 = vld [vmem:[%s5204_s1 + $0x914] ss:$48 sps:$4 sm:$0xff]   ;;  %v3675_v46 = vld [vmem:[%s5204_s1 + $0x91c] ss:$48 sps:$4 sm:$0xff]  }
  0xa7   :  { %2581 = vmatpush1.bf16.msra.mxu0 %v3580_v47  ;;  %2663 = vmatpush1.bf16.msra.mxu1 %v3583_v49  ;;  %v3670_v47 = vld [vmem:[%s5204_s1 + $0x910] ss:$48 sps:$4 sm:$0xff]   ;;  %v3673_v49 = vld [vmem:[%s5204_s1 + $0x918] ss:$48 sps:$4 sm:$0xff]  }
  0xa8   :  { %2582 = vmatprep.subr.bf16.mxu0 %v3588_v50  ;;  %2664 = vmatprep.subr.bf16.mxu1 %v3591_v51  ;;  %v3678_v50 = vld [vmem:[%s5204_s1 + $0x974] ss:$48 sps:$4 sm:$0xff]   ;;  %v3681_v51 = vld [vmem:[%s5204_s1 + $0x97c] ss:$48 sps:$4 sm:$0xff]  }
  0xab   :  { %2583 = vmatpush1.bf16.msra.mxu0 %v3586_v52  ;;  %2665 = vmatpush1.bf16.msra.mxu1 %v3589_v53  ;;  %v3676_v52 = vld [vmem:[%s5204_s1 + $0x970] ss:$48 sps:$4 sm:$0xff]   ;;  %v3679_v53 = vld [vmem:[%s5204_s1 + $0x978] ss:$48 sps:$4 sm:$0xff]  }
  0xac   :  { %2584 = vmatprep.subr.bf16.mxu0 %v3594_v54  ;;  %2666 = vmatprep.subr.bf16.mxu1 %v3597_v55  ;;  %v3684_v54 = vld [vmem:[%s5204_s1 + $0x9d4] ss:$48 sps:$4 sm:$0xff]   ;;  %v3687_v55 = vld [vmem:[%s5204_s1 + $0x9dc] ss:$48 sps:$4 sm:$0xff]  }
  0xaf   :  { %2585 = vmatpush1.bf16.msra.mxu0 %v3592_v56  ;;  %2667 = vmatpush1.bf16.msra.mxu1 %v3595_v57  ;;  %v3682_v56 = vld [vmem:[%s5204_s1 + $0x9d0] ss:$48 sps:$4 sm:$0xff]   ;;  %v3685_v57 = vld [vmem:[%s5204_s1 + $0x9d8] ss:$48 sps:$4 sm:$0xff]  }
  0xb0   :  { %2586 = vmatprep.subr.bf16.mxu0 %v3600_v58  ;;  %2668 = vmatprep.subr.bf16.mxu1 %v3603_v59  ;;  %v3690_v58 = vld [vmem:[%s5204_s1 + $0xa34] ss:$48 sps:$4 sm:$0xff]   ;;  %v3693_v59 = vld [vmem:[%s5204_s1 + $0xa3c] ss:$48 sps:$4 sm:$0xff]  }
  0xb3   :  { %2587 = vmatpush1.bf16.msra.mxu0 %v3598_v60  ;;  %2669 = vmatpush1.bf16.msra.mxu1 %v3601_v61  ;;  %v3688_v60 = vld [vmem:[%s5204_s1 + $0xa30] ss:$48 sps:$4 sm:$0xff]   ;;  %v3691_v61 = vld [vmem:[%s5204_s1 + $0xa38] ss:$48 sps:$4 sm:$0xff]  }
  0xb4   :  { %2588 = vmatprep.subr.bf16.mxu0 %v3606_v62  ;;  %2670 = vmatprep.subr.bf16.mxu1 %v3609_v63  ;;  %v3696_v62 = vld [vmem:[%s5204_s1 + $0xa94] ss:$48 sps:$4 sm:$0xff]   ;;  %v3699_v63 = vld [vmem:[%s5204_s1 + $0xa9c] ss:$48 sps:$4 sm:$0xff]  }
  0xb7   :  { %2589 = vmatpush1.bf16.msra.mxu0 %v3604_v0  ;;  %2671 = vmatpush1.bf16.msra.mxu1 %v3607_v1  ;;  %v3694_v0 = vld [vmem:[%s5204_s1 + $0xa90] ss:$48 sps:$4 sm:$0xff]   ;;  %v3697_v1 = vld [vmem:[%s5204_s1 + $0xa98] ss:$48 sps:$4 sm:$0xff]  }
  0xb8   :  { %2590 = vmatprep.subr.bf16.mxu0 %v3612_v2  ;;  %2672 = vmatprep.subr.bf16.mxu1 %v3615_v3  ;;  %v3702_v2 = vld [vmem:[%s5204_s1 + $0xaf4] ss:$48 sps:$4 sm:$0xff]   ;;  %v3705_v3 = vld [vmem:[%s5204_s1 + $0xafc] ss:$48 sps:$4 sm:$0xff]  }
  0xbb   :  { %2591 = vmatpush1.bf16.msra.mxu0 %v3610_v4  ;;  %2673 = vmatpush1.bf16.msra.mxu1 %v3613_v6  ;;  %v3700_v4 = vld [vmem:[%s5204_s1 + $0xaf0] ss:$48 sps:$4 sm:$0xff]   ;;  %v3703_v6 = vld [vmem:[%s5204_s1 + $0xaf8] ss:$48 sps:$4 sm:$0xff]  }
  0xbc   :  { %2592 = vmatprep.subr.bf16.mxu0 %v3618_v7  ;;  %2674 = vmatprep.subr.bf16.mxu1 %v3621_v8  ;;  %v3708_v7 = vld [vmem:[%s5204_s1 + $0xb54] ss:$48 sps:$4 sm:$0xff]   ;;  %v3711_v8 = vld [vmem:[%s5204_s1 + $0xb5c] ss:$48 sps:$4 sm:$0xff]  }
  0xbf   :  { %2593 = vmatpush1.bf16.msra.mxu0 %v3616_v10  ;;  %2675 = vmatpush1.bf16.msra.mxu1 %v3619_v11  ;;  %v3706_v10 = vld [vmem:[%s5204_s1 + $0xb50] ss:$48 sps:$4 sm:$0xff]   ;;  %v3709_v11 = vld [vmem:[%s5204_s1 + $0xb58] ss:$48 sps:$4 sm:$0xff]  }
  0xc0   :  { %2603 = vmatprep.subr.bf16.mxu0 %v3624_v12  ;;  %2685 = vmatprep.subr.bf16.mxu1 %v3627_v13  ;;  %v3714_v12 = vld [vmem:[%s5204_s1 + $0xbb4] ss:$48 sps:$4 sm:$0xff]   ;;  %v3717_v13 = vld [vmem:[%s5204_s1 + $0xbbc] ss:$48 sps:$4 sm:$0xff]  }
  0xc2   :  { %2595 = vmatmul.mubr.bf16.vlgmr.msra.gmra.mrb[4].mxu0 %v4138_v5  ;;  %2677 = vmatmul.mubr.bf16.vlgmr.msra.gmra.mrb[4].mxu1 %v4138_v5 }
  0xc3   :  { %2604 = vmatpush1.bf16.msra.mxu0 %v3622_v14  ;;  %2686 = vmatpush1.bf16.msra.mxu1 %v3625_v15  ;;  %v3712_v14 = vld [vmem:[%s5204_s1 + $0xbb0] ss:$48 sps:$4 sm:$0xff]   ;;  %v3715_v15 = vld [vmem:[%s5204_s1 + $0xbb8] ss:$48 sps:$4 sm:$0xff]  }
  0xc4   :  { %2605 = vmatprep.subr.bf16.mxu0 %v3630_v16  ;;  %2687 = vmatprep.subr.bf16.mxu1 %v3633_v17  ;;  %v3720_v16 = vld [vmem:[%s5204_s1 + $0x24] ss:$48 sps:$4 sm:$0xff]   ;;  %v3723_v17 = vld [vmem:[%s5204_s1 + $0x2c] ss:$48 sps:$4 sm:$0xff]  }
  0xc5   :  { %2635 = vmatprep.mubr.bf16.mxu0 %v4218_v30  ;;  %2717 = vmatprep.mubr.bf16.mxu1 %v4218_v30 }
  0xc7   :  { %2606 = vmatpush1.bf16.msra.mxu0 %v3628_v18  ;;  %2688 = vmatpush1.bf16.msra.mxu1 %v3631_v19  ;;  %v3718_v18 = vld [vmem:[%s5204_s1 + $0x20] ss:$48 sps:$4 sm:$0xff]   ;;  %v3721_v19 = vld [vmem:[%s5204_s1 + $0x28] ss:$48 sps:$4 sm:$0xff]  }
  0xc8   :  { %2607 = vmatprep.subr.bf16.mxu0 %v3636_v20  ;;  %2689 = vmatprep.subr.bf16.mxu1 %v3639_v21  ;;  %v3726_v20 = vld [vmem:[%s5204_s1 + $0x84] ss:$48 sps:$4 sm:$0xff]   ;;  %v3729_v21 = vld [vmem:[%s5204_s1 + $0x8c] ss:$48 sps:$4 sm:$0xff]  }
  0xcb   :  { %2608 = vmatpush1.bf16.msra.mxu0 %v3634_v22  ;;  %2690 = vmatpush1.bf16.msra.mxu1 %v3637_v23  ;;  %v3724_v22 = vld [vmem:[%s5204_s1 + $0x80] ss:$48 sps:$4 sm:$0xff]   ;;  %v3727_v23 = vld [vmem:[%s5204_s1 + $0x88] ss:$48 sps:$4 sm:$0xff]  }
  0xcc   :  { %2609 = vmatprep.subr.bf16.mxu0 %v3642_v24  ;;  %2691 = vmatprep.subr.bf16.mxu1 %v3645_v25  ;;  %v3732_v24 = vld [vmem:[%s5204_s1 + $0xe4] ss:$48 sps:$4 sm:$0xff]   ;;  %v3735_v25 = vld [vmem:[%s5204_s1 + $0xec] ss:$48 sps:$4 sm:$0xff]  }
  0xcf   :  { %2610 = vmatpush1.bf16.msra.mxu0 %v3640_v26  ;;  %2692 = vmatpush1.bf16.msra.mxu1 %v3643_v27  ;;  %v3730_v26 = vld [vmem:[%s5204_s1 + $0xe0] ss:$48 sps:$4 sm:$0xff]   ;;  %v3733_v27 = vld [vmem:[%s5204_s1 + $0xe8] ss:$48 sps:$4 sm:$0xff]  }
  0xd0   :  { %2611 = vmatprep.subr.bf16.mxu0 %v3648_v28  ;;  %2693 = vmatprep.subr.bf16.mxu1 %v3651_v29  ;;  %v3738_v28 = vld [vmem:[%s5204_s1 + $0x144] ss:$48 sps:$4 sm:$0xff]   ;;  %v3736_v29 = vld [vmem:[%s5204_s1 + $0x140] ss:$48 sps:$4 sm:$0xff]  }
  0xd3   :  { %2612 = vmatpush1.bf16.msra.mxu0 %v3646_v31  ;;  %2694 = vmatpush1.bf16.msra.mxu1 %v3649_v32  ;;  %v3739_v31 = vld [vmem:[%s5204_s1 + $0x148] ss:$48 sps:$4 sm:$0xff]   ;;  %v3744_v32 = vld [vmem:[%s5204_s1 + $0x1a4] ss:$48 sps:$4 sm:$0xff]  }
  0xd4   :  { %2613 = vmatprep.subr.bf16.mxu0 %v3654_v33  ;;  %2695 = vmatprep.subr.bf16.mxu1 %v3657_v34  ;;  %v3747_v33 = vld [vmem:[%s5204_s1 + $0x1ac] ss:$48 sps:$4 sm:$0xff]   ;;  %v3742_v34 = vld [vmem:[%s5204_s1 + $0x1a0] ss:$48 sps:$4 sm:$0xff]  }
  0xd7   :  { %2614 = vmatpush1.bf16.msra.mxu0 %v3652_v35  ;;  %2696 = vmatpush1.bf16.msra.mxu1 %v3655_v36  ;;  %v3745_v35 = vld [vmem:[%s5204_s1 + $0x1a8] ss:$48 sps:$4 sm:$0xff]   ;;  %v3750_v36 = vld [vmem:[%s5204_s1 + $0x204] ss:$48 sps:$4 sm:$0xff]  }
  0xd8   :  { %2615 = vmatprep.subr.bf16.mxu0 %v3660_v37  ;;  %2697 = vmatprep.subr.bf16.mxu1 %v3663_v38  ;;  %v3753_v37 = vld [vmem:[%s5204_s1 + $0x20c] ss:$48 sps:$4 sm:$0xff]   ;;  %v3748_v38 = vld [vmem:[%s5204_s1 + $0x200] ss:$48 sps:$4 sm:$0xff]  }
  0xdb   :  { %2616 = vmatpush1.bf16.msra.mxu0 %v3658_v39  ;;  %2698 = vmatpush1.bf16.msra.mxu1 %v3661_v40  ;;  %v3751_v39 = vld [vmem:[%s5204_s1 + $0x208] ss:$48 sps:$4 sm:$0xff]   ;;  %v3756_v40 = vld [vmem:[%s5204_s1 + $0x264] ss:$48 sps:$4 sm:$0xff]  }
  0xdc   :  { %2617 = vmatprep.subr.bf16.mxu0 %v3666_v41  ;;  %2699 = vmatprep.subr.bf16.mxu1 %v3669_v42  ;;  %v3759_v41 = vld [vmem:[%s5204_s1 + $0x26c] ss:$48 sps:$4 sm:$0xff]   ;;  %v3754_v42 = vld [vmem:[%s5204_s1 + $0x260] ss:$48 sps:$4 sm:$0xff]  }
  0xdf   :  { %2618 = vmatpush1.bf16.msra.mxu0 %v3664_v43  ;;  %2700 = vmatpush1.bf16.msra.mxu1 %v3667_v44  ;;  %v3757_v43 = vld [vmem:[%s5204_s1 + $0x268] ss:$48 sps:$4 sm:$0xff]   ;;  %v3762_v44 = vld [vmem:[%s5204_s1 + $0x2c4] ss:$48 sps:$4 sm:$0xff]  }
  0xe0   :  { %2619 = vmatprep.subr.bf16.mxu0 %v3672_v45  ;;  %2701 = vmatprep.subr.bf16.mxu1 %v3675_v46  ;;  %v3765_v45 = vld [vmem:[%s5204_s1 + $0x2cc] ss:$48 sps:$4 sm:$0xff]   ;;  %v3760_v46 = vld [vmem:[%s5204_s1 + $0x2c0] ss:$48 sps:$4 sm:$0xff]  }
  0xe3   :  { %2620 = vmatpush1.bf16.msra.mxu0 %v3670_v47  ;;  %2702 = vmatpush1.bf16.msra.mxu1 %v3673_v49  ;;  %v3763_v47 = vld [vmem:[%s5204_s1 + $0x2c8] ss:$48 sps:$4 sm:$0xff]   ;;  %v3768_v49 = vld [vmem:[%s5204_s1 + $0x324] ss:$48 sps:$4 sm:$0xff]  }
  0xe4   :  { %2621 = vmatprep.subr.bf16.mxu0 %v3678_v50  ;;  %2703 = vmatprep.subr.bf16.mxu1 %v3681_v51  ;;  %v3771_v50 = vld [vmem:[%s5204_s1 + $0x32c] ss:$48 sps:$4 sm:$0xff]   ;;  %v3766_v51 = vld [vmem:[%s5204_s1 + $0x320] ss:$48 sps:$4 sm:$0xff]  }
  0xe7   :  { %2622 = vmatpush1.bf16.msra.mxu0 %v3676_v52  ;;  %2704 = vmatpush1.bf16.msra.mxu1 %v3679_v53  ;;  %v3769_v52 = vld [vmem:[%s5204_s1 + $0x328] ss:$48 sps:$4 sm:$0xff]   ;;  %v3774_v53 = vld [vmem:[%s5204_s1 + $0x384] ss:$48 sps:$4 sm:$0xff]  }
  0xe8   :  { %2623 = vmatprep.subr.bf16.mxu0 %v3684_v54  ;;  %2705 = vmatprep.subr.bf16.mxu1 %v3687_v55  ;;  %v3777_v54 = vld [vmem:[%s5204_s1 + $0x38c] ss:$48 sps:$4 sm:$0xff]   ;;  %v3772_v55 = vld [vmem:[%s5204_s1 + $0x380] ss:$48 sps:$4 sm:$0xff]  }
  0xeb   :  { %2624 = vmatpush1.bf16.msra.mxu0 %v3682_v56  ;;  %2706 = vmatpush1.bf16.msra.mxu1 %v3685_v57  ;;  %v3775_v56 = vld [vmem:[%s5204_s1 + $0x388] ss:$48 sps:$4 sm:$0xff]   ;;  %v3780_v57 = vld [vmem:[%s5204_s1 + $0x3e4] ss:$48 sps:$4 sm:$0xff]  }
  0xec   :  { %2625 = vmatprep.subr.bf16.mxu0 %v3690_v58  ;;  %2707 = vmatprep.subr.bf16.mxu1 %v3693_v59  ;;  %v3783_v58 = vld [vmem:[%s5204_s1 + $0x3ec] ss:$48 sps:$4 sm:$0xff]   ;;  %v3778_v59 = vld [vmem:[%s5204_s1 + $0x3e0] ss:$48 sps:$4 sm:$0xff]  }
  0xef   :  { %2626 = vmatpush1.bf16.msra.mxu0 %v3688_v60  ;;  %2708 = vmatpush1.bf16.msra.mxu1 %v3691_v61  ;;  %v3781_v60 = vld [vmem:[%s5204_s1 + $0x3e8] ss:$48 sps:$4 sm:$0xff]   ;;  %v3786_v61 = vld [vmem:[%s5204_s1 + $0x444] ss:$48 sps:$4 sm:$0xff]  }
  0xf0   :  { %2627 = vmatprep.subr.bf16.mxu0 %v3696_v62  ;;  %2709 = vmatprep.subr.bf16.mxu1 %v3699_v63  ;;  %v3789_v62 = vld [vmem:[%s5204_s1 + $0x44c] ss:$48 sps:$4 sm:$0xff]   ;;  %v3784_v63 = vld [vmem:[%s5204_s1 + $0x440] ss:$48 sps:$4 sm:$0xff]  }
  0xf3   :  { %2628 = vmatpush1.bf16.msra.mxu0 %v3694_v0  ;;  %2710 = vmatpush1.bf16.msra.mxu1 %v3697_v1  ;;  %v3787_v0 = vld [vmem:[%s5204_s1 + $0x448] ss:$48 sps:$4 sm:$0xff]   ;;  %v3792_v1 = vld [vmem:[%s5204_s1 + $0x4a4] ss:$48 sps:$4 sm:$0xff]  }
  0xf4   :  { %2629 = vmatprep.subr.bf16.mxu0 %v3702_v2  ;;  %2711 = vmatprep.subr.bf16.mxu1 %v3705_v3  ;;  %v3795_v2 = vld [vmem:[%s5204_s1 + $0x4ac] ss:$48 sps:$4 sm:$0xff]   ;;  %v3790_v3 = vld [vmem:[%s5204_s1 + $0x4a0] ss:$48 sps:$4 sm:$0xff]  }
  0xf7   :  { %2630 = vmatpush1.bf16.msra.mxu0 %v3700_v4  ;;  %2712 = vmatpush1.bf16.msra.mxu1 %v3703_v6  ;;  %v3793_v4 = vld [vmem:[%s5204_s1 + $0x4a8] ss:$48 sps:$4 sm:$0xff]   ;;  %v3798_v6 = vld [vmem:[%s5204_s1 + $0x504] ss:$48 sps:$4 sm:$0xff]  }
  0xf8   :  { %2631 = vmatprep.subr.bf16.mxu0 %v3708_v7  ;;  %2713 = vmatprep.subr.bf16.mxu1 %v3711_v8  ;;  %v3801_v7 = vld [vmem:[%s5204_s1 + $0x50c] ss:$48 sps:$4 sm:$0xff]   ;;  %v3796_v8 = vld [vmem:[%s5204_s1 + $0x500] ss:$48 sps:$4 sm:$0xff]  }
  0xfb   :  { %2632 = vmatpush1.bf16.msra.mxu0 %v3706_v10  ;;  %2714 = vmatpush1.bf16.msra.mxu1 %v3709_v11  ;;  %v3799_v10 = vld [vmem:[%s5204_s1 + $0x508] ss:$48 sps:$4 sm:$0xff]   ;;  %v3804_v11 = vld [vmem:[%s5204_s1 + $0x564] ss:$48 sps:$4 sm:$0xff]  }
  0xfc   :  { %2633 = vmatprep.subr.bf16.mxu0 %v3714_v12  ;;  %2715 = vmatprep.subr.bf16.mxu1 %v3717_v13  ;;  %v3807_v12 = vld [vmem:[%s5204_s1 + $0x56c] ss:$48 sps:$4 sm:$0xff]   ;;  %v3802_v13 = vld [vmem:[%s5204_s1 + $0x560] ss:$48 sps:$4 sm:$0xff]  }
  0xff   :  { %2634 = vmatpush1.bf16.msra.mxu0 %v3712_v14  ;;  %2716 = vmatpush1.bf16.msra.mxu1 %v3715_v15  ;;  %v3805_v14 = vld [vmem:[%s5204_s1 + $0x568] ss:$48 sps:$4 sm:$0xff]   ;;  %v3810_v15 = vld [vmem:[%s5204_s1 + $0x5c4] ss:$48 sps:$4 sm:$0xff]  }
 0x100   :  { %2726 = vmatprep.subr.bf16.mxu0 %v3720_v16  ;;  %2808 = vmatprep.subr.bf16.mxu1 %v3723_v17  ;;  %v3813_v16 = vld [vmem:[%s5204_s1 + $0x5cc] ss:$48 sps:$4 sm:$0xff]   ;;  %v3808_v17 = vld [vmem:[%s5204_s1 + $0x5c0] ss:$48 sps:$4 sm:$0xff]  }
 0x102   :  { %2636 = vmatmul.mubr.bf16.vlgmr.msra.gmra.mrb[4].mxu0 %v4344_v9  ;;  %2718 = vmatmul.mubr.bf16.vlgmr.msra.gmra.mrb[4].mxu1 %v4344_v9 }
 0x103   :  { %2727 = vmatpush1.bf16.msra.mxu0 %v3718_v18  ;;  %2809 = vmatpush1.bf16.msra.mxu1 %v3721_v19  ;;  %v3811_v18 = vld [vmem:[%s5204_s1 + $0x5c8] ss:$48 sps:$4 sm:$0xff]   ;;  %v3816_v19 = vld [vmem:[%s5204_s1 + $0x624] ss:$48 sps:$4 sm:$0xff]  }
 0x104   :  { %2728 = vmatprep.subr.bf16.mxu0 %v3726_v20  ;;  %2810 = vmatprep.subr.bf16.mxu1 %v3729_v21  ;;  %v3819_v20 = vld [vmem:[%s5204_s1 + $0x62c] ss:$48 sps:$4 sm:$0xff]   ;;  %v3814_v21 = vld [vmem:[%s5204_s1 + $0x620] ss:$48 sps:$4 sm:$0xff]  }
 0x105   :  { %2758 = vmatprep.mubr.bf16.mxu0 %v4074_v48  ;;  %2840 = vmatprep.mubr.bf16.mxu1 %v4074_v48  ;;  %v3741_v48 = vld [vmem:[%s5204_s1 + $0x14c] ss:$48 sps:$4 sm:$0xff]  }
 0x107   :  { %2729 = vmatpush1.bf16.msra.mxu0 %v3724_v22  ;;  %2811 = vmatpush1.bf16.msra.mxu1 %v3727_v23  ;;  %v3817_v22 = vld [vmem:[%s5204_s1 + $0x628] ss:$48 sps:$4 sm:$0xff]   ;;  %v3822_v23 = vld [vmem:[%s5204_s1 + $0x684] ss:$48 sps:$4 sm:$0xff]  }
 0x108   :  { %2730 = vmatprep.subr.bf16.mxu0 %v3732_v24  ;;  %2812 = vmatprep.subr.bf16.mxu1 %v3735_v25  ;;  %v3825_v24 = vld [vmem:[%s5204_s1 + $0x68c] ss:$48 sps:$4 sm:$0xff]   ;;  %v3820_v25 = vld [vmem:[%s5204_s1 + $0x680] ss:$48 sps:$4 sm:$0xff]  }
 0x10b   :  { %2731 = vmatpush1.bf16.msra.mxu0 %v3730_v26  ;;  %2813 = vmatpush1.bf16.msra.mxu1 %v3733_v27  ;;  %v3823_v26 = vld [vmem:[%s5204_s1 + $0x688] ss:$48 sps:$4 sm:$0xff]   ;;  %v3828_v27 = vld [vmem:[%s5204_s1 + $0x6e4] ss:$48 sps:$4 sm:$0xff]  }
 0x10c   :  { %2732 = vmatprep.subr.bf16.mxu0 %v3738_v28  ;;  %2814 = vmatprep.subr.bf16.mxu1 %v3741_v48  ;;  %v404_v28 = vlaneseq  ;;  %v3826_v48 = vld [vmem:[%s5204_s1 + $0x6e0] ss:$48 sps:$4 sm:$0xff]  }
 0x10f   :  { %2733 = vmatpush1.bf16.msra.mxu0 %v3736_v29  ;;  %2815 = vmatpush1.bf16.msra.mxu1 %v3739_v31  ;;  %v3829_v29 = vld [vmem:[%s5204_s1 + $0x6e8] ss:$48 sps:$4 sm:$0xff]   ;;  %v3834_v31 = vld [vmem:[%s5204_s1 + $0x744] ss:$48 sps:$4 sm:$0xff]  }
 0x110   :  { %2734 = vmatprep.subr.bf16.mxu0 %v3744_v32  ;;  %2816 = vmatprep.subr.bf16.mxu1 %v3747_v33  ;;  %v4974_v32 = vshrl.u32 %v404_v28, 7  ;;  %v3832_v33 = vld [vmem:[%s5204_s1 + $0x740] ss:$48 sps:$4 sm:$0xff]  }
 0x111   :  { %v3886_v28 = vld [vmem:[%s5204_s1 + $0xaa0] ss:$48 sps:$4 sm:$0xff]  }
 0x113   :  { %2735 = vmatpush1.bf16.msra.mxu0 %v3742_v34  ;;  %2817 = vmatpush1.bf16.msra.mxu1 %v3745_v35  ;;  %v3835_v34 = vld [vmem:[%s5204_s1 + $0x748] ss:$48 sps:$4 sm:$0xff]   ;;  %v3840_v35 = vld [vmem:[%s5204_s1 + $0x7a4] ss:$48 sps:$4 sm:$0xff]  }
 0x114   :  { %2736 = vmatprep.subr.bf16.mxu0 %v3750_v36  ;;  %2818 = vmatprep.subr.bf16.mxu1 %v3753_v37  ;;  %v3843_v36 = vld [vmem:[%s5204_s1 + $0x7ac] ss:$48 sps:$4 sm:$0xff]   ;;  %v406_v37 = vsub.s32 0, %v4974_v32 }
 0x117   :  { %2737 = vmatpush1.bf16.msra.mxu0 %v3748_v38  ;;  %2819 = vmatpush1.bf16.msra.mxu1 %v3751_v39  ;;  %v414_v38 = vsub.s32 2, %v4974_v32  ;;  %v410_v39 = vsub.s32 1, %v4974_v32 }
 0x118   :  { %2738 = vmatprep.subr.bf16.mxu0 %v3756_v40  ;;  %2820 = vmatprep.subr.bf16.mxu1 %v3759_v41  ;;  %v3838_v40 = vld [vmem:[%s5204_s1 + $0x7a0] ss:$48 sps:$4 sm:$0xff]   ;;  %v3841_v41 = vld [vmem:[%s5204_s1 + $0x7a8] ss:$48 sps:$4 sm:$0xff]  }
 0x11b   :  { %2739 = vmatpush1.bf16.msra.mxu0 %v3754_v42  ;;  %2821 = vmatpush1.bf16.msra.mxu1 %v3757_v43  ;;  %v5000_v42 = vld [vmem:[%s5206_s2] sm:$0xff]  ;;  %v418_v43 = vsub.s32 3, %v4974_v32 }
 0x11c   :  { %2740 = vmatprep.subr.bf16.mxu0 %v3762_v44  ;;  %2822 = vmatprep.subr.bf16.mxu1 %v3765_v45  ;;  %v3846_v44 = vld [vmem:[%s5204_s1 + $0x804] ss:$48 sps:$4 sm:$0xff]   ;;  %v3849_v45 = vld [vmem:[%s5204_s1 + $0x80c] ss:$48 sps:$4 sm:$0xff]  }
 0x11f   :  { %2741 = vmatpush1.bf16.msra.mxu0 %v3760_v46  ;;  %2823 = vmatpush1.bf16.msra.mxu1 %v3763_v47  ;;  %v407_v46 = vrot.slane %v5000_v42, %v406_v37  ;;  %v415_v47 = vrot.slane %v5000_v42, %v414_v38 }
 0x120   :  { %2742 = vmatprep.subr.bf16.mxu0 %v3768_v49  ;;  %2824 = vmatprep.subr.bf16.mxu1 %v3771_v50  ;;  %v411_v49 = vrot.slane %v5000_v42, %v410_v39  ;;  %v419_v50 = vrot.slane %v5000_v42, %v418_v43 }
 0x123   :  { %2743 = vmatpush1.bf16.msra.mxu0 %v3766_v51  ;;  %2825 = vmatpush1.bf16.msra.mxu1 %v3769_v52  ;;  %v3844_v51 = vld [vmem:[%s5204_s1 + $0x800] ss:$48 sps:$4 sm:$0xff]   ;;  %v3847_v52 = vld [vmem:[%s5204_s1 + $0x808] ss:$48 sps:$4 sm:$0xff]  }
 0x124   :  { %2744 = vmatprep.subr.bf16.mxu0 %v3774_v53  ;;  %2826 = vmatprep.subr.bf16.mxu1 %v3777_v54  ;;  %v3852_v53 = vld [vmem:[%s5204_s1 + $0x864] ss:$48 sps:$4 sm:$0xff]   ;;  %v3855_v54 = vld [vmem:[%s5204_s1 + $0x86c] ss:$48 sps:$4 sm:$0xff]  }
 0x127   :  { %2745 = vmatpush1.bf16.msra.mxu0 %v3772_v55  ;;  %2827 = vmatpush1.bf16.msra.mxu1 %v3775_v56 }
 0x128   :  { %2746 = vmatprep.subr.bf16.mxu0 %v3780_v57  ;;  %2828 = vmatprep.subr.bf16.mxu1 %v3783_v58 }
 0x12b   :  { %2747 = vmatpush1.bf16.msra.mxu0 %v3778_v59  ;;  %2829 = vmatpush1.bf16.msra.mxu1 %v3781_v60 }
 0x12c   :  { %2748 = vmatprep.subr.bf16.mxu0 %v3786_v61  ;;  %2830 = vmatprep.subr.bf16.mxu1 %v3789_v62 }
 0x12f   :  { %2749 = vmatpush1.bf16.msra.mxu0 %v3784_v63  ;;  %2831 = vmatpush1.bf16.msra.mxu1 %v3787_v0 }
 0x130   :  { %2750 = vmatprep.subr.bf16.mxu0 %v3792_v1  ;;  %2832 = vmatprep.subr.bf16.mxu1 %v3795_v2  ;;  %v3850_v1 = vld [vmem:[%s5204_s1 + $0x860] ss:$48 sps:$4 sm:$0xff]   ;;  %v3853_v2 = vld [vmem:[%s5204_s1 + $0x868] ss:$48 sps:$4 sm:$0xff]  }
 0x133   :  { %2751 = vmatpush1.bf16.msra.mxu0 %v3790_v3  ;;  %2833 = vmatpush1.bf16.msra.mxu1 %v3793_v4 }
 0x134   :  { %2752 = vmatprep.subr.bf16.mxu0 %v3798_v6  ;;  %2834 = vmatprep.subr.bf16.mxu1 %v3801_v7  ;;  %v3858_v6 = vld [vmem:[%s5204_s1 + $0x8c4] ss:$48 sps:$4 sm:$0xff]   ;;  %v3861_v7 = vld [vmem:[%s5204_s1 + $0x8cc] ss:$48 sps:$4 sm:$0xff]  }
 0x137   :  { %2753 = vmatpush1.bf16.msra.mxu0 %v3796_v8  ;;  %2835 = vmatpush1.bf16.msra.mxu1 %v3799_v10  ;;  %v3856_v8 = vld [vmem:[%s5204_s1 + $0x8c0] ss:$48 sps:$4 sm:$0xff]   ;;  %v3859_v10 = vld [vmem:[%s5204_s1 + $0x8c8] ss:$48 sps:$4 sm:$0xff]  }
 0x138   :  { %2754 = vmatprep.subr.bf16.mxu0 %v3804_v11  ;;  %2836 = vmatprep.subr.bf16.mxu1 %v3807_v12  ;;  %v3864_v11 = vld [vmem:[%s5204_s1 + $0x924] ss:$48 sps:$4 sm:$0xff]   ;;  %v3867_v12 = vld [vmem:[%s5204_s1 + $0x92c] ss:$48 sps:$4 sm:$0xff]  }
 0x13b   :  { %2755 = vmatpush1.bf16.msra.mxu0 %v3802_v13  ;;  %2837 = vmatpush1.bf16.msra.mxu1 %v3805_v14  ;;  %v3862_v13 = vld [vmem:[%s5204_s1 + $0x920] ss:$48 sps:$4 sm:$0xff]   ;;  %v3865_v14 = vld [vmem:[%s5204_s1 + $0x928] ss:$48 sps:$4 sm:$0xff]  }
 0x13c   :  { %2756 = vmatprep.subr.bf16.mxu0 %v3810_v15  ;;  %2838 = vmatprep.subr.bf16.mxu1 %v3813_v16  ;;  %v3870_v15 = vld [vmem:[%s5204_s1 + $0x984] ss:$48 sps:$4 sm:$0xff]   ;;  %v3873_v16 = vld [vmem:[%s5204_s1 + $0x98c] ss:$48 sps:$4 sm:$0xff]  }
 0x13f   :  { %2757 = vmatpush1.bf16.msra.mxu0 %v3808_v17  ;;  %2839 = vmatpush1.bf16.msra.mxu1 %v3811_v18  ;;  %v3868_v17 = vld [vmem:[%s5204_s1 + $0x980] ss:$48 sps:$4 sm:$0xff]   ;;  %v3871_v18 = vld [vmem:[%s5204_s1 + $0x988] ss:$48 sps:$4 sm:$0xff]  }
 0x140   :  { %2767 = vmatprep.subr.bf16.mxu0 %v3816_v19  ;;  %2849 = vmatprep.subr.bf16.mxu1 %v3819_v20  ;;  %v3876_v19 = vld [vmem:[%s5204_s1 + $0x9e4] ss:$48 sps:$4 sm:$0xff]   ;;  %v3879_v20 = vld [vmem:[%s5204_s1 + $0x9ec] ss:$48 sps:$4 sm:$0xff]  }
 0x142   :  { %2759 = vmatmul.mubr.bf16.vlgmr.msra.gmra.mrb[8].mxu0 %v4138_v5  ;;  %2841 = vmatmul.mubr.bf16.vlgmr.msra.gmra.mrb[8].mxu1 %v4138_v5  ;;  %v3831_v5 = vld [vmem:[%s5204_s1 + $0x6ec] ss:$48 sps:$4 sm:$0xff]  }
 0x143   :  { %2768 = vmatpush1.bf16.msra.mxu0 %v3814_v21  ;;  %2850 = vmatpush1.bf16.msra.mxu1 %v3817_v22  ;;  %v3874_v21 = vld [vmem:[%s5204_s1 + $0x9e0] ss:$48 sps:$4 sm:$0xff]   ;;  %v3877_v22 = vld [vmem:[%s5204_s1 + $0x9e8] ss:$48 sps:$4 sm:$0xff]  }
 0x144   :  { %2769 = vmatprep.subr.bf16.mxu0 %v3822_v23  ;;  %2851 = vmatprep.subr.bf16.mxu1 %v3825_v24  ;;  %v3882_v23 = vld [vmem:[%s5204_s1 + $0xa44] ss:$48 sps:$4 sm:$0xff]   ;;  %v3885_v24 = vld [vmem:[%s5204_s1 + $0xa4c] ss:$48 sps:$4 sm:$0xff]  }
 0x145   :  { %2799 = vmatprep.mubr.bf16.mxu0 %v4218_v30  ;;  %2881 = vmatprep.mubr.bf16.mxu1 %v4218_v30  ;;  %v3837_v30 = vld [vmem:[%s5204_s1 + $0x74c] ss:$48 sps:$4 sm:$0xff]  }
 0x147   :  { %2770 = vmatpush1.bf16.msra.mxu0 %v3820_v25  ;;  %2852 = vmatpush1.bf16.msra.mxu1 %v3823_v26  ;;  %v3880_v25 = vld [vmem:[%s5204_s1 + $0xa40] ss:$48 sps:$4 sm:$0xff]   ;;  %v3883_v26 = vld [vmem:[%s5204_s1 + $0xa48] ss:$48 sps:$4 sm:$0xff]  }
 0x148   :  { %2771 = vmatprep.subr.bf16.mxu0 %v3828_v27  ;;  %2853 = vmatprep.subr.bf16.mxu1 %v3831_v5  ;;  %v3888_v27 = vld [vmem:[%s5204_s1 + $0xaa4] ss:$48 sps:$4 sm:$0xff]   ;;  %v3891_v5 = vld [vmem:[%s5204_s1 + $0xaac] ss:$48 sps:$4 sm:$0xff]  }
 0x14b   :  { %2772 = vmatpush1.bf16.msra.mxu0 %v3826_v48  ;;  %2854 = vmatpush1.bf16.msra.mxu1 %v3829_v29  ;;  %v3889_v48 = vld [vmem:[%s5204_s1 + $0xaa8] ss:$48 sps:$4 sm:$0xff]   ;;  %v3894_v29 = vld [vmem:[%s5204_s1 + $0xb04] ss:$48 sps:$4 sm:$0xff]  }
 0x14c   :  { %2773 = vmatprep.subr.bf16.mxu0 %v3834_v31  ;;  %2855 = vmatprep.subr.bf16.mxu1 %v3837_v30  ;;  %v3897_v31 = vld [vmem:[%s5204_s1 + $0xb0c] ss:$48 sps:$4 sm:$0xff]   ;;  %v3892_v30 = vld [vmem:[%s5204_s1 + $0xb00] ss:$48 sps:$4 sm:$0xff]  }
 0x14f   :  { %2774 = vmatpush1.bf16.msra.mxu0 %v3832_v33  ;;  %2856 = vmatpush1.bf16.msra.mxu1 %v3835_v34  ;;  %v3895_v33 = vld [vmem:[%s5204_s1 + $0xb08] ss:$48 sps:$4 sm:$0xff]   ;;  %v3900_v34 = vld [vmem:[%s5204_s1 + $0xb64] ss:$48 sps:$4 sm:$0xff]  }
 0x150   :  { %2775 = vmatprep.subr.bf16.mxu0 %v3840_v35  ;;  %2857 = vmatprep.subr.bf16.mxu1 %v3843_v36  ;;  %v3903_v35 = vld [vmem:[%s5204_s1 + $0xb6c] ss:$48 sps:$4 sm:$0xff]   ;;  %v3898_v36 = vld [vmem:[%s5204_s1 + $0xb60] ss:$48 sps:$4 sm:$0xff]  }
 0x153   :  { %2776 = vmatpush1.bf16.msra.mxu0 %v3838_v40  ;;  %2858 = vmatpush1.bf16.msra.mxu1 %v3841_v41  ;;  %v3901_v40 = vld [vmem:[%s5204_s1 + $0xb68] ss:$48 sps:$4 sm:$0xff]   ;;  %v3906_v41 = vld [vmem:[%s5204_s1 + $0xbc4] ss:$48 sps:$4 sm:$0xff]  }
 0x154   :  { %2777 = vmatprep.subr.bf16.mxu0 %v3846_v44  ;;  %2859 = vmatprep.subr.bf16.mxu1 %v3849_v45  ;;  %v3909_v44 = vld [vmem:[%s5204_s1 + $0xbcc] ss:$48 sps:$4 sm:$0xff]   ;;  %v3904_v45 = vld [vmem:[%s5204_s1 + $0xbc0] ss:$48 sps:$4 sm:$0xff]  }
 0x155   :  { %v2473_v55 = vpop.f32.mrb[0].mxu0  ;;  %v2555_v56 = vpop.f32.mrb[0].mxu1 }
 0x156   :  { %v3294_v57 = vadd.f32 %v2473_v55, %v407_v46  ;;  %v3296_v58 = vadd.f32 %v2555_v56, %v415_v47  ;;  %v2475_v59 = vpop.f32.mrb[1].mxu0  ;;  %v2557_v60 = vpop.f32.mrb[1].mxu1  ;;  %v3907_v46 = vld [vmem:[%s5204_s1 + $0xbc8] ss:$48 sps:$4 sm:$0xff]   ;;  %v422_v47 = vsub.s32 4, %v4974_v32 }
 0x157   :  { %v3295_v61 = vadd.f32 %v2475_v59, %v411_v49  ;;  %v3297_v62 = vadd.f32 %v2557_v60, %v419_v50  ;;  %v2477_v63 = vpop.f32.mrb[2].mxu0  ;;  %v2559_v0 = vpop.f32.mrb[2].mxu1  ;;  %2778 = vmatpush1.bf16.msra.mxu0 %v3844_v51  ;;  %2860 = vmatpush1.bf16.msra.mxu1 %v3847_v52  ;;  %v430_v49 = vsub.s32 6, %v4974_v32  ;;  %v426_v50 = vsub.s32 5, %v4974_v32 }
 0x158   :  { %2890 = vst [vmem:[%s5207_s3] sm:$0xff] %v3294_v57  ;;  %2892 = vst [vmem:[%s5207_s3 + $0x10] sm:$0xff] %v3296_v58  ;;  %v2478_v3 = vpop.f32.mrb[3].mxu0  ;;  %v2560_v4 = vpop.f32.mrb[3].mxu1  ;;  %2779 = vmatprep.subr.bf16.mxu0 %v3852_v53  ;;  %2861 = vmatprep.subr.bf16.mxu1 %v3855_v54  ;;  %v434_v51 = vsub.s32 7, %v4974_v32  ;;  %v423_v52 = vrot.slane %v5000_v42, %v422_v47 }
 0x159   :  { %2891 = vst [vmem:[%s5207_s3 + $0x8] sm:$0xff] %v3295_v61  ;;  %2893 = vst [vmem:[%s5207_s3 + $0x18] sm:$0xff] %v3297_v62  ;;  %v431_v53 = vrot.slane %v5000_v42, %v430_v49  ;;  %v427_v54 = vrot.slane %v5000_v42, %v426_v50 }
 0x15a   :  { %v435_v55 = vrot.slane %v5000_v42, %v434_v51 }
 0x15b   :  { %2780 = vmatpush1.bf16.msra.mxu0 %v3850_v1  ;;  %2862 = vmatpush1.bf16.msra.mxu1 %v3853_v2  ;;  %v401_v2 = vld [vmem:[%s5206_s2 + $0x8] sm:$0xf] }
 0x15c   :  { %2781 = vmatprep.subr.bf16.mxu0 %v3858_v6  ;;  %2863 = vmatprep.subr.bf16.mxu1 %v3861_v7  ;;  %v439_v3 = vrot.slane %v401_v2, %v406_v37  ;;  %v447_v4 = vrot.slane %v401_v2, %v414_v38  ;;  %v443_v6 = vrot.slane %v401_v2, %v410_v39 }
 0x15d   :  { %v451_v7 = vrot.slane %v401_v2, %v418_v43 }
 0x15f   :  { %2782 = vmatpush1.bf16.msra.mxu0 %v3856_v8  ;;  %2864 = vmatpush1.bf16.msra.mxu1 %v3859_v10 }
 0x160   :  { %2783 = vmatprep.subr.bf16.mxu0 %v3864_v11  ;;  %2865 = vmatprep.subr.bf16.mxu1 %v3867_v12 }
 0x163   :  { %2784 = vmatpush1.bf16.msra.mxu0 %v3862_v13  ;;  %2866 = vmatpush1.bf16.msra.mxu1 %v3865_v14 }
 0x164   :  { %2785 = vmatprep.subr.bf16.mxu0 %v3870_v15  ;;  %2867 = vmatprep.subr.bf16.mxu1 %v3873_v16 }
 0x167   :  { %2786 = vmatpush1.bf16.msra.mxu0 %v3868_v17  ;;  %2868 = vmatpush1.bf16.msra.mxu1 %v3871_v18 }
 0x168   :  { %2787 = vmatprep.subr.bf16.mxu0 %v3876_v19  ;;  %2869 = vmatprep.subr.bf16.mxu1 %v3879_v20 }
 0x16b   :  { %2788 = vmatpush1.bf16.msra.mxu0 %v3874_v21  ;;  %2870 = vmatpush1.bf16.msra.mxu1 %v3877_v22 }
 0x16c   :  { %2789 = vmatprep.subr.bf16.mxu0 %v3882_v23  ;;  %2871 = vmatprep.subr.bf16.mxu1 %v3885_v24 }
 0x16f   :  { %2790 = vmatpush1.bf16.msra.mxu0 %v3880_v25  ;;  %2872 = vmatpush1.bf16.msra.mxu1 %v3883_v26 }
 0x170   :  { %2791 = vmatprep.subr.bf16.mxu0 %v3888_v27  ;;  %2873 = vmatprep.subr.bf16.mxu1 %v3891_v5 }
 0x173   :  { %2792 = vmatpush1.bf16.msra.mxu0 %v3886_v28  ;;  %2874 = vmatpush1.bf16.msra.mxu1 %v3889_v48 }
 0x174   :  { %2793 = vmatprep.subr.bf16.mxu0 %v3894_v29  ;;  %2875 = vmatprep.subr.bf16.mxu1 %v3897_v31 }
 0x177   :  { %2794 = vmatpush1.bf16.msra.mxu0 %v3892_v30  ;;  %2876 = vmatpush1.bf16.msra.mxu1 %v3895_v33 }
 0x178   :  { %2795 = vmatprep.subr.bf16.mxu0 %v3900_v34  ;;  %2877 = vmatprep.subr.bf16.mxu1 %v3903_v35 }
 0x17b   :  { %2796 = vmatpush1.bf16.msra.mxu0 %v3898_v36  ;;  %2878 = vmatpush1.bf16.msra.mxu1 %v3901_v40 }
 0x17c   :  { %2797 = vmatprep.subr.bf16.mxu0 %v3906_v41  ;;  %2879 = vmatprep.subr.bf16.mxu1 %v3909_v44 }
 0x17f   :  { %2798 = vmatpush1.bf16.msra.mxu0 %v3904_v45  ;;  %2880 = vmatpush1.bf16.msra.mxu1 %v3907_v46 }
 0x182   :  { %2800 = vmatmul.mubr.bf16.vlgmr.msra.gmra.mrb[8].mxu0 %v4344_v9  ;;  %2882 = vmatmul.mubr.bf16.vlgmr.msra.gmra.mrb[8].mxu1 %v4344_v9 }
 0x1d5   :  { %v2637_v56 = vpop.f32.mrb[4].mxu0  ;;  %v2719_v57 = vpop.f32.mrb[4].mxu1 }
 0x1d6   :  { %v3298_v58 = vadd.f32 %v2637_v56, %v423_v52  ;;  %v3300_v9 = vadd.f32 %v2719_v57, %v431_v53  ;;  %v2639_v59 = vpop.f32.mrb[5].mxu0  ;;  %v2721_v60 = vpop.f32.mrb[5].mxu1 }
 0x1d7   :  { %v3299_v61 = vadd.f32 %v2639_v59, %v427_v54  ;;  %v3301_v62 = vadd.f32 %v2721_v60, %v435_v55  ;;  %v2641_v63 = vpop.f32.mrb[6].mxu0  ;;  %v2723_v0 = vpop.f32.mrb[6].mxu1 }
 0x1d8   :  { %2894 = vst [vmem:[%s5207_s3 + $0x20] sm:$0xff] %v3298_v58  ;;  %2896 = vst [vmem:[%s5207_s3 + $0x30] sm:$0xff] %v3300_v9  ;;  %v2642_v1 = vpop.f32.mrb[7].mxu0  ;;  %v2724_v42 = vpop.f32.mrb[7].mxu1 }
 0x1d9   :  { %2895 = vst [vmem:[%s5207_s3 + $0x28] sm:$0xff] %v3299_v61  ;;  %2897 = vst [vmem:[%s5207_s3 + $0x38] sm:$0xff] %v3301_v62 }
 0x255   :  { %v2801_v8 = vpop.f32.mrb[8].mxu0  ;;  %v2883_v10 = vpop.f32.mrb[8].mxu1 }
 0x256   :  { %v3302_v11 = vadd.f32 %v2801_v8, %v439_v3  ;;  %v3304_v12 = vadd.f32 %v2883_v10, %v447_v4  ;;  %v2803_v13 = vpop.f32.mrb[9].mxu0  ;;  %v2885_v14 = vpop.f32.mrb[9].mxu1 }
 0x257   :  { %v3303_v15 = vadd.f32 %v2803_v13, %v443_v6  ;;  %v3305_v16 = vadd.f32 %v2885_v14, %v451_v7  ;;  %v2805_v17 = vpop.f32.mrb[10].mxu0  ;;  %v2887_v18 = vpop.f32.mrb[10].mxu1 }
 0x258   :  { %2898 = vst [vmem:[%s5207_s3 + $0x40] sm:$0xff] %v3302_v11  ;;  %2900 = vst [vmem:[%s5207_s3 + $0x50] sm:$0xff] %v3304_v12  ;;  %v2806_v32 = vpop.f32.mrb[11].mxu0  ;;  %v2888_v37 = vpop.f32.mrb[11].mxu1 }
 0x259   :  { %2899 = vst [vmem:[%s5207_s3 + $0x48] sm:$0xff] %v3303_v15  ;;  %2901 = vst [vmem:[%s5207_s3 + $0x58] sm:$0xff] %v3305_v16 }

</bundles_post_ra>
